<compile_context>
chip_gen: v7x
topology: tpu7x:2x2x1
jax: 0.10.0
libtpu: 0.0.40
codegen_flags: <defaults>
</compile_context>

<pallas_src>
import functools

import jax
import jax.numpy as jnp
from jax import lax
from jax.experimental import pallas as pl
from jax.experimental.pallas import tpu as pltpu

# ----------------------------- small synthetic config -----------------------
B = 2              # batch
IMG = 32           # image size  (real BLIP: 384)
PATCH = 16         # patch size
C_IN = 3
D = 128            # hidden width, vision == text (real BLIP base: 768); 128 so
                   # output tiles are lane-dense on TPU
HEADS = 4
DH = D // HEADS
MLP = 4 * D
VIT_DEPTH = 2      # (real BLIP base: 12)
TXT_LAYERS = 2     # (real BLIP base: 12)
VOCAB = 1000       # real vocab size (real BLIP: 30524)
VPAD = 1024        # vocab padded to a multiple of 128 for the LM-head matmul
VTILE = 512        # vocab tile for fused LM-head + CE (use 1024-2048 at real vocab)
SEQ = 8            # text sequence length (real BLIP: up to 40)
PAD_ID = 0
BOS_ID = 1
PROMPT_LEN = 4     # len(tokenizer('a picture of ').input_ids) - 1
NEG = -1e9
VMEM_LIMIT = 48 * 1024 * 1024   # explicit scoped-VMEM limit (under v7x 64 MiB physical)

assert VPAD % VTILE == 0 and VOCAB <= VPAD and D % HEADS == 0


# ----------------------------- in-kernel helpers -----------------------------
def _ln(x, g, b, eps):
    mu = jnp.mean(x, axis=-1, keepdims=True)
    xc = x - mu
    var = jnp.mean(xc * xc, axis=-1, keepdims=True)
    return xc * lax.rsqrt(var + eps) * g + b


def _gelu(y):
    # exact erf GELU (matches nn.GELU / BERT). On v5e a tanh approximation
    # would move this to the EUP, but exactness vs the reference is kept.
    return 0.5 * y * (1.0 + lax.erf(y * 0.7071067811865475))


def _mha_into(o_sc, q, k, v, mask_add, scale):
    """q: (Sq, D), k/v: (Sk, D) f32. Writes (Sq, D) f32 attention output into
    the VMEM scratch ref o_sc (per-head slice stores; no concat relayout).
    All MXU matmuls take bf16 operands with f32 accumulation."""
    for h in range(HEADS):
        lo, hi = h * DH, (h + 1) * DH
        qh = q[:, lo:hi].astype(jnp.bfloat16)
        kh = k[:, lo:hi].astype(jnp.bfloat16)
        vh = v[:, lo:hi].astype(jnp.bfloat16)
        s = lax.dot_general(qh, kh, (((1,), (1,)), ((), ())),
                            preferred_element_type=jnp.float32) * scale
        if mask_add is not None:
            s = s + mask_add
        s = s - jnp.max(s, axis=-1, keepdims=True)
        p = jnp.exp(s)
        p = p * pl.reciprocal(jnp.sum(p, axis=-1, keepdims=True), approx=True)
        o_sc[:, lo:hi] = jnp.dot(p.astype(jnp.bfloat16), vh,
                                 preferred_element_type=jnp.float32)


# ----------------------------- Pallas kernels --------------------------------
def _linear_kernel(x_ref, w_ref, b_ref, o_ref):
    o_ref[...] = jnp.dot(x_ref[...].astype(jnp.bfloat16), w_ref[...],
                         preferred_element_type=jnp.float32) + b_ref[...]


def pallas_linear(x, w, b):
    """x: (M, K) f32, w: (K, N) bf16, b: (1, N) f32 -> (M, N) f32 (single block).
    Used only for the (tiny) patch-embedding matmul."""
    M, _ = x.shape
    N = w.shape[1]
    return pl.pallas_call(
        _linear_kernel,
        out_shape=jax.ShapeDtypeStruct((M, N), jnp.float32),
        compiler_params=pltpu.CompilerParams(vmem_limit_bytes=VMEM_LIMIT),
    )(x, w, b)


# --- ViT: all blocks + final LN in one pallas_call, grid=(B, L) ---------------
def _vit_stack_kernel(x_ref, ln1_ref, qkv_w_ref, qkv_b_ref, proj_w_ref, proj_b_ref,
                      ln2_ref, fc1_w_ref, fc1_b_ref, fc2_w_ref, fc2_b_ref,
                      fnorm_ref, o_ref, x_sc, attn_sc):
    l = pl.program_id(1)

    @pl.when(l == 0)
    def _():
        x_sc[...] = x_ref[0]                       # load residual once per batch elt

    x = x_sc[...]                                  # (S, D) f32 residual (VMEM-resident)
    ln1 = ln1_ref[0]
    h = _ln(x, ln1[0:1], ln1[1:2], 1e-6)
    qkv = jnp.dot(h.astype(jnp.bfloat16), qkv_w_ref[0],
                  preferred_element_type=jnp.float32) + qkv_b_ref[0]
    _mha_into(attn_sc, qkv[:, :D], qkv[:, D:2 * D], qkv[:, 2 * D:],
              None, DH ** -0.5)                    # ViT: no attention mask
    o = jnp.dot(attn_sc[...].astype(jnp.bfloat16), proj_w_ref[0],
                preferred_element_type=jnp.float32) + proj_b_ref[0]
    x = x + o
    ln2 = ln2_ref[0]
    h = _ln(x, ln2[0:1], ln2[1:2], 1e-6)
    h = _gelu(jnp.dot(h.astype(jnp.bfloat16), fc1_w_ref[0],
                      preferred_element_type=jnp.float32) + fc1_b_ref[0])
    h = jnp.dot(h.astype(jnp.bfloat16), fc2_w_ref[0],
                preferred_element_type=jnp.float32) + fc2_b_ref[0]
    x_sc[...] = x + h

    @pl.when(l == pl.num_programs(1) - 1)
    def _():                                       # fused final ViT LayerNorm
        fn = fnorm_ref[...]
        o_ref[0] = _ln(x_sc[...], fn[0:1], fn[1:2], 1e-6)


def vit_stack(x, p):
    Bb, S, _ = x.shape
    wnames = ["ln1", "qkv_w", "qkv_b", "proj_w", "proj_b",
              "ln2", "fc1_w", "fc1_b", "fc2_w", "fc2_b"]
    weights = [p[n] for n in wnames]
    L = p["qkv_w"].shape[0]

    def stacked_spec(w):
        shp = (1,) + w.shape[1:]
        return pl.BlockSpec(shp, lambda b, l: (l,) + (0,) * (len(shp) - 1))

    in_specs = [pl.BlockSpec((1, S, D), lambda b, l: (b, 0, 0))]
    in_specs += [stacked_spec(w) for w in weights]
    in_specs += [pl.BlockSpec(p["norm"].shape, lambda b, l: (0, 0))]
    return pl.pallas_call(
        _vit_stack_kernel,
        out_shape=jax.ShapeDtypeStruct((Bb, S, D), jnp.float32),
        grid=(Bb, L),
        in_specs=in_specs,
        out_specs=pl.BlockSpec((1, S, D), lambda b, l: (b, 0, 0)),
        scratch_shapes=[pltpu.VMEM((S, D), jnp.float32),     # residual stream
                        pltpu.VMEM((S, D), jnp.float32)],    # attention output
        compiler_params=pltpu.CompilerParams(
            dimension_semantics=("parallel", "arbitrary"),
            vmem_limit_bytes=VMEM_LIMIT),
    )(x, *weights, p["norm"])


# --- BERT decoder: all layers (+embedding LN) in one pallas_call, grid=(B, L) --
def _bert_stack_kernel(lens_ref, x_ref, enc_ref, embln_ref,
                       sqkv_w_ref, sqkv_b_ref, ao_w_ref, ao_b_ref, aln_ref,
                       cq_w_ref, cq_b_ref, ckv_w_ref, ckv_b_ref, co_w_ref, co_b_ref,
                       cln_ref, i_w_ref, i_b_ref, ow_ref, ob_ref, fln_ref,
                       o_ref, x_sc, attn_sc):
    b = pl.program_id(0)
    l = pl.program_id(1)

    @pl.when(l == 0)
    def _():                                       # fused embedding LayerNorm
        eln = embln_ref[...]
        x_sc[...] = _ln(x_ref[0], eln[0:1], eln[1:2], 1e-12)

    x = x_sc[...]                                  # (S, D) f32
    S = x.shape[0]

    # causal + padding mask from SMEM valid-length scalar (no HBM mask DMA).
    # Assumes contiguous tokenizer padding (1...1 0...0), as produced by
    # BertTokenizer(padding='longest').
    length = lens_ref[b]
    row = lax.broadcasted_iota(jnp.int32, (S, S), 0)
    col = lax.broadcasted_iota(jnp.int32, (S, S), 1)
    keep = jnp.logical_and(col <= row, col < length)
    mask_add = jnp.where(keep, 0.0, NEG)

    # self-attention
    qkv = jnp.dot(x.astype(jnp.bfloat16), sqkv_w_ref[0],
                  preferred_element_type=jnp.float32) + sqkv_b_ref[0]
    _mha_into(attn_sc, qkv[:, :D], qkv[:, D:2 * D], qkv[:, 2 * D:],
              mask_add, DH ** -0.5)
    o = jnp.dot(attn_sc[...].astype(jnp.bfloat16), ao_w_ref[0],
                preferred_element_type=jnp.float32) + ao_b_ref[0]
    aln = aln_ref[0]
    x = _ln(x + o, aln[0:1], aln[1:2], 1e-12)

    # cross-attention to image embeddings (image_atts all ones -> no mask);
    # enc block is bf16 and is the direct MXU operand of the KV projection.
    cq = jnp.dot(x.astype(jnp.bfloat16), cq_w_ref[0],
                 preferred_element_type=jnp.float32) + cq_b_ref[0]
    ckv = jnp.dot(enc_ref[0], ckv_w_ref[0],
                  preferred_element_type=jnp.float32) + ckv_b_ref[0]
    _mha_into(attn_sc, cq, ckv[:, :D], ckv[:, D:], None, DH ** -0.5)
    o = jnp.dot(attn_sc[...].astype(jnp.bfloat16), co_w_ref[0],
                preferred_element_type=jnp.float32) + co_b_ref[0]
    cln = cln_ref[0]
    x = _ln(x + o, cln[0:1], cln[1:2], 1e-12)

    # feed-forward
    h = _gelu(jnp.dot(x.astype(jnp.bfloat16), i_w_ref[0],
                      preferred_element_type=jnp.float32) + i_b_ref[0])
    h = jnp.dot(h.astype(jnp.bfloat16), ow_ref[0],
                preferred_element_type=jnp.float32) + ob_ref[0]
    fln = fln_ref[0]
    x_sc[...] = _ln(x + h, fln[0:1], fln[1:2], 1e-12)

    @pl.when(l == pl.num_programs(1) - 1)
    def _():
        o_ref[0] = x_sc[...]                       # single HBM write per batch elt


def bert_stack(x, enc_bf16, lengths, p):
    Bb, S, _ = x.shape
    Se = enc_bf16.shape[1]
    wnames = ["sqkv_w", "sqkv_b", "ao_w", "ao_b", "aln",
              "cq_w", "cq_b", "ckv_w", "ckv_b", "co_w", "co_b", "cln",
              "i_w", "i_b", "o_w", "o_b", "fln"]
    weights = [p[n] for n in wnames]
    L = p["sqkv_w"].shape[0]

    def stacked_spec(w):
        shp = (1,) + w.shape[1:]
        return pl.BlockSpec(shp, lambda b, l, lens: (l,) + (0,) * (len(shp) - 1))

    in_specs = [pl.BlockSpec((1, S, D), lambda b, l, lens: (b, 0, 0)),
                pl.BlockSpec((1, Se, D), lambda b, l, lens: (b, 0, 0)),
                pl.BlockSpec(p["emb_ln"].shape, lambda b, l, lens: (0, 0))]
    in_specs += [stacked_spec(w) for w in weights]
    return pl.pallas_call(
        _bert_stack_kernel,
        out_shape=jax.ShapeDtypeStruct((Bb, S, D), jnp.float32),
        grid_spec=pltpu.PrefetchScalarGridSpec(
            num_scalar_prefetch=1,
            grid=(Bb, L),
            in_specs=in_specs,
            out_specs=pl.BlockSpec((1, S, D), lambda b, l, lens: (b, 0, 0)),
            scratch_shapes=[pltpu.VMEM((S, D), jnp.float32),   # residual stream
                            pltpu.VMEM((S, D), jnp.float32)]), # attention output
        compiler_params=pltpu.CompilerParams(
            dimension_semantics=("parallel", "arbitrary"),
            vmem_limit_bytes=VMEM_LIMIT),
    )(lengths, x, enc_bf16, p["emb_ln"], *weights)


# --- fused LM head (transform + GELU + LN + tied decoder) + masked CE ---------
def _lmhead_ce_kernel(x_ref, lab_ref, tr_w_ref, tr_b_ref, trln_ref,
                      dec_w_ref, dec_b_ref, loss_ref,
                      h_sc, m_sc, l_sc, pick_sc, *, tv, vocab):
    k = pl.program_id(0)

    @pl.when(k == 0)
    def _():
        trln = trln_ref[...]
        h = _gelu(jnp.dot(x_ref[...].astype(jnp.bfloat16), tr_w_ref[...],
                          preferred_element_type=jnp.float32) + tr_b_ref[...])
        # cache transformed hidden once, already in bf16 (MXU operand dtype)
        h_sc[...] = _ln(h, trln[0:1], trln[1:2], 1e-12).astype(jnp.bfloat16)
        m_sc[...] = jnp.full(m_sc.shape, -1e30, jnp.float32)
        l_sc[...] = jnp.zeros(l_sc.shape, jnp.float32)
        pick_sc[...] = jnp.zeros(pick_sc.shape, jnp.float32)

    # logits for this vocab tile only -- never written to HBM
    logits = jnp.dot(h_sc[...], dec_w_ref[...],
                     preferred_element_type=jnp.float32) + dec_b_ref[...]   # (N, tv)
    labels = lab_ref[...]                                                   # (N, 1)
    col = lax.broadcasted_iota(jnp.int32, logits.shape, 1) + k * tv
    logits = jnp.where(col < vocab, logits, NEG)   # mask padded vocab columns
    onehot = (col == labels).astype(jnp.float32)
    pick_sc[...] = pick_sc[...] + jnp.sum(logits * onehot, axis=-1, keepdims=True)

    tile_max = jnp.max(logits, axis=-1, keepdims=True)
    m_new = jnp.maximum(m_sc[...], tile_max)
    l_sc[...] = (l_sc[...] * jnp.exp(m_sc[...] - m_new)
                 + jnp.sum(jnp.exp(logits - m_new), axis=-1, keepdims=True))
    m_sc[...] = m_new

    @pl.when(k == pl.num_programs(0) - 1)
    def _():
        lse = m_sc[...] + jnp.log(l_sc[...])                     # (N, 1)
        valid = (lab_ref[...] != -100).astype(jnp.float32)       # (N, 1)
        per_row = (lse - pick_sc[...]) * valid
        loss_sum = jnp.sum(per_row, axis=(0, 1), keepdims=True)  # (1, 1)
        cnt = jnp.sum(valid, axis=(0, 1), keepdims=True)
        loss_ref[...] = loss_sum / jnp.maximum(cnt, 1.0)


def pallas_lmhead_ce(x, labels, p):
    """Fused LM transform + tied decoder matmul + masked CE (ignore_index=-100)."""
    N, Dm = x.shape
    Vp = p["dec_w"].shape[1]
    grid = (Vp // VTILE,)
    loss = pl.pallas_call(
        functools.partial(_lmhead_ce_kernel, tv=VTILE, vocab=VOCAB),
        out_shape=jax.ShapeDtypeStruct((1, 1), jnp.float32),
        grid=grid,
        in_specs=[
            pl.BlockSpec((N, Dm), lambda k: (0, 0)),
            pl.BlockSpec((N, 1), lambda k: (0, 0)),
            pl.BlockSpec((Dm, Dm), lambda k: (0, 0)),
            pl.BlockSpec((1, Dm), lambda k: (0, 0)),
            pl.BlockSpec((2, Dm), lambda k: (0, 0)),
            pl.BlockSpec((Dm, VTILE), lambda k: (0, k)),
            pl.BlockSpec((1, VTILE), lambda k: (0, k)),
        ],
        out_specs=pl.BlockSpec((1, 1), lambda k: (0, 0)),
        scratch_shapes=[pltpu.VMEM((N, Dm), jnp.bfloat16),
                        pltpu.VMEM((N, 1), jnp.float32),
                        pltpu.VMEM((N, 1), jnp.float32),
                        pltpu.VMEM((N, 1), jnp.float32)],
        compiler_params=pltpu.CompilerParams(
            dimension_semantics=("arbitrary",),
            vmem_limit_bytes=VMEM_LIMIT),
    )(x, labels, p["tr_w"], p["tr_b"], p["tr_ln"], p["dec_w"], p["dec_b"])
    return loss[0, 0]


# ----------------------------- model composition -----------------------------
def visual_encoder(image, p):
    # Conv2d(C, D, kernel=PATCH, stride=PATCH) == patchify + matmul.
    Bb = image.shape[0]
    nh = IMG // PATCH
    patches = image.reshape(Bb, C_IN, nh, PATCH, nh, PATCH)
    patches = patches.transpose(0, 2, 4, 1, 3, 5).reshape(Bb * nh * nh,
                                                          C_IN * PATCH * PATCH)
    x = pallas_linear(patches, p["patch_w"], p["patch_b"]).reshape(Bb, nh * nh, D)
    cls = jnp.broadcast_to(p["cls_token"], (Bb, 1, D))
    x = jnp.concatenate([cls, x], axis=1)
    x = x + p["pos_embed"]
    # all ViT blocks + final LN in one fused, layer-pipelined pallas_call
    return vit_stack(x, p)


def text_decoder(input_ids, lengths, image_embeds, p):
    Bb, S = input_ids.shape
    we = jnp.take(p["word_emb"], input_ids, axis=0).astype(jnp.float32)  # glue gather
    x = we + p["pos_emb"][None, :S]
    # embedding LN is fused into the first BERT grid step; enc fed as bf16
    return bert_stack(x, image_embeds.astype(jnp.bfloat16), lengths, p)


def blip_decoder_forward(image, input_ids, attention_mask, params):
    image_embeds = visual_encoder(image, params["vit"])
    # text.input_ids[:, 0] = bos_token_id
    input_ids = input_ids.at[:, 0].set(BOS_ID)
    # decoder_targets: ignore pads and the prompt tokens
    decoder_targets = jnp.where(input_ids == PAD_ID, -100, input_ids)
    decoder_targets = decoder_targets.at[:, :PROMPT_LEN].set(-100)
    # per-example valid length (tokenizer padding is contiguous) -> SMEM prefetch
    lengths = jnp.sum(attention_mask.astype(jnp.int32), axis=1).astype(jnp.int32)
    hidden = text_decoder(input_ids, lengths, image_embeds, params["txt"])
    # causal LM shift: position t predicts token t+1
    shifted_hidden = hidden[:, :-1, :].reshape(-1, D)
    shifted_labels = decoder_targets[:, 1:].reshape(-1, 1).astype(jnp.int32)
    # TODO(synk): BLIP's BertLMHeadModel uses CrossEntropyLoss(label_smoothing=0.1);
    # plain (unsmoothed) masked CE is computed here.
    return pallas_lmhead_ce(shifted_hidden, shifted_labels, params["txt"])


# ----------------------------- deterministic params --------------------------
def init_params(key):
    keys = iter(jax.random.split(key, 512))

    def dense(din, dout):
        w = (jax.random.normal(next(keys), (din, dout), jnp.float32) * 0.02
             ).astype(jnp.bfloat16)
        b = jnp.zeros((1, dout), jnp.float32)
        return w, b

    def ln(d):
        return jnp.stack([jnp.ones((d,), jnp.float32), jnp.zeros((d,), jnp.float32)])

    def stack_layers(make_layer, n):
        layers = [make_layer() for _ in range(n)]
        return jax.tree_util.tree_map(lambda *xs: jnp.stack(xs, axis=0), *layers)

    def vit_block_params():
        qkv_w, qkv_b = dense(D, 3 * D)
        proj_w, proj_b = dense(D, D)
        fc1_w, fc1_b = dense(D, MLP)
        fc2_w, fc2_b = dense(MLP, D)
        return dict(ln1=ln(D), qkv_w=qkv_w, qkv_b=qkv_b,
                    proj_w=proj_w, proj_b=proj_b, ln2=ln(D),
                    fc1_w=fc1_w, fc1_b=fc1_b, fc2_w=fc2_w, fc2_b=fc2_b)

    patch_w, patch_b = dense(C_IN * PATCH * PATCH, D)
    nh = IMG // PATCH
    vit = dict(patch_w=patch_w, patch_b=patch_b,
               cls_token=jax.random.normal(next(keys), (1, 1, D), jnp.float32) * 0.02,
               pos_embed=jax.random.normal(next(keys), (1, nh * nh + 1, D),
                                           jnp.float32) * 0.02,
               norm=ln(D),
               **stack_layers(vit_block_params, VIT_DEPTH))

    def bert_layer_params():
        sqkv_w, sqkv_b = dense(D, 3 * D)     # fused self q/k/v
        ao_w, ao_b = dense(D, D)
        cq_w, cq_b = dense(D, D)
        ckv_w, ckv_b = dense(D, 2 * D)       # fused cross k/v
        co_w, co_b = dense(D, D)
        i_w, i_b = dense(D, MLP)
        o_w, o_b = dense(MLP, D)
        return dict(sqkv_w=sqkv_w, sqkv_b=sqkv_b, ao_w=ao_w, ao_b=ao_b, aln=ln(D),
                    cq_w=cq_w, cq_b=cq_b, ckv_w=ckv_w, ckv_b=ckv_b,
                    co_w=co_w, co_b=co_b, cln=ln(D),
                    i_w=i_w, i_b=i_b, o_w=o_w, o_b=o_b, fln=ln(D))

    word_emb = (jax.random.normal(next(keys), (VOCAB, D), jnp.float32) * 0.02
                ).astype(jnp.bfloat16)
    pos_emb = jax.random.normal(next(keys), (SEQ, D), jnp.float32) * 0.02
    tr_w, tr_b = dense(D, D)
    # tied LM head (as in BERT), padded to VPAD columns; padded columns are
    # masked to -inf inside the CE kernel.
    dec_w = jnp.zeros((D, VPAD), jnp.bfloat16).at[:, :VOCAB].set(word_emb.T)
    dec_b = jnp.zeros((1, VPAD), jnp.float32)
    txt = dict(word_emb=word_emb, pos_emb=pos_emb, emb_ln=ln(D),
               tr_w=tr_w, tr_b=tr_b, tr_ln=ln(D),
               dec_w=dec_w, dec_b=dec_b,
               **stack_layers(bert_layer_params, TXT_LAYERS))
    return dict(vit=vit, txt=txt)


# ----------------------------- main -------------------------------------------
if __name__ == "__main__":
    key = jax.random.PRNGKey(0)
    pkey, ikey, tkey = jax.random.split(key, 3)
    params = init_params(pkey)

    image = jax.random.normal(ikey, (B, C_IN, IMG, IMG), jnp.float32)   # NCHW
    # TODO(synk): BertTokenizer has no Pallas/JAX equivalent; synthesize
    # deterministic token ids instead of tokenizing a caption string.
    input_ids = jax.random.randint(tkey, (B, SEQ), 5, VOCAB, dtype=jnp.int32)
    input_ids = input_ids.at[1, SEQ - 2:].set(PAD_ID)     # pad tail of example 1
    attention_mask = (input_ids != PAD_ID).astype(jnp.int32)
    attention_mask = attention_mask.at[:, 0].set(1)       # bos position attended

    loss = jax.jit(blip_decoder_forward)(image, input_ids, attention_mask, params)
    loss = jax.block_until_ready(loss)
    assert loss.shape == () and bool(jnp.isfinite(loss))
    print("KERNEL_OK")
</pallas_src>

<mosaic_0001>
module attributes {stable_mosaic.version = 11 : i64} {
  func.func @_vit_stack_kernel(%arg0: i32, %arg1: i32, %arg2: memref<1x5x128xf32, #tpu.memory_space<vmem>>, %arg3: memref<1x2x128xf32, #tpu.memory_space<vmem>>, %arg4: memref<1x128x384xbf16, #tpu.memory_space<vmem>>, %arg5: memref<1x1x384xf32, #tpu.memory_space<vmem>>, %arg6: memref<1x128x128xbf16, #tpu.memory_space<vmem>>, %arg7: memref<1x1x128xf32, #tpu.memory_space<vmem>>, %arg8: memref<1x2x128xf32, #tpu.memory_space<vmem>>, %arg9: memref<1x128x512xbf16, #tpu.memory_space<vmem>>, %arg10: memref<1x1x512xf32, #tpu.memory_space<vmem>>, %arg11: memref<1x512x128xbf16, #tpu.memory_space<vmem>>, %arg12: memref<1x1x128xf32, #tpu.memory_space<vmem>>, %arg13: memref<2x128xf32, #tpu.memory_space<vmem>>, %arg14: memref<1x5x128xf32, #tpu.memory_space<vmem>>, %arg15: memref<5x128xf32, #tpu.memory_space<vmem>>, %arg16: memref<5x128xf32, #tpu.memory_space<vmem>>) attributes {dimension_semantics = [#tpu.dimension_semantics<parallel>, #tpu.dimension_semantics<arbitrary>], iteration_bounds = array<i64: 2, 2>, scalar_prefetch = 0 : i64, scratch_operands = 2 : i64, tpu.core_type = #tpu.core_type<tc>, window_params = [{transform_indices = @transform_0, window_bounds = array<i64: 1, 5, 128>}, {transform_indices = @transform_1, window_bounds = array<i64: 1, 2, 128>}, {transform_indices = @transform_2, window_bounds = array<i64: 1, 128, 384>}, {transform_indices = @transform_3, window_bounds = array<i64: 1, 1, 384>}, {transform_indices = @transform_4, window_bounds = array<i64: 1, 128, 128>}, {transform_indices = @transform_5, window_bounds = array<i64: 1, 1, 128>}, {transform_indices = @transform_6, window_bounds = array<i64: 1, 2, 128>}, {transform_indices = @transform_7, window_bounds = array<i64: 1, 128, 512>}, {transform_indices = @transform_8, window_bounds = array<i64: 1, 1, 512>}, {transform_indices = @transform_9, window_bounds = array<i64: 1, 512, 128>}, {transform_indices = @transform_10, window_bounds = array<i64: 1, 1, 128>}, {pipeline_mode = #tpu.pipeline_mode<synchronous>, transform_indices = @transform_11, window_bounds = array<i64: 2, 128>}, {transform_indices = @transform_12, window_bounds = array<i64: 1, 5, 128>}]} {
    %c0_i32 = arith.constant 0 : i32
    %0 = arith.cmpi eq, %arg1, %c0_i32 : i32
    %1 = arith.extui %0 : i1 to i32
    %c0_i32_0 = arith.constant 0 : i32
    %2 = arith.cmpi ne, %1, %c0_i32_0 : i32
    scf.if %2 {
      %c0_78 = arith.constant 0 : index
      %c0_79 = arith.constant 0 : index
      %c0_80 = arith.constant 0 : index
      %190 = vector.load %arg2[%c0_78, %c0_79, %c0_80] : memref<1x5x128xf32, #tpu.memory_space<vmem>>, vector<1x5x128xf32>
      %191 = vector.shape_cast %190 : vector<1x5x128xf32> to vector<5x128xf32>
      %c0_81 = arith.constant 0 : index
      %c0_82 = arith.constant 0 : index
      %192 = vector.load %arg15[%c0_81, %c0_82] : memref<5x128xf32, #tpu.memory_space<vmem>>, vector<5x128xf32>
      tpu.vector_store %arg15[%c0_81, %c0_82], %191 {strides = array<i32>} : memref<5x128xf32, #tpu.memory_space<vmem>>, vector<5x128xf32>,
    } else {
    }
    %c0 = arith.constant 0 : index
    %c0_1 = arith.constant 0 : index
    %3 = vector.load %arg15[%c0, %c0_1] : memref<5x128xf32, #tpu.memory_space<vmem>>, vector<5x128xf32>
    %c0_2 = arith.constant 0 : index
    %c0_3 = arith.constant 0 : index
    %c0_4 = arith.constant 0 : index
    %4 = vector.load %arg3[%c0_2, %c0_3, %c0_4] : memref<1x2x128xf32, #tpu.memory_space<vmem>>, vector<1x2x128xf32>
    %5 = vector.shape_cast %4 : vector<1x2x128xf32> to vector<2x128xf32>
    %6 = vector.extract_strided_slice %5 {offsets = [0, 0], sizes = [1, 128], strides = [1, 1]} : vector<2x128xf32> to vector<1x128xf32>
    %7 = vector.extract_strided_slice %5 {offsets = [1, 0], sizes = [1, 128], strides = [1, 1]} : vector<2x128xf32> to vector<1x128xf32>
    %cst = arith.constant dense<0.000000e+00> : vector<5xf32>
    %8 = vector.multi_reduction <add>, %3, %cst [1] : vector<5x128xf32> to vector<5xf32>
    %9 = vector.shape_cast %8 : vector<5xf32> to vector<5x1xf32>
    %cst_5 = arith.constant 1.280000e+02 : f32
    %10 = vector.broadcast %cst_5 : f32 to vector<5x1xf32>
    %11 = arith.divf %9, %10 : vector<5x1xf32>
    %12 = vector.broadcast %11 : vector<5x1xf32> to vector<5x128xf32>
    %13 = arith.subf %3, %12 : vector<5x128xf32>
    %14 = arith.mulf %13, %13 : vector<5x128xf32>
    %cst_6 = arith.constant dense<0.000000e+00> : vector<5xf32>
    %15 = vector.multi_reduction <add>, %14, %cst_6 [1] : vector<5x128xf32> to vector<5xf32>
    %16 = vector.shape_cast %15 : vector<5xf32> to vector<5x1xf32>
    %cst_7 = arith.constant 1.280000e+02 : f32
    %17 = vector.broadcast %cst_7 : f32 to vector<5x1xf32>
    %18 = arith.divf %16, %17 : vector<5x1xf32>
    %cst_8 = arith.constant 9.99999997E-7 : f32
    %19 = vector.broadcast %cst_8 : f32 to vector<5x1xf32>
    %20 = arith.addf %18, %19 : vector<5x1xf32>
    %21 = math.rsqrt %20 : vector<5x1xf32>
    %22 = vector.broadcast %21 : vector<5x1xf32> to vector<5x128xf32>
    %23 = arith.mulf %13, %22 : vector<5x128xf32>
    %24 = vector.broadcast %6 : vector<1x128xf32> to vector<5x128xf32>
    %25 = arith.mulf %23, %24 : vector<5x128xf32>
    %26 = vector.broadcast %7 : vector<1x128xf32> to vector<5x128xf32>
    %27 = arith.addf %25, %26 : vector<5x128xf32>
    %28 = arith.truncf %27 : vector<5x128xf32> to vector<5x128xbf16>
    %c0_9 = arith.constant 0 : index
    %c0_10 = arith.constant 0 : index
    %c0_11 = arith.constant 0 : index
    %29 = vector.load %arg4[%c0_9, %c0_10, %c0_11] : memref<1x128x384xbf16, #tpu.memory_space<vmem>>, vector<1x128x384xbf16>
    %30 = vector.shape_cast %29 : vector<1x128x384xbf16> to vector<128x384xbf16>
    %cst_12 = arith.constant dense<0.000000e+00> : vector<5x384xf32>
    %31 = tpu.matmul %28, %30, %cst_12 {dimension_numbers = #tpu.dot_dimension_numbers<[1], [0], [0], [1], [0, 0, 1, 1], [], []>} : vector<5x128xbf16>, vector<128x384xbf16>, vector<5x384xf32> -> vector<5x384xf32>
    %c0_13 = arith.constant 0 : index
    %c0_14 = arith.constant 0 : index
    %c0_15 = arith.constant 0 : index
    %32 = vector.load %arg5[%c0_13, %c0_14, %c0_15] : memref<1x1x384xf32, #tpu.memory_space<vmem>>, vector<1x1x384xf32>
    %33 = vector.shape_cast %32 : vector<1x1x384xf32> to vector<1x384xf32>
    %34 = vector.broadcast %33 : vector<1x384xf32> to vector<5x384xf32>
    %35 = arith.addf %31, %34 : vector<5x384xf32>
    %36 = vector.extract_strided_slice %35 {offsets = [0, 0], sizes = [5, 128], strides = [1, 1]} : vector<5x384xf32> to vector<5x128xf32>
    %37 = vector.extract_strided_slice %35 {offsets = [0, 128], sizes = [5, 128], strides = [1, 1]} : vector<5x384xf32> to vector<5x128xf32>
    %38 = vector.extract_strided_slice %35 {offsets = [0, 256], sizes = [5, 128], strides = [1, 1]} : vector<5x384xf32> to vector<5x128xf32>
    %39 = vector.extract_strided_slice %36 {offsets = [0, 0], sizes = [5, 32], strides = [1, 1]} : vector<5x128xf32> to vector<5x32xf32>
    %40 = arith.truncf %39 : vector<5x32xf32> to vector<5x32xbf16>
    %41 = vector.extract_strided_slice %37 {offsets = [0, 0], sizes = [5, 32], strides = [1, 1]} : vector<5x128xf32> to vector<5x32xf32>
    %42 = arith.truncf %41 : vector<5x32xf32> to vector<5x32xbf16>
    %43 = vector.extract_strided_slice %38 {offsets = [0, 0], sizes = [5, 32], strides = [1, 1]} : vector<5x128xf32> to vector<5x32xf32>
    %44 = arith.truncf %43 : vector<5x32xf32> to vector<5x32xbf16>
    %cst_16 = arith.constant dense<0.000000e+00> : vector<5x5xf32>
    %45 = tpu.matmul %40, %42, %cst_16 {dimension_numbers = #tpu.dot_dimension_numbers<[1], [1], [0], [0], [0, 0, 1, 0], [], []>} : vector<5x32xbf16>, vector<5x32xbf16>, vector<5x5xf32> -> vector<5x5xf32>
    %cst_17 = arith.constant 0.176776692 : f32
    %46 = vector.broadcast %cst_17 : f32 to vector<5x5xf32>
    %47 = arith.mulf %45, %46 : vector<5x5xf32>
    %cst_18 = arith.constant dense<0xFF800000> : vector<5xf32>
    %48 = vector.multi_reduction <maximumf>, %47, %cst_18 [1] : vector<5x5xf32> to vector<5xf32>
    %49 = vector.shape_cast %48 : vector<5xf32> to vector<5x1xf32>
    %50 = vector.broadcast %49 : vector<5x1xf32> to vector<5x5xf32>
    %51 = arith.subf %47, %50 : vector<5x5xf32>
    %52 = math.exp %51 : vector<5x5xf32>
    %cst_19 = arith.constant dense<0.000000e+00> : vector<5xf32>
    %53 = vector.multi_reduction <add>, %52, %cst_19 [1] : vector<5x5xf32> to vector<5xf32>
    %54 = vector.shape_cast %53 : vector<5xf32> to vector<5x1xf32>
    %55 = tpu.reciprocal %54 {approx = true} : vector<5x1xf32> -> vector<5x1xf32>
    %56 = vector.broadcast %55 : vector<5x1xf32> to vector<5x5xf32>
    %57 = arith.mulf %52, %56 : vector<5x5xf32>
    %58 = arith.truncf %57 : vector<5x5xf32> to vector<5x5xbf16>
    %cst_20 = arith.constant dense<0.000000e+00> : vector<5x32xf32>
    %59 = tpu.matmul %58, %44, %cst_20 {dimension_numbers = #tpu.dot_dimension_numbers<[1], [0], [0], [1], [0, 0, 1, 1], [], []>} : vector<5x5xbf16>, vector<5x32xbf16>, vector<5x32xf32> -> vector<5x32xf32>
    %c0_21 = arith.constant 0 : index
    %c0_22 = arith.constant 0 : index
    %60 = vector.load %arg16[%c0_21, %c0_22] : memref<5x128xf32, #tpu.memory_space<vmem>>, vector<5x32xf32>
    tpu.vector_store %arg16[%c0_21, %c0_22], %59 {strides = array<i32>} : memref<5x128xf32, #tpu.memory_space<vmem>>, vector<5x32xf32>,
    %61 = vector.extract_strided_slice %36 {offsets = [0, 32], sizes = [5, 32], strides = [1, 1]} : vector<5x128xf32> to vector<5x32xf32>
    %62 = arith.truncf %61 : vector<5x32xf32> to vector<5x32xbf16>
    %63 = vector.extract_strided_slice %37 {offsets = [0, 32], sizes = [5, 32], strides = [1, 1]} : vector<5x128xf32> to vector<5x32xf32>
    %64 = arith.truncf %63 : vector<5x32xf32> to vector<5x32xbf16>
    %65 = vector.extract_strided_slice %38 {offsets = [0, 32], sizes = [5, 32], strides = [1, 1]} : vector<5x128xf32> to vector<5x32xf32>
    %66 = arith.truncf %65 : vector<5x32xf32> to vector<5x32xbf16>
    %cst_23 = arith.constant dense<0.000000e+00> : vector<5x5xf32>
    %67 = tpu.matmul %62, %64, %cst_23 {dimension_numbers = #tpu.dot_dimension_numbers<[1], [1], [0], [0], [0, 0, 1, 0], [], []>} : vector<5x32xbf16>, vector<5x32xbf16>, vector<5x5xf32> -> vector<5x5xf32>
    %cst_24 = arith.constant 0.176776692 : f32
    %68 = vector.broadcast %cst_24 : f32 to vector<5x5xf32>
    %69 = arith.mulf %67, %68 : vector<5x5xf32>
    %cst_25 = arith.constant dense<0xFF800000> : vector<5xf32>
    %70 = vector.multi_reduction <maximumf>, %69, %cst_25 [1] : vector<5x5xf32> to vector<5xf32>
    %71 = vector.shape_cast %70 : vector<5xf32> to vector<5x1xf32>
    %72 = vector.broadcast %71 : vector<5x1xf32> to vector<5x5xf32>
    %73 = arith.subf %69, %72 : vector<5x5xf32>
    %74 = math.exp %73 : vector<5x5xf32>
    %cst_26 = arith.constant dense<0.000000e+00> : vector<5xf32>
    %75 = vector.multi_reduction <add>, %74, %cst_26 [1] : vector<5x5xf32> to vector<5xf32>
    %76 = vector.shape_cast %75 : vector<5xf32> to vector<5x1xf32>
    %77 = tpu.reciprocal %76 {approx = true} : vector<5x1xf32> -> vector<5x1xf32>
    %78 = vector.broadcast %77 : vector<5x1xf32> to vector<5x5xf32>
    %79 = arith.mulf %74, %78 : vector<5x5xf32>
    %80 = arith.truncf %79 : vector<5x5xf32> to vector<5x5xbf16>
    %cst_27 = arith.constant dense<0.000000e+00> : vector<5x32xf32>
    %81 = tpu.matmul %80, %66, %cst_27 {dimension_numbers = #tpu.dot_dimension_numbers<[1], [0], [0], [1], [0, 0, 1, 1], [], []>} : vector<5x5xbf16>, vector<5x32xbf16>, vector<5x32xf32> -> vector<5x32xf32>
    %c0_28 = arith.constant 0 : index
    %c32 = arith.constant 32 : index
    %82 = vector.load %arg16[%c0_28, %c32] : memref<5x128xf32, #tpu.memory_space<vmem>>, vector<5x32xf32>
    tpu.vector_store %arg16[%c0_28, %c32], %81 {strides = array<i32>} : memref<5x128xf32, #tpu.memory_space<vmem>>, vector<5x32xf32>,
    %83 = vector.extract_strided_slice %36 {offsets = [0, 64], sizes = [5, 32], strides = [1, 1]} : vector<5x128xf32> to vector<5x32xf32>
    %84 = arith.truncf %83 : vector<5x32xf32> to vector<5x32xbf16>
    %85 = vector.extract_strided_slice %37 {offsets = [0, 64], sizes = [5, 32], strides = [1, 1]} : vector<5x128xf32> to vector<5x32xf32>
    %86 = arith.truncf %85 : vector<5x32xf32> to vector<5x32xbf16>
    %87 = vector.extract_strided_slice %38 {offsets = [0, 64], sizes = [5, 32], strides = [1, 1]} : vector<5x128xf32> to vector<5x32xf32>
    %88 = arith.truncf %87 : vector<5x32xf32> to vector<5x32xbf16>
    %cst_29 = arith.constant dense<0.000000e+00> : vector<5x5xf32>
    %89 = tpu.matmul %84, %86, %cst_29 {dimension_numbers = #tpu.dot_dimension_numbers<[1], [1], [0], [0], [0, 0, 1, 0], [], []>} : vector<5x32xbf16>, vector<5x32xbf16>, vector<5x5xf32> -> vector<5x5xf32>
    %cst_30 = arith.constant 0.176776692 : f32
    %90 = vector.broadcast %cst_30 : f32 to vector<5x5xf32>
    %91 = arith.mulf %89, %90 : vector<5x5xf32>
    %cst_31 = arith.constant dense<0xFF800000> : vector<5xf32>
    %92 = vector.multi_reduction <maximumf>, %91, %cst_31 [1] : vector<5x5xf32> to vector<5xf32>
    %93 = vector.shape_cast %92 : vector<5xf32> to vector<5x1xf32>
    %94 = vector.broadcast %93 : vector<5x1xf32> to vector<5x5xf32>
    %95 = arith.subf %91, %94 : vector<5x5xf32>
    %96 = math.exp %95 : vector<5x5xf32>
    %cst_32 = arith.constant dense<0.000000e+00> : vector<5xf32>
    %97 = vector.multi_reduction <add>, %96, %cst_32 [1] : vector<5x5xf32> to vector<5xf32>
    %98 = vector.shape_cast %97 : vector<5xf32> to vector<5x1xf32>
    %99 = tpu.reciprocal %98 {approx = true} : vector<5x1xf32> -> vector<5x1xf32>
    %100 = vector.broadcast %99 : vector<5x1xf32> to vector<5x5xf32>
    %101 = arith.mulf %96, %100 : vector<5x5xf32>
    %102 = arith.truncf %101 : vector<5x5xf32> to vector<5x5xbf16>
    %cst_33 = arith.constant dense<0.000000e+00> : vector<5x32xf32>
    %103 = tpu.matmul %102, %88, %cst_33 {dimension_numbers = #tpu.dot_dimension_numbers<[1], [0], [0], [1], [0, 0, 1, 1], [], []>} : vector<5x5xbf16>, vector<5x32xbf16>, vector<5x32xf32> -> vector<5x32xf32>
    %c0_34 = arith.constant 0 : index
    %c64 = arith.constant 64 : index
    %104 = vector.load %arg16[%c0_34, %c64] : memref<5x128xf32, #tpu.memory_space<vmem>>, vector<5x32xf32>
    tpu.vector_store %arg16[%c0_34, %c64], %103 {strides = array<i32>} : memref<5x128xf32, #tpu.memory_space<vmem>>, vector<5x32xf32>,
    %105 = vector.extract_strided_slice %36 {offsets = [0, 96], sizes = [5, 32], strides = [1, 1]} : vector<5x128xf32> to vector<5x32xf32>
    %106 = arith.truncf %105 : vector<5x32xf32> to vector<5x32xbf16>
    %107 = vector.extract_strided_slice %37 {offsets = [0, 96], sizes = [5, 32], strides = [1, 1]} : vector<5x128xf32> to vector<5x32xf32>
    %108 = arith.truncf %107 : vector<5x32xf32> to vector<5x32xbf16>
    %109 = vector.extract_strided_slice %38 {offsets = [0, 96], sizes = [5, 32], strides = [1, 1]} : vector<5x128xf32> to vector<5x32xf32>
    %110 = arith.truncf %109 : vector<5x32xf32> to vector<5x32xbf16>
    %cst_35 = arith.constant dense<0.000000e+00> : vector<5x5xf32>
    %111 = tpu.matmul %106, %108, %cst_35 {dimension_numbers = #tpu.dot_dimension_numbers<[1], [1], [0], [0], [0, 0, 1, 0], [], []>} : vector<5x32xbf16>, vector<5x32xbf16>, vector<5x5xf32> -> vector<5x5xf32>
    %cst_36 = arith.constant 0.176776692 : f32
    %112 = vector.broadcast %cst_36 : f32 to vector<5x5xf32>
    %113 = arith.mulf %111, %112 : vector<5x5xf32>
    %cst_37 = arith.constant dense<0xFF800000> : vector<5xf32>
    %114 = vector.multi_reduction <maximumf>, %113, %cst_37 [1] : vector<5x5xf32> to vector<5xf32>
    %115 = vector.shape_cast %114 : vector<5xf32> to vector<5x1xf32>
    %116 = vector.broadcast %115 : vector<5x1xf32> to vector<5x5xf32>
    %117 = arith.subf %113, %116 : vector<5x5xf32>
    %118 = math.exp %117 : vector<5x5xf32>
    %cst_38 = arith.constant dense<0.000000e+00> : vector<5xf32>
    %119 = vector.multi_reduction <add>, %118, %cst_38 [1] : vector<5x5xf32> to vector<5xf32>
    %120 = vector.shape_cast %119 : vector<5xf32> to vector<5x1xf32>
    %121 = tpu.reciprocal %120 {approx = true} : vector<5x1xf32> -> vector<5x1xf32>
    %122 = vector.broadcast %121 : vector<5x1xf32> to vector<5x5xf32>
    %123 = arith.mulf %118, %122 : vector<5x5xf32>
    %124 = arith.truncf %123 : vector<5x5xf32> to vector<5x5xbf16>
    %cst_39 = arith.constant dense<0.000000e+00> : vector<5x32xf32>
    %125 = tpu.matmul %124, %110, %cst_39 {dimension_numbers = #tpu.dot_dimension_numbers<[1], [0], [0], [1], [0, 0, 1, 1], [], []>} : vector<5x5xbf16>, vector<5x32xbf16>, vector<5x32xf32> -> vector<5x32xf32>
    %c0_40 = arith.constant 0 : index
    %c96 = arith.constant 96 : index
    %126 = vector.load %arg16[%c0_40, %c96] : memref<5x128xf32, #tpu.memory_space<vmem>>, vector<5x32xf32>
    tpu.vector_store %arg16[%c0_40, %c96], %125 {strides = array<i32>} : memref<5x128xf32, #tpu.memory_space<vmem>>, vector<5x32xf32>,
    %c0_41 = arith.constant 0 : index
    %c0_42 = arith.constant 0 : index
    %127 = vector.load %arg16[%c0_41, %c0_42] : memref<5x128xf32, #tpu.memory_space<vmem>>, vector<5x128xf32>
    %128 = arith.truncf %127 : vector<5x128xf32> to vector<5x128xbf16>
    %c0_43 = arith.constant 0 : index
    %c0_44 = arith.constant 0 : index
    %c0_45 = arith.constant 0 : index
    %129 = vector.load %arg6[%c0_43, %c0_44, %c0_45] : memref<1x128x128xbf16, #tpu.memory_space<vmem>>, vector<1x128x128xbf16>
    %130 = vector.shape_cast %129 : vector<1x128x128xbf16> to vector<128x128xbf16>
    %cst_46 = arith.constant dense<0.000000e+00> : vector<5x128xf32>
    %131 = tpu.matmul %128, %130, %cst_46 {dimension_numbers = #tpu.dot_dimension_numbers<[1], [0], [0], [1], [0, 0, 1, 1], [], []>} : vector<5x128xbf16>, vector<128x128xbf16>, vector<5x128xf32> -> vector<5x128xf32>
    %c0_47 = arith.constant 0 : index
    %c0_48 = arith.constant 0 : index
    %c0_49 = arith.constant 0 : index
    %132 = vector.load %arg7[%c0_47, %c0_48, %c0_49] : memref<1x1x128xf32, #tpu.memory_space<vmem>>, vector<1x1x128xf32>
    %133 = vector.shape_cast %132 : vector<1x1x128xf32> to vector<1x128xf32>
    %134 = vector.broadcast %133 : vector<1x128xf32> to vector<5x128xf32>
    %135 = arith.addf %131, %134 : vector<5x128xf32>
    %136 = arith.addf %3, %135 : vector<5x128xf32>
    %c0_50 = arith.constant 0 : index
    %c0_51 = arith.constant 0 : index
    %c0_52 = arith.constant 0 : index
    %137 = vector.load %arg8[%c0_50, %c0_51, %c0_52] : memref<1x2x128xf32, #tpu.memory_space<vmem>>, vector<1x2x128xf32>
    %138 = vector.shape_cast %137 : vector<1x2x128xf32> to vector<2x128xf32>
    %139 = vector.extract_strided_slice %138 {offsets = [0, 0], sizes = [1, 128], strides = [1, 1]} : vector<2x128xf32> to vector<1x128xf32>
    %140 = vector.extract_strided_slice %138 {offsets = [1, 0], sizes = [1, 128], strides = [1, 1]} : vector<2x128xf32> to vector<1x128xf32>
    %cst_53 = arith.constant dense<0.000000e+00> : vector<5xf32>
    %141 = vector.multi_reduction <add>, %136, %cst_53 [1] : vector<5x128xf32> to vector<5xf32>
    %142 = vector.shape_cast %141 : vector<5xf32> to vector<5x1xf32>
    %cst_54 = arith.constant 1.280000e+02 : f32
    %143 = vector.broadcast %cst_54 : f32 to vector<5x1xf32>
    %144 = arith.divf %142, %143 : vector<5x1xf32>
    %145 = vector.broadcast %144 : vector<5x1xf32> to vector<5x128xf32>
    %146 = arith.subf %136, %145 : vector<5x128xf32>
    %147 = arith.mulf %146, %146 : vector<5x128xf32>
    %cst_55 = arith.constant dense<0.000000e+00> : vector<5xf32>
    %148 = vector.multi_reduction <add>, %147, %cst_55 [1] : vector<5x128xf32> to vector<5xf32>
    %149 = vector.shape_cast %148 : vector<5xf32> to vector<5x1xf32>
    %cst_56 = arith.constant 1.280000e+02 : f32
    %150 = vector.broadcast %cst_56 : f32 to vector<5x1xf32>
    %151 = arith.divf %149, %150 : vector<5x1xf32>
    %cst_57 = arith.constant 9.99999997E-7 : f32
    %152 = vector.broadcast %cst_57 : f32 to vector<5x1xf32>
    %153 = arith.addf %151, %152 : vector<5x1xf32>
    %154 = math.rsqrt %153 : vector<5x1xf32>
    %155 = vector.broadcast %154 : vector<5x1xf32> to vector<5x128xf32>
    %156 = arith.mulf %146, %155 : vector<5x128xf32>
    %157 = vector.broadcast %139 : vector<1x128xf32> to vector<5x128xf32>
    %158 = arith.mulf %156, %157 : vector<5x128xf32>
    %159 = vector.broadcast %140 : vector<1x128xf32> to vector<5x128xf32>
    %160 = arith.addf %158, %159 : vector<5x128xf32>
    %161 = arith.truncf %160 : vector<5x128xf32> to vector<5x128xbf16>
    %c0_58 = arith.constant 0 : index
    %c0_59 = arith.constant 0 : index
    %c0_60 = arith.constant 0 : index
    %162 = vector.load %arg9[%c0_58, %c0_59, %c0_60] : memref<1x128x512xbf16, #tpu.memory_space<vmem>>, vector<1x128x512xbf16>
    %163 = vector.shape_cast %162 : vector<1x128x512xbf16> to vector<128x512xbf16>
    %cst_61 = arith.constant dense<0.000000e+00> : vector<5x512xf32>
    %164 = tpu.matmul %161, %163, %cst_61 {dimension_numbers = #tpu.dot_dimension_numbers<[1], [0], [0], [1], [0, 0, 1, 1], [], []>} : vector<5x128xbf16>, vector<128x512xbf16>, vector<5x512xf32> -> vector<5x512xf32>
    %c0_62 = arith.constant 0 : index
    %c0_63 = arith.constant 0 : index
    %c0_64 = arith.constant 0 : index
    %165 = vector.load %arg10[%c0_62, %c0_63, %c0_64] : memref<1x1x512xf32, #tpu.memory_space<vmem>>, vector<1x1x512xf32>
    %166 = vector.shape_cast %165 : vector<1x1x512xf32> to vector<1x512xf32>
    %167 = vector.broadcast %166 : vector<1x512xf32> to vector<5x512xf32>
    %168 = arith.addf %164, %167 : vector<5x512xf32>
    %cst_65 = arith.constant 5.000000e-01 : f32
    %169 = vector.broadcast %cst_65 : f32 to vector<5x512xf32>
    %170 = arith.mulf %169, %168 : vector<5x512xf32>
    %cst_66 = arith.constant 0.707106769 : f32
    %171 = vector.broadcast %cst_66 : f32 to vector<5x512xf32>
    %172 = arith.mulf %168, %171 : vector<5x512xf32>
    %173 = math.erf %172 : vector<5x512xf32>
    %cst_67 = arith.constant 1.000000e+00 : f32
    %174 = vector.broadcast %cst_67 : f32 to vector<5x512xf32>
    %175 = arith.addf %174, %173 : vector<5x512xf32>
    %176 = arith.mulf %170, %175 : vector<5x512xf32>
    %177 = arith.truncf %176 : vector<5x512xf32> to vector<5x512xbf16>
    %c0_68 = arith.constant 0 : index
    %c0_69 = arith.constant 0 : index
    %c0_70 = arith.constant 0 : index
    %178 = vector.load %arg11[%c0_68, %c0_69, %c0_70] : memref<1x512x128xbf16, #tpu.memory_space<vmem>>, vector<1x512x128xbf16>
    %179 = vector.shape_cast %178 : vector<1x512x128xbf16> to vector<512x128xbf16>
    %cst_71 = arith.constant dense<0.000000e+00> : vector<5x128xf32>
    %180 = tpu.matmul %177, %179, %cst_71 {dimension_numbers = #tpu.dot_dimension_numbers<[1], [0], [0], [1], [0, 0, 1, 1], [], []>} : vector<5x512xbf16>, vector<512x128xbf16>, vector<5x128xf32> -> vector<5x128xf32>
    %c0_72 = arith.constant 0 : index
    %c0_73 = arith.constant 0 : index
    %c0_74 = arith.constant 0 : index
    %181 = vector.load %arg12[%c0_72, %c0_73, %c0_74] : memref<1x1x128xf32, #tpu.memory_space<vmem>>, vector<1x1x128xf32>
    %182 = vector.shape_cast %181 : vector<1x1x128xf32> to vector<1x128xf32>
    %183 = vector.broadcast %182 : vector<1x128xf32> to vector<5x128xf32>
    %184 = arith.addf %180, %183 : vector<5x128xf32>
    %185 = arith.addf %136, %184 : vector<5x128xf32>
    %c0_75 = arith.constant 0 : index
    %c0_76 = arith.constant 0 : index
    %186 = vector.load %arg15[%c0_75, %c0_76] : memref<5x128xf32, #tpu.memory_space<vmem>>, vector<5x128xf32>
    tpu.vector_store %arg15[%c0_75, %c0_76], %185 {strides = array<i32>} : memref<5x128xf32, #tpu.memory_space<vmem>>, vector<5x128xf32>,
    %c1_i32 = arith.constant 1 : i32
    %187 = arith.cmpi eq, %arg1, %c1_i32 : i32
    %188 = arith.extui %187 : i1 to i32
    %c0_i32_77 = arith.constant 0 : i32
    %189 = arith.cmpi ne, %188, %c0_i32_77 : i32
    scf.if %189 {
      %c0_78 = arith.constant 0 : index
      %c0_79 = arith.constant 0 : index
      %190 = vector.load %arg13[%c0_78, %c0_79] : memref<2x128xf32, #tpu.memory_space<vmem>>, vector<2x128xf32>
      %c0_80 = arith.constant 0 : index
      %c0_81 = arith.constant 0 : index
      %191 = vector.load %arg15[%c0_80, %c0_81] : memref<5x128xf32, #tpu.memory_space<vmem>>, vector<5x128xf32>
      %192 = vector.extract_strided_slice %190 {offsets = [0, 0], sizes = [1, 128], strides = [1, 1]} : vector<2x128xf32> to vector<1x128xf32>
      %193 = vector.extract_strided_slice %190 {offsets = [1, 0], sizes = [1, 128], strides = [1, 1]} : vector<2x128xf32> to vector<1x128xf32>
      %cst_82 = arith.constant dense<0.000000e+00> : vector<5xf32>
      %194 = vector.multi_reduction <add>, %191, %cst_82 [1] : vector<5x128xf32> to vector<5xf32>
      %195 = vector.shape_cast %194 : vector<5xf32> to vector<5x1xf32>
      %cst_83 = arith.constant 1.280000e+02 : f32
      %196 = vector.broadcast %cst_83 : f32 to vector<5x1xf32>
      %197 = arith.divf %195, %196 : vector<5x1xf32>
      %198 = vector.broadcast %197 : vector<5x1xf32> to vector<5x128xf32>
      %199 = arith.subf %191, %198 : vector<5x128xf32>
      %200 = arith.mulf %199, %199 : vector<5x128xf32>
      %cst_84 = arith.constant dense<0.000000e+00> : vector<5xf32>
      %201 = vector.multi_reduction <add>, %200, %cst_84 [1] : vector<5x128xf32> to vector<5xf32>
      %202 = vector.shape_cast %201 : vector<5xf32> to vector<5x1xf32>
      %cst_85 = arith.constant 1.280000e+02 : f32
      %203 = vector.broadcast %cst_85 : f32 to vector<5x1xf32>
      %204 = arith.divf %202, %203 : vector<5x1xf32>
      %cst_86 = arith.constant 9.99999997E-7 : f32
      %205 = vector.broadcast %cst_86 : f32 to vector<5x1xf32>
      %206 = arith.addf %204, %205 : vector<5x1xf32>
      %207 = math.rsqrt %206 : vector<5x1xf32>
      %208 = vector.broadcast %207 : vector<5x1xf32> to vector<5x128xf32>
      %209 = arith.mulf %199, %208 : vector<5x128xf32>
      %210 = vector.broadcast %192 : vector<1x128xf32> to vector<5x128xf32>
      %211 = arith.mulf %209, %210 : vector<5x128xf32>
      %212 = vector.broadcast %193 : vector<1x128xf32> to vector<5x128xf32>
      %213 = arith.addf %211, %212 : vector<5x128xf32>
      %c0_87 = arith.constant 0 : index
      %c0_88 = arith.constant 0 : index
      %c0_89 = arith.constant 0 : index
      %214 = vector.load %arg14[%c0_87, %c0_88, %c0_89] : memref<1x5x128xf32, #tpu.memory_space<vmem>>, vector<1x5x128xf32>
      %215 = vector.shape_cast %214 : vector<1x5x128xf32> to vector<5x128xf32>
      %216 = vector.shape_cast %213 : vector<5x128xf32> to vector<1x5x128xf32>
      tpu.vector_store %arg14[%c0_87, %c0_88, %c0_89], %216 {strides = array<i32>} : memref<1x5x128xf32, #tpu.memory_space<vmem>>, vector<1x5x128xf32>,
    } else {
    }
    return
  }
  func.func @transform_0(%arg0: i32, %arg1: i32) -> (i32, i32, i32) {
    %c0_i32 = arith.constant 0 : i32
    %c0_i32_0 = arith.constant 0 : i32
    %c0_i32_1 = arith.constant 0 : i32
    return %arg0, %c0_i32, %c0_i32_0 : i32, i32, i32
  }
  func.func @transform_1(%arg0: i32, %arg1: i32) -> (i32, i32, i32) {
    %c0_i32 = arith.constant 0 : i32
    %c0_i32_0 = arith.constant 0 : i32
    %c0_i32_1 = arith.constant 0 : i32
    return %arg1, %c0_i32, %c0_i32_0 : i32, i32, i32
  }
  func.func @transform_2(%arg0: i32, %arg1: i32) -> (i32, i32, i32) {
    %c0_i32 = arith.constant 0 : i32
    %c0_i32_0 = arith.constant 0 : i32
    %c0_i32_1 = arith.constant 0 : i32
    return %arg1, %c0_i32, %c0_i32_0 : i32, i32, i32
  }
  func.func @transform_3(%arg0: i32, %arg1: i32) -> (i32, i32, i32) {
    %c0_i32 = arith.constant 0 : i32
    %c0_i32_0 = arith.constant 0 : i32
    %c0_i32_1 = arith.constant 0 : i32
    return %arg1, %c0_i32, %c0_i32_0 : i32, i32, i32
  }
  func.func @transform_4(%arg0: i32, %arg1: i32) -> (i32, i32, i32) {
    %c0_i32 = arith.constant 0 : i32
    %c0_i32_0 = arith.constant 0 : i32
    %c0_i32_1 = arith.constant 0 : i32
    return %arg1, %c0_i32, %c0_i32_0 : i32, i32, i32
  }
  func.func @transform_5(%arg0: i32, %arg1: i32) -> (i32, i32, i32) {
    %c0_i32 = arith.constant 0 : i32
    %c0_i32_0 = arith.constant 0 : i32
    %c0_i32_1 = arith.constant 0 : i32
    return %arg1, %c0_i32, %c0_i32_0 : i32, i32, i32
  }
  func.func @transform_6(%arg0: i32, %arg1: i32) -> (i32, i32, i32) {
    %c0_i32 = arith.constant 0 : i32
    %c0_i32_0 = arith.constant 0 : i32
    %c0_i32_1 = arith.constant 0 : i32
    return %arg1, %c0_i32, %c0_i32_0 : i32, i32, i32
  }
  func.func @transform_7(%arg0: i32, %arg1: i32) -> (i32, i32, i32) {
    %c0_i32 = arith.constant 0 : i32
    %c0_i32_0 = arith.constant 0 : i32
    %c0_i32_1 = arith.constant 0 : i32
    return %arg1, %c0_i32, %c0_i32_0 : i32, i32, i32
  }
  func.func @transform_8(%arg0: i32, %arg1: i32) -> (i32, i32, i32) {
    %c0_i32 = arith.constant 0 : i32
    %c0_i32_0 = arith.constant 0 : i32
    %c0_i32_1 = arith.constant 0 : i32
    return %arg1, %c0_i32, %c0_i32_0 : i32, i32, i32
  }
  func.func @transform_9(%arg0: i32, %arg1: i32) -> (i32, i32, i32) {
    %c0_i32 = arith.constant 0 : i32
    %c0_i32_0 = arith.constant 0 : i32
    %c0_i32_1 = arith.constant 0 : i32
    return %arg1, %c0_i32, %c0_i32_0 : i32, i32, i32
  }
  func.func @transform_10(%arg0: i32, %arg1: i32) -> (i32, i32, i32) {
    %c0_i32 = arith.constant 0 : i32
    %c0_i32_0 = arith.constant 0 : i32
    %c0_i32_1 = arith.constant 0 : i32
    return %arg1, %c0_i32, %c0_i32_0 : i32, i32, i32
  }
  func.func @transform_11(%arg0: i32, %arg1: i32) -> (i32, i32) {
    %c0_i32 = arith.constant 0 : i32
    %c0_i32_0 = arith.constant 0 : i32
    %c0_i32_1 = arith.constant 0 : i32
    return %c0_i32, %c0_i32_0 : i32, i32
  }
  func.func @transform_12(%arg0: i32, %arg1: i32) -> (i32, i32, i32) {
    %c0_i32 = arith.constant 0 : i32
    %c0_i32_0 = arith.constant 0 : i32
    %c0_i32_1 = arith.constant 0 : i32
    return %arg0, %c0_i32, %c0_i32_0 : i32, i32, i32
  }
}

module attributes {stable_mosaic.version = 11 : i64} {
  func.func @_linear_kernel(%arg0: memref<8x768xf32, #tpu.memory_space<vmem>>, %arg1: memref<768x128xbf16, #tpu.memory_space<vmem>>, %arg2: memref<1x128xf32, #tpu.memory_space<vmem>>, %arg3: memref<8x128xf32, #tpu.memory_space<vmem>>) attributes {dimension_semantics = [], scalar_prefetch = 0 : i64, scratch_operands = 0 : i64, tpu.core_type = #tpu.core_type<tc>} {
    %c0 = arith.constant 0 : index
    %c0_0 = arith.constant 0 : index
    %0 = vector.load %arg0[%c0, %c0_0] : memref<8x768xf32, #tpu.memory_space<vmem>>, vector<8x768xf32>
    %1 = arith.truncf %0 : vector<8x768xf32> to vector<8x768xbf16>
    %c0_1 = arith.constant 0 : index
    %c0_2 = arith.constant 0 : index
    %2 = vector.load %arg1[%c0_1, %c0_2] : memref<768x128xbf16, #tpu.memory_space<vmem>>, vector<768x128xbf16>
    %cst = arith.constant dense<0.000000e+00> : vector<8x128xf32>
    %3 = tpu.matmul %1, %2, %cst {dimension_numbers = #tpu.dot_dimension_numbers<[1], [0], [0], [1], [0, 0, 1, 1], [], []>} : vector<8x768xbf16>, vector<768x128xbf16>, vector<8x128xf32> -> vector<8x128xf32>
    %c0_3 = arith.constant 0 : index
    %c0_4 = arith.constant 0 : index
    %4 = vector.load %arg2[%c0_3, %c0_4] : memref<1x128xf32, #tpu.memory_space<vmem>>, vector<1x128xf32>
    %5 = vector.broadcast %4 : vector<1x128xf32> to vector<8x128xf32>
    %6 = arith.addf %3, %5 : vector<8x128xf32>
    %c0_5 = arith.constant 0 : index
    %c0_6 = arith.constant 0 : index
    %7 = vector.load %arg3[%c0_5, %c0_6] : memref<8x128xf32, #tpu.memory_space<vmem>>, vector<8x128xf32>
    tpu.vector_store %arg3[%c0_5, %c0_6], %6 {strides = array<i32>} : memref<8x128xf32, #tpu.memory_space<vmem>>, vector<8x128xf32>,
    return
  }
}

module attributes {stable_mosaic.version = 11 : i64} {
  func.func @_bert_stack_kernel(%arg0: i32, %arg1: i32, %arg2: memref<2xi32, #tpu.memory_space<smem>>, %arg3: memref<1x8x128xf32, #tpu.memory_space<vmem>>, %arg4: memref<1x5x128xbf16, #tpu.memory_space<vmem>>, %arg5: memref<2x128xf32, #tpu.memory_space<vmem>>, %arg6: memref<1x128x384xbf16, #tpu.memory_space<vmem>>, %arg7: memref<1x1x384xf32, #tpu.memory_space<vmem>>, %arg8: memref<1x128x128xbf16, #tpu.memory_space<vmem>>, %arg9: memref<1x1x128xf32, #tpu.memory_space<vmem>>, %arg10: memref<1x2x128xf32, #tpu.memory_space<vmem>>, %arg11: memref<1x128x128xbf16, #tpu.memory_space<vmem>>, %arg12: memref<1x1x128xf32, #tpu.memory_space<vmem>>, %arg13: memref<1x128x256xbf16, #tpu.memory_space<vmem>>, %arg14: memref<1x1x256xf32, #tpu.memory_space<vmem>>, %arg15: memref<1x128x128xbf16, #tpu.memory_space<vmem>>, %arg16: memref<1x1x128xf32, #tpu.memory_space<vmem>>, %arg17: memref<1x2x128xf32, #tpu.memory_space<vmem>>, %arg18: memref<1x128x512xbf16, #tpu.memory_space<vmem>>, %arg19: memref<1x1x512xf32, #tpu.memory_space<vmem>>, %arg20: memref<1x512x128xbf16, #tpu.memory_space<vmem>>, %arg21: memref<1x1x128xf32, #tpu.memory_space<vmem>>, %arg22: memref<1x2x128xf32, #tpu.memory_space<vmem>>, %arg23: memref<1x8x128xf32, #tpu.memory_space<vmem>>, %arg24: memref<8x128xf32, #tpu.memory_space<vmem>>, %arg25: memref<8x128xf32, #tpu.memory_space<vmem>>) attributes {dimension_semantics = [#tpu.dimension_semantics<parallel>, #tpu.dimension_semantics<arbitrary>], iteration_bounds = array<i64: 2, 2>, scalar_prefetch = 1 : i64, scratch_operands = 2 : i64, tpu.core_type = #tpu.core_type<tc>, window_params = [{transform_indices = @transform_0, window_bounds = array<i64: 1, 8, 128>}, {transform_indices = @transform_1, window_bounds = array<i64: 1, 5, 128>}, {pipeline_mode = #tpu.pipeline_mode<synchronous>, transform_indices = @transform_2, window_bounds = array<i64: 2, 128>}, {transform_indices = @transform_3, window_bounds = array<i64: 1, 128, 384>}, {transform_indices = @transform_4, window_bounds = array<i64: 1, 1, 384>}, {transform_indices = @transform_5, window_bounds = array<i64: 1, 128, 128>}, {transform_indices = @transform_6, window_bounds = array<i64: 1, 1, 128>}, {transform_indices = @transform_7, window_bounds = array<i64: 1, 2, 128>}, {transform_indices = @transform_8, window_bounds = array<i64: 1, 128, 128>}, {transform_indices = @transform_9, window_bounds = array<i64: 1, 1, 128>}, {transform_indices = @transform_10, window_bounds = array<i64: 1, 128, 256>}, {transform_indices = @transform_11, window_bounds = array<i64: 1, 1, 256>}, {transform_indices = @transform_12, window_bounds = array<i64: 1, 128, 128>}, {transform_indices = @transform_13, window_bounds = array<i64: 1, 1, 128>}, {transform_indices = @transform_14, window_bounds = array<i64: 1, 2, 128>}, {transform_indices = @transform_15, window_bounds = array<i64: 1, 128, 512>}, {transform_indices = @transform_16, window_bounds = array<i64: 1, 1, 512>}, {transform_indices = @transform_17, window_bounds = array<i64: 1, 512, 128>}, {transform_indices = @transform_18, window_bounds = array<i64: 1, 1, 128>}, {transform_indices = @transform_19, window_bounds = array<i64: 1, 2, 128>}, {transform_indices = @transform_20, window_bounds = array<i64: 1, 8, 128>}]} {
    %c0_i32 = arith.constant 0 : i32
    %0 = arith.cmpi eq, %arg1, %c0_i32 : i32
    %1 = arith.extui %0 : i1 to i32
    %c0_i32_0 = arith.constant 0 : i32
    %2 = arith.cmpi ne, %1, %c0_i32_0 : i32
    scf.if %2 {
      %c0_142 = arith.constant 0 : index
      %c0_143 = arith.constant 0 : index
      %346 = vector.load %arg5[%c0_142, %c0_143] : memref<2x128xf32, #tpu.memory_space<vmem>>, vector<2x128xf32>
      %c0_144 = arith.constant 0 : index
      %c0_145 = arith.constant 0 : index
      %c0_146 = arith.constant 0 : index
      %347 = vector.load %arg3[%c0_144, %c0_145, %c0_146] : memref<1x8x128xf32, #tpu.memory_space<vmem>>, vector<1x8x128xf32>
      %348 = vector.shape_cast %347 : vector<1x8x128xf32> to vector<8x128xf32>
      %349 = vector.extract_strided_slice %346 {offsets = [0, 0], sizes = [1, 128], strides = [1, 1]} : vector<2x128xf32> to vector<1x128xf32>
      %350 = vector.extract_strided_slice %346 {offsets = [1, 0], sizes = [1, 128], strides = [1, 1]} : vector<2x128xf32> to vector<1x128xf32>
      %cst_147 = arith.constant dense<0.000000e+00> : vector<8xf32>
      %351 = vector.multi_reduction <add>, %348, %cst_147 [1] : vector<8x128xf32> to vector<8xf32>
      %352 = vector.shape_cast %351 : vector<8xf32> to vector<8x1xf32>
      %cst_148 = arith.constant 1.280000e+02 : f32
      %353 = vector.broadcast %cst_148 : f32 to vector<8x1xf32>
      %354 = arith.divf %352, %353 : vector<8x1xf32>
      %355 = vector.broadcast %354 : vector<8x1xf32> to vector<8x128xf32>
      %356 = arith.subf %348, %355 : vector<8x128xf32>
      %357 = arith.mulf %356, %356 : vector<8x128xf32>
      %cst_149 = arith.constant dense<0.000000e+00> : vector<8xf32>
      %358 = vector.multi_reduction <add>, %357, %cst_149 [1] : vector<8x128xf32> to vector<8xf32>
      %359 = vector.shape_cast %358 : vector<8xf32> to vector<8x1xf32>
      %cst_150 = arith.constant 1.280000e+02 : f32
      %360 = vector.broadcast %cst_150 : f32 to vector<8x1xf32>
      %361 = arith.divf %359, %360 : vector<8x1xf32>
      %cst_151 = arith.constant 9.99999996E-13 : f32
      %362 = vector.broadcast %cst_151 : f32 to vector<8x1xf32>
      %363 = arith.addf %361, %362 : vector<8x1xf32>
      %364 = math.rsqrt %363 : vector<8x1xf32>
      %365 = vector.broadcast %364 : vector<8x1xf32> to vector<8x128xf32>
      %366 = arith.mulf %356, %365 : vector<8x128xf32>
      %367 = vector.broadcast %349 : vector<1x128xf32> to vector<8x128xf32>
      %368 = arith.mulf %366, %367 : vector<8x128xf32>
      %369 = vector.broadcast %350 : vector<1x128xf32> to vector<8x128xf32>
      %370 = arith.addf %368, %369 : vector<8x128xf32>
      %c0_152 = arith.constant 0 : index
      %c0_153 = arith.constant 0 : index
      %371 = vector.load %arg24[%c0_152, %c0_153] : memref<8x128xf32, #tpu.memory_space<vmem>>, vector<8x128xf32>
      tpu.vector_store %arg24[%c0_152, %c0_153], %370 {strides = array<i32>} : memref<8x128xf32, #tpu.memory_space<vmem>>, vector<8x128xf32>,
    } else {
    }
    %c0 = arith.constant 0 : index
    %c0_1 = arith.constant 0 : index
    %3 = vector.load %arg24[%c0, %c0_1] : memref<8x128xf32, #tpu.memory_space<vmem>>, vector<8x128xf32>
    %4 = arith.index_cast %arg0 : i32 to index
    %5 = memref.load %arg2[%4] : memref<2xi32, #tpu.memory_space<smem>>
    %6 = tpu.iota {dimensions = array<i32: 0>} : vector<8x8xi32>
    %7 = tpu.iota {dimensions = array<i32: 1>} : vector<8x8xi32>
    %8 = arith.cmpi sle, %7, %6 : vector<8x8xi32>
    %9 = vector.broadcast %5 : i32 to vector<8x8xi32>
    %10 = arith.cmpi slt, %7, %9 : vector<8x8xi32>
    %11 = arith.andi %8, %10 : vector<8x8xi1>
    %cst = arith.constant 0.000000e+00 : f32
    %cst_2 = arith.constant -1.000000e+09 : f32
    %12 = vector.broadcast %cst : f32 to vector<8x8xf32>
    %13 = vector.broadcast %cst_2 : f32 to vector<8x8xf32>
    %14 = arith.select %11, %12, %13 : vector<8x8xi1>, vector<8x8xf32>
    %15 = arith.truncf %3 : vector<8x128xf32> to vector<8x128xbf16>
    %c0_3 = arith.constant 0 : index
    %c0_4 = arith.constant 0 : index
    %c0_5 = arith.constant 0 : index
    %16 = vector.load %arg6[%c0_3, %c0_4, %c0_5] : memref<1x128x384xbf16, #tpu.memory_space<vmem>>, vector<1x128x384xbf16>
    %17 = vector.shape_cast %16 : vector<1x128x384xbf16> to vector<128x384xbf16>
    %cst_6 = arith.constant dense<0.000000e+00> : vector<8x384xf32>
    %18 = tpu.matmul %15, %17, %cst_6 {dimension_numbers = #tpu.dot_dimension_numbers<[1], [0], [0], [1], [0, 0, 1, 1], [], []>} : vector<8x128xbf16>, vector<128x384xbf16>, vector<8x384xf32> -> vector<8x384xf32>
    %c0_7 = arith.constant 0 : index
    %c0_8 = arith.constant 0 : index
    %c0_9 = arith.constant 0 : index
    %19 = vector.load %arg7[%c0_7, %c0_8, %c0_9] : memref<1x1x384xf32, #tpu.memory_space<vmem>>, vector<1x1x384xf32>
    %20 = vector.shape_cast %19 : vector<1x1x384xf32> to vector<1x384xf32>
    %21 = vector.broadcast %20 : vector<1x384xf32> to vector<8x384xf32>
    %22 = arith.addf %18, %21 : vector<8x384xf32>
    %23 = vector.extract_strided_slice %22 {offsets = [0, 0], sizes = [8, 128], strides = [1, 1]} : vector<8x384xf32> to vector<8x128xf32>
    %24 = vector.extract_strided_slice %22 {offsets = [0, 128], sizes = [8, 128], strides = [1, 1]} : vector<8x384xf32> to vector<8x128xf32>
    %25 = vector.extract_strided_slice %22 {offsets = [0, 256], sizes = [8, 128], strides = [1, 1]} : vector<8x384xf32> to vector<8x128xf32>
    %26 = vector.extract_strided_slice %23 {offsets = [0, 0], sizes = [8, 32], strides = [1, 1]} : vector<8x128xf32> to vector<8x32xf32>
    %27 = arith.truncf %26 : vector<8x32xf32> to vector<8x32xbf16>
    %28 = vector.extract_strided_slice %24 {offsets = [0, 0], sizes = [8, 32], strides = [1, 1]} : vector<8x128xf32> to vector<8x32xf32>
    %29 = arith.truncf %28 : vector<8x32xf32> to vector<8x32xbf16>
    %30 = vector.extract_strided_slice %25 {offsets = [0, 0], sizes = [8, 32], strides = [1, 1]} : vector<8x128xf32> to vector<8x32xf32>
    %31 = arith.truncf %30 : vector<8x32xf32> to vector<8x32xbf16>
    %cst_10 = arith.constant dense<0.000000e+00> : vector<8x8xf32>
    %32 = tpu.matmul %27, %29, %cst_10 {dimension_numbers = #tpu.dot_dimension_numbers<[1], [1], [0], [0], [0, 0, 1, 0], [], []>} : vector<8x32xbf16>, vector<8x32xbf16>, vector<8x8xf32> -> vector<8x8xf32>
    %cst_11 = arith.constant 0.176776692 : f32
    %33 = vector.broadcast %cst_11 : f32 to vector<8x8xf32>
    %34 = arith.mulf %32, %33 : vector<8x8xf32>
    %35 = arith.addf %34, %14 : vector<8x8xf32>
    %cst_12 = arith.constant dense<0xFF800000> : vector<8xf32>
    %36 = vector.multi_reduction <maximumf>, %35, %cst_12 [1] : vector<8x8xf32> to vector<8xf32>
    %37 = vector.shape_cast %36 : vector<8xf32> to vector<8x1xf32>
    %38 = vector.broadcast %37 : vector<8x1xf32> to vector<8x8xf32>
    %39 = arith.subf %35, %38 : vector<8x8xf32>
    %40 = math.exp %39 : vector<8x8xf32>
    %cst_13 = arith.constant dense<0.000000e+00> : vector<8xf32>
    %41 = vector.multi_reduction <add>, %40, %cst_13 [1] : vector<8x8xf32> to vector<8xf32>
    %42 = vector.shape_cast %41 : vector<8xf32> to vector<8x1xf32>
    %43 = tpu.reciprocal %42 {approx = true} : vector<8x1xf32> -> vector<8x1xf32>
    %44 = vector.broadcast %43 : vector<8x1xf32> to vector<8x8xf32>
    %45 = arith.mulf %40, %44 : vector<8x8xf32>
    %46 = arith.truncf %45 : vector<8x8xf32> to vector<8x8xbf16>
    %cst_14 = arith.constant dense<0.000000e+00> : vector<8x32xf32>
    %47 = tpu.matmul %46, %31, %cst_14 {dimension_numbers = #tpu.dot_dimension_numbers<[1], [0], [0], [1], [0, 0, 1, 1], [], []>} : vector<8x8xbf16>, vector<8x32xbf16>, vector<8x32xf32> -> vector<8x32xf32>
    %c0_15 = arith.constant 0 : index
    %c0_16 = arith.constant 0 : index
    %48 = vector.load %arg25[%c0_15, %c0_16] : memref<8x128xf32, #tpu.memory_space<vmem>>, vector<8x32xf32>
    tpu.vector_store %arg25[%c0_15, %c0_16], %47 {strides = array<i32>} : memref<8x128xf32, #tpu.memory_space<vmem>>, vector<8x32xf32>,
    %49 = vector.extract_strided_slice %23 {offsets = [0, 32], sizes = [8, 32], strides = [1, 1]} : vector<8x128xf32> to vector<8x32xf32>
    %50 = arith.truncf %49 : vector<8x32xf32> to vector<8x32xbf16>
    %51 = vector.extract_strided_slice %24 {offsets = [0, 32], sizes = [8, 32], strides = [1, 1]} : vector<8x128xf32> to vector<8x32xf32>
    %52 = arith.truncf %51 : vector<8x32xf32> to vector<8x32xbf16>
    %53 = vector.extract_strided_slice %25 {offsets = [0, 32], sizes = [8, 32], strides = [1, 1]} : vector<8x128xf32> to vector<8x32xf32>
    %54 = arith.truncf %53 : vector<8x32xf32> to vector<8x32xbf16>
    %cst_17 = arith.constant dense<0.000000e+00> : vector<8x8xf32>
    %55 = tpu.matmul %50, %52, %cst_17 {dimension_numbers = #tpu.dot_dimension_numbers<[1], [1], [0], [0], [0, 0, 1, 0], [], []>} : vector<8x32xbf16>, vector<8x32xbf16>, vector<8x8xf32> -> vector<8x8xf32>
    %cst_18 = arith.constant 0.176776692 : f32
    %56 = vector.broadcast %cst_18 : f32 to vector<8x8xf32>
    %57 = arith.mulf %55, %56 : vector<8x8xf32>
    %58 = arith.addf %57, %14 : vector<8x8xf32>
    %cst_19 = arith.constant dense<0xFF800000> : vector<8xf32>
    %59 = vector.multi_reduction <maximumf>, %58, %cst_19 [1] : vector<8x8xf32> to vector<8xf32>
    %60 = vector.shape_cast %59 : vector<8xf32> to vector<8x1xf32>
    %61 = vector.broadcast %60 : vector<8x1xf32> to vector<8x8xf32>
    %62 = arith.subf %58, %61 : vector<8x8xf32>
    %63 = math.exp %62 : vector<8x8xf32>
    %cst_20 = arith.constant dense<0.000000e+00> : vector<8xf32>
    %64 = vector.multi_reduction <add>, %63, %cst_20 [1] : vector<8x8xf32> to vector<8xf32>
    %65 = vector.shape_cast %64 : vector<8xf32> to vector<8x1xf32>
    %66 = tpu.reciprocal %65 {approx = true} : vector<8x1xf32> -> vector<8x1xf32>
    %67 = vector.broadcast %66 : vector<8x1xf32> to vector<8x8xf32>
    %68 = arith.mulf %63, %67 : vector<8x8xf32>
    %69 = arith.truncf %68 : vector<8x8xf32> to vector<8x8xbf16>
    %cst_21 = arith.constant dense<0.000000e+00> : vector<8x32xf32>
    %70 = tpu.matmul %69, %54, %cst_21 {dimension_numbers = #tpu.dot_dimension_numbers<[1], [0], [0], [1], [0, 0, 1, 1], [], []>} : vector<8x8xbf16>, vector<8x32xbf16>, vector<8x32xf32> -> vector<8x32xf32>
    %c0_22 = arith.constant 0 : index
    %c32 = arith.constant 32 : index
    %71 = vector.load %arg25[%c0_22, %c32] : memref<8x128xf32, #tpu.memory_space<vmem>>, vector<8x32xf32>
    tpu.vector_store %arg25[%c0_22, %c32], %70 {strides = array<i32>} : memref<8x128xf32, #tpu.memory_space<vmem>>, vector<8x32xf32>,
    %72 = vector.extract_strided_slice %23 {offsets = [0, 64], sizes = [8, 32], strides = [1, 1]} : vector<8x128xf32> to vector<8x32xf32>
    %73 = arith.truncf %72 : vector<8x32xf32> to vector<8x32xbf16>
    %74 = vector.extract_strided_slice %24 {offsets = [0, 64], sizes = [8, 32], strides = [1, 1]} : vector<8x128xf32> to vector<8x32xf32>
    %75 = arith.truncf %74 : vector<8x32xf32> to vector<8x32xbf16>
    %76 = vector.extract_strided_slice %25 {offsets = [0, 64], sizes = [8, 32], strides = [1, 1]} : vector<8x128xf32> to vector<8x32xf32>
    %77 = arith.truncf %76 : vector<8x32xf32> to vector<8x32xbf16>
    %cst_23 = arith.constant dense<0.000000e+00> : vector<8x8xf32>
    %78 = tpu.matmul %73, %75, %cst_23 {dimension_numbers = #tpu.dot_dimension_numbers<[1], [1], [0], [0], [0, 0, 1, 0], [], []>} : vector<8x32xbf16>, vector<8x32xbf16>, vector<8x8xf32> -> vector<8x8xf32>
    %cst_24 = arith.constant 0.176776692 : f32
    %79 = vector.broadcast %cst_24 : f32 to vector<8x8xf32>
    %80 = arith.mulf %78, %79 : vector<8x8xf32>
    %81 = arith.addf %80, %14 : vector<8x8xf32>
    %cst_25 = arith.constant dense<0xFF800000> : vector<8xf32>
    %82 = vector.multi_reduction <maximumf>, %81, %cst_25 [1] : vector<8x8xf32> to vector<8xf32>
    %83 = vector.shape_cast %82 : vector<8xf32> to vector<8x1xf32>
    %84 = vector.broadcast %83 : vector<8x1xf32> to vector<8x8xf32>
    %85 = arith.subf %81, %84 : vector<8x8xf32>
    %86 = math.exp %85 : vector<8x8xf32>
    %cst_26 = arith.constant dense<0.000000e+00> : vector<8xf32>
    %87 = vector.multi_reduction <add>, %86, %cst_26 [1] : vector<8x8xf32> to vector<8xf32>
    %88 = vector.shape_cast %87 : vector<8xf32> to vector<8x1xf32>
    %89 = tpu.reciprocal %88 {approx = true} : vector<8x1xf32> -> vector<8x1xf32>
    %90 = vector.broadcast %89 : vector<8x1xf32> to vector<8x8xf32>
    %91 = arith.mulf %86, %90 : vector<8x8xf32>
    %92 = arith.truncf %91 : vector<8x8xf32> to vector<8x8xbf16>
    %cst_27 = arith.constant dense<0.000000e+00> : vector<8x32xf32>
    %93 = tpu.matmul %92, %77, %cst_27 {dimension_numbers = #tpu.dot_dimension_numbers<[1], [0], [0], [1], [0, 0, 1, 1], [], []>} : vector<8x8xbf16>, vector<8x32xbf16>, vector<8x32xf32> -> vector<8x32xf32>
    %c0_28 = arith.constant 0 : index
    %c64 = arith.constant 64 : index
    %94 = vector.load %arg25[%c0_28, %c64] : memref<8x128xf32, #tpu.memory_space<vmem>>, vector<8x32xf32>
    tpu.vector_store %arg25[%c0_28, %c64], %93 {strides = array<i32>} : memref<8x128xf32, #tpu.memory_space<vmem>>, vector<8x32xf32>,
    %95 = vector.extract_strided_slice %23 {offsets = [0, 96], sizes = [8, 32], strides = [1, 1]} : vector<8x128xf32> to vector<8x32xf32>
    %96 = arith.truncf %95 : vector<8x32xf32> to vector<8x32xbf16>
    %97 = vector.extract_strided_slice %24 {offsets = [0, 96], sizes = [8, 32], strides = [1, 1]} : vector<8x128xf32> to vector<8x32xf32>
    %98 = arith.truncf %97 : vector<8x32xf32> to vector<8x32xbf16>
    %99 = vector.extract_strided_slice %25 {offsets = [0, 96], sizes = [8, 32], strides = [1, 1]} : vector<8x128xf32> to vector<8x32xf32>
    %100 = arith.truncf %99 : vector<8x32xf32> to vector<8x32xbf16>
    %cst_29 = arith.constant dense<0.000000e+00> : vector<8x8xf32>
    %101 = tpu.matmul %96, %98, %cst_29 {dimension_numbers = #tpu.dot_dimension_numbers<[1], [1], [0], [0], [0, 0, 1, 0], [], []>} : vector<8x32xbf16>, vector<8x32xbf16>, vector<8x8xf32> -> vector<8x8xf32>
    %cst_30 = arith.constant 0.176776692 : f32
    %102 = vector.broadcast %cst_30 : f32 to vector<8x8xf32>
    %103 = arith.mulf %101, %102 : vector<8x8xf32>
    %104 = arith.addf %103, %14 : vector<8x8xf32>
    %cst_31 = arith.constant dense<0xFF800000> : vector<8xf32>
    %105 = vector.multi_reduction <maximumf>, %104, %cst_31 [1] : vector<8x8xf32> to vector<8xf32>
    %106 = vector.shape_cast %105 : vector<8xf32> to vector<8x1xf32>
    %107 = vector.broadcast %106 : vector<8x1xf32> to vector<8x8xf32>
    %108 = arith.subf %104, %107 : vector<8x8xf32>
    %109 = math.exp %108 : vector<8x8xf32>
    %cst_32 = arith.constant dense<0.000000e+00> : vector<8xf32>
    %110 = vector.multi_reduction <add>, %109, %cst_32 [1] : vector<8x8xf32> to vector<8xf32>
    %111 = vector.shape_cast %110 : vector<8xf32> to vector<8x1xf32>
    %112 = tpu.reciprocal %111 {approx = true} : vector<8x1xf32> -> vector<8x1xf32>
    %113 = vector.broadcast %112 : vector<8x1xf32> to vector<8x8xf32>
    %114 = arith.mulf %109, %113 : vector<8x8xf32>
    %115 = arith.truncf %114 : vector<8x8xf32> to vector<8x8xbf16>
    %cst_33 = arith.constant dense<0.000000e+00> : vector<8x32xf32>
    %116 = tpu.matmul %115, %100, %cst_33 {dimension_numbers = #tpu.dot_dimension_numbers<[1], [0], [0], [1], [0, 0, 1, 1], [], []>} : vector<8x8xbf16>, vector<8x32xbf16>, vector<8x32xf32> -> vector<8x32xf32>
    %c0_34 = arith.constant 0 : index
    %c96 = arith.constant 96 : index
    %117 = vector.load %arg25[%c0_34, %c96] : memref<8x128xf32, #tpu.memory_space<vmem>>, vector<8x32xf32>
    tpu.vector_store %arg25[%c0_34, %c96], %116 {strides = array<i32>} : memref<8x128xf32, #tpu.memory_space<vmem>>, vector<8x32xf32>,
    %c0_35 = arith.constant 0 : index
    %c0_36 = arith.constant 0 : index
    %118 = vector.load %arg25[%c0_35, %c0_36] : memref<8x128xf32, #tpu.memory_space<vmem>>, vector<8x128xf32>
    %119 = arith.truncf %118 : vector<8x128xf32> to vector<8x128xbf16>
    %c0_37 = arith.constant 0 : index
    %c0_38 = arith.constant 0 : index
    %c0_39 = arith.constant 0 : index
    %120 = vector.load %arg8[%c0_37, %c0_38, %c0_39] : memref<1x128x128xbf16, #tpu.memory_space<vmem>>, vector<1x128x128xbf16>
    %121 = vector.shape_cast %120 : vector<1x128x128xbf16> to vector<128x128xbf16>
    %cst_40 = arith.constant dense<0.000000e+00> : vector<8x128xf32>
    %122 = tpu.matmul %119, %121, %cst_40 {dimension_numbers = #tpu.dot_dimension_numbers<[1], [0], [0], [1], [0, 0, 1, 1], [], []>} : vector<8x128xbf16>, vector<128x128xbf16>, vector<8x128xf32> -> vector<8x128xf32>
    %c0_41 = arith.constant 0 : index
    %c0_42 = arith.constant 0 : index
    %c0_43 = arith.constant 0 : index
    %123 = vector.load %arg9[%c0_41, %c0_42, %c0_43] : memref<1x1x128xf32, #tpu.memory_space<vmem>>, vector<1x1x128xf32>
    %124 = vector.shape_cast %123 : vector<1x1x128xf32> to vector<1x128xf32>
    %125 = vector.broadcast %124 : vector<1x128xf32> to vector<8x128xf32>
    %126 = arith.addf %122, %125 : vector<8x128xf32>
    %c0_44 = arith.constant 0 : index
    %c0_45 = arith.constant 0 : index
    %c0_46 = arith.constant 0 : index
    %127 = vector.load %arg10[%c0_44, %c0_45, %c0_46] : memref<1x2x128xf32, #tpu.memory_space<vmem>>, vector<1x2x128xf32>
    %128 = vector.shape_cast %127 : vector<1x2x128xf32> to vector<2x128xf32>
    %129 = arith.addf %3, %126 : vector<8x128xf32>
    %130 = vector.extract_strided_slice %128 {offsets = [0, 0], sizes = [1, 128], strides = [1, 1]} : vector<2x128xf32> to vector<1x128xf32>
    %131 = vector.extract_strided_slice %128 {offsets = [1, 0], sizes = [1, 128], strides = [1, 1]} : vector<2x128xf32> to vector<1x128xf32>
    %cst_47 = arith.constant dense<0.000000e+00> : vector<8xf32>
    %132 = vector.multi_reduction <add>, %129, %cst_47 [1] : vector<8x128xf32> to vector<8xf32>
    %133 = vector.shape_cast %132 : vector<8xf32> to vector<8x1xf32>
    %cst_48 = arith.constant 1.280000e+02 : f32
    %134 = vector.broadcast %cst_48 : f32 to vector<8x1xf32>
    %135 = arith.divf %133, %134 : vector<8x1xf32>
    %136 = vector.broadcast %135 : vector<8x1xf32> to vector<8x128xf32>
    %137 = arith.subf %129, %136 : vector<8x128xf32>
    %138 = arith.mulf %137, %137 : vector<8x128xf32>
    %cst_49 = arith.constant dense<0.000000e+00> : vector<8xf32>
    %139 = vector.multi_reduction <add>, %138, %cst_49 [1] : vector<8x128xf32> to vector<8xf32>
    %140 = vector.shape_cast %139 : vector<8xf32> to vector<8x1xf32>
    %cst_50 = arith.constant 1.280000e+02 : f32
    %141 = vector.broadcast %cst_50 : f32 to vector<8x1xf32>
    %142 = arith.divf %140, %141 : vector<8x1xf32>
    %cst_51 = arith.constant 9.99999996E-13 : f32
    %143 = vector.broadcast %cst_51 : f32 to vector<8x1xf32>
    %144 = arith.addf %142, %143 : vector<8x1xf32>
    %145 = math.rsqrt %144 : vector<8x1xf32>
    %146 = vector.broadcast %145 : vector<8x1xf32> to vector<8x128xf32>
    %147 = arith.mulf %137, %146 : vector<8x128xf32>
    %148 = vector.broadcast %130 : vector<1x128xf32> to vector<8x128xf32>
    %149 = arith.mulf %147, %148 : vector<8x128xf32>
    %150 = vector.broadcast %131 : vector<1x128xf32> to vector<8x128xf32>
    %151 = arith.addf %149, %150 : vector<8x128xf32>
    %152 = arith.truncf %151 : vector<8x128xf32> to vector<8x128xbf16>
    %c0_52 = arith.constant 0 : index
    %c0_53 = arith.constant 0 : index
    %c0_54 = arith.constant 0 : index
    %153 = vector.load %arg11[%c0_52, %c0_53, %c0_54] : memref<1x128x128xbf16, #tpu.memory_space<vmem>>, vector<1x128x128xbf16>
    %154 = vector.shape_cast %153 : vector<1x128x128xbf16> to vector<128x128xbf16>
    %cst_55 = arith.constant dense<0.000000e+00> : vector<8x128xf32>
    %155 = tpu.matmul %152, %154, %cst_55 {dimension_numbers = #tpu.dot_dimension_numbers<[1], [0], [0], [1], [0, 0, 1, 1], [], []>} : vector<8x128xbf16>, vector<128x128xbf16>, vector<8x128xf32> -> vector<8x128xf32>
    %c0_56 = arith.constant 0 : index
    %c0_57 = arith.constant 0 : index
    %c0_58 = arith.constant 0 : index
    %156 = vector.load %arg12[%c0_56, %c0_57, %c0_58] : memref<1x1x128xf32, #tpu.memory_space<vmem>>, vector<1x1x128xf32>
    %157 = vector.shape_cast %156 : vector<1x1x128xf32> to vector<1x128xf32>
    %158 = vector.broadcast %157 : vector<1x128xf32> to vector<8x128xf32>
    %159 = arith.addf %155, %158 : vector<8x128xf32>
    %c0_59 = arith.constant 0 : index
    %c0_60 = arith.constant 0 : index
    %c0_61 = arith.constant 0 : index
    %160 = vector.load %arg4[%c0_59, %c0_60, %c0_61] : memref<1x5x128xbf16, #tpu.memory_space<vmem>>, vector<1x5x128xbf16>
    %161 = vector.shape_cast %160 : vector<1x5x128xbf16> to vector<5x128xbf16>
    %c0_62 = arith.constant 0 : index
    %c0_63 = arith.constant 0 : index
    %c0_64 = arith.constant 0 : index
    %162 = vector.load %arg13[%c0_62, %c0_63, %c0_64] : memref<1x128x256xbf16, #tpu.memory_space<vmem>>, vector<1x128x256xbf16>
    %163 = vector.shape_cast %162 : vector<1x128x256xbf16> to vector<128x256xbf16>
    %cst_65 = arith.constant dense<0.000000e+00> : vector<5x256xf32>
    %164 = tpu.matmul %161, %163, %cst_65 {dimension_numbers = #tpu.dot_dimension_numbers<[1], [0], [0], [1], [0, 0, 1, 1], [], []>} : vector<5x128xbf16>, vector<128x256xbf16>, vector<5x256xf32> -> vector<5x256xf32>
    %c0_66 = arith.constant 0 : index
    %c0_67 = arith.constant 0 : index
    %c0_68 = arith.constant 0 : index
    %165 = vector.load %arg14[%c0_66, %c0_67, %c0_68] : memref<1x1x256xf32, #tpu.memory_space<vmem>>, vector<1x1x256xf32>
    %166 = vector.shape_cast %165 : vector<1x1x256xf32> to vector<1x256xf32>
    %167 = vector.broadcast %166 : vector<1x256xf32> to vector<5x256xf32>
    %168 = arith.addf %164, %167 : vector<5x256xf32>
    %169 = vector.extract_strided_slice %168 {offsets = [0, 0], sizes = [5, 128], strides = [1, 1]} : vector<5x256xf32> to vector<5x128xf32>
    %170 = vector.extract_strided_slice %168 {offsets = [0, 128], sizes = [5, 128], strides = [1, 1]} : vector<5x256xf32> to vector<5x128xf32>
    %171 = vector.extract_strided_slice %159 {offsets = [0, 0], sizes = [8, 32], strides = [1, 1]} : vector<8x128xf32> to vector<8x32xf32>
    %172 = arith.truncf %171 : vector<8x32xf32> to vector<8x32xbf16>
    %173 = vector.extract_strided_slice %169 {offsets = [0, 0], sizes = [5, 32], strides = [1, 1]} : vector<5x128xf32> to vector<5x32xf32>
    %174 = arith.truncf %173 : vector<5x32xf32> to vector<5x32xbf16>
    %175 = vector.extract_strided_slice %170 {offsets = [0, 0], sizes = [5, 32], strides = [1, 1]} : vector<5x128xf32> to vector<5x32xf32>
    %176 = arith.truncf %175 : vector<5x32xf32> to vector<5x32xbf16>
    %cst_69 = arith.constant dense<0.000000e+00> : vector<8x5xf32>
    %177 = tpu.matmul %172, %174, %cst_69 {dimension_numbers = #tpu.dot_dimension_numbers<[1], [1], [0], [0], [0, 0, 1, 0], [], []>} : vector<8x32xbf16>, vector<5x32xbf16>, vector<8x5xf32> -> vector<8x5xf32>
    %cst_70 = arith.constant 0.176776692 : f32
    %178 = vector.broadcast %cst_70 : f32 to vector<8x5xf32>
    %179 = arith.mulf %177, %178 : vector<8x5xf32>
    %cst_71 = arith.constant dense<0xFF800000> : vector<8xf32>
    %180 = vector.multi_reduction <maximumf>, %179, %cst_71 [1] : vector<8x5xf32> to vector<8xf32>
    %181 = vector.shape_cast %180 : vector<8xf32> to vector<8x1xf32>
    %182 = vector.broadcast %181 : vector<8x1xf32> to vector<8x5xf32>
    %183 = arith.subf %179, %182 : vector<8x5xf32>
    %184 = math.exp %183 : vector<8x5xf32>
    %cst_72 = arith.constant dense<0.000000e+00> : vector<8xf32>
    %185 = vector.multi_reduction <add>, %184, %cst_72 [1] : vector<8x5xf32> to vector<8xf32>
    %186 = vector.shape_cast %185 : vector<8xf32> to vector<8x1xf32>
    %187 = tpu.reciprocal %186 {approx = true} : vector<8x1xf32> -> vector<8x1xf32>
    %188 = vector.broadcast %187 : vector<8x1xf32> to vector<8x5xf32>
    %189 = arith.mulf %184, %188 : vector<8x5xf32>
    %190 = arith.truncf %189 : vector<8x5xf32> to vector<8x5xbf16>
    %cst_73 = arith.constant dense<0.000000e+00> : vector<8x32xf32>
    %191 = tpu.matmul %190, %176, %cst_73 {dimension_numbers = #tpu.dot_dimension_numbers<[1], [0], [0], [1], [0, 0, 1, 1], [], []>} : vector<8x5xbf16>, vector<5x32xbf16>, vector<8x32xf32> -> vector<8x32xf32>
    %c0_74 = arith.constant 0 : index
    %c0_75 = arith.constant 0 : index
    %192 = vector.load %arg25[%c0_74, %c0_75] : memref<8x128xf32, #tpu.memory_space<vmem>>, vector<8x32xf32>
    tpu.vector_store %arg25[%c0_74, %c0_75], %191 {strides = array<i32>} : memref<8x128xf32, #tpu.memory_space<vmem>>, vector<8x32xf32>,
    %193 = vector.extract_strided_slice %159 {offsets = [0, 32], sizes = [8, 32], strides = [1, 1]} : vector<8x128xf32> to vector<8x32xf32>
    %194 = arith.truncf %193 : vector<8x32xf32> to vector<8x32xbf16>
    %195 = vector.extract_strided_slice %169 {offsets = [0, 32], sizes = [5, 32], strides = [1, 1]} : vector<5x128xf32> to vector<5x32xf32>
    %196 = arith.truncf %195 : vector<5x32xf32> to vector<5x32xbf16>
    %197 = vector.extract_strided_slice %170 {offsets = [0, 32], sizes = [5, 32], strides = [1, 1]} : vector<5x128xf32> to vector<5x32xf32>
    %198 = arith.truncf %197 : vector<5x32xf32> to vector<5x32xbf16>
    %cst_76 = arith.constant dense<0.000000e+00> : vector<8x5xf32>
    %199 = tpu.matmul %194, %196, %cst_76 {dimension_numbers = #tpu.dot_dimension_numbers<[1], [1], [0], [0], [0, 0, 1, 0], [], []>} : vector<8x32xbf16>, vector<5x32xbf16>, vector<8x5xf32> -> vector<8x5xf32>
    %cst_77 = arith.constant 0.176776692 : f32
    %200 = vector.broadcast %cst_77 : f32 to vector<8x5xf32>
    %201 = arith.mulf %199, %200 : vector<8x5xf32>
    %cst_78 = arith.constant dense<0xFF800000> : vector<8xf32>
    %202 = vector.multi_reduction <maximumf>, %201, %cst_78 [1] : vector<8x5xf32> to vector<8xf32>
    %203 = vector.shape_cast %202 : vector<8xf32> to vector<8x1xf32>
    %204 = vector.broadcast %203 : vector<8x1xf32> to vector<8x5xf32>
    %205 = arith.subf %201, %204 : vector<8x5xf32>
    %206 = math.exp %205 : vector<8x5xf32>
    %cst_79 = arith.constant dense<0.000000e+00> : vector<8xf32>
    %207 = vector.multi_reduction <add>, %206, %cst_79 [1] : vector<8x5xf32> to vector<8xf32>
    %208 = vector.shape_cast %207 : vector<8xf32> to vector<8x1xf32>
    %209 = tpu.reciprocal %208 {approx = true} : vector<8x1xf32> -> vector<8x1xf32>
    %210 = vector.broadcast %209 : vector<8x1xf32> to vector<8x5xf32>
    %211 = arith.mulf %206, %210 : vector<8x5xf32>
    %212 = arith.truncf %211 : vector<8x5xf32> to vector<8x5xbf16>
    %cst_80 = arith.constant dense<0.000000e+00> : vector<8x32xf32>
    %213 = tpu.matmul %212, %198, %cst_80 {dimension_numbers = #tpu.dot_dimension_numbers<[1], [0], [0], [1], [0, 0, 1, 1], [], []>} : vector<8x5xbf16>, vector<5x32xbf16>, vector<8x32xf32> -> vector<8x32xf32>
    %c0_81 = arith.constant 0 : index
    %c32_82 = arith.constant 32 : index
    %214 = vector.load %arg25[%c0_81, %c32_82] : memref<8x128xf32, #tpu.memory_space<vmem>>, vector<8x32xf32>
    tpu.vector_store %arg25[%c0_81, %c32_82], %213 {strides = array<i32>} : memref<8x128xf32, #tpu.memory_space<vmem>>, vector<8x32xf32>,
    %215 = vector.extract_strided_slice %159 {offsets = [0, 64], sizes = [8, 32], strides = [1, 1]} : vector<8x128xf32> to vector<8x32xf32>
    %216 = arith.truncf %215 : vector<8x32xf32> to vector<8x32xbf16>
    %217 = vector.extract_strided_slice %169 {offsets = [0, 64], sizes = [5, 32], strides = [1, 1]} : vector<5x128xf32> to vector<5x32xf32>
    %218 = arith.truncf %217 : vector<5x32xf32> to vector<5x32xbf16>
    %219 = vector.extract_strided_slice %170 {offsets = [0, 64], sizes = [5, 32], strides = [1, 1]} : vector<5x128xf32> to vector<5x32xf32>
    %220 = arith.truncf %219 : vector<5x32xf32> to vector<5x32xbf16>
    %cst_83 = arith.constant dense<0.000000e+00> : vector<8x5xf32>
    %221 = tpu.matmul %216, %218, %cst_83 {dimension_numbers = #tpu.dot_dimension_numbers<[1], [1], [0], [0], [0, 0, 1, 0], [], []>} : vector<8x32xbf16>, vector<5x32xbf16>, vector<8x5xf32> -> vector<8x5xf32>
    %cst_84 = arith.constant 0.176776692 : f32
    %222 = vector.broadcast %cst_84 : f32 to vector<8x5xf32>
    %223 = arith.mulf %221, %222 : vector<8x5xf32>
    %cst_85 = arith.constant dense<0xFF800000> : vector<8xf32>
    %224 = vector.multi_reduction <maximumf>, %223, %cst_85 [1] : vector<8x5xf32> to vector<8xf32>
    %225 = vector.shape_cast %224 : vector<8xf32> to vector<8x1xf32>
    %226 = vector.broadcast %225 : vector<8x1xf32> to vector<8x5xf32>
    %227 = arith.subf %223, %226 : vector<8x5xf32>
    %228 = math.exp %227 : vector<8x5xf32>
    %cst_86 = arith.constant dense<0.000000e+00> : vector<8xf32>
    %229 = vector.multi_reduction <add>, %228, %cst_86 [1] : vector<8x5xf32> to vector<8xf32>
    %230 = vector.shape_cast %229 : vector<8xf32> to vector<8x1xf32>
    %231 = tpu.reciprocal %230 {approx = true} : vector<8x1xf32> -> vector<8x1xf32>
    %232 = vector.broadcast %231 : vector<8x1xf32> to vector<8x5xf32>
    %233 = arith.mulf %228, %232 : vector<8x5xf32>
    %234 = arith.truncf %233 : vector<8x5xf32> to vector<8x5xbf16>
    %cst_87 = arith.constant dense<0.000000e+00> : vector<8x32xf32>
    %235 = tpu.matmul %234, %220, %cst_87 {dimension_numbers = #tpu.dot_dimension_numbers<[1], [0], [0], [1], [0, 0, 1, 1], [], []>} : vector<8x5xbf16>, vector<5x32xbf16>, vector<8x32xf32> -> vector<8x32xf32>
    %c0_88 = arith.constant 0 : index
    %c64_89 = arith.constant 64 : index
    %236 = vector.load %arg25[%c0_88, %c64_89] : memref<8x128xf32, #tpu.memory_space<vmem>>, vector<8x32xf32>
    tpu.vector_store %arg25[%c0_88, %c64_89], %235 {strides = array<i32>} : memref<8x128xf32, #tpu.memory_space<vmem>>, vector<8x32xf32>,
    %237 = vector.extract_strided_slice %159 {offsets = [0, 96], sizes = [8, 32], strides = [1, 1]} : vector<8x128xf32> to vector<8x32xf32>
    %238 = arith.truncf %237 : vector<8x32xf32> to vector<8x32xbf16>
    %239 = vector.extract_strided_slice %169 {offsets = [0, 96], sizes = [5, 32], strides = [1, 1]} : vector<5x128xf32> to vector<5x32xf32>
    %240 = arith.truncf %239 : vector<5x32xf32> to vector<5x32xbf16>
    %241 = vector.extract_strided_slice %170 {offsets = [0, 96], sizes = [5, 32], strides = [1, 1]} : vector<5x128xf32> to vector<5x32xf32>
    %242 = arith.truncf %241 : vector<5x32xf32> to vector<5x32xbf16>
    %cst_90 = arith.constant dense<0.000000e+00> : vector<8x5xf32>
    %243 = tpu.matmul %238, %240, %cst_90 {dimension_numbers = #tpu.dot_dimension_numbers<[1], [1], [0], [0], [0, 0, 1, 0], [], []>} : vector<8x32xbf16>, vector<5x32xbf16>, vector<8x5xf32> -> vector<8x5xf32>
    %cst_91 = arith.constant 0.176776692 : f32
    %244 = vector.broadcast %cst_91 : f32 to vector<8x5xf32>
    %245 = arith.mulf %243, %244 : vector<8x5xf32>
    %cst_92 = arith.constant dense<0xFF800000> : vector<8xf32>
    %246 = vector.multi_reduction <maximumf>, %245, %cst_92 [1] : vector<8x5xf32> to vector<8xf32>
    %247 = vector.shape_cast %246 : vector<8xf32> to vector<8x1xf32>
    %248 = vector.broadcast %247 : vector<8x1xf32> to vector<8x5xf32>
    %249 = arith.subf %245, %248 : vector<8x5xf32>
    %250 = math.exp %249 : vector<8x5xf32>
    %cst_93 = arith.constant dense<0.000000e+00> : vector<8xf32>
    %251 = vector.multi_reduction <add>, %250, %cst_93 [1] : vector<8x5xf32> to vector<8xf32>
    %252 = vector.shape_cast %251 : vector<8xf32> to vector<8x1xf32>
    %253 = tpu.reciprocal %252 {approx = true} : vector<8x1xf32> -> vector<8x1xf32>
    %254 = vector.broadcast %253 : vector<8x1xf32> to vector<8x5xf32>
    %255 = arith.mulf %250, %254 : vector<8x5xf32>
    %256 = arith.truncf %255 : vector<8x5xf32> to vector<8x5xbf16>
    %cst_94 = arith.constant dense<0.000000e+00> : vector<8x32xf32>
    %257 = tpu.matmul %256, %242, %cst_94 {dimension_numbers = #tpu.dot_dimension_numbers<[1], [0], [0], [1], [0, 0, 1, 1], [], []>} : vector<8x5xbf16>, vector<5x32xbf16>, vector<8x32xf32> -> vector<8x32xf32>
    %c0_95 = arith.constant 0 : index
    %c96_96 = arith.constant 96 : index
    %258 = vector.load %arg25[%c0_95, %c96_96] : memref<8x128xf32, #tpu.memory_space<vmem>>, vector<8x32xf32>
    tpu.vector_store %arg25[%c0_95, %c96_96], %257 {strides = array<i32>} : memref<8x128xf32, #tpu.memory_space<vmem>>, vector<8x32xf32>,
    %c0_97 = arith.constant 0 : index
    %c0_98 = arith.constant 0 : index
    %259 = vector.load %arg25[%c0_97, %c0_98] : memref<8x128xf32, #tpu.memory_space<vmem>>, vector<8x128xf32>
    %260 = arith.truncf %259 : vector<8x128xf32> to vector<8x128xbf16>
    %c0_99 = arith.constant 0 : index
    %c0_100 = arith.constant 0 : index
    %c0_101 = arith.constant 0 : index
    %261 = vector.load %arg15[%c0_99, %c0_100, %c0_101] : memref<1x128x128xbf16, #tpu.memory_space<vmem>>, vector<1x128x128xbf16>
    %262 = vector.shape_cast %261 : vector<1x128x128xbf16> to vector<128x128xbf16>
    %cst_102 = arith.constant dense<0.000000e+00> : vector<8x128xf32>
    %263 = tpu.matmul %260, %262, %cst_102 {dimension_numbers = #tpu.dot_dimension_numbers<[1], [0], [0], [1], [0, 0, 1, 1], [], []>} : vector<8x128xbf16>, vector<128x128xbf16>, vector<8x128xf32> -> vector<8x128xf32>
    %c0_103 = arith.constant 0 : index
    %c0_104 = arith.constant 0 : index
    %c0_105 = arith.constant 0 : index
    %264 = vector.load %arg16[%c0_103, %c0_104, %c0_105] : memref<1x1x128xf32, #tpu.memory_space<vmem>>, vector<1x1x128xf32>
    %265 = vector.shape_cast %264 : vector<1x1x128xf32> to vector<1x128xf32>
    %266 = vector.broadcast %265 : vector<1x128xf32> to vector<8x128xf32>
    %267 = arith.addf %263, %266 : vector<8x128xf32>
    %c0_106 = arith.constant 0 : index
    %c0_107 = arith.constant 0 : index
    %c0_108 = arith.constant 0 : index
    %268 = vector.load %arg17[%c0_106, %c0_107, %c0_108] : memref<1x2x128xf32, #tpu.memory_space<vmem>>, vector<1x2x128xf32>
    %269 = vector.shape_cast %268 : vector<1x2x128xf32> to vector<2x128xf32>
    %270 = arith.addf %151, %267 : vector<8x128xf32>
    %271 = vector.extract_strided_slice %269 {offsets = [0, 0], sizes = [1, 128], strides = [1, 1]} : vector<2x128xf32> to vector<1x128xf32>
    %272 = vector.extract_strided_slice %269 {offsets = [1, 0], sizes = [1, 128], strides = [1, 1]} : vector<2x128xf32> to vector<1x128xf32>
    %cst_109 = arith.constant dense<0.000000e+00> : vector<8xf32>
    %273 = vector.multi_reduction <add>, %270, %cst_109 [1] : vector<8x128xf32> to vector<8xf32>
    %274 = vector.shape_cast %273 : vector<8xf32> to vector<8x1xf32>
    %cst_110 = arith.constant 1.280000e+02 : f32
    %275 = vector.broadcast %cst_110 : f32 to vector<8x1xf32>
    %276 = arith.divf %274, %275 : vector<8x1xf32>
    %277 = vector.broadcast %276 : vector<8x1xf32> to vector<8x128xf32>
    %278 = arith.subf %270, %277 : vector<8x128xf32>
    %279 = arith.mulf %278, %278 : vector<8x128xf32>
    %cst_111 = arith.constant dense<0.000000e+00> : vector<8xf32>
    %280 = vector.multi_reduction <add>, %279, %cst_111 [1] : vector<8x128xf32> to vector<8xf32>
    %281 = vector.shape_cast %280 : vector<8xf32> to vector<8x1xf32>
    %cst_112 = arith.constant 1.280000e+02 : f32
    %282 = vector.broadcast %cst_112 : f32 to vector<8x1xf32>
    %283 = arith.divf %281, %282 : vector<8x1xf32>
    %cst_113 = arith.constant 9.99999996E-13 : f32
    %284 = vector.broadcast %cst_113 : f32 to vector<8x1xf32>
    %285 = arith.addf %283, %284 : vector<8x1xf32>
    %286 = math.rsqrt %285 : vector<8x1xf32>
    %287 = vector.broadcast %286 : vector<8x1xf32> to vector<8x128xf32>
    %288 = arith.mulf %278, %287 : vector<8x128xf32>
    %289 = vector.broadcast %271 : vector<1x128xf32> to vector<8x128xf32>
    %290 = arith.mulf %288, %289 : vector<8x128xf32>
    %291 = vector.broadcast %272 : vector<1x128xf32> to vector<8x128xf32>
    %292 = arith.addf %290, %291 : vector<8x128xf32>
    %293 = arith.truncf %292 : vector<8x128xf32> to vector<8x128xbf16>
    %c0_114 = arith.constant 0 : index
    %c0_115 = arith.constant 0 : index
    %c0_116 = arith.constant 0 : index
    %294 = vector.load %arg18[%c0_114, %c0_115, %c0_116] : memref<1x128x512xbf16, #tpu.memory_space<vmem>>, vector<1x128x512xbf16>
    %295 = vector.shape_cast %294 : vector<1x128x512xbf16> to vector<128x512xbf16>
    %cst_117 = arith.constant dense<0.000000e+00> : vector<8x512xf32>
    %296 = tpu.matmul %293, %295, %cst_117 {dimension_numbers = #tpu.dot_dimension_numbers<[1], [0], [0], [1], [0, 0, 1, 1], [], []>} : vector<8x128xbf16>, vector<128x512xbf16>, vector<8x512xf32> -> vector<8x512xf32>
    %c0_118 = arith.constant 0 : index
    %c0_119 = arith.constant 0 : index
    %c0_120 = arith.constant 0 : index
    %297 = vector.load %arg19[%c0_118, %c0_119, %c0_120] : memref<1x1x512xf32, #tpu.memory_space<vmem>>, vector<1x1x512xf32>
    %298 = vector.shape_cast %297 : vector<1x1x512xf32> to vector<1x512xf32>
    %299 = vector.broadcast %298 : vector<1x512xf32> to vector<8x512xf32>
    %300 = arith.addf %296, %299 : vector<8x512xf32>
    %cst_121 = arith.constant 5.000000e-01 : f32
    %301 = vector.broadcast %cst_121 : f32 to vector<8x512xf32>
    %302 = arith.mulf %301, %300 : vector<8x512xf32>
    %cst_122 = arith.constant 0.707106769 : f32
    %303 = vector.broadcast %cst_122 : f32 to vector<8x512xf32>
    %304 = arith.mulf %300, %303 : vector<8x512xf32>
    %305 = math.erf %304 : vector<8x512xf32>
    %cst_123 = arith.constant 1.000000e+00 : f32
    %306 = vector.broadcast %cst_123 : f32 to vector<8x512xf32>
    %307 = arith.addf %306, %305 : vector<8x512xf32>
    %308 = arith.mulf %302, %307 : vector<8x512xf32>
    %309 = arith.truncf %308 : vector<8x512xf32> to vector<8x512xbf16>
    %c0_124 = arith.constant 0 : index
    %c0_125 = arith.constant 0 : index
    %c0_126 = arith.constant 0 : index
    %310 = vector.load %arg20[%c0_124, %c0_125, %c0_126] : memref<1x512x128xbf16, #tpu.memory_space<vmem>>, vector<1x512x128xbf16>
    %311 = vector.shape_cast %310 : vector<1x512x128xbf16> to vector<512x128xbf16>
    %cst_127 = arith.constant dense<0.000000e+00> : vector<8x128xf32>
    %312 = tpu.matmul %309, %311, %cst_127 {dimension_numbers = #tpu.dot_dimension_numbers<[1], [0], [0], [1], [0, 0, 1, 1], [], []>} : vector<8x512xbf16>, vector<512x128xbf16>, vector<8x128xf32> -> vector<8x128xf32>
    %c0_128 = arith.constant 0 : index
    %c0_129 = arith.constant 0 : index
    %c0_130 = arith.constant 0 : index
    %313 = vector.load %arg21[%c0_128, %c0_129, %c0_130] : memref<1x1x128xf32, #tpu.memory_space<vmem>>, vector<1x1x128xf32>
    %314 = vector.shape_cast %313 : vector<1x1x128xf32> to vector<1x128xf32>
    %315 = vector.broadcast %314 : vector<1x128xf32> to vector<8x128xf32>
    %316 = arith.addf %312, %315 : vector<8x128xf32>
    %c0_131 = arith.constant 0 : index
    %c0_132 = arith.constant 0 : index
    %c0_133 = arith.constant 0 : index
    %317 = vector.load %arg22[%c0_131, %c0_132, %c0_133] : memref<1x2x128xf32, #tpu.memory_space<vmem>>, vector<1x2x128xf32>
    %318 = vector.shape_cast %317 : vector<1x2x128xf32> to vector<2x128xf32>
    %319 = arith.addf %292, %316 : vector<8x128xf32>
    %320 = vector.extract_strided_slice %318 {offsets = [0, 0], sizes = [1, 128], strides = [1, 1]} : vector<2x128xf32> to vector<1x128xf32>
    %321 = vector.extract_strided_slice %318 {offsets = [1, 0], sizes = [1, 128], strides = [1, 1]} : vector<2x128xf32> to vector<1x128xf32>
    %cst_134 = arith.constant dense<0.000000e+00> : vector<8xf32>
    %322 = vector.multi_reduction <add>, %319, %cst_134 [1] : vector<8x128xf32> to vector<8xf32>
    %323 = vector.shape_cast %322 : vector<8xf32> to vector<8x1xf32>
    %cst_135 = arith.constant 1.280000e+02 : f32
    %324 = vector.broadcast %cst_135 : f32 to vector<8x1xf32>
    %325 = arith.divf %323, %324 : vector<8x1xf32>
    %326 = vector.broadcast %325 : vector<8x1xf32> to vector<8x128xf32>
    %327 = arith.subf %319, %326 : vector<8x128xf32>
    %328 = arith.mulf %327, %327 : vector<8x128xf32>
    %cst_136 = arith.constant dense<0.000000e+00> : vector<8xf32>
    %329 = vector.multi_reduction <add>, %328, %cst_136 [1] : vector<8x128xf32> to vector<8xf32>
    %330 = vector.shape_cast %329 : vector<8xf32> to vector<8x1xf32>
    %cst_137 = arith.constant 1.280000e+02 : f32
    %331 = vector.broadcast %cst_137 : f32 to vector<8x1xf32>
    %332 = arith.divf %330, %331 : vector<8x1xf32>
    %cst_138 = arith.constant 9.99999996E-13 : f32
    %333 = vector.broadcast %cst_138 : f32 to vector<8x1xf32>
    %334 = arith.addf %332, %333 : vector<8x1xf32>
    %335 = math.rsqrt %334 : vector<8x1xf32>
    %336 = vector.broadcast %335 : vector<8x1xf32> to vector<8x128xf32>
    %337 = arith.mulf %327, %336 : vector<8x128xf32>
    %338 = vector.broadcast %320 : vector<1x128xf32> to vector<8x128xf32>
    %339 = arith.mulf %337, %338 : vector<8x128xf32>
    %340 = vector.broadcast %321 : vector<1x128xf32> to vector<8x128xf32>
    %341 = arith.addf %339, %340 : vector<8x128xf32>
    %c0_139 = arith.constant 0 : index
    %c0_140 = arith.constant 0 : index
    %342 = vector.load %arg24[%c0_139, %c0_140] : memref<8x128xf32, #tpu.memory_space<vmem>>, vector<8x128xf32>
    tpu.vector_store %arg24[%c0_139, %c0_140], %341 {strides = array<i32>} : memref<8x128xf32, #tpu.memory_space<vmem>>, vector<8x128xf32>,
    %c1_i32 = arith.constant 1 : i32
    %343 = arith.cmpi eq, %arg1, %c1_i32 : i32
    %344 = arith.extui %343 : i1 to i32
    %c0_i32_141 = arith.constant 0 : i32
    %345 = arith.cmpi ne, %344, %c0_i32_141 : i32
    scf.if %345 {
      %c0_142 = arith.constant 0 : index
      %c0_143 = arith.constant 0 : index
      %346 = vector.load %arg24[%c0_142, %c0_143] : memref<8x128xf32, #tpu.memory_space<vmem>>, vector<8x128xf32>
      %c0_144 = arith.constant 0 : index
      %c0_145 = arith.constant 0 : index
      %c0_146 = arith.constant 0 : index
      %347 = vector.load %arg23[%c0_144, %c0_145, %c0_146] : memref<1x8x128xf32, #tpu.memory_space<vmem>>, vector<1x8x128xf32>
      %348 = vector.shape_cast %347 : vector<1x8x128xf32> to vector<8x128xf32>
      %349 = vector.shape_cast %346 : vector<8x128xf32> to vector<1x8x128xf32>
      tpu.vector_store %arg23[%c0_144, %c0_145, %c0_146], %349 {strides = array<i32>} : memref<1x8x128xf32, #tpu.memory_space<vmem>>, vector<1x8x128xf32>,
    } else {
    }
    return
  }
  func.func @transform_0(%arg0: i32, %arg1: i32, %arg2: memref<2xi32, #tpu.memory_space<smem>>) -> (i32, i32, i32) {
    %c0_i32 = arith.constant 0 : i32
    %c0_i32_0 = arith.constant 0 : i32
    %c0_i32_1 = arith.constant 0 : i32
    return %arg0, %c0_i32, %c0_i32_0 : i32, i32, i32
  }
  func.func @transform_1(%arg0: i32, %arg1: i32, %arg2: memref<2xi32, #tpu.memory_space<smem>>) -> (i32, i32, i32) {
    %c0_i32 = arith.constant 0 : i32
    %c0_i32_0 = arith.constant 0 : i32
    %c0_i32_1 = arith.constant 0 : i32
    return %arg0, %c0_i32, %c0_i32_0 : i32, i32, i32
  }
  func.func @transform_2(%arg0: i32, %arg1: i32, %arg2: memref<2xi32, #tpu.memory_space<smem>>) -> (i32, i32) {
    %c0_i32 = arith.constant 0 : i32
    %c0_i32_0 = arith.constant 0 : i32
    %c0_i32_1 = arith.constant 0 : i32
    return %c0_i32, %c0_i32_0 : i32, i32
  }
  func.func @transform_3(%arg0: i32, %arg1: i32, %arg2: memref<2xi32, #tpu.memory_space<smem>>) -> (i32, i32, i32) {
    %c0_i32 = arith.constant 0 : i32
    %c0_i32_0 = arith.constant 0 : i32
    %c0_i32_1 = arith.constant 0 : i32
    return %arg1, %c0_i32, %c0_i32_0 : i32, i32, i32
  }
  func.func @transform_4(%arg0: i32, %arg1: i32, %arg2: memref<2xi32, #tpu.memory_space<smem>>) -> (i32, i32, i32) {
    %c0_i32 = arith.constant 0 : i32
    %c0_i32_0 = arith.constant 0 : i32
    %c0_i32_1 = arith.constant 0 : i32
    return %arg1, %c0_i32, %c0_i32_0 : i32, i32, i32
  }
  func.func @transform_5(%arg0: i32, %arg1: i32, %arg2: memref<2xi32, #tpu.memory_space<smem>>) -> (i32, i32, i32) {
    %c0_i32 = arith.constant 0 : i32
    %c0_i32_0 = arith.constant 0 : i32
    %c0_i32_1 = arith.constant 0 : i32
    return %arg1, %c0_i32, %c0_i32_0 : i32, i32, i32
  }
  func.func @transform_6(%arg0: i32, %arg1: i32, %arg2: memref<2xi32, #tpu.memory_space<smem>>) -> (i32, i32, i32) {
    %c0_i32 = arith.constant 0 : i32
    %c0_i32_0 = arith.constant 0 : i32
    %c0_i32_1 = arith.constant 0 : i32
    return %arg1, %c0_i32, %c0_i32_0 : i32, i32, i32
  }
  func.func @transform_7(%arg0: i32, %arg1: i32, %arg2: memref<2xi32, #tpu.memory_space<smem>>) -> (i32, i32, i32) {
    %c0_i32 = arith.constant 0 : i32
    %c0_i32_0 = arith.constant 0 : i32
    %c0_i32_1 = arith.constant 0 : i32
    return %arg1, %c0_i32, %c0_i32_0 : i32, i32, i32
  }
  func.func @transform_8(%arg0: i32, %arg1: i32, %arg2: memref<2xi32, #tpu.memory_space<smem>>) -> (i32, i32, i32) {
    %c0_i32 = arith.constant 0 : i32
    %c0_i32_0 = arith.constant 0 : i32
    %c0_i32_1 = arith.constant 0 : i32
    return %arg1, %c0_i32, %c0_i32_0 : i32, i32, i32
  }
  func.func @transform_9(%arg0: i32, %arg1: i32, %arg2: memref<2xi32, #tpu.memory_space<smem>>) -> (i32, i32, i32) {
    %c0_i32 = arith.constant 0 : i32
    %c0_i32_0 = arith.constant 0 : i32
    %c0_i32_1 = arith.constant 0 : i32
    return %arg1, %c0_i32, %c0_i32_0 : i32, i32, i32
  }
  func.func @transform_10(%arg0: i32, %arg1: i32, %arg2: memref<2xi32, #tpu.memory_space<smem>>) -> (i32, i32, i32) {
    %c0_i32 = arith.constant 0 : i32
    %c0_i32_0 = arith.constant 0 : i32
    %c0_i32_1 = arith.constant 0 : i32
    return %arg1, %c0_i32, %c0_i32_0 : i32, i32, i32
  }
  func.func @transform_11(%arg0: i32, %arg1: i32, %arg2: memref<2xi32, #tpu.memory_space<smem>>) -> (i32, i32, i32) {
    %c0_i32 = arith.constant 0 : i32
    %c0_i32_0 = arith.constant 0 : i32
    %c0_i32_1 = arith.constant 0 : i32
    return %arg1, %c0_i32, %c0_i32_0 : i32, i32, i32
  }
  func.func @transform_12(%arg0: i32, %arg1: i32, %arg2: memref<2xi32, #tpu.memory_space<smem>>) -> (i32, i32, i32) {
    %c0_i32 = arith.constant 0 : i32
    %c0_i32_0 = arith.constant 0 : i32
    %c0_i32_1 = arith.constant 0 : i32
    return %arg1, %c0_i32, %c0_i32_0 : i32, i32, i32
  }
  func.func @transform_13(%arg0: i32, %arg1: i32, %arg2: memref<2xi32, #tpu.memory_space<smem>>) -> (i32, i32, i32) {
    %c0_i32 = arith.constant 0 : i32
    %c0_i32_0 = arith.constant 0 : i32
    %c0_i32_1 = arith.constant 0 : i32
    return %arg1, %c0_i32, %c0_i32_0 : i32, i32, i32
  }
  func.func @transform_14(%arg0: i32, %arg1: i32, %arg2: memref<2xi32, #tpu.memory_space<smem>>) -> (i32, i32, i32) {
    %c0_i32 = arith.constant 0 : i32
    %c0_i32_0 = arith.constant 0 : i32
    %c0_i32_1 = arith.constant 0 : i32
    return %arg1, %c0_i32, %c0_i32_0 : i32, i32, i32
  }
  func.func @transform_15(%arg0: i32, %arg1: i32, %arg2: memref<2xi32, #tpu.memory_space<smem>>) -> (i32, i32, i32) {
    %c0_i32 = arith.constant 0 : i32
    %c0_i32_0 = arith.constant 0 : i32
    %c0_i32_1 = arith.constant 0 : i32
    return %arg1, %c0_i32, %c0_i32_0 : i32, i32, i32
  }
  func.func @transform_16(%arg0: i32, %arg1: i32, %arg2: memref<2xi32, #tpu.memory_space<smem>>) -> (i32, i32, i32) {
    %c0_i32 = arith.constant 0 : i32
    %c0_i32_0 = arith.constant 0 : i32
    %c0_i32_1 = arith.constant 0 : i32
    return %arg1, %c0_i32, %c0_i32_0 : i32, i32, i32
  }
  func.func @transform_17(%arg0: i32, %arg1: i32, %arg2: memref<2xi32, #tpu.memory_space<smem>>) -> (i32, i32, i32) {
    %c0_i32 = arith.constant 0 : i32
    %c0_i32_0 = arith.constant 0 : i32
    %c0_i32_1 = arith.constant 0 : i32
    return %arg1, %c0_i32, %c0_i32_0 : i32, i32, i32
  }
  func.func @transform_18(%arg0: i32, %arg1: i32, %arg2: memref<2xi32, #tpu.memory_space<smem>>) -> (i32, i32, i32) {
    %c0_i32 = arith.constant 0 : i32
    %c0_i32_0 = arith.constant 0 : i32
    %c0_i32_1 = arith.constant 0 : i32
    return %arg1, %c0_i32, %c0_i32_0 : i32, i32, i32
  }
  func.func @transform_19(%arg0: i32, %arg1: i32, %arg2: memref<2xi32, #tpu.memory_space<smem>>) -> (i32, i32, i32) {
    %c0_i32 = arith.constant 0 : i32
    %c0_i32_0 = arith.constant 0 : i32
    %c0_i32_1 = arith.constant 0 : i32
    return %arg1, %c0_i32, %c0_i32_0 : i32, i32, i32
  }
  func.func @transform_20(%arg0: i32, %arg1: i32, %arg2: memref<2xi32, #tpu.memory_space<smem>>) -> (i32, i32, i32) {
    %c0_i32 = arith.constant 0 : i32
    %c0_i32_0 = arith.constant 0 : i32
    %c0_i32_1 = arith.constant 0 : i32
    return %arg0, %c0_i32, %c0_i32_0 : i32, i32, i32
  }
}

module attributes {stable_mosaic.version = 11 : i64} {
  func.func @_lmhead_ce_kernel(%arg0: i32, %arg1: memref<14x128xf32, #tpu.memory_space<vmem>>, %arg2: memref<14x1xi32, #tpu.memory_space<vmem>>, %arg3: memref<128x128xbf16, #tpu.memory_space<vmem>>, %arg4: memref<1x128xf32, #tpu.memory_space<vmem>>, %arg5: memref<2x128xf32, #tpu.memory_space<vmem>>, %arg6: memref<128x512xbf16, #tpu.memory_space<vmem>>, %arg7: memref<1x512xf32, #tpu.memory_space<vmem>>, %arg8: memref<1x1xf32, #tpu.memory_space<vmem>>, %arg9: memref<14x128xbf16, #tpu.memory_space<vmem>>, %arg10: memref<14x1xf32, #tpu.memory_space<vmem>>, %arg11: memref<14x1xf32, #tpu.memory_space<vmem>>, %arg12: memref<14x1xf32, #tpu.memory_space<vmem>>) attributes {dimension_semantics = [#tpu.dimension_semantics<arbitrary>], iteration_bounds = array<i64: 2>, scalar_prefetch = 0 : i64, scratch_operands = 4 : i64, tpu.core_type = #tpu.core_type<tc>, window_params = [{pipeline_mode = #tpu.pipeline_mode<synchronous>, transform_indices = @transform_0, window_bounds = array<i64: 14, 128>}, {pipeline_mode = #tpu.pipeline_mode<synchronous>, transform_indices = @transform_1, window_bounds = array<i64: 14, 1>}, {pipeline_mode = #tpu.pipeline_mode<synchronous>, transform_indices = @transform_2, window_bounds = array<i64: 128, 128>}, {pipeline_mode = #tpu.pipeline_mode<synchronous>, transform_indices = @transform_3, window_bounds = array<i64: 1, 128>}, {pipeline_mode = #tpu.pipeline_mode<synchronous>, transform_indices = @transform_4, window_bounds = array<i64: 2, 128>}, {transform_indices = @transform_5, window_bounds = array<i64: 128, 512>}, {transform_indices = @transform_6, window_bounds = array<i64: 1, 512>}, {pipeline_mode = #tpu.pipeline_mode<synchronous>, transform_indices = @transform_7, window_bounds = array<i64: 1, 1>}]} {
    %c0_i32 = arith.constant 0 : i32
    %0 = arith.cmpi eq, %arg0, %c0_i32 : i32
    %1 = arith.extui %0 : i1 to i32
    %c0_i32_0 = arith.constant 0 : i32
    %2 = arith.cmpi ne, %1, %c0_i32_0 : i32
    scf.if %2 {
      %c0_27 = arith.constant 0 : index
      %c0_28 = arith.constant 0 : index
      %48 = vector.load %arg5[%c0_27, %c0_28] : memref<2x128xf32, #tpu.memory_space<vmem>>, vector<2x128xf32>
      %c0_29 = arith.constant 0 : index
      %c0_30 = arith.constant 0 : index
      %49 = vector.load %arg1[%c0_29, %c0_30] : memref<14x128xf32, #tpu.memory_space<vmem>>, vector<14x128xf32>
      %50 = arith.truncf %49 : vector<14x128xf32> to vector<14x128xbf16>
      %c0_31 = arith.constant 0 : index
      %c0_32 = arith.constant 0 : index
      %51 = vector.load %arg3[%c0_31, %c0_32] : memref<128x128xbf16, #tpu.memory_space<vmem>>, vector<128x128xbf16>
      %cst_33 = arith.constant dense<0.000000e+00> : vector<14x128xf32>
      %52 = tpu.matmul %50, %51, %cst_33 {dimension_numbers = #tpu.dot_dimension_numbers<[1], [0], [0], [1], [0, 0, 1, 1], [], []>} : vector<14x128xbf16>, vector<128x128xbf16>, vector<14x128xf32> -> vector<14x128xf32>
      %c0_34 = arith.constant 0 : index
      %c0_35 = arith.constant 0 : index
      %53 = vector.load %arg4[%c0_34, %c0_35] : memref<1x128xf32, #tpu.memory_space<vmem>>, vector<1x128xf32>
      %54 = vector.broadcast %53 : vector<1x128xf32> to vector<14x128xf32>
      %55 = arith.addf %52, %54 : vector<14x128xf32>
      %cst_36 = arith.constant 5.000000e-01 : f32
      %56 = vector.broadcast %cst_36 : f32 to vector<14x128xf32>
      %57 = arith.mulf %56, %55 : vector<14x128xf32>
      %cst_37 = arith.constant 0.707106769 : f32
      %58 = vector.broadcast %cst_37 : f32 to vector<14x128xf32>
      %59 = arith.mulf %55, %58 : vector<14x128xf32>
      %60 = math.erf %59 : vector<14x128xf32>
      %cst_38 = arith.constant 1.000000e+00 : f32
      %61 = vector.broadcast %cst_38 : f32 to vector<14x128xf32>
      %62 = arith.addf %61, %60 : vector<14x128xf32>
      %63 = arith.mulf %57, %62 : vector<14x128xf32>
      %64 = vector.extract_strided_slice %48 {offsets = [0, 0], sizes = [1, 128], strides = [1, 1]} : vector<2x128xf32> to vector<1x128xf32>
      %65 = vector.extract_strided_slice %48 {offsets = [1, 0], sizes = [1, 128], strides = [1, 1]} : vector<2x128xf32> to vector<1x128xf32>
      %cst_39 = arith.constant dense<0.000000e+00> : vector<14xf32>
      %66 = vector.multi_reduction <add>, %63, %cst_39 [1] : vector<14x128xf32> to vector<14xf32>
      %67 = vector.shape_cast %66 : vector<14xf32> to vector<14x1xf32>
      %cst_40 = arith.constant 1.280000e+02 : f32
      %68 = vector.broadcast %cst_40 : f32 to vector<14x1xf32>
      %69 = arith.divf %67, %68 : vector<14x1xf32>
      %70 = vector.broadcast %69 : vector<14x1xf32> to vector<14x128xf32>
      %71 = arith.subf %63, %70 : vector<14x128xf32>
      %72 = arith.mulf %71, %71 : vector<14x128xf32>
      %cst_41 = arith.constant dense<0.000000e+00> : vector<14xf32>
      %73 = vector.multi_reduction <add>, %72, %cst_41 [1] : vector<14x128xf32> to vector<14xf32>
      %74 = vector.shape_cast %73 : vector<14xf32> to vector<14x1xf32>
      %cst_42 = arith.constant 1.280000e+02 : f32
      %75 = vector.broadcast %cst_42 : f32 to vector<14x1xf32>
      %76 = arith.divf %74, %75 : vector<14x1xf32>
      %cst_43 = arith.constant 9.99999996E-13 : f32
      %77 = vector.broadcast %cst_43 : f32 to vector<14x1xf32>
      %78 = arith.addf %76, %77 : vector<14x1xf32>
      %79 = math.rsqrt %78 : vector<14x1xf32>
      %80 = vector.broadcast %79 : vector<14x1xf32> to vector<14x128xf32>
      %81 = arith.mulf %71, %80 : vector<14x128xf32>
      %82 = vector.broadcast %64 : vector<1x128xf32> to vector<14x128xf32>
      %83 = arith.mulf %81, %82 : vector<14x128xf32>
      %84 = vector.broadcast %65 : vector<1x128xf32> to vector<14x128xf32>
      %85 = arith.addf %83, %84 : vector<14x128xf32>
      %86 = arith.truncf %85 : vector<14x128xf32> to vector<14x128xbf16>
      %c0_44 = arith.constant 0 : index
      %c0_45 = arith.constant 0 : index
      %87 = vector.load %arg9[%c0_44, %c0_45] : memref<14x128xbf16, #tpu.memory_space<vmem>>, vector<14x128xbf16>
      tpu.vector_store %arg9[%c0_44, %c0_45], %86 {strides = array<i32>} : memref<14x128xbf16, #tpu.memory_space<vmem>>, vector<14x128xbf16>,
      %cst_46 = arith.constant -1.000000e+30 : f32
      %88 = vector.broadcast %cst_46 : f32 to vector<14x1xf32>
      %c0_47 = arith.constant 0 : index
      %c0_48 = arith.constant 0 : index
      %89 = vector.load %arg10[%c0_47, %c0_48] : memref<14x1xf32, #tpu.memory_space<vmem>>, vector<14x1xf32>
      tpu.vector_store %arg10[%c0_47, %c0_48], %88 {strides = array<i32>} : memref<14x1xf32, #tpu.memory_space<vmem>>, vector<14x1xf32>,
      %cst_49 = arith.constant 0.000000e+00 : f32
      %90 = vector.broadcast %cst_49 : f32 to vector<14x1xf32>
      %c0_50 = arith.constant 0 : index
      %c0_51 = arith.constant 0 : index
      %91 = vector.load %arg11[%c0_50, %c0_51] : memref<14x1xf32, #tpu.memory_space<vmem>>, vector<14x1xf32>
      tpu.vector_store %arg11[%c0_50, %c0_51], %90 {strides = array<i32>} : memref<14x1xf32, #tpu.memory_space<vmem>>, vector<14x1xf32>,
      %cst_52 = arith.constant 0.000000e+00 : f32
      %92 = vector.broadcast %cst_52 : f32 to vector<14x1xf32>
      %c0_53 = arith.constant 0 : index
      %c0_54 = arith.constant 0 : index
      %93 = vector.load %arg12[%c0_53, %c0_54] : memref<14x1xf32, #tpu.memory_space<vmem>>, vector<14x1xf32>
      tpu.vector_store %arg12[%c0_53, %c0_54], %92 {strides = array<i32>} : memref<14x1xf32, #tpu.memory_space<vmem>>, vector<14x1xf32>,
    } else {
    }
    %c0 = arith.constant 0 : index
    %c0_1 = arith.constant 0 : index
    %3 = vector.load %arg9[%c0, %c0_1] : memref<14x128xbf16, #tpu.memory_space<vmem>>, vector<14x128xbf16>
    %c0_2 = arith.constant 0 : index
    %c0_3 = arith.constant 0 : index
    %4 = vector.load %arg6[%c0_2, %c0_3] : memref<128x512xbf16, #tpu.memory_space<vmem>>, vector<128x512xbf16>
    %cst = arith.constant dense<0.000000e+00> : vector<14x512xf32>
    %5 = tpu.matmul %3, %4, %cst {dimension_numbers = #tpu.dot_dimension_numbers<[1], [0], [0], [1], [0, 0, 1, 1], [], []>} : vector<14x128xbf16>, vector<128x512xbf16>, vector<14x512xf32> -> vector<14x512xf32>
    %c0_4 = arith.constant 0 : index
    %c0_5 = arith.constant 0 : index
    %6 = vector.load %arg7[%c0_4, %c0_5] : memref<1x512xf32, #tpu.memory_space<vmem>>, vector<1x512xf32>
    %7 = vector.broadcast %6 : vector<1x512xf32> to vector<14x512xf32>
    %8 = arith.addf %5, %7 : vector<14x512xf32>
    %c0_6 = arith.constant 0 : index
    %c0_7 = arith.constant 0 : index
    %9 = vector.load %arg2[%c0_6, %c0_7] : memref<14x1xi32, #tpu.memory_space<vmem>>, vector<14x1xi32>
    %10 = tpu.iota {dimensions = array<i32: 1>} : vector<14x512xi32>
    %c512_i32 = arith.constant 512 : i32
    %11 = arith.muli %arg0, %c512_i32 : i32
    %12 = vector.broadcast %11 : i32 to vector<14x512xi32>
    %13 = arith.addi %10, %12 : vector<14x512xi32>
    %c1000_i32 = arith.constant 1000 : i32
    %14 = vector.broadcast %c1000_i32 : i32 to vector<14x512xi32>
    %15 = arith.cmpi slt, %13, %14 : vector<14x512xi32>
    %cst_8 = arith.constant -1.000000e+09 : f32
    %16 = vector.broadcast %cst_8 : f32 to vector<14x512xf32>
    %17 = arith.select %15, %8, %16 : vector<14x512xi1>, vector<14x512xf32>
    %18 = vector.broadcast %9 : vector<14x1xi32> to vector<14x512xi32>
    %19 = arith.cmpi eq, %13, %18 : vector<14x512xi32>
    %20 = arith.extui %19 : vector<14x512xi1> to vector<14x512xi32>
    %21 = arith.sitofp %20 : vector<14x512xi32> to vector<14x512xf32>
    %c0_9 = arith.constant 0 : index
    %c0_10 = arith.constant 0 : index
    %22 = vector.load %arg12[%c0_9, %c0_10] : memref<14x1xf32, #tpu.memory_space<vmem>>, vector<14x1xf32>
    %23 = arith.mulf %17, %21 : vector<14x512xf32>
    %cst_11 = arith.constant dense<0.000000e+00> : vector<14xf32>
    %24 = vector.multi_reduction <add>, %23, %cst_11 [1] : vector<14x512xf32> to vector<14xf32>
    %25 = vector.shape_cast %24 : vector<14xf32> to vector<14x1xf32>
    %26 = arith.addf %22, %25 : vector<14x1xf32>
    %c0_12 = arith.constant 0 : index
    %c0_13 = arith.constant 0 : index
    %27 = vector.load %arg12[%c0_12, %c0_13] : memref<14x1xf32, #tpu.memory_space<vmem>>, vector<14x1xf32>
    tpu.vector_store %arg12[%c0_12, %c0_13], %26 {strides = array<i32>} : memref<14x1xf32, #tpu.memory_space<vmem>>, vector<14x1xf32>,
    %cst_14 = arith.constant dense<0xFF800000> : vector<14xf32>
    %28 = vector.multi_reduction <maximumf>, %17, %cst_14 [1] : vector<14x512xf32> to vector<14xf32>
    %29 = vector.shape_cast %28 : vector<14xf32> to vector<14x1xf32>
    %c0_15 = arith.constant 0 : index
    %c0_16 = arith.constant 0 : index
    %30 = vector.load %arg10[%c0_15, %c0_16] : memref<14x1xf32, #tpu.memory_space<vmem>>, vector<14x1xf32>
    %31 = arith.maximumf %30, %29 : vector<14x1xf32>
    %c0_17 = arith.constant 0 : index
    %c0_18 = arith.constant 0 : index
    %32 = vector.load %arg11[%c0_17, %c0_18] : memref<14x1xf32, #tpu.memory_space<vmem>>, vector<14x1xf32>
    %c0_19 = arith.constant 0 : index
    %c0_20 = arith.constant 0 : index
    %33 = vector.load %arg10[%c0_19, %c0_20] : memref<14x1xf32, #tpu.memory_space<vmem>>, vector<14x1xf32>
    %34 = arith.subf %33, %31 : vector<14x1xf32>
    %35 = math.exp %34 : vector<14x1xf32>
    %36 = arith.mulf %32, %35 : vector<14x1xf32>
    %37 = vector.broadcast %31 : vector<14x1xf32> to vector<14x512xf32>
    %38 = arith.subf %17, %37 : vector<14x512xf32>
    %39 = math.exp %38 : vector<14x512xf32>
    %cst_21 = arith.constant dense<0.000000e+00> : vector<14xf32>
    %40 = vector.multi_reduction <add>, %39, %cst_21 [1] : vector<14x512xf32> to vector<14xf32>
    %41 = vector.shape_cast %40 : vector<14xf32> to vector<14x1xf32>
    %42 = arith.addf %36, %41 : vector<14x1xf32>
    %c0_22 = arith.constant 0 : index
    %c0_23 = arith.constant 0 : index
    %43 = vector.load %arg11[%c0_22, %c0_23] : memref<14x1xf32, #tpu.memory_space<vmem>>, vector<14x1xf32>
    tpu.vector_store %arg11[%c0_22, %c0_23], %42 {strides = array<i32>} : memref<14x1xf32, #tpu.memory_space<vmem>>, vector<14x1xf32>,
    %c0_24 = arith.constant 0 : index
    %c0_25 = arith.constant 0 : index
    %44 = vector.load %arg10[%c0_24, %c0_25] : memref<14x1xf32, #tpu.memory_space<vmem>>, vector<14x1xf32>
    tpu.vector_store %arg10[%c0_24, %c0_25], %31 {strides = array<i32>} : memref<14x1xf32, #tpu.memory_space<vmem>>, vector<14x1xf32>,
    %c1_i32 = arith.constant 1 : i32
    %45 = arith.cmpi eq, %arg0, %c1_i32 : i32
    %46 = arith.extui %45 : i1 to i32
    %c0_i32_26 = arith.constant 0 : i32
    %47 = arith.cmpi ne, %46, %c0_i32_26 : i32
    scf.if %47 {
      %c0_27 = arith.constant 0 : index
      %c0_28 = arith.constant 0 : index
      %48 = vector.load %arg10[%c0_27, %c0_28] : memref<14x1xf32, #tpu.memory_space<vmem>>, vector<14x1xf32>
      %c0_29 = arith.constant 0 : index
      %c0_30 = arith.constant 0 : index
      %49 = vector.load %arg11[%c0_29, %c0_30] : memref<14x1xf32, #tpu.memory_space<vmem>>, vector<14x1xf32>
      %50 = math.log %49 : vector<14x1xf32>
      %51 = arith.addf %48, %50 : vector<14x1xf32>
      %c0_31 = arith.constant 0 : index
      %c0_32 = arith.constant 0 : index
      %52 = vector.load %arg2[%c0_31, %c0_32] : memref<14x1xi32, #tpu.memory_space<vmem>>, vector<14x1xi32>
      %c-100_i32 = arith.constant -100 : i32
      %53 = vector.broadcast %c-100_i32 : i32 to vector<14x1xi32>
      %54 = arith.cmpi ne, %52, %53 : vector<14x1xi32>
      %55 = arith.extui %54 : vector<14x1xi1> to vector<14x1xi32>
      %56 = arith.sitofp %55 : vector<14x1xi32> to vector<14x1xf32>
      %c0_33 = arith.constant 0 : index
      %c0_34 = arith.constant 0 : index
      %57 = vector.load %arg12[%c0_33, %c0_34] : memref<14x1xf32, #tpu.memory_space<vmem>>, vector<14x1xf32>
      %58 = arith.subf %51, %57 : vector<14x1xf32>
      %59 = arith.mulf %58, %56 : vector<14x1xf32>
      %60 = vector.shape_cast %59 : vector<14x1xf32> to vector<1x14x1xf32>
      %cst_35 = arith.constant dense<0.000000e+00> : vector<1xf32>
      %61 = vector.multi_reduction <add>, %60, %cst_35 [1, 2] : vector<1x14x1xf32> to vector<1xf32>
      %62 = vector.shape_cast %61 : vector<1xf32> to vector<1x1x1xf32>
      %63 = vector.extract %62[0, 0, 0] : f32 from vector<1x1x1xf32>
      %64 = vector.broadcast %63 : f32 to vector<1x1xf32>
      %65 = vector.shape_cast %56 : vector<14x1xf32> to vector<1x14x1xf32>
      %cst_36 = arith.constant dense<0.000000e+00> : vector<1xf32>
      %66 = vector.multi_reduction <add>, %65, %cst_36 [1, 2] : vector<1x14x1xf32> to vector<1xf32>
      %67 = vector.shape_cast %66 : vector<1xf32> to vector<1x1x1xf32>
      %68 = vector.extract %67[0, 0, 0] : f32 from vector<1x1x1xf32>
      %69 = vector.broadcast %68 : f32 to vector<1x1xf32>
      %cst_37 = arith.constant 1.000000e+00 : f32
      %70 = vector.broadcast %cst_37 : f32 to vector<1x1xf32>
      %71 = arith.maximumf %69, %70 : vector<1x1xf32>
      %72 = arith.divf %64, %71 : vector<1x1xf32>
      %c0_38 = arith.constant 0 : index
      %c0_39 = arith.constant 0 : index
      %73 = vector.load %arg8[%c0_38, %c0_39] : memref<1x1xf32, #tpu.memory_space<vmem>>, vector<1x1xf32>
      tpu.vector_store %arg8[%c0_38, %c0_39], %72 {strides = array<i32>} : memref<1x1xf32, #tpu.memory_space<vmem>>, vector<1x1xf32>,
    } else {
    }
    return
  }
  func.func @transform_0(%arg0: i32) -> (i32, i32) {
    %c0_i32 = arith.constant 0 : i32
    %c0_i32_0 = arith.constant 0 : i32
    %c0_i32_1 = arith.constant 0 : i32
    return %c0_i32, %c0_i32_0 : i32, i32
  }
  func.func @transform_1(%arg0: i32) -> (i32, i32) {
    %c0_i32 = arith.constant 0 : i32
    %c0_i32_0 = arith.constant 0 : i32
    %c0_i32_1 = arith.constant 0 : i32
    return %c0_i32, %c0_i32_0 : i32, i32
  }
  func.func @transform_2(%arg0: i32) -> (i32, i32) {
    %c0_i32 = arith.constant 0 : i32
    %c0_i32_0 = arith.constant 0 : i32
    %c0_i32_1 = arith.constant 0 : i32
    return %c0_i32, %c0_i32_0 : i32, i32
  }
  func.func @transform_3(%arg0: i32) -> (i32, i32) {
    %c0_i32 = arith.constant 0 : i32
    %c0_i32_0 = arith.constant 0 : i32
    %c0_i32_1 = arith.constant 0 : i32
    return %c0_i32, %c0_i32_0 : i32, i32
  }
  func.func @transform_4(%arg0: i32) -> (i32, i32) {
    %c0_i32 = arith.constant 0 : i32
    %c0_i32_0 = arith.constant 0 : i32
    %c0_i32_1 = arith.constant 0 : i32
    return %c0_i32, %c0_i32_0 : i32, i32
  }
  func.func @transform_5(%arg0: i32) -> (i32, i32) {
    %c0_i32 = arith.constant 0 : i32
    %c0_i32_0 = arith.constant 0 : i32
    return %c0_i32, %arg0 : i32, i32
  }
  func.func @transform_6(%arg0: i32) -> (i32, i32) {
    %c0_i32 = arith.constant 0 : i32
    %c0_i32_0 = arith.constant 0 : i32
    return %c0_i32, %arg0 : i32, i32
  }
  func.func @transform_7(%arg0: i32) -> (i32, i32) {
    %c0_i32 = arith.constant 0 : i32
    %c0_i32_0 = arith.constant 0 : i32
    %c0_i32_1 = arith.constant 0 : i32
    return %c0_i32, %c0_i32_0 : i32, i32
  }
}

</mosaic_0001>

<bundles_post_ra>
// kernel: blip_decoder_forward.4
= control target key start
LH: loop header
LB: loop body
LE: loop exit
PB: predicated region body
PF: predicated region fallthrough
CT: control target
= control target key end

     0   :  { %8 = vsyncpa [#allocation3], 0  ;;  %s744_s12 = smov [#allocation2]   ;;  %s942_s0 = inlined_call_operand.vmem [shape: f32[8,768], index: 0, kind: input, shape index: {}]   ;;  %s943_s1 = inlined_call_operand.vmem [shape: bf16[768,128], index: 1, kind: input, shape index: {}]   ;;  %s944_s2 = inlined_call_operand.hbm [shape: f32[1,128], index: 2, kind: input, shape index: {}]   ;;  %s945_s3 = inlined_call_operand.vmem [shape: f32[8,128], index: 3, kind: output, shape index: {}]  }
   0x1   :  { %s19_s13 = sshll.u32 %s744_s12, 4  ;;  %s720_s16 = scalar_lea.hbm %s944_s2, 16  ;;  %s20_s13 = int_to_ptr.vmem [resolvable:$true] %s19_s13 }
   0x2   :  { %p721_p0 = scmp.ne.s32.totalorder %s944_s2, %s720_s16  ;;  %p724_p1 = scmp.lt.u32.totalorder %s720_s16, %s944_s2 }
   0x4   :  { %p726_p2 = pnand %p724_p1, %p721_p0 }
   0x6   :  { %729 = shalt.err (!%p726_p2)
}
   0x7   :  { %s730_s21 = scalar_lea.vmem %s20_s13, 16  ;;  %s734_s22 = scalar_lea.vmem %s20_s13, 32 }
   0x8   :  { %p731_p3 = scmp.ne.s32.totalorder %s20_s13, %s730_s21  ;;  %p735_p4 = scmp.lt.s32.totalorder %s20_s13, %s20_s13 }
   0x9   :  { %p736_p5 = scmp.lt.s32.totalorder %s734_s22, %s730_s21 }
   0xb   :  { %p737_p6 = por %p736_p5, %p735_p4 }
   0xd   :  { %p738_p7 = pnand %p737_p6, %p731_p3 }
   0xf   :  { %741 = shalt.err (!%p738_p7)
}
  0x10   :  { %22 = dma.hbm_to_vmem [thread:$0]  %s944_s2, 16, %s20_s13, [#allocation3]  }
  0x11   :  { %742 = dma.done.wait [#allocation3], 16  }
  0x12   :  { %743 = vsyncadd [#allocation3], 4294967280  ;;  %v672_v0 = vld [vmem:[%s943_s1 + $0x40] sm:$0xff]   ;;  %v676_v4 = vld [vmem:[%s943_s1 + $0x48] sm:$0xff]  }
  0x13   :  { %v673_v1 = vld [vmem:[%s943_s1] sm:$0xff]   ;;  %605 = vmatprep.subr.bf16.mxu0 %v672_v0  ;;  %v677_v5 = vld [vmem:[%s943_s1 + $0x8] sm:$0xff]   ;;  %v680_v8 = vld [vmem:[%s943_s1 + $0x50] sm:$0xff]  }
  0x14   :  { %v674_v2 = vld [vmem:[%s943_s1 + $0xc0] sm:$0xff]   ;;  %606 = vmatpush3.bf16.msra.mxu0 %v673_v1  ;;  %v678_v6 = vld [vmem:[%s943_s1 + $0xc8] sm:$0xff]   ;;  %v681_v9 = vld [vmem:[%s943_s1 + $0x10] sm:$0xff]  }
  0x15   :  { %v675_v3 = vld [vmem:[%s943_s1 + $0x80] sm:$0xff]   ;;  %627 = vmatprep.subr.bf16.mxu1 %v674_v2  ;;  %607 = vmatprep.subr.bf16.mxu0 %v676_v4  ;;  %v679_v7 = vld [vmem:[%s943_s1 + $0x88] sm:$0xff]   ;;  %v682_v10 = vld [vmem:[%s943_s1 + $0xd0] sm:$0xff]  }
  0x16   :  { %628 = vmatpush3.bf16.msra.mxu1 %v675_v3  ;;  %v683_v11 = vld [vmem:[%s943_s1 + $0x90] sm:$0xff]   ;;  %v684_v12 = vld [vmem:[%s943_s1 + $0x58] sm:$0xff]   ;;  %v688_v16 = vld [vmem:[%s943_s1 + $0x60] sm:$0xff]  }
  0x17   :  { %629 = vmatprep.subr.bf16.mxu1 %v678_v6  ;;  %v685_v13 = vld [vmem:[%s943_s1 + $0x18] sm:$0xff]   ;;  %v689_v17 = vld [vmem:[%s943_s1 + $0x20] sm:$0xff]   ;;  %v692_v20 = vld [vmem:[%s943_s1 + $0x68] sm:$0xff]  }
  0x18   :  { %608 = vmatpush3.bf16.msra.mxu0 %v677_v5  ;;  %v686_v14 = vld [vmem:[%s943_s1 + $0xd8] sm:$0xff]   ;;  %v690_v18 = vld [vmem:[%s943_s1 + $0xe0] sm:$0xff]   ;;  %v693_v21 = vld [vmem:[%s943_s1 + $0x28] sm:$0xff]  }
  0x19   :  { %609 = vmatprep.subr.bf16.mxu0 %v680_v8  ;;  %v687_v15 = vld [vmem:[%s943_s1 + $0x98] sm:$0xff]   ;;  %v691_v19 = vld [vmem:[%s943_s1 + $0xa0] sm:$0xff]   ;;  %v694_v22 = vld [vmem:[%s943_s1 + $0xe8] sm:$0xff]  }
  0x1a   :  { %630 = vmatpush3.bf16.msra.mxu1 %v679_v7  ;;  %v695_v23 = vld [vmem:[%s943_s1 + $0xa8] sm:$0xff]   ;;  %v696_v24 = vld [vmem:[%s943_s1 + $0x70] sm:$0xff]   ;;  %v700_v28 = vld [vmem:[%s943_s1 + $0x78] sm:$0xff]  }
  0x1b   :  { %631 = vmatprep.subr.bf16.mxu1 %v682_v10  ;;  %v697_v25 = vld [vmem:[%s943_s1 + $0x30] sm:$0xff]   ;;  %v701_v29 = vld [vmem:[%s943_s1 + $0x38] sm:$0xff]   ;;  %v28_v31 = vld [vmem:[%s942_s0 + $0x8] sm:$0xff] }
  0x1c   :  { %610 = vmatpush3.bf16.msra.mxu0 %v681_v9  ;;  %v698_v26 = vld [vmem:[%s943_s1 + $0xf0] sm:$0xff]   ;;  %v702_v30 = vld [vmem:[%s943_s1 + $0xf8] sm:$0xff]   ;;  %v34_v32 = vpack.c.bf16 %v28_v31, %v28_v31  ;;  %v27_v34 = vld [vmem:[%s942_s0] sm:$0xff] }
  0x1d   :  { %611 = vmatprep.subr.bf16.mxu0 %v684_v12  ;;  %v699_v27 = vld [vmem:[%s943_s1 + $0xb0] sm:$0xff]   ;;  %v703_v33 = vld [vmem:[%s943_s1 + $0xb8] sm:$0xff]   ;;  %v33_v35 = vpack.c.bf16 %v27_v34, %v27_v34  ;;  %v704_v36 = vld [vmem:[%s943_s1 + $0x140] sm:$0xff]  }
  0x1e   :  { %632 = vmatpush3.bf16.msra.mxu1 %v683_v11  ;;  %v30_v37 = vld [vmem:[%s942_s0 + $0x18] sm:$0xff]  ;;  %462 = vmatprep.mubr.bf16.mxu0 %v34_v32  ;;  %v705_v39 = vld [vmem:[%s943_s1 + $0x100] sm:$0xff]   ;;  %v29_v40 = vld [vmem:[%s942_s0 + $0x10] sm:$0xff] }
  0x1f   :  { %633 = vmatprep.subr.bf16.mxu1 %v686_v14  ;;  %v36_v38 = vpack.c.bf16 %v30_v37, %v30_v37  ;;  %v35_v41 = vpack.c.bf16 %v29_v40, %v29_v40  ;;  %v706_v42 = vld [vmem:[%s943_s1 + $0x148] sm:$0xff]   ;;  %v708_v44 = vld [vmem:[%s943_s1 + $0x150] sm:$0xff]   ;;  %v710_v46 = vld [vmem:[%s943_s1 + $0x158] sm:$0xff]  }
  0x20   :  { %612 = vmatpush3.bf16.msra.mxu0 %v685_v13  ;;  %v707_v43 = vld [vmem:[%s943_s1 + $0x108] sm:$0xff]   ;;  %v709_v45 = vld [vmem:[%s943_s1 + $0x110] sm:$0xff]   ;;  %v711_v47 = vld [vmem:[%s943_s1 + $0x118] sm:$0xff]  }
  0x21   :  { %613 = vmatprep.subr.bf16.mxu0 %v688_v16  ;;  %502 = vmatprep.mubr.bf16.mxu1 %v36_v38  ;;  %v712_v48 = vld [vmem:[%s943_s1 + $0x160] sm:$0xff]   ;;  %v714_v50 = vld [vmem:[%s943_s1 + $0x168] sm:$0xff]   ;;  %v716_v54 = vld [vmem:[%s943_s1 + $0x170] sm:$0xff]  }
  0x22   :  { %634 = vmatpush3.bf16.msra.mxu1 %v687_v15  ;;  %v713_v49 = vld [vmem:[%s943_s1 + $0x120] sm:$0xff]   ;;  %v32_v51 = vld [vmem:[%s942_s0 + $0x28] sm:$0xff]  ;;  %v717_v55 = vld [vmem:[%s943_s1 + $0x130] sm:$0xff]  }
  0x23   :  { %635 = vmatprep.subr.bf16.mxu1 %v690_v18  ;;  %v38_v52 = vpack.c.bf16 %v32_v51, %v32_v51  ;;  %v715_v53 = vld [vmem:[%s943_s1 + $0x128] sm:$0xff]   ;;  %v718_v56 = vld [vmem:[%s943_s1 + $0x178] sm:$0xff]   ;;  %v31_v58 = vld [vmem:[%s942_s0 + $0x20] sm:$0xff] }
  0x24   :  { %614 = vmatpush3.bf16.msra.mxu0 %v689_v17  ;;  %v719_v57 = vld [vmem:[%s943_s1 + $0x138] sm:$0xff]   ;;  %v37_v59 = vpack.c.bf16 %v31_v58, %v31_v58  ;;  %v556_v61 = vld [vmem:[#allocation2] ss:$0 sm:$0xff] }
  0x25   :  { %615 = vmatprep.subr.bf16.mxu0 %v692_v20 }
  0x26   :  { %636 = vmatpush3.bf16.msra.mxu1 %v691_v19 }
  0x27   :  { %637 = vmatprep.subr.bf16.mxu1 %v694_v22 }
  0x28   :  { %616 = vmatpush3.bf16.msra.mxu0 %v693_v21 }
  0x29   :  { %617 = vmatprep.subr.bf16.mxu0 %v696_v24 }
  0x2a   :  { %638 = vmatpush3.bf16.msra.mxu1 %v695_v23 }
  0x2b   :  { %639 = vmatprep.subr.bf16.mxu1 %v698_v26 }
  0x2c   :  { %618 = vmatpush3.bf16.msra.mxu0 %v697_v25 }
  0x2d   :  { %619 = vmatprep.subr.bf16.mxu0 %v700_v28 }
  0x2e   :  { %640 = vmatpush3.bf16.msra.mxu1 %v699_v27 }
  0x2f   :  { %641 = vmatprep.subr.bf16.mxu1 %v702_v30 }
  0x30   :  { %620 = vmatpush3.bf16.msra.mxu0 %v701_v29 }
  0x31   :  { %649 = vmatprep.subr.bf16.mxu0 %v704_v36 }
  0x32   :  { %642 = vmatpush3.bf16.msra.mxu1 %v703_v33 }
  0x33   :  { %463 = vmatmul.mubr.bf16.vlgmr.msra.gmra.mrb[0].mxu0 %v33_v35 }
  0x34   :  { %650 = vmatpush3.bf16.msra.mxu0 %v705_v39  ;;  %542 = vmatprep.mubr.bf16.mxu0 %v38_v52 }
  0x35   :  { %503 = vmatmul.mubr.bf16.vlgmr.msra.gmra.mrb[0].mxu1 %v35_v41  ;;  %651 = vmatprep.subr.bf16.mxu0 %v706_v42 }
  0x38   :  { %652 = vmatpush3.bf16.msra.mxu0 %v707_v43 }
  0x39   :  { %653 = vmatprep.subr.bf16.mxu0 %v708_v44 }
  0x3c   :  { %654 = vmatpush3.bf16.msra.mxu0 %v709_v45 }
  0x3d   :  { %655 = vmatprep.subr.bf16.mxu0 %v710_v46 }
  0x40   :  { %656 = vmatpush3.bf16.msra.mxu0 %v711_v47 }
  0x41   :  { %657 = vmatprep.subr.bf16.mxu0 %v712_v48 }
  0x44   :  { %658 = vmatpush3.bf16.msra.mxu0 %v713_v49 }
  0x45   :  { %659 = vmatprep.subr.bf16.mxu0 %v714_v50 }
  0x48   :  { %660 = vmatpush3.bf16.msra.mxu0 %v715_v53 }
  0x49   :  { %661 = vmatprep.subr.bf16.mxu0 %v716_v54 }
  0x4c   :  { %662 = vmatpush3.bf16.msra.mxu0 %v717_v55 }
  0x4d   :  { %663 = vmatprep.subr.bf16.mxu0 %v718_v56 }
  0x50   :  { %664 = vmatpush3.bf16.msra.mxu0 %v719_v57 }
  0x53   :  { %543 = vmatmul.mubr.bf16.vlgmr.msra.gmra.mrb[4].mxu0 %v37_v59 }
 0x106   :  { %v621_v60 = vpop.f32.mrb[0].mxu0 }
 0x107   :  { %v622_v62 = vpop.f32.mrb[1].mxu0 }
 0x108   :  { %v623_v63 = vadd.f32 %v622_v62, %v621_v60  ;;  %v624_v0 = vpop.f32.mrb[2].mxu0  ;;  %v643_v1 = vpop.f32.mrb[0].mxu1 }
 0x109   :  { %v625_v2 = vpop.f32.mrb[3].mxu0  ;;  %v644_v4 = vpop.f32.mrb[1].mxu1 }
 0x10a   :  { %v465_v3 = vadd.f32 %v623_v63, %v556_v61  ;;  %v645_v5 = vadd.f32 %v644_v4, %v643_v1  ;;  %v646_v6 = vpop.f32.mrb[2].mxu1 }
 0x10b   :  { %v647_v7 = vpop.f32.mrb[3].mxu1 }
 0x10c   :  { %v505_v8 = vadd.f32 %v645_v5, %v465_v3 }
 0x126   :  { %v665_v9 = vpop.f32.mrb[4].mxu0 }
 0x127   :  { %v666_v10 = vpop.f32.mrb[5].mxu0 }
 0x128   :  { %v667_v11 = vadd.f32 %v666_v10, %v665_v9  ;;  %v668_v12 = vpop.f32.mrb[6].mxu0 }
 0x129   :  { %v669_v13 = vpop.f32.mrb[7].mxu0 }
 0x12a   :  { %v545_v14 = vadd.f32 %v667_v11, %v505_v8 }
 0x12c   :  { %550 = vst [vmem:[%s945_s3] sm:$0xff] %v545_v14 }
 0x12d   :  { %555 = vsyncpa [#allocation3], 1 }

// kernel: blip_decoder_forward.5
= control target key start
LH: loop header
LB: loop body
LE: loop exit
PB: predicated region body
PF: predicated region fallthrough
CT: control target
= control target key end

     0   :  { %s3774_s0 = inlined_call_operand.vmem [shape: f32[2,5,128], index: 0, kind: input, shape index: {}]   ;;  %s3775_s1 = inlined_call_operand.vmem [shape: f32[2,2,128], index: 1, kind: input, shape index: {}]   ;;  %s3776_s2 = inlined_call_operand.vmem [shape: bf16[2,128,384], index: 2, kind: input, shape index: {}]   ;;  %s3777_s3 = inlined_call_operand.vmem [shape: f32[2,1,384], index: 3, kind: input, shape index: {}]   ;;  %s3778_s4 = inlined_call_operand.vmem [shape: bf16[2,128,128], index: 4, kind: input, shape index: {}]   ;;  %s3779_s5 = inlined_call_operand.vmem [shape: f32[2,1,128], index: 5, kind: input, shape index: {}]   ;;  %s3780_s6 = inlined_call_operand.hbm [shape: f32[2,2,128], index: 6, kind: input, shape index: {}]   ;;  %s3781_s7 = inlined_call_operand.vmem [shape: bf16[2,128,512], index: 7, kind: input, shape index: {}]   ;;  %s3782_s8 = inlined_call_operand.vmem [shape: f32[2,1,512], index: 8, kind: input, shape index: {}]   ;;  %s3783_s9 = inlined_call_operand.vmem [shape: bf16[2,512,128], index: 9, kind: input, shape index: {}]   ;;  %s3784_s10 = inlined_call_operand.hbm [shape: f32[2,1,128], index: 10, kind: input, shape index: {}]   ;;  %s3785_s11 = inlined_call_operand.hbm [shape: f32[2,128], index: 11, kind: input, shape index: {}]   ;;  %s3786_s12 = inlined_call_operand.vmem [shape: f32[2,5,128], index: 12, kind: output, shape index: {}]  }
   0x1   :  { %3797 = sst [smem:[#allocation18_spill]] %s3774_s0 }
   0x2   :  { %3798 = sst [smem:[#allocation19_spill]] %s3775_s1 }
   0x3   :  { %3799 = sst [smem:[#allocation20_spill]] %s3776_s2 }
   0x4   :  { %3800 = sst [smem:[#allocation21_spill]] %s3777_s3 }
   0x5   :  { %3801 = sst [smem:[#allocation22_spill]] %s3778_s4 }
   0x6   :  { %3802 = sst [smem:[#allocation23_spill]] %s3779_s5 }
   0x7   :  { %3803 = sst [smem:[#allocation24_spill]] %s3780_s6 }
   0x8   :  { %3804 = sst [smem:[#allocation25_spill]] %s3781_s7 }
   0x9   :  { %3805 = sst [smem:[#allocation26_spill]] %s3782_s8 }
   0xa   :  { %3806 = sst [smem:[#allocation27_spill]] %s3783_s9 }
   0xb   :  { %3807 = sst [smem:[#allocation28_spill]] %s3784_s10 }
   0xc   :  { %3808 = sst [smem:[#allocation29_spill]] %s3785_s11 }
   0xd   :  { %3809 = sst [smem:[#allocation30_spill]] %s3786_s12 }
   0xe   :  { %17 = vsyncpa [#allocation5], 0 }
   0xf   :  { %19 = vsyncpa [#allocation5 + $0x1], 0 }
  0x10   :  { %20 = vsyncpa [#allocation7], 0 }
  0x11   :  { %22 = vsyncpa [#allocation7 + $0x1], 0  ;;  %s3243_s21 = smov 0   ;;  %s3245_s22 = smov 0  }
  0x12   :  { %s3247_s23 = smov 0   ;;  %s3249_s24 = smov 0  }
  0x13   :  { %s3251_s25 = smov 0   ;;  %s3253_s26 = smov 0  }
  0x14   :  { %s3255_s27 = smov 0   ;;  %s3257_s28 = smov 0  }
  0x15 LB: > { %3810 = sst [smem:[#allocation12_spill]] %s3146_s23  ;;  %s3787_s29 = sadd.s32 4294967295, %s3166_s28   ;;  %s3166_s28 = sphi %s3257_s28, %s28_s28   ;;  %s3162_s27 = sphi %s3255_s27, %s3854_s27   ;;  %s3158_s26 = sphi %s3253_s26, %s3849_s26   ;;  %s3154_s25 = sphi %s3251_s25, %s3848_s25   ;;  %s3150_s24 = sphi %s3249_s24, %s3853_s24   ;;  %s3146_s23 = sphi %s3247_s23, %s3846_s23   ;;  %s3142_s22 = sphi %s3245_s22, %s3852_s22   ;;  %s3138_s21 = sphi %s3243_s21, %s3851_s21  }
  0x16   : > { %3811 = sst [smem:[#allocation13_spill]] %s3158_s26  ;;  %p216_p1 = scmp.ne.s32.totalorder %s3142_s22, %s3138_s21 }
  0x17   : > { %3812 = sst [smem:[#allocation14_spill]] %s3162_s27  ;;  %p3288_p2 = scmp.eq.s32.totalorder %s3787_s29, 0 }
  0x18   : > { %p2459_p3 = scmp.ge.s32.totalorder %s3166_s28, 1  ;;  %p378_p4 = scmp.lt.s32.totalorder %s3166_s28, 5 }
  0x19   : > { %s3813_s13 = scalar_select %p3288_p2, 1, 0 }
  0x1a   : > { %p3296_p5 = por %p3288_p2, %p216_p1  ;;  %p3300_p6 = pnand %p2459_p3, %p378_p4 }
  0x1b   : > { %s3168_s16 = smov [#allocation8]   ;;  %s37_s19 = sadd.s32 1, %s3158_s26 }
  0x1c   : > { %s3814_s14 = scalar_select %p3296_p5, 1, 0 }
  0x1d   : > { %s3815_s15 = scalar_select %p3300_p6, 1, 0 }
  0x1e   : > { %s391_s17 = sshll.u32 %s3168_s16, 4  ;;  %p2768_p7 = pneg %p3300_p6  ;;  %s392_s17 = int_to_ptr.vmem [resolvable:$true] %s391_s17 }
  0x1f   : > { %s40_s20 = sadd.s32 1, %s3162_s27  ;;  %p3314_p9 = scmp.ge.s32.totalorder %s37_s19, 2 }
  0x20   : > { %p3308_p8 = pnand %p2768_p7, %p3288_p2  ;;  %s3818_s11 = sld [smem:[#allocation29_spill]] }
  0x21   : > { %s3817_s21 = scalar_select %p3314_p9, 1, 0 }
  0x22   : > { %p3006_p11 = pneg %p3308_p8 }
  0x26   : > { %s3004_s12 = scalar_lea.hbm %s3818_s11, 32 }
  0x27   : > { %p3005_p10 = scmp.ne.s32.totalorder %s3818_s11, %s3004_s12  ;;  %p3011_p1 = scmp.lt.u32.totalorder %s3004_s12, %s3818_s11 }
  0x29   : > { %p3007_p12 = pnand %p3006_p11, %p3005_p10 }
  0x2b   : > { %p3008_p13 = pneg %p3007_p12 }
  0x2d   : > { %p3013_p3 = pnand %p3011_p1, %p3008_p13 }
  0x2f   : > { %3016 = shalt.err (!%p3013_p3)
}
  0x30   : > { %s3017_s5 = scalar_lea.vmem %s392_s17, 32  ;;  %p3025_p2 = scmp.lt.s32.totalorder %s392_s17, %s392_s17 }
  0x31   : > { %p3018_p4 = scmp.ne.s32.totalorder %s392_s17, %s3017_s5  ;;  %p3026_p5 = scmp.lt.s32.totalorder %s3017_s5, %s3017_s5 }
  0x33   : > { %p3020_p7 = pnand %p3018_p4, %p3006_p11  ;;  %p3027_p6 = por %p3026_p5, %p3025_p2 }
  0x35   : > { %p3021_p0 = pneg %p3020_p7 }
  0x37   : > { %p3028_p9 = pnand %p3027_p6, %p3021_p0 }
  0x39   : > { %3031 = shalt.err (!%p3028_p9)
}
  0x3a   : > { %2771 = dma.hbm_to_vmem [thread:$0]  (!%p3308_p8), %s3818_s11, 32, %s392_s17, [#allocation7]  }
  0x3b   : > { %p3819_p0 = scmp.ne.s32.totalorder %s3817_s21, 0  ;;  %p211_p2 = scmp.eq.s32.totalorder %s3166_s28, 0 }
  0x3c   : > { %p3821_p9 = scmp.ne.s32.totalorder %s3146_s23, %s3142_s22  ;;  %p2780_p11 = scmp.lt.s32.totalorder %s3166_s28, 4 }
  0x3d   : > { %s3856_s19 = smov (%p3819_p0, %s37_s19), 0  ;;  %s3858_s20 = smov (!%p3819_p0, %s40_s20), %s3162_s27 }
  0x3e   : > { %3820 = sst [smem:[#allocation15_spill]] %s3856_s19  ;;  %s200_s5 = ssub.s32 %s3158_s26, %s3856_s19 }
  0x3f   : > { %p42_p5 = scmp.ge.s32.totalorder %s3858_s20, 2  ;;  %p201_p6 = scmp.eq.s32.totalorder %s200_s5, 0 }
  0x40   : > { %p212_p10 = por %p211_p2, %p3821_p9  ;;  %s3823_s7 = sadd.s32 1, %s3146_s23 }
  0x41   : > { %s3860_s20 = smov (%p42_p5, %s3858_s20), 0  ;;  %s3356_s12 = sand.u32 1, %s3146_s23  }
  0x42   : > { %3822 = sst [smem:[#allocation16_spill]] %s3860_s20  ;;  %s2463_s30 = sshll.u32 %s3158_s26, 5 }
  0x43   : > { %s3353_s8 = scalar_select %p201_p6, %s3146_s23, %s3823_s7  }
  0x44   : > { %s2462_s17 = sshll.u32 %s3356_s12, 1  ;;  %s3825_s6 = sld [smem:[#allocation24_spill]] }
  0x45   : > { %3824 = sst [smem:[#allocation17_spill]] %s3353_s8  ;;  %s449_s9 = scalar_lea.vmem [#allocation4], %s2462_s17 }
  0x46   : > { %s456_s29 = sshll.u32 %s449_s9, 4  ;;  %p3365_p8 = pnand %p2780_p11, %p212_p10  ;;  %s3369_s29 = int_to_ptr.vmem [resolvable:$true] %s456_s29 }
  0x47   : > { %s446_s11 = scalar_lea.sflag [#allocation5], %s3356_s12 }
  0x48   : > { %p3034_p13 = pneg %p3365_p8 }
  0x4a   : > { %s3363_s16 = scalar_lea.hbm %s3825_s6, %s2463_s30  ;;  %s3037_s18 = scalar_lea.hbm %s3825_s6, 64 }
  0x4b   : > { %s3032_s20 = scalar_lea.hbm %s3363_s16, 32  ;;  %p3038_p4 = scmp.lt.u32.totalorder %s3363_s16, %s3825_s6 }
  0x4c   : > { %p3033_p12 = scmp.ne.s32.totalorder %s3363_s16, %s3032_s20  ;;  %p3039_p7 = scmp.lt.u32.totalorder %s3037_s18, %s3032_s20 }
  0x4d   : > { %p3041_p2 = scmp.lt.u32.totalorder %s3032_s20, %s3363_s16 }
  0x4e   : > { %p3035_p1 = pnand %p3034_p13, %p3033_p12  ;;  %p3040_p0 = por %p3039_p7, %p3038_p4 }
  0x50   : > { %p3036_p3 = pneg %p3035_p1  ;;  %p3042_p5 = por %p3041_p2, %p3040_p0 }
  0x52   : > { %p3043_p6 = pnand %p3042_p5, %p3036_p3 }
  0x54   : > { %3046 = shalt.err (!%p3043_p6)
}
  0x55   : > { %s3047_s7 = scalar_lea.vmem %s3369_s29, 32  ;;  %s3169_s30 = smov [#allocation4]  }
  0x56   : > { %p3048_p9 = scmp.ne.s32.totalorder %s3369_s29, %s3047_s7  ;;  %s3052_s17 = sshll.u32 %s3169_s30, 4  ;;  %s3053_s17 = int_to_ptr.vmem [resolvable:$false] %s3052_s17 }
  0x57   : > { %s3054_s21 = scalar_lea.vmem %s3053_s17, 64  ;;  %p3055_p12 = scmp.lt.s32.totalorder %s3369_s29, %s3053_s17 }
  0x58   : > { %p3050_p10 = pnand %p3048_p9, %p3034_p13  ;;  %p3056_p1 = scmp.lt.s32.totalorder %s3054_s21, %s3047_s7 }
  0x5a   : > { %p3051_p11 = pneg %p3050_p10  ;;  %p3057_p4 = por %p3056_p1, %p3055_p12 }
  0x5c   : > { %p3058_p7 = pnand %p3057_p4, %p3051_p11 }
  0x5e   : > { %3061 = shalt.err (!%p3058_p7)
}
  0x5f   : > { %2775 = dma.hbm_to_vmem [thread:$0]  (!%p3365_p8), %s3363_s16, 32, %s3369_s29, %s446_s11  }
  0x60   : > { %s2464_s20 = sshll.u32 %s3158_s26, 4  ;;  %s3827_s10 = sld [smem:[#allocation28_spill]] }
  0x61   : > { %s489_s7 = scalar_lea.vmem [#allocation6], %s3356_s12  ;;  %s3828_s21 = sand.u32 1, %s3166_s28  }
  0x62   : > { %s496_s17 = sshll.u32 %s489_s7, 4  ;;  %s487_s6 = scalar_lea.sflag [#allocation7], %s3828_s21  ;;  %s497_s17 = int_to_ptr.vmem [resolvable:$true] %s496_s17 }
  0x66   : > { %s3402_s30 = scalar_lea.hbm %s3827_s10, %s2464_s20  ;;  %s3067_s29 = scalar_lea.hbm %s3827_s10, 32 }
  0x67   : > { %s3062_s19 = scalar_lea.hbm %s3402_s30, 16  ;;  %p3068_p5 = scmp.lt.u32.totalorder %s3402_s30, %s3827_s10 }
  0x68   : > { %p3063_p3 = scmp.ne.s32.totalorder %s3402_s30, %s3062_s19  ;;  %p3069_p6 = scmp.lt.u32.totalorder %s3067_s29, %s3062_s19 }
  0x69   : > { %p3071_p10 = scmp.lt.u32.totalorder %s3062_s19, %s3402_s30 }
  0x6a   : > { %p3065_p0 = pnand %p3063_p3, %p3034_p13  ;;  %p3070_p9 = por %p3069_p6, %p3068_p5 }
  0x6c   : > { %p3066_p2 = pneg %p3065_p0  ;;  %p3072_p11 = por %p3071_p10, %p3070_p9 }
  0x6e   : > { %p3073_p12 = pnand %p3072_p11, %p3066_p2 }
  0x70   : > { %3076 = shalt.err (!%p3073_p12)
}
  0x71   : > { %s3077_s12 = scalar_lea.vmem %s497_s17, 16  ;;  %s3170_s9 = smov [#allocation6]  }
  0x72   : > { %p3078_p1 = scmp.ne.s32.totalorder %s497_s17, %s3077_s12  ;;  %s3082_s7 = sshll.u32 %s3170_s9, 4  ;;  %s3083_s7 = int_to_ptr.vmem [resolvable:$false] %s3082_s7 }
  0x73   : > { %s3084_s21 = scalar_lea.vmem %s3083_s7, 32  ;;  %p3085_p3 = scmp.lt.s32.totalorder %s497_s17, %s3083_s7 }
  0x74   : > { %p3080_p4 = pnand %p3078_p1, %p3034_p13  ;;  %p3086_p0 = scmp.lt.s32.totalorder %s3084_s21, %s3077_s12 }
  0x76   : > { %p3081_p7 = pneg %p3080_p4  ;;  %p3087_p5 = por %p3086_p0, %p3085_p3 }
  0x78   : > { %p3088_p6 = pnand %p3087_p5, %p3081_p7 }
  0x7a   : > { %3091 = shalt.err (!%p3088_p6)
}
  0x7b   : > { %2778 = dma.hbm_to_vmem [thread:$0]  (!%p3365_p8), %s3402_s30, 16, %s497_s17, %s487_s6  }
  0x7c   : > { %p3829_p2 = scmp.ne.s32.totalorder %s3815_s15, 0 }
  0x7d   : > { %s3429_s19 = sand.u32 (!%p3829_p2), 1, %s3142_s22   ;;  %p3830_p13 = scmp.ne.s32.totalorder (!%p3829_p2), %s3814_s14, 0 }
  0x7e   : > { %505 = sbr.rel (%p3829_p2) target bundleno = 3435 (0xd6b), region = 68  ;;  %s2466_s11 = sshll.u32 (!%p3829_p2), %s3429_s19, 1 }
  0x7f   : > { %s508_s16 = scalar_lea.sflag (!%p3829_p2), [#allocation5], %s3429_s19  ;;  %s3433_s29 = scalar_lea.vmem (!%p3829_p2), [#allocation4], %s2466_s11 }
  0x85   : > { %3125 = dma.done.wait (%p3830_p13), %s508_s16, 32  }
  0x86   : > { %3127 = vsyncadd (%p3830_p13), %s508_s16, 4294967264  ;;  %s3831_s6 = sadd.s32 4294967295, %s3166_s28  }
  0x87   : > { %s516_s15 = sand.u32 1, %s3831_s6  }
  0x88   : > { %s517_s5 = scalar_lea.sflag [#allocation7], %s516_s15 }
  0x89   : > { %3129 = dma.done.wait (%p3830_p13), %s517_s5, 16  }
  0x8a   : > { %3131 = vsyncadd (%p3830_p13), %s517_s5, 4294967280  ;;  %p3832_p8 = scmp.ne.s32.totalorder %s3813_s13, 0 }
  0x8c   : > { %3133 = dma.done.wait (%p3832_p8), [#allocation7], 32  }
  0x8d   : > { %3135 = vsyncadd (%p3832_p8), [#allocation7], 4294967264  ;;  %p606_p9 = scmp.lt.s32.totalorder %s3154_s25, 1  ;;  %p610_p10 = scmp.lt.s32.totalorder %s3150_s24, 1 }
  0x8e   : > { %s3833_s0 = sld [smem:[#allocation18_spill]]  ;;  %s3834_s1 = sld [smem:[#allocation19_spill]] }
  0x8f   : > { %s3862_s25 = smov (!%p606_p9, %s3154_s25), 1  ;;  %s3835_s2 = sld [smem:[#allocation20_spill]] }
  0x90   : > { %s3454_s17 = scalar_select %p610_p10, %s3150_s24, 1 }
  0x91   : > { %s2468_s14 = sshll.u32 %s3862_s25, 3  ;;  %s3836_s4 = sld [smem:[#allocation22_spill]] }
  0x92   : > { %s2469_s12 = sshll.u32 %s3454_s17, 1  ;;  %s2758_s11 = smul.u32 192, %s3454_s17 }
  0x93   : > { %s2759_s16 = smul.u32 3, %s3454_s17  ;;  %s2589_s6 = sshll.u32 %s3454_s17, 6 }
  0x94   : > { %s609_s18 = scalar_lea.vmem %s3833_s0, %s2468_s14  ;;  %s3463_s21 = scalar_lea.vmem %s3834_s1, %s2469_s12 }
  0x95   : > { %s3471_s30 = scalar_lea.vmem %s3835_s2, %s2758_s11  ;;  %s3837_s3 = sld [smem:[#allocation21_spill]] }
  0x96   : > { %s3838_s7 = sld [smem:[#allocation23_spill]]  ;;  %s2590_s26 = sshll.u32 %s3454_s17, 8 }
  0x97   : > { %s3476_s27 = scalar_lea.vmem %s3836_s4, %s2589_s6  ;;  %s2475_s8 = sshll.u32 %s3454_s17, 2 }
  0x98   : > { %s3839_s11 = sld [smem:[#allocation25_spill]]  ;;  %s3840_s6 = sld [smem:[#allocation26_spill]] }
  0x99   : > { %s3842_s9 = sld [smem:[#allocation30_spill]]  ;;  %p2479_p11 = scmp.ne.s32.totalorder %s3150_s24, 0 }
  0x9a   : > { %v654_v0 = vld [vmem:[%s609_s18] sm:$0x1f] (!%p2479_p11) }
  0x9b   : > { %s3481_s0 = scalar_lea.vmem %s3837_s3, %s2759_s16  ;;  %s3841_s16 = sld [smem:[#allocation27_spill]]  ;;  %655 = vst [vmem:[#allocation2] sm:$0x1f] (!%p2479_p11), %v654_v0 }
  0x9c   : > { %s630_s1 = scalar_lea.vmem %s3838_s7, %s3454_s17  ;;  %653 = sbr.rel (%p2479_p11) target bundleno = 163 (0xa3), region = 84 }
  0x9e   : > { %s3492_s5 = scalar_lea.vmem %s3839_s11, %s2590_s26  ;;  %s3497_s25 = scalar_lea.vmem %s3840_s6, %s2475_s8 }
  0x9f   : > { %s3507_s7 = scalar_lea.vmem %s3842_s9, %s2468_s14 }
  0xa1   : > { %s3502_s13 = scalar_lea.vmem %s3841_s16, %s2590_s26 }
  0xa3 PF: > { %v3510_v1 = vld [vmem:[#allocation2] sm:$0x1f]  ;;  %vm658_vm0 = vcmask 1044480   ;;  %v3171_v5 = vmov 0.0   ;;  %v2857_v6 = vld [vmem:[%s3471_s30 + $0x8] ss:$12 sps:$4 sm:$0xff]   ;;  %v673_v36 = vlaneseq }
  0xa4   : > { %v659_v2 = vsel %vm658_vm0, %v3510_v1, 0.0  ;;  %v2854_v3 = vld [vmem:[%s3471_s30 + $0x4] ss:$12 sps:$4 sm:$0xff]   ;;  %v2856_v4 = vld [vmem:[%s3471_s30] ss:$12 sps:$4 sm:$0xff]   ;;  %2670 = vmatprep.subr.bf16.mxu1 %v3171_v5  ;;  %v3172_v28 = vmov 0  }
  0xa5   : > { %660 = vadd.xlane.f32.xlu0 %v659_v2  ;;  %v2858_v7 = vld [vmem:[%s3471_s30 + $0x1c] ss:$12 sps:$4 sm:$0xff]   ;;  %v2860_v8 = vld [vmem:[%s3471_s30 + $0x18] ss:$12 sps:$4 sm:$0xff]   ;;  %861 = vmatprep.subr.bf16.mxu0 %v2854_v3  ;;  %v2861_v9 = vld [vmem:[%s3471_s30 + $0x20] ss:$12 sps:$4 sm:$0xff]  }
  0xa6   : > { %v2862_v10 = vld [vmem:[%s3471_s30 + $0x34] ss:$12 sps:$4 sm:$0xff]   ;;  %862 = vmatpush1.bf16.msra.mxu0 %v2856_v4  ;;  %2671 = vmatpush3.bf16.msra.mxu1 %v2857_v6  ;;  %v2864_v16 = vld [vmem:[%s3471_s30 + $0x30] ss:$12 sps:$4 sm:$0xff]   ;;  %v2865_v17 = vld [vmem:[%s3471_s30 + $0x38] ss:$12 sps:$4 sm:$0xff]  }
  0xa7   : > { %863 = vmatprep.subr.bf16.mxu0 %v2858_v7  ;;  %2672 = vmatprep.subr.bf16.mxu1 %v3171_v5  ;;  %v2866_v18 = vld [vmem:[%s3471_s30 + $0x4c] ss:$12 sps:$4 sm:$0xff]   ;;  %v2868_v19 = vld [vmem:[%s3471_s30 + $0x48] ss:$12 sps:$4 sm:$0xff]   ;;  %v2869_v20 = vld [vmem:[%s3471_s30 + $0x50] ss:$12 sps:$4 sm:$0xff]  }
  0xa8   : > { %v2870_v21 = vld [vmem:[%s3471_s30 + $0x64] ss:$12 sps:$4 sm:$0xff]   ;;  %v2872_v22 = vld [vmem:[%s3471_s30 + $0x60] ss:$12 sps:$4 sm:$0xff]   ;;  %v2873_v23 = vld [vmem:[%s3471_s30 + $0x68] ss:$12 sps:$4 sm:$0xff]   ;;  %893 = vmatprep.mubr.bf16.mxu0 %v3172_v28 }
  0xa9   : > { %v2874_v24 = vld [vmem:[%s3471_s30 + $0x7c] ss:$12 sps:$4 sm:$0xff]   ;;  %v2876_v25 = vld [vmem:[%s3471_s30 + $0x78] ss:$12 sps:$4 sm:$0xff]   ;;  %v2877_v26 = vld [vmem:[%s3471_s30 + $0x80] ss:$12 sps:$4 sm:$0xff]  }
  0xaa   : > { %864 = vmatpush1.bf16.msra.mxu0 %v2860_v8  ;;  %2673 = vmatpush3.bf16.msra.mxu1 %v2861_v9  ;;  %v2878_v27 = vld [vmem:[%s3471_s30 + $0x94] ss:$12 sps:$4 sm:$0xff]   ;;  %vm3173_vm1 = vmmov 0   ;;  %v2880_v29 = vld [vmem:[%s3471_s30 + $0x90] ss:$12 sps:$4 sm:$0xff]   ;;  %v3553_v38 = vshrl.u32 %v673_v36, 7 }
  0xab   : > { %865 = vmatprep.subr.bf16.mxu0 %v2862_v10  ;;  %2674 = vmatprep.subr.bf16.mxu1 %v3171_v5  ;;  %v2881_v30 = vld [vmem:[%s3471_s30 + $0x98] ss:$12 sps:$4 sm:$0xff]   ;;  %v2884_v32 = vld [vmem:[%s3471_s30 + $0xa8] ss:$12 sps:$4 sm:$0xff]   ;;  %v2885_v33 = vld [vmem:[%s3471_s30 + $0xb0] ss:$12 sps:$4 sm:$0xff]  }
  0xac   : > { %2686 = vmatprep.mubr.msk.bf16.mxu1 %vm3173_vm1, %v3171_v5  ;;  %v2882_v31 = vld [vmem:[%s3471_s30 + $0xac] ss:$12 sps:$4 sm:$0xff]   ;;  %v3556_v39 = vsub.s32 0, %v3553_v38  ;;  %v657_v40 = vld [vmem:[%s3463_s21] sm:$0x3]  ;;  %v3560_v41 = vsub.s32 1, %v3553_v38 }
  0xad   : > { %v716_v49 = vld [vmem:[%s3481_s0] sm:$0x7]  ;;  %v728_v50 = vsub.s32 2, %v3553_v38  ;;  %vm945_vm2 = vcmask 261120   ;;  %vm1010_vm3 = vcmask 1041408   ;;  %s3174_s0 = smov 96  }
  0xae   : > { %866 = vmatpush1.bf16.msra.mxu0 %v2864_v16  ;;  %2675 = vmatpush3.bf16.msra.mxu1 %v2865_v17  ;;  %v676_v42 = vrot.slane %v657_v40, %v3556_v39  ;;  %v681_v45 = vrot.slane %v657_v40, %v3560_v41  ;;  %v725_v51 = vrot.slane %v716_v49, %v3560_v41  ;;  %vm1011_vm4 = vcmask 1042432   ;;  %s3176_s2 = smov 32   ;;  %s3177_s3 = smov 64  }
  0xaf   : > { %2676 = vmatprep.subr.bf16.mxu1 %v3171_v5  ;;  %867 = vmatprep.subr.bf16.mxu0 %v2866_v18  ;;  %v729_v54 = vrot.slane %v716_v49, %v728_v50  ;;  %v721_v62 = vrot.slane %v716_v49, %v3556_v39  ;;  %v3175_v3 = vmov 65535   ;;  %vm993_vm5 = vcmask 36864   ;;  %p2586_p12 = scmp.ne.s32.totalorder %s3150_s24, 1 }
  0xb0   : > { %v1012_v4 = vsel %vm1010_vm3, 4294967295, %v3175_v3  ;;  %vm1006_vm6 = vcmask 39936   ;;  %vm1057_vm7 = vcmask 258048   ;;  %vm1177_vm8 = vcmask 520448  }
  0xb1   : > { %v3580_v8 = vsel %vm1011_vm4, %v1012_v4, 0  ;;  %vm1294_vm9 = vcmask 782848   ;;  %vm1411_vm10 = vcmask 1045248  }
  0xb2   : > { %868 = vmatpush1.bf16.msra.mxu0 %v2868_v19  ;;  %2677 = vmatpush3.bf16.msra.mxu1 %v2869_v20 }
  0xb3   : > { %2678 = vmatprep.subr.bf16.mxu1 %v3171_v5  ;;  %869 = vmatprep.subr.bf16.mxu0 %v2870_v21 }
  0xb6   : > { %870 = vmatpush1.bf16.msra.mxu0 %v2872_v22  ;;  %2679 = vmatpush3.bf16.msra.mxu1 %v2873_v23 }
  0xb7   : > { %871 = vmatprep.subr.bf16.mxu0 %v2874_v24  ;;  %2680 = vmatprep.subr.bf16.mxu1 %v3171_v5 }
  0xba   : > { %872 = vmatpush1.bf16.msra.mxu0 %v2876_v25  ;;  %2681 = vmatpush3.bf16.msra.mxu1 %v2877_v26 }
  0xbb   : > { %873 = vmatprep.subr.bf16.mxu0 %v2878_v27  ;;  %2682 = vmatprep.subr.bf16.mxu1 %v3171_v5 }
  0xbe   : > { %874 = vmatpush1.bf16.msra.mxu0 %v2880_v29  ;;  %2683 = vmatpush3.bf16.msra.mxu1 %v2881_v30 }
  0xbf   : > { %875 = vmatprep.subr.bf16.mxu0 %v2882_v31  ;;  %2684 = vmatprep.subr.bf16.mxu1 %v3171_v5 }
  0xc2   : > { %876 = vmatpush1.bf16.msra.mxu0 %v2884_v32  ;;  %2685 = vmatpush3.bf16.msra.mxu1 %v2885_v33 }
  0xc3   : > { %2690 = vmatprep.subr.bf16.mxu1 %v3171_v5  ;;  %2714 = vmatprep.subr.bf16.mxu0 %v3171_v5 }
 0x132   : > { %v661_v11 = vpop.xlane.xlu0 %660 }
 0x133   : > { %v663_v12 = vmul.f32 0.0078125, %v661_v11 }
 0x135   : > { %v664_v13 = vsub.f32 %v3510_v1, %v663_v12 }
 0x137   : > { %v665_v14 = vmul.f32 %v664_v13, %v664_v13 }
 0x139   : > { %v666_v15 = vsel %vm658_vm0, %v665_v14, 0.0 }
 0x13a   : > { %667 = vadd.xlane.f32.xlu0 %v666_v15 }
 0x1c7   : > { %v668_v34 = vpop.xlane.xlu0 %667 }
 0x1c8   : > { %v669_v35 = vmul.f32 0.0078125, %v668_v34 }
 0x1ca   : > { %v670_v37 = vadd.f32 1e-06, %v669_v35 }
 0x1cc   : > { %2974 = vrsqrt.f32 %v670_v37 }
 0x1d6   : > { %v2975_v43 = vpop.eup %2974 }
 0x1d7   : > { %v672_v44 = vmul.f32 %v2975_v43, %v664_v13 }
 0x1d9   : > { %v677_v46 = vmul.f32 %v676_v42, %v672_v44 }
 0x1db   : > { %v682_v47 = vadd.f32 %v681_v45, %v677_v46 }
 0x1dd   : > { %v683_v48 = vpack.c.bf16 %v682_v47, %v682_v47 }
 0x1df   : > { %894 = vmatmul.mubr.bf16.vlgmr.msra.gmra.mrb[0].mxu0 %v683_v48  ;;  %2687 = vmatmul.mubr.bf16.vlgmr.msra.gmra.mrb[0].mxu1 %v683_v48 }
 0x1e0   : > { %2692 = vmatprep.mubr.msk.bf16.mxu1 %vm3173_vm1, %v3171_v5  ;;  %2716 = vmatprep.mubr.msk.bf16.mxu0 %vm3173_vm1, %v3171_v5 }
 0x2b2   : > { %v895_v52 = vpop.f32.mrb[0].mxu0  ;;  %v936_v53 = vpop.f32.mrb[0].mxu1 }
 0x2b3   : > { %v897_v55 = vpop.f32.mrb[1].mxu0  ;;  %v2688_v56 = vpop.f32.mrb[1].mxu1  ;;  %v937_v0 = vadd.f32 %v936_v53, %v729_v54  ;;  %v896_v6 = vadd.f32 %v895_v52, %v721_v62 }
 0x2b4   : > { %v898_v57 = vadd.f32 %v897_v55, %v725_v51  ;;  %v899_v58 = vpop.f32.mrb[2].mxu0  ;;  %v939_v59 = vpop.f32.mrb[2].mxu1 }
 0x2b5   : > { %v900_v60 = vpop.f32.mrb[3].mxu0  ;;  %v2689_v61 = vpop.f32.mrb[3].mxu1  ;;  %v3577_v7 = vpack.c.bf16 %v937_v0, %v937_v0  ;;  %v942_v9 = vpack.c.bf16 %v896_v6, %v896_v6 }
 0x2b6   : > { %v943_v63 = vpack.c.bf16 %v898_v57, %v898_v57 }
 0x2b7   : > { %v1015_v10 = vand.u32 %v3580_v8, %v3577_v7 }
 0x2b8   : > { %1063 = vrot.lane.b32.xlu0 %v943_v63, %s3174_s0  ;;  %v950_v2 = vsel %vm945_vm2, %v943_v63, 0 }
 0x2b9   : > { %2691 = vmatpush3.bf16.xpose.msra.mxu1 %v950_v2 }
 0x2ba   : > { %2696 = vmatprep.subr.bf16.mxu1 %v3171_v5 }
 0x2bc   : > { %1298 = vrot.lane.b32.xlu0 %v943_v63, %s3176_s2 }
 0x2c0   : > { %2693 = vmatmul.mubr.msk.bf16.vlgmr.msra.gmra.mrb[4].mxu1 %vm945_vm2, %v942_v9 }
 0x2c1   : > { %2697 = vmatpush3.bf16.msra.mxu1 %v1015_v10  ;;  %2698 = vmatprep.mubr.msk.bf16.mxu1 %vm3173_vm1, %v3171_v5 }
 0x2c2   : > { %2702 = vmatprep.subr.bf16.mxu1 %v3171_v5 }
 0x32a   : > { %v1064_v24 = vpop.permute.xlu0 %1063 }
 0x32b   : > { %v1069_v32 = vsel %vm945_vm2, %v1064_v24, 0 }
 0x32e   : > { %v1299_v30 = vpop.permute.xlu0 %1298 }
 0x32f   : > { %v1304_v34 = vsel %vm945_vm2, %v1299_v30, 0 }
 0x393   : > { %v986_v11 = vpop.f32.mrb[4].mxu1 }
 0x394   : > { %v992_v12 = vmul.f32 0.17677669, %v986_v11  ;;  %v2694_v13 = vpop.f32.mrb[5].mxu1 }
 0x395   : > { %v989_v14 = vpop.f32.mrb[6].mxu1 }
 0x396   : > { %v2695_v15 = vpop.f32.mrb[7].mxu1  ;;  %v994_v16 = vsel %vm993_vm5, %v992_v12, -inf }
 0x397   : > { %995 = vmax.xlane.f32.xlu1 %v994_v16 }
 0x424   : > { %v996_v17 = vpop.xlane.xlu1 %995 }
 0x425   : > { %v997_v18 = vsub.f32 %v992_v12, %v996_v17 }
 0x427   : > { %v998_v19 = vmul.f32 1.442695, %v997_v18 }
 0x429   : > { %2976 = vpow2.f32 %v998_v19 }
 0x433   : > { %v2977_v20 = vpop.eup %2976 }
 0x434   : > { %v1000_v21 = vsel %vm993_vm5, %v2977_v20, 0.0 }
 0x435   : > { %1001 = vadd.xlane.f32.xlu1 %v1000_v21 }
 0x446   : > { %1060 = vrot.lane.b32.xlu1 %v942_v9, %s3174_s0 }
 0x44a   : > { %1181 = vrot.lane.b32.xlu1 %v943_v63, %s3177_s3 }
 0x44e   : > { %1179 = vrot.lane.b32.xlu1 %v942_v9, %s3177_s3 }
 0x452   : > { %1296 = vrot.lane.b32.xlu1 %v942_v9, %s3176_s2 }
 0x4c2   : > { %v1002_v22 = vpop.xlane.xlu1 %1001 }
 0x4c3   : > { %2978 = vrcp.f32 %v1002_v22 }
 0x4c6   : > { %v1061_v23 = vpop.permute.xlu1 %1060 }
 0x4ca   : > { %v1182_v25 = vpop.permute.xlu1 %1181 }
 0x4cb   : > { %v1187_v26 = vsel %vm945_vm2, %v1182_v25, 0 }
 0x4cc   : > { %2715 = vmatpush3.bf16.xpose.msra.mxu0 %v1187_v26 }
 0x4cd   : > { %v2979_v27 = vpop.eup %2978  ;;  %2726 = vmatprep.subr.bf16.mxu0 %v3171_v5 }
 0x4ce   : > { %v1004_v29 = vmul.f32 %v2979_v27, %v2977_v20  ;;  %v1180_v33 = vpop.permute.xlu1 %1179 }
 0x4d0   : > { %v1005_v31 = vpack.c.bf16 %v1004_v29, %v1004_v29 }
 0x4d2   : > { %2699 = vmatmul.mubr.msk.bf16.vlgmr.msra.gmra.mrb[8].mxu1 %vm1006_vm6, %v1005_v31  ;;  %v1297_v35 = vpop.permute.xlu1 %1296 }
 0x4d3   : > { %2703 = vmatpush3.bf16.xpose.msra.mxu1 %v1069_v32  ;;  %2717 = vmatmul.mubr.msk.bf16.vlgmr.msra.gmra.mrb[4].mxu0 %vm945_vm2, %v1180_v33 }
 0x4d4   : > { %2727 = vmatpush3.bf16.xpose.msra.mxu0 %v1304_v34  ;;  %2704 = vmatprep.mubr.msk.bf16.mxu1 %vm3173_vm1, %v3171_v5 }
 0x4d5   : > { %2728 = vmatprep.mubr.msk.bf16.mxu0 %vm3173_vm1, %v3171_v5  ;;  %2708 = vmatprep.subr.bf16.mxu1 %v3171_v5 }
 0x4d6   : > { %2738 = vmatprep.subr.bf16.mxu0 %v3171_v5 }
 0x4da   : > { %2705 = vmatmul.mubr.msk.bf16.vlgmr.msra.gmra.mrb[12].mxu1 %vm945_vm2, %v1061_v23 }
 0x4db   : > { %2729 = vmatmul.mubr.msk.bf16.vlgmr.msra.gmra.mrb[8].mxu0 %vm945_vm2, %v1297_v35  ;;  %2710 = vmatprep.mubr.msk.bf16.mxu1 %vm3173_vm1, %v3171_v5  ;;  %v2886_v35 = vld [vmem:[%s3476_s27] sm:$0xff]  }
 0x4dc   : > { %2754 = vmatprep.mubr.msk.bf16.mxu0 %vm3173_vm1, %v3171_v5  ;;  %2739 = vmatpush3.bf16.msra.mxu0 %v2886_v35  ;;  %v2924_v35 = vld [vmem:[%s3492_s5 + $0xa0] ss:$16 sps:$4 sm:$0xff]  }
 0x4dd   : > { %2740 = vmatprep.subr.bf16.mxu0 %v3171_v5 }
 0x5a5   : > { %v1051_v36 = vpop.f32.mrb[8].mxu1 }
 0x5a6   : > { %1058 = vst.msk [vmem:[#allocation3] sm:$0x1f] %vm1057_vm7, %v1051_v36  ;;  %v2700_v37 = vpop.f32.mrb[9].mxu1  ;;  %v1223_v40 = vpop.f32.mrb[4].mxu0  ;;  %v2887_v36 = vld [vmem:[%s3476_s27 + $0x8] sm:$0xff]  }
 0x5a7   : > { %v1229_v42 = vmul.f32 0.17677669, %v1223_v40  ;;  %v1054_v43 = vpop.f32.mrb[10].mxu1  ;;  %v2718_v44 = vpop.f32.mrb[5].mxu0  ;;  %2741 = vmatpush3.bf16.msra.mxu0 %v2887_v36  ;;  %v2889_v37 = vld [vmem:[%s3476_s27 + $0x18] sm:$0xff]   ;;  %v2890_v40 = vld [vmem:[%s3476_s27 + $0x20] sm:$0xff]  }
 0x5a8   : > { %v2701_v45 = vpop.f32.mrb[11].mxu1  ;;  %v1226_v46 = vpop.f32.mrb[6].mxu0  ;;  %2742 = vmatprep.subr.bf16.mxu0 %v3171_v5  ;;  %v2927_v36 = vld [vmem:[%s3492_s5 + $0xa8] ss:$16 sps:$4 sm:$0xff]  }
 0x5a9   : > { %v2719_v47 = vpop.f32.mrb[7].mxu0  ;;  %v1230_v48 = vsel %vm993_vm5, %v1229_v42, -inf }
 0x5aa   : > { %1231 = vmax.xlane.f32.xlu1 %v1230_v48  ;;  %v2892_v47 = vld [vmem:[%s3476_s27 + $0x30] sm:$0xff]   ;;  %v2893_v48 = vld [vmem:[%s3476_s27 + $0x38] sm:$0xff]  }
 0x5ad   : > { %v1105_v49 = vpop.f32.mrb[12].mxu1 }
 0x5ae   : > { %v1111_v51 = vmul.f32 0.17677669, %v1105_v49  ;;  %v2706_v52 = vpop.f32.mrb[13].mxu1  ;;  %v1340_v53 = vpop.f32.mrb[8].mxu0 }
 0x5af   : > { %v1108_v54 = vpop.f32.mrb[14].mxu1  ;;  %v2730_v55 = vpop.f32.mrb[9].mxu0  ;;  %v1346_v56 = vmul.f32 0.17677669, %v1340_v53 }
 0x5b0   : > { %v2707_v57 = vpop.f32.mrb[15].mxu1  ;;  %v1343_v58 = vpop.f32.mrb[10].mxu0  ;;  %v1112_v59 = vsel %vm993_vm5, %v1111_v51, -inf }
 0x5b1   : > { %v2731_v60 = vpop.f32.mrb[11].mxu0  ;;  %1113 = vmax.xlane.f32.xlu0 %v1112_v59  ;;  %v1347_v61 = vsel %vm993_vm5, %v1346_v56, -inf }
 0x5b5   : > { %1348 = vmax.xlane.f32.xlu0 %v1347_v61 }
 0x637   : > { %v1232_v62 = vpop.xlane.xlu1 %1231 }
 0x638   : > { %v1233_v63 = vsub.f32 %v1229_v42, %v1232_v62  ;;  %v2891_v42 = vld [vmem:[%s3476_s27 + $0x28] sm:$0xff]   ;;  %v2512_v62 = vld [vmem:[%s630_s1] ss:$0 sm:$0xff]  ;;  %s3844_s1 = scalar_lea.vmem [#allocation6], %s3429_s19 }
 0x63a   : > { %v1234_v0 = vmul.f32 1.442695, %v1233_v63 }
 0x63c   : > { %2980 = vpow2.f32 %v1234_v0 }
 0x63e   : > { %v1114_v2 = vpop.xlane.xlu0 %1113 }
 0x63f   : > { %v1115_v3 = vsub.f32 %v1111_v51, %v1114_v2 }
 0x641   : > { %v1116_v4 = vmul.f32 1.442695, %v1115_v3 }
 0x642   : > { %v1349_v6 = vpop.xlane.xlu0 %1348 }
 0x643   : > { %2982 = vpow2.f32 %v1116_v4  ;;  %v1350_v9 = vsub.f32 %v1346_v56, %v1349_v6 }
 0x645   : > { %v1351_v10 = vmul.f32 1.442695, %v1350_v9  ;;  %v2894_v9 = vld [vmem:[%s3492_s5] ss:$16 sps:$4 sm:$0xff]  }
 0x646   : > { %v2981_v11 = vpop.eup %2980 }
 0x647   : > { %2984 = vpow2.f32 %v1351_v10  ;;  %v1236_v12 = vsel %vm993_vm5, %v2981_v11, 0.0  ;;  %v2896_v10 = vld [vmem:[%s3492_s5 + $0x4] ss:$16 sps:$4 sm:$0xff]  }
 0x648   : > { %1237 = vadd.xlane.f32.xlu0 %v1236_v12  ;;  %v2899_v12 = vld [vmem:[%s3492_s5 + $0xc] ss:$16 sps:$4 sm:$0xff]  }
 0x64d   : > { %v2983_v13 = vpop.eup %2982 }
 0x64e   : > { %v1118_v14 = vsel %vm993_vm5, %v2983_v13, 0.0 }
 0x64f   : > { %1119 = vadd.xlane.f32.xlu0 %v1118_v14  ;;  %v2905_v14 = vld [vmem:[%s3492_s5 + $0x2c] ss:$16 sps:$4 sm:$0xff]  }
 0x651   : > { %v2985_v15 = vpop.eup %2984 }
 0x652   : > { %v1353_v16 = vsel %vm993_vm5, %v2985_v15, 0.0 }
 0x653   : > { %1354 = vadd.xlane.f32.xlu1 %v1353_v16  ;;  %v2908_v16 = vld [vmem:[%s3492_s5 + $0x44] ss:$16 sps:$4 sm:$0xff]  }
 0x664   : > { %1242 = vrot.lane.b32.xlu1 %v3577_v7, %s3177_s3 }
 0x665   : > { %1125 = vrot.lane.b32.xlu0 %v3577_v7, %s3174_s0 }
 0x668   : > { %1359 = vrot.lane.b32.xlu1 %v3577_v7, %s3176_s2 }
 0x6d5   : > { %v1238_v17 = vpop.xlane.xlu0 %1237 }
 0x6dc   : > { %v1120_v18 = vpop.xlane.xlu0 %1119 }
 0x6dd   : > { %2986 = vrcp.f32 %v1120_v18  ;;  %v2906_v18 = vld [vmem:[%s3492_s5 + $0x40] ss:$16 sps:$4 sm:$0xff]  }
 0x6de   : > { %2988 = vrcp.f32 %v1238_v17  ;;  %v2911_v17 = vld [vmem:[%s3492_s5 + $0x4c] ss:$16 sps:$4 sm:$0xff]  }
 0x6e0   : > { %v1126_v19 = vpop.permute.xlu0 %1125  ;;  %v1355_v21 = vpop.xlane.xlu1 %1354 }
 0x6e1   : > { %v1131_v20 = vand.u32 %v1126_v19, %v3580_v8  ;;  %2990 = vrcp.f32 %v1355_v21  ;;  %v2909_v19 = vld [vmem:[%s3492_s5 + $0x48] ss:$16 sps:$4 sm:$0xff]  }
 0x6e3   : > { %2709 = vmatpush3.bf16.msra.mxu1 %v1131_v20 }
 0x6e4   : > { %2720 = vmatprep.subr.bf16.mxu1 %v3171_v5  ;;  %v1243_v24 = vpop.permute.xlu1 %1242 }
 0x6e5   : > { %v1248_v27 = vand.u32 %v1243_v24, %v3580_v8 }
 0x6e7   : > { %v2987_v22 = vpop.eup %2986 }
 0x6e8   : > { %v1122_v23 = vmul.f32 %v2987_v22, %v2983_v13  ;;  %v2989_v26 = vpop.eup %2988  ;;  %v1360_v29 = vpop.permute.xlu1 %1359  ;;  %v2902_v13 = vld [vmem:[%s3492_s5 + $0x24] ss:$16 sps:$4 sm:$0xff]  }
 0x6e9   : > { %v1240_v7 = vmul.f32 %v2989_v26, %v2981_v11  ;;  %v1365_v32 = vand.u32 %v1360_v29, %v3580_v8  ;;  %v2888_v8 = vld [vmem:[%s3476_s27 + $0x10] sm:$0xff]   ;;  %v2897_v11 = vld [vmem:[%s3492_s5 + $0x8] ss:$16 sps:$4 sm:$0xff]   ;;  %v2917_v26 = vld [vmem:[%s3492_s5 + $0x6c] ss:$16 sps:$4 sm:$0xff]  }
 0x6ea   : > { %v1123_v25 = vpack.c.bf16 %v1122_v23, %v1122_v23  ;;  %2743 = vmatpush3.bf16.msra.mxu0 %v2888_v8  ;;  %v2920_v29 = vld [vmem:[%s3492_s5 + $0x84] ss:$16 sps:$4 sm:$0xff]  }
 0x6eb   : > { %v1241_v30 = vpack.c.bf16 %v1240_v7, %v1240_v7  ;;  %v2991_v31 = vpop.eup %2990  ;;  %2744 = vmatprep.subr.bf16.mxu0 %v3171_v5  ;;  %v2915_v7 = vld [vmem:[%s3492_s5 + $0x68] ss:$16 sps:$4 sm:$0xff]   ;;  %v2932_v8 = vld [vmem:[%s3492_s5 + $0xc4] ss:$16 sps:$4 sm:$0xff]  }
 0x6ec   : > { %2711 = vmatmul.mubr.msk.bf16.vlgmr.msra.gmra.mrb[16].mxu1 %vm1006_vm6, %v1123_v25  ;;  %v1357_v33 = vmul.f32 %v2991_v31, %v2985_v15  ;;  %v2903_v15 = vld [vmem:[%s3492_s5 + $0x28] ss:$16 sps:$4 sm:$0xff]   ;;  %v2914_v25 = vld [vmem:[%s3492_s5 + $0x64] ss:$16 sps:$4 sm:$0xff]   ;;  %v2918_v31 = vld [vmem:[%s3492_s5 + $0x80] ss:$16 sps:$4 sm:$0xff]  }
 0x6ed   : > { %2721 = vmatpush3.bf16.msra.mxu1 %v1248_v27  ;;  %2722 = vmatprep.mubr.msk.bf16.mxu1 %vm3173_vm1, %v3171_v5  ;;  %v2912_v27 = vld [vmem:[%s3492_s5 + $0x60] ss:$16 sps:$4 sm:$0xff]  }
 0x6ee   : > { %2732 = vmatprep.subr.bf16.mxu1 %v3171_v5  ;;  %v1358_v34 = vpack.c.bf16 %v1357_v33, %v1357_v33  ;;  %2745 = vmatpush3.bf16.msra.mxu0 %v2889_v37  ;;  %v2926_v33 = vld [vmem:[%s3492_s5 + $0xa4] ss:$16 sps:$4 sm:$0xff]   ;;  %v2935_v37 = vld [vmem:[%s3492_s5 + $0xcc] ss:$16 sps:$4 sm:$0xff]  }
 0x6ef   : > { %2746 = vmatprep.subr.bf16.mxu0 %v3171_v5 }
 0x6f2   : > { %2747 = vmatpush3.bf16.msra.mxu0 %v2890_v40  ;;  %v2930_v40 = vld [vmem:[%s3492_s5 + $0xc0] ss:$16 sps:$4 sm:$0xff]  }
 0x6f3   : > { %2748 = vmatprep.subr.bf16.mxu0 %v3171_v5 }
 0x6f4   : > { %2723 = vmatmul.mubr.msk.bf16.vlgmr.msra.gmra.mrb[20].mxu1 %vm1006_vm6, %v1241_v30  ;;  %v2923_v30 = vld [vmem:[%s3492_s5 + $0x8c] ss:$16 sps:$4 sm:$0xff]  }
 0x6f5   : > { %2733 = vmatpush3.bf16.msra.mxu1 %v1365_v32  ;;  %2734 = vmatprep.mubr.msk.bf16.mxu1 %vm3173_vm1, %v3171_v5  ;;  %v2921_v32 = vld [vmem:[%s3492_s5 + $0x88] ss:$16 sps:$4 sm:$0xff]  }
 0x6f6   : > { %2749 = vmatpush3.bf16.msra.mxu0 %v2891_v42  ;;  %1766 = vmatprep.subr.bf16.mxu1 %v2896_v10  ;;  %v2933_v42 = vld [vmem:[%s3492_s5 + $0xc8] ss:$16 sps:$4 sm:$0xff]  }
 0x6f7   : > { %2750 = vmatprep.subr.bf16.mxu0 %v3171_v5  ;;  %v2954_v10 = vld [vmem:[%s3502_s13 + $0x58] sm:$0xff]  }
 0x6fa   : > { %2751 = vmatpush3.bf16.msra.mxu0 %v2892_v47  ;;  %v2942_v47 = vld [vmem:[%s3502_s13 + $0x40] sm:$0xff]  }
 0x6fb   : > { %2752 = vmatprep.subr.bf16.mxu0 %v3171_v5 }
 0x6fc   : > { %2735 = vmatmul.mubr.msk.bf16.vlgmr.msra.gmra.mrb[24].mxu1 %vm1006_vm6, %v1358_v34  ;;  %v2929_v34 = vld [vmem:[%s3492_s5 + $0xac] ss:$16 sps:$4 sm:$0xff]  }
 0x6fd   : > { %1798 = vmatprep.mubr.bf16.mxu1 %v3172_v28  ;;  %1767 = vmatpush1.bf16.msra.mxu1 %v2894_v9  ;;  %v2953_v9 = vld [vmem:[%s3502_s13 + $0x90] sm:$0xff]  }
 0x6fe   : > { %2753 = vmatpush3.bf16.msra.mxu0 %v2893_v48  ;;  %1768 = vmatprep.subr.bf16.mxu1 %v2902_v13  ;;  %v2943_v48 = vld [vmem:[%s3502_s13 + $0xc0] sm:$0xff]   ;;  %v2957_v13 = vld [vmem:[%s3502_s13 + $0x98] sm:$0xff]  }
 0x6ff   : > { %1807 = vmatprep.subr.bf16.mxu0 %v2899_v12  ;;  %v2956_v12 = vld [vmem:[%s3502_s13 + $0x18] sm:$0xff]  }
 0x7bf   : > { %v1167_v43 = vpop.f32.mrb[16].mxu1 }
 0x7c0   : > { %1174 = vrot.lane.b32.xlu1 %v1167_v43, %s3176_s2  ;;  %v2712_v44 = vpop.f32.mrb[17].mxu1  ;;  %v2938_v43 = vld [vmem:[%s3492_s5 + $0xe4] ss:$16 sps:$4 sm:$0xff]  }
 0x7c1   : > { %v1170_v45 = vpop.f32.mrb[18].mxu1  ;;  %v2941_v44 = vld [vmem:[%s3492_s5 + $0xec] ss:$16 sps:$4 sm:$0xff]  }
 0x7c2   : > { %v2713_v46 = vpop.f32.mrb[19].mxu1  ;;  %v2936_v45 = vld [vmem:[%s3492_s5 + $0xe0] ss:$16 sps:$4 sm:$0xff]  }
 0x7c3   : > { %v2939_v46 = vld [vmem:[%s3492_s5 + $0xe8] ss:$16 sps:$4 sm:$0xff]  }
 0x7c7   : > { %v1284_v49 = vpop.f32.mrb[20].mxu1 }
 0x7c8   : > { %1291 = vrot.lane.b32.xlu0 %v1284_v49, %s3177_s3  ;;  %v2724_v51 = vpop.f32.mrb[21].mxu1 }
 0x7c9   : > { %v1287_v52 = vpop.f32.mrb[22].mxu1 }
 0x7ca   : > { %v2725_v53 = vpop.f32.mrb[23].mxu1 }
 0x7cb   : > { %v1527_v53 = vld [vmem:[%s3433_s29] sm:$0x3] }
 0x7cf   : > { %v1401_v54 = vpop.f32.mrb[24].mxu1 }
 0x7d0   : > { %1408 = vrot.lane.b32.xlu1 %v1401_v54, %s3174_s0  ;;  %v2736_v55 = vpop.f32.mrb[25].mxu1  ;;  %v1544_v54 = vrot.slane %v1527_v53, %v3556_v39 }
 0x7d1   : > { %v1404_v56 = vpop.f32.mrb[26].mxu1 }
 0x7d2   : > { %v2737_v57 = vpop.f32.mrb[27].mxu1 }
 0x7d3   : > { %v1549_v57 = vrot.slane %v1527_v53, %v3560_v41 }
 0x832   : > { %v1175_v58 = vpop.permute.xlu1 %1174 }
 0x833   : > { %1178 = vst.msk [vmem:[#allocation3] sm:$0x1f] %vm1177_vm8, %v1175_v58 }
 0x83a   : > { %v1292_v59 = vpop.permute.xlu0 %1291 }
 0x83b   : > { %1295 = vst.msk [vmem:[#allocation3] sm:$0x1f] %vm1294_vm9, %v1292_v59 }
 0x842   : > { %v1409_v5 = vpop.permute.xlu1 %1408 }
 0x843   : > { %1412 = vst.msk [vmem:[#allocation3] sm:$0x1f] %vm1411_vm10, %v1409_v5  ;;  %v2944_v5 = vld [vmem:[%s3502_s13] sm:$0xff]  }
 0x84a   : > { %v1413_v60 = vld [vmem:[#allocation3] sm:$0x1f] }
 0x84b   : > { %v1414_v61 = vpack.c.bf16 %v1413_v60, %v1413_v60  ;;  %v2945_v60 = vld [vmem:[%s3502_s13 + $0x80] sm:$0xff]  }
 0x84d   : > { %2755 = vmatmul.mubr.bf16.vlgmr.msra.gmra.mrb[12].mxu0 %v1414_v61 }
 0x84e   : > { %1839 = vmatprep.mubr.bf16.mxu0 %v3172_v28  ;;  %1808 = vmatpush1.bf16.msra.mxu0 %v2897_v11  ;;  %v2955_v11 = vld [vmem:[%s3502_s13 + $0xd8] sm:$0xff]  }
 0x84f   : > { %1809 = vmatprep.subr.bf16.mxu0 %v2905_v14  ;;  %v2958_v14 = vld [vmem:[%s3502_s13 + $0x60] sm:$0xff]  }
 0x852   : > { %1810 = vmatpush1.bf16.msra.mxu0 %v2903_v15  ;;  %v2960_v15 = vld [vmem:[%s3502_s13 + $0x20] sm:$0xff]  }
 0x853   : > { %1811 = vmatprep.subr.bf16.mxu0 %v2911_v17  ;;  %v2962_v17 = vld [vmem:[%s3502_s13 + $0x68] sm:$0xff]  }
 0x856   : > { %1812 = vmatpush1.bf16.msra.mxu0 %v2909_v19  ;;  %v2964_v19 = vld [vmem:[%s3502_s13 + $0x28] sm:$0xff]  }
 0x857   : > { %1813 = vmatprep.subr.bf16.mxu0 %v2917_v26  ;;  %v2971_v26 = vld [vmem:[%s3502_s13 + $0xf8] sm:$0xff]  }
 0x85a   : > { %1814 = vmatpush1.bf16.msra.mxu0 %v2915_v7  ;;  %v2973_v7 = vld [vmem:[%s3502_s13 + $0xb8] sm:$0xff]  }
 0x85b   : > { %1815 = vmatprep.subr.bf16.mxu0 %v2923_v30  ;;  %v1600_v30 = vsub.s32 3, %v3553_v38 }
 0x85e   : > { %1816 = vmatpush1.bf16.msra.mxu0 %v2921_v32 }
 0x85f   : > { %1817 = vmatprep.subr.bf16.mxu0 %v2929_v34 }
 0x862   : > { %1818 = vmatpush1.bf16.msra.mxu0 %v2927_v36 }
 0x863   : > { %1819 = vmatprep.subr.bf16.mxu0 %v2935_v37 }
 0x866   : > { %1820 = vmatpush1.bf16.msra.mxu0 %v2933_v42 }
 0x867   : > { %1821 = vmatprep.subr.bf16.mxu0 %v2941_v44 }
 0x86a   : > { %1822 = vmatpush1.bf16.msra.mxu0 %v2939_v46 }
 0x86b   : > { %2648 = vmatprep.subr.bf16.mxu0 %v2943_v48 }
 0x920   : > { %v1520_v63 = vpop.f32.mrb[12].mxu0 }
 0x921   : > { %v1521_v0 = vadd.f32 %v2512_v62, %v1520_v63  ;;  %v2756_v2 = vpop.f32.mrb[13].mxu0  ;;  %v2946_v62 = vld [vmem:[%s3502_s13 + $0x48] sm:$0xff]  }
 0x922   : > { %v1523_v3 = vpop.f32.mrb[14].mxu0  ;;  %v2947_v63 = vld [vmem:[%s3502_s13 + $0xc8] sm:$0xff]  }
 0x923   : > { %v3662_v4 = vadd.f32 %v1521_v0, %v3510_v1  ;;  %v2757_v6 = vpop.f32.mrb[15].mxu0  ;;  %v2900_v1 = vld [vmem:[%s3492_s5 + $0x20] ss:$16 sps:$4 sm:$0xff]   ;;  %v2948_v0 = vld [vmem:[%s3502_s13 + $0x8] sm:$0xff]  }
 0x924   : > { %1769 = vmatpush1.bf16.msra.mxu1 %v2900_v1  ;;  %v2949_v2 = vld [vmem:[%s3502_s13 + $0x88] sm:$0xff]   ;;  %v2950_v3 = vld [vmem:[%s3502_s13 + $0x50] sm:$0xff]   ;;  %v2959_v1 = vld [vmem:[%s3502_s13 + $0xe0] sm:$0xff]  }
 0x925   : > { %v1528_v28 = vsel %vm658_vm0, %v3662_v4, 0.0  ;;  %1770 = vmatprep.subr.bf16.mxu1 %v2908_v16  ;;  %v2951_v6 = vld [vmem:[%s3502_s13 + $0xd0] sm:$0xff]   ;;  %v2961_v16 = vld [vmem:[%s3502_s13 + $0xa0] sm:$0xff]  }
 0x926   : > { %1529 = vadd.xlane.f32.xlu0 %v1528_v28  ;;  %v2952_v28 = vld [vmem:[%s3502_s13 + $0x10] sm:$0xff]  }
 0x928   : > { %1771 = vmatpush1.bf16.msra.mxu1 %v2906_v18  ;;  %v2963_v18 = vld [vmem:[%s3502_s13 + $0xe8] sm:$0xff]  }
 0x929   : > { %1772 = vmatprep.subr.bf16.mxu1 %v2914_v25  ;;  %v2970_v25 = vld [vmem:[%s3502_s13 + $0x78] sm:$0xff]  }
 0x92c   : > { %1773 = vmatpush1.bf16.msra.mxu1 %v2912_v27  ;;  %v2972_v27 = vld [vmem:[%s3502_s13 + $0x38] sm:$0xff]  }
 0x92d   : > { %1774 = vmatprep.subr.bf16.mxu1 %v2920_v29  ;;  %v1584_v29 = vld [vmem:[%s3497_s25] sm:$0xf] }
 0x92e   : > { %v1597_v32 = vrot.slane %v1584_v29, %v728_v50  ;;  %v1601_v34 = vrot.slane %v1584_v29, %v1600_v30 }
 0x930   : > { %1775 = vmatpush1.bf16.msra.mxu1 %v2918_v31  ;;  %v1589_v31 = vrot.slane %v1584_v29, %v3556_v39 }
 0x931   : > { %1776 = vmatprep.subr.bf16.mxu1 %v2926_v33  ;;  %v1593_v33 = vrot.slane %v1584_v29, %v3560_v41 }
 0x934   : > { %1777 = vmatpush1.bf16.msra.mxu1 %v2924_v35 }
 0x935   : > { %1778 = vmatprep.subr.bf16.mxu1 %v2932_v8 }
 0x938   : > { %1779 = vmatpush1.bf16.msra.mxu1 %v2930_v40 }
 0x939   : > { %1780 = vmatprep.subr.bf16.mxu1 %v2938_v43 }
 0x93c   : > { %1781 = vmatpush1.bf16.msra.mxu1 %v2936_v45 }
 0x93d   : > { %2626 = vmatprep.subr.bf16.mxu1 %v2942_v47 }
 0x9b3   : > { %v1530_v20 = vpop.xlane.xlu0 %1529 }
 0x9b4   : > { %v1531_v21 = vmul.f32 0.0078125, %v1530_v20  ;;  %v2965_v20 = vld [vmem:[%s3502_s13 + $0xa8] sm:$0xff]  }
 0x9b6   : > { %v1532_v22 = vsub.f32 %v3662_v4, %v1531_v21  ;;  %v2966_v21 = vld [vmem:[%s3502_s13 + $0x70] sm:$0xff]  }
 0x9b8   : > { %v1533_v23 = vmul.f32 %v1532_v22, %v1532_v22 }
 0x9ba   : > { %v1534_v24 = vsel %vm658_vm0, %v1533_v23, 0.0  ;;  %v2968_v23 = vld [vmem:[%s3502_s13 + $0x30] sm:$0xff]  }
 0x9bb   : > { %1535 = vadd.xlane.f32.xlu1 %v1534_v24  ;;  %v2969_v24 = vld [vmem:[%s3502_s13 + $0xb0] sm:$0xff]  }
 0xa48   : > { %v1536_v49 = vpop.xlane.xlu1 %1535 }
 0xa49   : > { %v1537_v51 = vmul.f32 0.0078125, %v1536_v49 }
 0xa4b   : > { %v1538_v52 = vadd.f32 1e-06, %v1537_v51 }
 0xa4d   : > { %2992 = vrsqrt.f32 %v1538_v52 }
 0xa57   : > { %v2993_v55 = vpop.eup %2992 }
 0xa58   : > { %v1540_v56 = vmul.f32 %v2993_v55, %v1532_v22  ;;  %v2967_v22 = vld [vmem:[%s3502_s13 + $0xf0] sm:$0xff]  }
 0xa5a   : > { %v1545_v58 = vmul.f32 %v1544_v54, %v1540_v56 }
 0xa5c   : > { %v1550_v59 = vadd.f32 %v1549_v57, %v1545_v58 }
 0xa5e   : > { %v1551_v61 = vpack.c.bf16 %v1550_v59, %v1550_v59 }
 0xa60   : > { %1799 = vmatmul.mubr.bf16.vlgmr.msra.gmra.mrb[28].mxu1 %v1551_v61  ;;  %1840 = vmatmul.mubr.bf16.vlgmr.msra.gmra.mrb[16].mxu0 %v1551_v61 }
 0xa61   : > { %2627 = vmatpush3.bf16.msra.mxu1 %v2944_v5  ;;  %2649 = vmatpush3.bf16.msra.mxu0 %v2945_v60 }
 0xa62   : > { %2628 = vmatprep.subr.bf16.mxu1 %v2946_v62  ;;  %2650 = vmatprep.subr.bf16.mxu0 %v2947_v63 }
 0xa65   : > { %2629 = vmatpush3.bf16.msra.mxu1 %v2948_v0  ;;  %2651 = vmatpush3.bf16.msra.mxu0 %v2949_v2 }
 0xa66   : > { %2630 = vmatprep.subr.bf16.mxu1 %v2950_v3  ;;  %2652 = vmatprep.subr.bf16.mxu0 %v2951_v6 }
 0xa69   : > { %2631 = vmatpush3.bf16.msra.mxu1 %v2952_v28  ;;  %2653 = vmatpush3.bf16.msra.mxu0 %v2953_v9 }
 0xa6a   : > { %2632 = vmatprep.subr.bf16.mxu1 %v2954_v10  ;;  %2654 = vmatprep.subr.bf16.mxu0 %v2955_v11 }
 0xa6d   : > { %2633 = vmatpush3.bf16.msra.mxu1 %v2956_v12  ;;  %2655 = vmatpush3.bf16.msra.mxu0 %v2957_v13  ;;  %v2553_v13 = vld [vmem:[%s3844_s1] ss:$0 sm:$0xff] }
 0xa6e   : > { %2634 = vmatprep.subr.bf16.mxu1 %v2958_v14  ;;  %2656 = vmatprep.subr.bf16.mxu0 %v2959_v1 }
 0xa71   : > { %2635 = vmatpush3.bf16.msra.mxu1 %v2960_v15  ;;  %2657 = vmatpush3.bf16.msra.mxu0 %v2961_v16 }
 0xa72   : > { %2636 = vmatprep.subr.bf16.mxu1 %v2962_v17  ;;  %2658 = vmatprep.subr.bf16.mxu0 %v2963_v18 }
 0xa75   : > { %2637 = vmatpush3.bf16.msra.mxu1 %v2964_v19  ;;  %2659 = vmatpush3.bf16.msra.mxu0 %v2965_v20 }
 0xa76   : > { %2638 = vmatprep.subr.bf16.mxu1 %v2966_v21  ;;  %2660 = vmatprep.subr.bf16.mxu0 %v2967_v22 }
 0xa79   : > { %2639 = vmatpush3.bf16.msra.mxu1 %v2968_v23  ;;  %2661 = vmatpush3.bf16.msra.mxu0 %v2969_v24 }
 0xa7a   : > { %2640 = vmatprep.subr.bf16.mxu1 %v2970_v25  ;;  %2662 = vmatprep.subr.bf16.mxu0 %v2971_v26 }
 0xa7d   : > { %2641 = vmatpush3.bf16.msra.mxu1 %v2972_v27  ;;  %2663 = vmatpush3.bf16.msra.mxu0 %v2973_v7 }
 0xb33   : > { %v1800_v35 = vpop.f32.mrb[28].mxu1  ;;  %v1841_v36 = vpop.f32.mrb[16].mxu0 }
 0xb34   : > { %v1801_v8 = vadd.f32 %v1800_v35, %v1589_v31  ;;  %v1842_v37 = vadd.f32 %v1841_v36, %v1597_v32  ;;  %v1802_v40 = vpop.f32.mrb[29].mxu1  ;;  %v1843_v42 = vpop.f32.mrb[17].mxu0 }
 0xb35   : > { %v1803_v43 = vadd.f32 %v1802_v40, %v1593_v33  ;;  %v1844_v44 = vadd.f32 %v1843_v42, %v1601_v34  ;;  %v1804_v45 = vpop.f32.mrb[30].mxu1  ;;  %v1845_v46 = vpop.f32.mrb[18].mxu0 }
 0xb36   : > { %v1852_v47 = vmul.f32 0.70710677, %v1801_v8  ;;  %v1854_v48 = vmul.f32 0.70710677, %v1842_v37  ;;  %v1805_v38 = vpop.f32.mrb[31].mxu1  ;;  %v1846_v50 = vpop.f32.mrb[19].mxu0 }
 0xb37   : > { %v1853_v49 = vmul.f32 0.70710677, %v1803_v43  ;;  %v1855_v51 = vmul.f32 0.70710677, %v1844_v44  ;;  %v1848_v56 = vmul.f32 0.5, %v1801_v8  ;;  %v1850_v59 = vmul.f32 0.5, %v1842_v37 }
 0xb38   : > { %2994 = verf.f32 %v1852_v47  ;;  %v1849_v5 = vmul.f32 0.5, %v1803_v43  ;;  %v1851_v62 = vmul.f32 0.5, %v1844_v44 }
 0xb39   : > { %2996 = verf.f32 %v1854_v48 }
 0xb3a   : > { %2998 = verf.f32 %v1853_v49 }
 0xb3b   : > { %3000 = verf.f32 %v1855_v51 }
 0xb42   : > { %v2995_v52 = vpop.eup %2994 }
 0xb43   : > { %v2997_v53 = vpop.eup %2996  ;;  %v1860_v54 = vadd.f32 1.0, %v2995_v52 }
 0xb44   : > { %v2999_v55 = vpop.eup %2998  ;;  %v1862_v57 = vadd.f32 1.0, %v2997_v53 }
 0xb45   : > { %v3001_v58 = vpop.eup %3000  ;;  %v1861_v60 = vadd.f32 1.0, %v2999_v55  ;;  %v1864_v61 = vmul.f32 %v1860_v54, %v1848_v56 }
 0xb46   : > { %v1863_v63 = vadd.f32 1.0, %v3001_v58  ;;  %v1866_v0 = vmul.f32 %v1862_v57, %v1850_v59 }
 0xb47   : > { %v1865_v2 = vmul.f32 %v1861_v60, %v1849_v5  ;;  %v1868_v28 = vpack.c.bf16 %v1864_v61, %v1864_v61 }
 0xb48   : > { %v1867_v3 = vmul.f32 %v1863_v63, %v1851_v62  ;;  %v1870_v10 = vpack.c.bf16 %v1866_v0, %v1866_v0 }
 0xb49   : > { %v1869_v6 = vpack.c.bf16 %v1865_v2, %v1865_v2 }
 0xb4a   : > { %v1871_v9 = vpack.c.bf16 %v1867_v3, %v1867_v3 }
 0xb4b   : > { %2167 = vmatprep.mubr.bf16.mxu1 %v1869_v6 }
 0xb4c   : > { %2207 = vmatprep.mubr.bf16.mxu0 %v1871_v9  ;;  %2168 = vmatmul.mubr.bf16.vlgmr.msra.gmra.mrb[32].mxu1 %v1868_v28 }
 0xb4d   : > { %2208 = vmatmul.mubr.bf16.vlgmr.msra.gmra.mrb[20].mxu0 %v1870_v10 }
 0xc1f   : > { %v2642_v11 = vpop.f32.mrb[32].mxu1 }
 0xc20   : > { %v2664_v12 = vpop.f32.mrb[20].mxu0  ;;  %v2643_v14 = vpop.f32.mrb[33].mxu1 }
 0xc21   : > { %v2644_v1 = vadd.f32 %v2643_v14, %v2642_v11  ;;  %v2665_v15 = vpop.f32.mrb[21].mxu0  ;;  %v2645_v16 = vpop.f32.mrb[34].mxu1 }
 0xc22   : > { %v2666_v17 = vadd.f32 %v2665_v15, %v2664_v12  ;;  %v2667_v18 = vpop.f32.mrb[22].mxu0  ;;  %v2646_v19 = vpop.f32.mrb[35].mxu1 }
 0xc23   : > { %v2170_v20 = vadd.f32 %v2644_v1, %v2553_v13  ;;  %v2668_v21 = vpop.f32.mrb[23].mxu0  ;;  %2220 = sbr.rel (%p2586_p12) target bundleno = 3435 (0xd6b), region = 88 }
 0xc25   : > { %v2210_v22 = vadd.f32 %v2666_v17, %v2170_v20 }
 0xc27   : > { %v2215_v23 = vadd.f32 %v2210_v22, %v3662_v4  ;;  %v2221_v4 = vld [vmem:[#allocation8] sm:$0x3] (!%p2586_p12) }
 0xc28   : > { %v2239_v34 = vrot.slane (!%p2586_p12), %v2221_v4, %v3556_v39  ;;  %v2244_v8 = vrot.slane (!%p2586_p12), %v2221_v4, %v3560_v41 }
 0xc29   : > { %2216 = vst [vmem:[#allocation2] sm:$0x1f] %v2215_v23 }
 0xc30   : > { %v2222_v24 = vld [vmem:[#allocation2] sm:$0x1f] }
 0xc31   : > { %v2223_v25 = vsel %vm658_vm0, %v2222_v24, 0.0 }
 0xc32   : > { %2224 = vadd.xlane.f32.xlu0 %v2223_v25 }
 0xcbf   : > { %v2225_v26 = vpop.xlane.xlu0 %2224 }
 0xcc0   : > { %v2226_v27 = vmul.f32 0.0078125, %v2225_v26 }
 0xcc2   : > { %v2227_v7 = vsub.f32 %v2222_v24, %v2226_v27 }
 0xcc4   : > { %v2228_v29 = vmul.f32 %v2227_v7, %v2227_v7 }
 0xcc6   : > { %v2229_v30 = vsel %vm658_vm0, %v2228_v29, 0.0 }
 0xcc7   : > { %2230 = vadd.xlane.f32.xlu0 %v2229_v30 }
 0xd54   : > { %v2231_v31 = vpop.xlane.xlu0 %2230 }
 0xd55   : > { %v2232_v32 = vmul.f32 0.0078125, %v2231_v31 }
 0xd57   : > { %v2233_v33 = vadd.f32 1e-06, %v2232_v32 }
 0xd59   : > { %3002 = vrsqrt.f32 %v2233_v33 }
 0xd63   : > { %v3003_v35 = vpop.eup %3002 }
 0xd64   : > { %v2235_v36 = vmul.f32 %v3003_v35, %v2227_v7 }
 0xd66   : > { %v2240_v37 = vmul.f32 %v2239_v34, %v2235_v36 }
 0xd68   : > { %v2245_v40 = vadd.f32 %v2244_v8, %v2240_v37 }
 0xd6a   : > { %2246 = vst [vmem:[%s3507_s7] sm:$0x1f] %v2245_v40 }
 0xd6b PF: > { %s28_s28 = sadd.s32 1, %s3166_s28   ;;  %s3845_s24 = sld [smem:[#allocation12_spill]] }
 0xd6c   : > { %p25_p1 = scmp.ge.s32.totalorder %s28_s28, 6   ;;  %s3846_s23 = sld [smem:[#allocation17_spill]] }
 0xd6d   : > { %s3847_s27 = sld [smem:[#allocation13_spill]]  ;;  %s3848_s25 = sld [smem:[#allocation14_spill]] }
 0xd6e   : > { %s3849_s26 = sld [smem:[#allocation15_spill]]  ;;  %s3850_s8 = sld [smem:[#allocation16_spill]] }
 0xd6f   : > { %s3851_s21 = smov %s3142_s22  ;;  %27 = sbr.rel (!%p25_p1) target bundleno = 21 (0x15), region = 160 }
 0xd71   : > { %s3852_s22 = smov %s3845_s24 }
 0xd73   : > { %s3853_s24 = smov %s3847_s27 }
 0xd74   : > { %s3854_s27 = smov %s3850_s8 }
 0xd76   :  { %2266 = vsyncpa [#allocation5], 1 }
 0xd77   :  { %2268 = vsyncpa [#allocation5 + $0x1], 1 }
 0xd78   :  { %2269 = vsyncpa [#allocation7], 1 }
 0xd79   :  { %2271 = vsyncpa [#allocation7 + $0x1], 1 }

// kernel: blip_decoder_forward.7
= control target key start
LH: loop header
LB: loop body
LE: loop exit
PB: predicated region body
PF: predicated region fallthrough
CT: control target
= control target key end

     0   :  { %12 = vsyncpa [#allocation8], 0  ;;  %s1487_s24 = smov 0   ;;  %s1489_s25 = smov 0   ;;  %s1840_s0 = inlined_call_operand.vmem [shape: f32[14,128], index: 0, kind: input, shape index: {}]   ;;  %s1841_s1 = inlined_call_operand.vmem [shape: s32[14,1], index: 1, kind: input, shape index: {}]   ;;  %s1842_s2 = inlined_call_operand.vmem [shape: bf16[128,128], index: 2, kind: input, shape index: {}]   ;;  %s1843_s3 = inlined_call_operand.vmem [shape: f32[1,128], index: 3, kind: input, shape index: {}]   ;;  %s1844_s4 = inlined_call_operand.vmem [shape: f32[2,128], index: 4, kind: input, shape index: {}]   ;;  %s1845_s5 = inlined_call_operand.vmem [shape: bf16[128,1024], index: 5, kind: input, shape index: {}]   ;;  %s1846_s6 = inlined_call_operand.vmem [shape: f32[1,1024], index: 6, kind: input, shape index: {}]   ;;  %s1847_s7 = inlined_call_operand.hbm [shape: f32[1,1], index: 7, kind: output, shape index: {}]  }
   0x1   :  { %s1491_s26 = smov 0  }
   0x2 LB: > { %s1503_s27 = sadd.s32 4294967295, %s1438_s26   ;;  %s1506_s28 = sadd.s32 1, %s1438_s26   ;;  %s1438_s26 = sphi %s1491_s26, %s1850_s26   ;;  %s1434_s25 = sphi %s1489_s25, %s1849_s25   ;;  %s1430_s24 = sphi %s1487_s24, %s1848_s24  }
   0x3   : > { %s127_s29 = ssub.s32 %s1438_s26, %s1506_s28  ;;  %s130_s30 = sadd.s32 1, %s1434_s25 }
   0x4   : > { %p128_p0 = scmp.eq.s32.totalorder %s127_s29, 0  ;;  %p137_p1 = scmp.ne.s32.totalorder %s1434_s25, %s1430_s24 }
   0x5   : > { %p138_p2 = scmp.eq.s32.totalorder %s1438_s26, 0  ;;  %p1152_p4 = scmp.ge.s32.totalorder %s1438_s26, 2 }
   0x6   : > { %s1515_s8 = scalar_select %p128_p0, %s1434_s25, %s130_s30  }
   0x7   : > { %p139_p3 = por %p138_p2, %p137_p1  ;;  %225 = sbr.rel (%p1152_p4) target bundleno = 34 (0x22), region = 36 }
   0xe   : > { %228 = sbr.rel (!%p139_p3) target bundleno = 34 (0x22), region = 40  ;;  %s230_s9 = sand.u32 (%p139_p3), 1, %s1434_s25  }
   0xf   : > { %s1220_s10 = sshll.u32 (%p139_p3), %s1438_s26, 4  ;;  %s1153_s11 = sshll.u32 (%p139_p3), %s230_s9, 8 }
  0x10   : > { %s1523_s14 = scalar_lea.vmem (%p139_p3), %s1845_s5, %s1220_s10  ;;  %s1528_s15 = scalar_lea.vmem (%p139_p3), [#allocation6], %s1153_s11 }
  0x11   : > { %v248_v0 = vld [vmem:[%s1523_s14] sm:$0xff] (%p139_p3)  ;;  %v250_v1 = vld [vmem:[%s1523_s14 + $0x8] sm:$0xff] (%p139_p3) }
  0x12   : > { %v252_v2 = vld [vmem:[%s1523_s14 + $0x20] sm:$0xff] (%p139_p3)  ;;  %249 = vst [vmem:[%s1528_s15] sm:$0xff] (%p139_p3), %v248_v0  ;;  %251 = vst [vmem:[%s1528_s15 + $0x8] sm:$0xff] (%p139_p3), %v250_v1  ;;  %v254_v3 = vld [vmem:[%s1523_s14 + $0x28] sm:$0xff] (%p139_p3) }
  0x13   : > { %253 = vst [vmem:[%s1528_s15 + $0x10] sm:$0xff] (%p139_p3), %v252_v2  ;;  %v256_v4 = vld [vmem:[%s1523_s14 + $0x40] sm:$0xff] (%p139_p3)  ;;  %v258_v5 = vld [vmem:[%s1523_s14 + $0x48] sm:$0xff] (%p139_p3)  ;;  %255 = vst [vmem:[%s1528_s15 + $0x18] sm:$0xff] (%p139_p3), %v254_v3 }
  0x14   : > { %257 = vst [vmem:[%s1528_s15 + $0x20] sm:$0xff] (%p139_p3), %v256_v4  ;;  %259 = vst [vmem:[%s1528_s15 + $0x28] sm:$0xff] (%p139_p3), %v258_v5  ;;  %v260_v6 = vld [vmem:[%s1523_s14 + $0x60] sm:$0xff] (%p139_p3)  ;;  %v262_v7 = vld [vmem:[%s1523_s14 + $0x68] sm:$0xff] (%p139_p3) }
  0x15   : > { %v264_v8 = vld [vmem:[%s1523_s14 + $0x80] sm:$0xff]  ;;  %261 = vst [vmem:[%s1528_s15 + $0x30] sm:$0xff] %v260_v6  ;;  %263 = vst [vmem:[%s1528_s15 + $0x38] sm:$0xff] %v262_v7  ;;  %v266_v9 = vld [vmem:[%s1523_s14 + $0x88] sm:$0xff] }
  0x16   : > { %265 = vst [vmem:[%s1528_s15 + $0x40] sm:$0xff] %v264_v8  ;;  %v268_v10 = vld [vmem:[%s1523_s14 + $0xa0] sm:$0xff]  ;;  %v270_v11 = vld [vmem:[%s1523_s14 + $0xa8] sm:$0xff]  ;;  %267 = vst [vmem:[%s1528_s15 + $0x48] sm:$0xff] %v266_v9 }
  0x17   : > { %269 = vst [vmem:[%s1528_s15 + $0x50] sm:$0xff] %v268_v10  ;;  %271 = vst [vmem:[%s1528_s15 + $0x58] sm:$0xff] %v270_v11  ;;  %v272_v12 = vld [vmem:[%s1523_s14 + $0xc0] sm:$0xff]  ;;  %v274_v13 = vld [vmem:[%s1523_s14 + $0xc8] sm:$0xff] }
  0x18   : > { %v276_v14 = vld [vmem:[%s1523_s14 + $0xe0] sm:$0xff]  ;;  %273 = vst [vmem:[%s1528_s15 + $0x60] sm:$0xff] %v272_v12  ;;  %275 = vst [vmem:[%s1528_s15 + $0x68] sm:$0xff] %v274_v13  ;;  %v278_v15 = vld [vmem:[%s1523_s14 + $0xe8] sm:$0xff] }
  0x19   : > { %277 = vst [vmem:[%s1528_s15 + $0x70] sm:$0xff] %v276_v14  ;;  %v280_v16 = vld [vmem:[%s1523_s14 + $0x100] sm:$0xff]  ;;  %v282_v17 = vld [vmem:[%s1523_s14 + $0x108] sm:$0xff]  ;;  %279 = vst [vmem:[%s1528_s15 + $0x78] sm:$0xff] %v278_v15 }
  0x1a   : > { %281 = vst [vmem:[%s1528_s15 + $0x80] sm:$0xff] %v280_v16  ;;  %283 = vst [vmem:[%s1528_s15 + $0x88] sm:$0xff] %v282_v17  ;;  %v284_v18 = vld [vmem:[%s1523_s14 + $0x120] sm:$0xff]  ;;  %v286_v19 = vld [vmem:[%s1523_s14 + $0x128] sm:$0xff] }
  0x1b   : > { %v288_v20 = vld [vmem:[%s1523_s14 + $0x140] sm:$0xff]  ;;  %285 = vst [vmem:[%s1528_s15 + $0x90] sm:$0xff] %v284_v18  ;;  %287 = vst [vmem:[%s1528_s15 + $0x98] sm:$0xff] %v286_v19  ;;  %v290_v21 = vld [vmem:[%s1523_s14 + $0x148] sm:$0xff] }
  0x1c   : > { %289 = vst [vmem:[%s1528_s15 + $0xa0] sm:$0xff] %v288_v20  ;;  %v292_v22 = vld [vmem:[%s1523_s14 + $0x160] sm:$0xff]  ;;  %v294_v23 = vld [vmem:[%s1523_s14 + $0x168] sm:$0xff]  ;;  %291 = vst [vmem:[%s1528_s15 + $0xa8] sm:$0xff] %v290_v21 }
  0x1d   : > { %293 = vst [vmem:[%s1528_s15 + $0xb0] sm:$0xff] %v292_v22  ;;  %295 = vst [vmem:[%s1528_s15 + $0xb8] sm:$0xff] %v294_v23  ;;  %v296_v24 = vld [vmem:[%s1523_s14 + $0x180] sm:$0xff]  ;;  %v298_v25 = vld [vmem:[%s1523_s14 + $0x188] sm:$0xff] }
  0x1e   : > { %v300_v26 = vld [vmem:[%s1523_s14 + $0x1a0] sm:$0xff]  ;;  %297 = vst [vmem:[%s1528_s15 + $0xc0] sm:$0xff] %v296_v24  ;;  %299 = vst [vmem:[%s1528_s15 + $0xc8] sm:$0xff] %v298_v25  ;;  %v302_v27 = vld [vmem:[%s1523_s14 + $0x1a8] sm:$0xff] }
  0x1f   : > { %301 = vst [vmem:[%s1528_s15 + $0xd0] sm:$0xff] %v300_v26  ;;  %v304_v28 = vld [vmem:[%s1523_s14 + $0x1c0] sm:$0xff]  ;;  %v306_v29 = vld [vmem:[%s1523_s14 + $0x1c8] sm:$0xff]  ;;  %303 = vst [vmem:[%s1528_s15 + $0xd8] sm:$0xff] %v302_v27 }
  0x20   : > { %305 = vst [vmem:[%s1528_s15 + $0xe0] sm:$0xff] %v304_v28  ;;  %307 = vst [vmem:[%s1528_s15 + $0xe8] sm:$0xff] %v306_v29  ;;  %v308_v30 = vld [vmem:[%s1523_s14 + $0x1e0] sm:$0xff]  ;;  %v310_v31 = vld [vmem:[%s1523_s14 + $0x1e8] sm:$0xff] }
  0x21   : > { %309 = vst [vmem:[%s1528_s15 + $0xf0] sm:$0xff] %v308_v30  ;;  %311 = vst [vmem:[%s1528_s15 + $0xf8] sm:$0xff] %v310_v31 }
  0x22 PF: > { %p1156_p5 = scmp.ge.s32.totalorder %s1438_s26, 1  ;;  %p324_p6 = scmp.lt.s32.totalorder %s1438_s26, 3 }
  0x24   : > { %p325_p7 = pnand %p1156_p5, %p324_p6 }
  0x25   : > { %s331_s16 = sand.u32 (!%p325_p7), 1, %s1430_s24   ;;  %s1158_s17 = sshll.u32 (!%p325_p7), %s1503_s27, 2 }
  0x26   : > { %328 = sbr.rel (%p325_p7) target bundleno = 1616 (0x650), region = 67  ;;  %s1157_s18 = sshll.u32 (!%p325_p7), %s331_s16, 8 }
  0x27   : > { %p363_p8 = scmp.lt.s32.totalorder (!%p325_p7), %s1158_s17, 7  ;;  %s1601_s22 = scalar_lea.vmem (!%p325_p7), [#allocation6], %s1157_s18 }
  0x28   : > { %p1159_p9 = scmp.ne.s32.totalorder (!%p325_p7), %s1503_s27, 0 }
  0x2d   : > { %s1852_s17 = smov (!%p363_p8, %s1158_s17), 7  ;;  %371 = sbr.rel (%p1159_p9) target bundleno = 635 (0x27b), region = 75 }
  0x2e   : > { %s365_s21 = scalar_lea.vmem %s1846_s6, %s1852_s17  ;;  %vm546_vm0 = vcmask (!%p1159_p9), 7168   ;;  %vm548_vm1 = vcmask (!%p1159_p9), 5120   ;;  %v1293_v32 = vld [vmem:[%s1842_s2] sm:$0xff] (!%p1159_p9)   ;;  %v1440_v33 = vmov (!%p1159_p9), 0.0   ;;  %v1441_v34 = vmov (!%p1159_p9), -1e+30  }
  0x2f   : > { %1232 = vmatprep.subr.bf16.mxu0 (!%p1159_p9), %v1440_v33  ;;  %547 = vst.msk [vmem:[#allocation3] sm:$0xff] (!%p1159_p9), %vm546_vm0, %v1441_v34  ;;  %550 = vst.msk [vmem:[#allocation4] sm:$0xff] (!%p1159_p9), %vm546_vm0, %v1440_v33  ;;  %v1294_v35 = vld [vmem:[%s1842_s2 + $0x8] sm:$0xff] (!%p1159_p9)   ;;  %vm1442_vm2 = vmmov (!%p1159_p9), 0   ;;  %v1295_v36 = vld [vmem:[%s1842_s2 + $0x10] sm:$0xff] (!%p1159_p9)   ;;  %vm500_vm3 = vcmask (!%p1159_p9), 1045504   ;;  %v524_v10 = vlaneseq (!%p1159_p9) }
  0x30   : > { %549 = vst.msk [vmem:[#allocation3 + $0x8] sm:$0x3f] (!%p1159_p9), %vm548_vm1, %v1441_v34  ;;  %551 = vst.msk [vmem:[#allocation4 + $0x8] sm:$0x3f] (!%p1159_p9), %vm548_vm1, %v1440_v33  ;;  %1233 = vmatpush3.bf16.msra.mxu0 (!%p1159_p9), %v1293_v32  ;;  %1248 = vmatprep.mubr.msk.bf16.mxu0 (!%p1159_p9), %vm1442_vm2, %v1440_v33  ;;  %v1296_v37 = vld [vmem:[%s1842_s2 + $0x18] sm:$0xff] (!%p1159_p9)   ;;  %v1297_v38 = vld [vmem:[%s1842_s2 + $0x20] sm:$0xff] (!%p1159_p9)  }
  0x31   : > { %552 = vst.msk [vmem:[#allocation5] sm:$0xff] (!%p1159_p9), %vm546_vm0, %v1440_v33  ;;  %1234 = vmatprep.subr.bf16.mxu0 (!%p1159_p9), %v1440_v33  ;;  %v1298_v39 = vld [vmem:[%s1842_s2 + $0x28] sm:$0xff] (!%p1159_p9)   ;;  %v1299_v40 = vld [vmem:[%s1842_s2 + $0x30] sm:$0xff] (!%p1159_p9)   ;;  %v1300_v41 = vld [vmem:[%s1842_s2 + $0x38] sm:$0xff] (!%p1159_p9)   ;;  %v525_v14 = vshrl.u32 (!%p1159_p9), %v524_v10, 7 }
  0x32   : > { %553 = vst.msk [vmem:[#allocation5 + $0x8] sm:$0x3f] (!%p1159_p9), %vm548_vm1, %v1440_v33  ;;  %v373_v42 = vld [vmem:[%s1840_s0] sm:$0xff] (!%p1159_p9)  ;;  %v374_v43 = vld [vmem:[%s1840_s0 + $0x8] sm:$0x3f] (!%p1159_p9) }
  0x33   : > { %v375_v44 = vpack.c.bf16 (!%p1159_p9), %v374_v43, %v373_v42  ;;  %v1160_v45 = vld [vmem:[%s1843_s3] ss:$0 sm:$0xff] (!%p1159_p9)  ;;  %v526_v16 = vsub.s32 (!%p1159_p9), 0, %v525_v14  ;;  %v532_v18 = vsub.s32 (!%p1159_p9), 1, %v525_v14 }
  0x34   : > { %1235 = vmatpush3.bf16.msra.mxu0 %v1294_v35  ;;  %v372_v17 = vld [vmem:[%s1844_s4] sm:$0x3] }
  0x35   : > { %1236 = vmatprep.subr.bf16.mxu0 %v1440_v33  ;;  %v527_v19 = vrot.slane %v372_v17, %v526_v16  ;;  %v533_v22 = vrot.slane %v372_v17, %v532_v18 }
  0x38   : > { %1237 = vmatpush3.bf16.msra.mxu0 %v1295_v36 }
  0x39   : > { %1238 = vmatprep.subr.bf16.mxu0 %v1440_v33 }
  0x3c   : > { %1239 = vmatpush3.bf16.msra.mxu0 %v1296_v37 }
  0x3d   : > { %1240 = vmatprep.subr.bf16.mxu0 %v1440_v33 }
  0x40   : > { %1241 = vmatpush3.bf16.msra.mxu0 %v1297_v38 }
  0x41   : > { %1242 = vmatprep.subr.bf16.mxu0 %v1440_v33 }
  0x44   : > { %1243 = vmatpush3.bf16.msra.mxu0 %v1298_v39 }
  0x45   : > { %1244 = vmatprep.subr.bf16.mxu0 %v1440_v33 }
  0x48   : > { %1245 = vmatpush3.bf16.msra.mxu0 %v1299_v40 }
  0x49   : > { %1246 = vmatprep.subr.bf16.mxu0 %v1440_v33 }
  0x4c   : > { %1247 = vmatpush3.bf16.msra.mxu0 %v1300_v41 }
  0x4f   : > { %1249 = vmatmul.mubr.bf16.vlgmr.msra.gmra.mrb[0].mxu0 %v375_v44 }
 0x122   : > { %v481_v46 = vpop.f32.mrb[0].mxu0 }
 0x123   : > { %v482_v47 = vadd.f32 %v1160_v45, %v481_v46  ;;  %v1250_v48 = vpop.f32.mrb[1].mxu0 }
 0x124   : > { %v484_v49 = vpop.f32.mrb[2].mxu0 }
 0x125   : > { %v485_v50 = vadd.f32 %v1160_v45, %v484_v49  ;;  %v1251_v51 = vpop.f32.mrb[3].mxu0  ;;  %v490_v52 = vmul.f32 0.70710677, %v482_v47  ;;  %v488_v61 = vmul.f32 0.5, %v482_v47 }
 0x127   : > { %v491_v53 = vmul.f32 0.70710677, %v485_v50  ;;  %v489_v56 = vmul.f32 0.5, %v485_v50 }
 0x129   : > { %1301 = verf.f32 %v491_v53 }
 0x12a   : > { %1303 = verf.f32 %v490_v52 }
 0x133   : > { %v1302_v54 = vpop.eup %1301 }
 0x134   : > { %v1304_v55 = vpop.eup %1303  ;;  %v495_v57 = vadd.f32 1.0, %v1302_v54 }
 0x135   : > { %v494_v59 = vadd.f32 1.0, %v1304_v55 }
 0x136   : > { %v497_v58 = vmul.f32 %v495_v57, %v489_v56 }
 0x137   : > { %v496_v62 = vmul.f32 %v494_v59, %v488_v61 }
 0x138   : > { %v501_v60 = vsel %vm500_vm3, %v497_v58, 0.0 }
 0x139   : > { %502 = vadd.xlane.f32.xlu0 %v501_v60 }
 0x13d   : > { %498 = vadd.xlane.f32.xlu0 %v496_v62 }
 0x1c6   : > { %v503_v63 = vpop.xlane.xlu0 %502 }
 0x1c7   : > { %v506_v0 = vmul.f32 0.0078125, %v503_v63 }
 0x1c9   : > { %v508_v3 = vsub.f32 %v497_v58, %v506_v0 }
 0x1ca   : > { %v499_v1 = vpop.xlane.xlu0 %498 }
 0x1cb   : > { %v505_v2 = vmul.f32 0.0078125, %v499_v1  ;;  %v510_v6 = vmul.f32 %v508_v3, %v508_v3 }
 0x1cd   : > { %v507_v4 = vsub.f32 %v496_v62, %v505_v2  ;;  %v513_v7 = vsel %vm500_vm3, %v510_v6, 0.0 }
 0x1cf   : > { %v509_v5 = vmul.f32 %v507_v4, %v507_v4 }
 0x1d1   : > { %511 = vadd.xlane.f32.xlu1 %v509_v5 }
 0x1d5   : > { %514 = vadd.xlane.f32.xlu1 %v513_v7 }
 0x25e   : > { %v512_v8 = vpop.xlane.xlu1 %511 }
 0x25f   : > { %v516_v9 = vmul.f32 0.0078125, %v512_v8 }
 0x261   : > { %v518_v11 = vadd.f32 1e-12, %v516_v9 }
 0x262   : > { %v515_v12 = vpop.xlane.xlu1 %514 }
 0x263   : > { %1305 = vrsqrt.f32 %v518_v11  ;;  %v517_v13 = vmul.f32 0.0078125, %v515_v12 }
 0x265   : > { %v519_v15 = vadd.f32 1e-12, %v517_v13 }
 0x267   : > { %1307 = vrsqrt.f32 %v519_v15 }
 0x26d   : > { %v1306_v20 = vpop.eup %1305 }
 0x26e   : > { %v522_v21 = vmul.f32 %v1306_v20, %v507_v4 }
 0x270   : > { %v528_v23 = vmul.f32 %v527_v19, %v522_v21 }
 0x271   : > { %v1308_v24 = vpop.eup %1307 }
 0x272   : > { %v534_v25 = vadd.f32 %v533_v22, %v528_v23  ;;  %v523_v26 = vmul.f32 %v1308_v24, %v508_v3 }
 0x274   : > { %v1221_v27 = vpack.c.bf16 %v534_v25, %v534_v25  ;;  %v529_v28 = vmul.f32 %v527_v19, %v523_v26 }
 0x276   : > { %544 = vst [vmem:[#allocation2] sm:$0xf] %v1221_v27  ;;  %v535_v29 = vadd.f32 %v533_v22, %v529_v28 }
 0x278   : > { %v1222_v30 = vpack.c.bf16 %v535_v29, %v535_v29 }
 0x27a   : > { %545 = vst [vmem:[#allocation2 + $0x4] sm:$0x7] %v1222_v30 }
 0x27b PF: > { %v1311_v31 = vld [vmem:[%s1601_s22 + $0x4] ss:$16 sps:$4 sm:$0xff]   ;;  %v1313_v32 = vld [vmem:[%s1601_s22 + $0xc] ss:$16 sps:$4 sm:$0xff]   ;;  %v1443_v33 = vmov 0   ;;  %v590_v1 = vlaneseq  ;;  %s1204_s12 = sshll.u32 %s1503_s27, 9 }
 0x27c   : > { %808 = vmatprep.mubr.bf16.mxu0 %v1443_v33  ;;  %851 = vmatprep.mubr.bf16.mxu1 %v1443_v33  ;;  %v1315_v34 = vld [vmem:[%s1601_s22] ss:$16 sps:$4 sm:$0xff]   ;;  %v1316_v35 = vld [vmem:[%s1601_s22 + $0x8] ss:$16 sps:$4 sm:$0xff]   ;;  %v1317_v36 = vld [vmem:[%s1601_s22 + $0x24] ss:$16 sps:$4 sm:$0xff]   ;;  %v870_v8 = vstv %s1204_s12 }
 0x27d   : > { %776 = vmatprep.subr.bf16.mxu0 %v1311_v31  ;;  %1310 = vset.pattern.permute.xlu0 %v1443_v33  ;;  %v1319_v37 = vld [vmem:[%s1601_s22 + $0x2c] ss:$16 sps:$4 sm:$0xff]   ;;  %v1321_v38 = vld [vmem:[%s1601_s22 + $0x20] ss:$16 sps:$4 sm:$0xff]   ;;  %v1322_v39 = vld [vmem:[%s1601_s22 + $0x28] ss:$16 sps:$4 sm:$0xff]  }
 0x27e   : > { %819 = vmatprep.subr.bf16.mxu1 %v1313_v32  ;;  %1309 = vset.pattern.permute.xlu1 %v1443_v33  ;;  %v1323_v40 = vld [vmem:[%s1601_s22 + $0x44] ss:$16 sps:$4 sm:$0xff]   ;;  %v1325_v41 = vld [vmem:[%s1601_s22 + $0x4c] ss:$16 sps:$4 sm:$0xff]   ;;  %v1327_v42 = vld [vmem:[%s1601_s22 + $0x40] ss:$16 sps:$4 sm:$0xff]  }
 0x27f   : > { %777 = vmatpush1.bf16.msra.mxu0 %v1315_v34  ;;  %820 = vmatpush1.bf16.msra.mxu1 %v1316_v35  ;;  %v1328_v43 = vld [vmem:[%s1601_s22 + $0x48] ss:$16 sps:$4 sm:$0xff]   ;;  %v1329_v44 = vld [vmem:[%s1601_s22 + $0x64] ss:$16 sps:$4 sm:$0xff]   ;;  %v1331_v45 = vld [vmem:[%s1601_s22 + $0x6c] ss:$16 sps:$4 sm:$0xff]  }
 0x280   : > { %778 = vmatprep.subr.bf16.mxu0 %v1317_v36  ;;  %821 = vmatprep.subr.bf16.mxu1 %v1319_v37  ;;  %v1333_v46 = vld [vmem:[%s1601_s22 + $0x60] ss:$16 sps:$4 sm:$0xff]   ;;  %v1334_v47 = vld [vmem:[%s1601_s22 + $0x68] ss:$16 sps:$4 sm:$0xff]   ;;  %v1335_v48 = vld [vmem:[%s1601_s22 + $0x84] ss:$16 sps:$4 sm:$0xff]  }
 0x281   : > { %v1337_v49 = vld [vmem:[%s1601_s22 + $0x8c] ss:$16 sps:$4 sm:$0xff]   ;;  %v1339_v50 = vld [vmem:[%s1601_s22 + $0x80] ss:$16 sps:$4 sm:$0xff]   ;;  %v1340_v51 = vld [vmem:[%s1601_s22 + $0x88] ss:$16 sps:$4 sm:$0xff]  }
 0x282   : > { %v1341_v52 = vld [vmem:[%s1601_s22 + $0xa4] ss:$16 sps:$4 sm:$0xff]   ;;  %v1343_v53 = vld [vmem:[%s1601_s22 + $0xac] ss:$16 sps:$4 sm:$0xff]   ;;  %v1345_v54 = vld [vmem:[%s1601_s22 + $0xa0] ss:$16 sps:$4 sm:$0xff]  }
 0x283   : > { %779 = vmatpush1.bf16.msra.mxu0 %v1321_v38  ;;  %822 = vmatpush1.bf16.msra.mxu1 %v1322_v39  ;;  %v1346_v55 = vld [vmem:[%s1601_s22 + $0xa8] ss:$16 sps:$4 sm:$0xff]   ;;  %v1347_v56 = vld [vmem:[%s1601_s22 + $0xc4] ss:$16 sps:$4 sm:$0xff]   ;;  %v1349_v57 = vld [vmem:[%s1601_s22 + $0xcc] ss:$16 sps:$4 sm:$0xff]  }
 0x284   : > { %780 = vmatprep.subr.bf16.mxu0 %v1323_v40  ;;  %823 = vmatprep.subr.bf16.mxu1 %v1325_v41  ;;  %v1351_v58 = vld [vmem:[%s1601_s22 + $0xc0] ss:$16 sps:$4 sm:$0xff]   ;;  %v1352_v59 = vld [vmem:[%s1601_s22 + $0xc8] ss:$16 sps:$4 sm:$0xff]   ;;  %v1353_v60 = vld [vmem:[%s1601_s22 + $0xe4] ss:$16 sps:$4 sm:$0xff]  }
 0x285   : > { %v1355_v61 = vld [vmem:[%s1601_s22 + $0xec] ss:$16 sps:$4 sm:$0xff]   ;;  %v1357_v62 = vld [vmem:[%s1601_s22 + $0xe0] ss:$16 sps:$4 sm:$0xff]   ;;  %v1358_v63 = vld [vmem:[%s1601_s22 + $0xe8] ss:$16 sps:$4 sm:$0xff]  }
 0x286   : > { %v1359_v0 = vld [vmem:[#allocation2] sm:$0x7f]   ;;  %v591_v2 = vshrl.u32 %v590_v1, 7  ;;  %v865_v3 = vand.u32 127, %v590_v1  ;;  %vm932_vm8 = vcmask 1045504   ;;  %vm946_vm9 = vcmask 5120  }
 0x287   : > { %781 = vmatpush1.bf16.msra.mxu0 %v1327_v42  ;;  %824 = vmatpush1.bf16.msra.mxu1 %v1328_v43  ;;  %v588_v7 = vld [vmem:[%s365_s21] sm:$0xf]  ;;  %vm944_vm10 = vcmask 7168   ;;  %p1213_p10 = scmp.ne.s32.totalorder %s1503_s27, 1 }
 0x288   : > { %782 = vmatprep.subr.bf16.mxu0 %v1329_v44  ;;  %825 = vmatprep.subr.bf16.mxu1 %v1331_v45  ;;  %v592_v4 = vsub.s32 0, %v591_v2  ;;  %v600_v5 = vsub.s32 2, %v591_v2  ;;  %v867_v6 = vadd.s32 256, %v865_v3  ;;  %v596_v9 = vsub.s32 1, %v591_v2 }
 0x289   : > { %v866_v10 = vadd.s32 128, %v865_v3  ;;  %v868_v11 = vadd.s32 384, %v865_v3  ;;  %v604_v12 = vsub.s32 3, %v591_v2  ;;  %v1680_v14 = vadd.s32 %v870_v8, %v865_v3 }
 0x28a   : > { %v593_v13 = vrot.slane %v588_v7, %v592_v4  ;;  %v601_v15 = vrot.slane %v588_v7, %v600_v5  ;;  %v1682_v16 = vadd.s32 %v870_v8, %v867_v6  ;;  %v597_v17 = vrot.slane %v588_v7, %v596_v9 }
 0x28b   : > { %783 = vmatpush1.bf16.msra.mxu0 %v1333_v46  ;;  %826 = vmatpush1.bf16.msra.mxu1 %v1334_v47  ;;  %v1684_v18 = vadd.s32 %v870_v8, %v866_v10  ;;  %v1686_v19 = vadd.s32 %v870_v8, %v868_v11  ;;  %v605_v20 = vrot.slane %v588_v7, %v604_v12  ;;  %vm875_vm4 = vcmp.lt.s32.totalorder %v1680_v14, 1000 }
 0x28c   : > { %784 = vmatprep.subr.bf16.mxu0 %v1335_v48  ;;  %827 = vmatprep.subr.bf16.mxu1 %v1337_v49  ;;  %vm877_vm5 = vcmp.lt.s32.totalorder %v1682_v16, 1000  ;;  %v1444_v3 = vmov 0.0  }
 0x28d   : > { %vm876_vm6 = vcmp.lt.s32.totalorder %v1684_v18, 1000  ;;  %vm878_vm7 = vcmp.lt.s32.totalorder %v1686_v19, 1000 }
 0x28f   : > { %785 = vmatpush1.bf16.msra.mxu0 %v1339_v50  ;;  %828 = vmatpush1.bf16.msra.mxu1 %v1340_v51 }
 0x290   : > { %786 = vmatprep.subr.bf16.mxu0 %v1341_v52  ;;  %829 = vmatprep.subr.bf16.mxu1 %v1343_v53 }
 0x293   : > { %787 = vmatpush1.bf16.msra.mxu0 %v1345_v54  ;;  %830 = vmatpush1.bf16.msra.mxu1 %v1346_v55  ;;  %v863_v55 = vld [vmem:[%s1841_s1 + $0x8] sm:$0x3f] }
 0x294   : > { %788 = vmatprep.subr.bf16.mxu0 %v1347_v56  ;;  %831 = vmatprep.subr.bf16.mxu1 %v1349_v57  ;;  %v1733_v56 = vld [vmem:[#allocation3 + $0x8] sm:$0x3f] }
 0x297   : > { %789 = vmatpush1.bf16.msra.mxu0 %v1351_v58  ;;  %832 = vmatpush1.bf16.msra.mxu1 %v1352_v59  ;;  %v1738_v59 = vld [vmem:[#allocation3] sm:$0xff] }
 0x298   : > { %790 = vmatprep.subr.bf16.mxu0 %v1353_v60  ;;  %833 = vmatprep.subr.bf16.mxu1 %v1355_v61 }
 0x29b   : > { %791 = vmatpush1.bf16.msra.mxu0 %v1357_v62  ;;  %834 = vmatpush1.bf16.msra.mxu1 %v1358_v63 }
 0x29e   : > { %809 = vmatmul.mubr.bf16.vlgmr.msra.gmra.mrb[0].mxu0 %v1359_v0  ;;  %852 = vmatmul.mubr.bf16.vlgmr.msra.gmra.mrb[0].mxu1 %v1359_v0  ;;  %v862_v0 = vld [vmem:[%s1841_s1] sm:$0xff] }
 0x371   : > { %v810_v21 = vpop.f32.mrb[0].mxu0  ;;  %v853_v22 = vpop.f32.mrb[0].mxu1 }
 0x372   : > { %v811_v23 = vadd.f32 %v810_v21, %v593_v13  ;;  %v854_v24 = vadd.f32 %v853_v22, %v601_v15  ;;  %v812_v25 = vpop.f32.mrb[1].mxu0  ;;  %v855_v26 = vpop.f32.mrb[1].mxu1 }
 0x373   : > { %v813_v27 = vadd.f32 %v812_v25, %v597_v17  ;;  %v814_v28 = vpop.f32.mrb[2].mxu0  ;;  %v857_v29 = vpop.f32.mrb[2].mxu1  ;;  %v856_v30 = vadd.f32 %v855_v26, %v605_v20 }
 0x374   : > { %v815_v31 = vadd.f32 %v814_v28, %v593_v13  ;;  %v858_v32 = vadd.f32 %v857_v29, %v601_v15  ;;  %v816_v33 = vpop.f32.mrb[3].mxu0  ;;  %v859_v34 = vpop.f32.mrb[3].mxu1  ;;  %v1694_v35 = vsel %vm875_vm4, %v811_v23, -1e+09  ;;  %v1698_v36 = vsel %vm877_vm5, %v854_v24, -1e+09 }
 0x375   : > { %v817_v37 = vadd.f32 %v816_v33, %v597_v17  ;;  %v860_v38 = vadd.f32 %v859_v34, %v605_v20  ;;  %v1702_v39 = vsel %vm876_vm6, %v813_v27, -1e+09  ;;  %v1721_v46 = vsel %vm878_vm7, %v856_v30, -1e+09 }
 0x376   : > { %v883_v40 = vsel %vm875_vm4, %v815_v31, -1e+09  ;;  %v1708_v41 = vsel %vm877_vm5, %v858_v32, -1e+09  ;;  %v948_v52 = vmax.f32 %v1694_v35, %v1698_v36  ;;  %v949_v53 = vmax.f32 %v1702_v39, %v1721_v46 }
 0x377   : > { %v884_v42 = vsel %vm876_vm6, %v817_v37, -1e+09  ;;  %v1714_v43 = vsel %vm878_vm7, %v860_v38, -1e+09  ;;  %v953_v44 = vsel %vm932_vm8, %v883_v40, -inf  ;;  %v955_v45 = vsel %vm932_vm8, %v1708_v41, -inf }
 0x378   : > { %v954_v47 = vsel %vm932_vm8, %v884_v42, -inf  ;;  %v956_v48 = vmax.f32 %v953_v44, %v955_v45  ;;  %v957_v49 = vsel %vm932_vm8, %v1714_v43, -inf  ;;  %v950_v54 = vmax.f32 %v948_v52, %v949_v53 }
 0x379   : > { %v958_v50 = vmax.f32 %v954_v47, %v957_v49  ;;  %vm1087_vm5 = vcmask (!%p1213_p10), 0  }
 0x37b   : > { %v959_v51 = vmax.f32 %v956_v48, %v958_v50 }
 0x37d   : > { %960 = vmax.xlane.f32.xlu0 %v959_v51 }
 0x381   : > { %951 = vmax.xlane.f32.xlu0 %v950_v54 }
 0x397   : > { %891 = vperm.xlu0 %1310, %v863_v55  }
 0x40a   : > { %v961_v57 = vpop.xlane.xlu0 %960 }
 0x40b   : > { %v1736_v58 = vmax.f32 %v1733_v56, %v961_v57 }
 0x40d   : > { %v969_v60 = vsub.f32 %v1733_v56, %v1736_v58  ;;  %1029 = vst.msk [vmem:[#allocation3 + $0x8] sm:$0x3f] %vm946_vm9, %v1736_v58  ;;  %983 = vperm.xlu1 %1309, %v1736_v58  }
 0x40e   : > { %v952_v61 = vpop.xlane.xlu0 %951 }
 0x40f   : > { %v1746_v62 = vmax.f32 %v1738_v59, %v952_v61 }
 0x411   : > { %v968_v63 = vsub.f32 %v1738_v59, %v1746_v62  ;;  %1028 = vst.msk [vmem:[#allocation3] sm:$0xff] %vm944_vm10, %v1746_v62  ;;  %978 = vperm.xlu1 %1309, %v1746_v62  }
 0x415   : > { %888 = vperm.xlu1 %1309, %v862_v0  }
 0x416   : > { %v892_v1 = vpop.permute.xlu0 %891 }
 0x417   : > { %vm897_vm11 = vcmp.eq.s32.totalorder %v1680_v14, %v892_v1  ;;  %vm898_vm12 = vcmp.eq.s32.totalorder %v1684_v18, %v892_v1  ;;  %vm899_vm13 = vcmp.eq.s32.totalorder %v1682_v16, %v892_v1  ;;  %vm900_vm14 = vcmp.eq.s32.totalorder %v1686_v19, %v892_v1 }
 0x418   : > { %v1209_v4 = vsel %vm897_vm11, 1.0, %v1444_v3  ;;  %v1210_v11 = vsel %vm898_vm12, 1.0, %v1444_v3  ;;  %v1211_v22 = vsel %vm899_vm13, 1.0, %v1444_v3 }
 0x419   : > { %v923_v12 = vmul.f32 %v1209_v4, %v883_v40  ;;  %v924_v24 = vmul.f32 %v1210_v11, %v884_v42 }
 0x41b   : > { %v933_v31 = vsel %vm932_vm8, %v923_v12, 0.0  ;;  %v934_v38 = vsel %vm932_vm8, %v924_v24, 0.0 }
 0x41c   : > { %v935_v45 = vadd.f32 %v934_v38, %v933_v31  ;;  %v1035_v31 = vld [vmem:[#allocation3 + $0x8] sm:$0x3f] (!%p1213_p10) }
 0x48c   : > { %v984_v2 = vpop.permute.xlu1 %983 }
 0x48d   : > { %v990_v5 = vsub.f32 %v883_v40, %v984_v2  ;;  %v991_v6 = vsub.f32 %v884_v42, %v984_v2  ;;  %v992_v7 = vsub.f32 %v1708_v41, %v984_v2  ;;  %v993_v8 = vsub.f32 %v1714_v43, %v984_v2 }
 0x48f   : > { %v1002_v9 = vmul.f32 1.442695, %v990_v5  ;;  %v1004_v10 = vmul.f32 1.442695, %v991_v6  ;;  %v1006_v13 = vmul.f32 1.442695, %v992_v7 }
 0x490   : > { %v979_v15 = vpop.permute.xlu1 %978  ;;  %v1008_v25 = vmul.f32 1.442695, %v993_v8  ;;  %v970_v8 = vmul.f32 1.442695, %v968_v63 }
 0x491   : > { %1360 = vpow2.f32 %v1002_v9  ;;  %v986_v17 = vsub.f32 %v1694_v35, %v979_v15  ;;  %v987_v20 = vsub.f32 %v1702_v39, %v979_v15  ;;  %v988_v21 = vsub.f32 %v1698_v36, %v979_v15 }
 0x492   : > { %1362 = vpow2.f32 %v1004_v10  ;;  %v989_v23 = vsub.f32 %v1721_v46, %v979_v15  ;;  %v972_v9 = vmul.f32 1.442695, %v969_v60  ;;  %v917_v10 = vld [vmem:[#allocation5] sm:$0xff] }
 0x493   : > { %v994_v26 = vmul.f32 1.442695, %v986_v17  ;;  %v996_v27 = vmul.f32 1.442695, %v987_v20  ;;  %1364 = vpow2.f32 %v1006_v13  ;;  %v998_v28 = vmul.f32 1.442695, %v988_v21 }
 0x494   : > { %v1000_v29 = vmul.f32 1.442695, %v989_v23  ;;  %v889_v30 = vpop.permute.xlu1 %888  ;;  %v918_v13 = vld [vmem:[#allocation5 + $0x8] sm:$0x3f]  ;;  %v966_v17 = vld [vmem:[#allocation4] sm:$0xff] }
 0x495   : > { %1366 = vpow2.f32 %v994_v26  ;;  %vm893_vm15 = vcmp.eq.s32.totalorder %v1680_v14, %v889_v30  ;;  %vm894_vm0 = vcmp.eq.s32.totalorder %v1684_v18, %v889_v30  ;;  %vm895_vm1 = vcmp.eq.s32.totalorder %v1682_v16, %v889_v30  ;;  %v1044_v26 = vld [vmem:[%s1841_s1] sm:$0xff] (!%p1213_p10) }
 0x496   : > { %1368 = vpow2.f32 %v996_v27  ;;  %v1205_v32 = vsel %vm893_vm15, 1.0, %v1444_v3  ;;  %v1206_v33 = vsel %vm894_vm0, 1.0, %v1444_v3  ;;  %vm896_vm2 = vcmp.eq.s32.totalorder %v1686_v19, %v889_v30  ;;  %v1045_v27 = vld [vmem:[%s1841_s1 + $0x8] sm:$0x3f] (!%p1213_p10) }
 0x497   : > { %1370 = vpow2.f32 %v1008_v25  ;;  %v1207_v34 = vsel %vm895_vm1, 1.0, %v1444_v3  ;;  %v919_v37 = vmul.f32 %v1205_v32, %v1694_v35  ;;  %v920_v40 = vmul.f32 %v1206_v33, %v1702_v39 }
 0x498   : > { %1372 = vpow2.f32 %v998_v28  ;;  %v1208_v42 = vsel %vm896_vm2, 1.0, %v1444_v3  ;;  %v1212_v14 = vsel %vm900_vm14, 1.0, %v1444_v3  ;;  %v925_v16 = vmul.f32 %v1211_v22, %v1708_v41  ;;  %v967_v22 = vld [vmem:[#allocation4 + $0x8] sm:$0x3f] }
 0x499   : > { %1374 = vpow2.f32 %v1000_v29  ;;  %v921_v18 = vmul.f32 %v1207_v34, %v1698_v36  ;;  %v927_v44 = vadd.f32 %v920_v40, %v919_v37  ;;  %v922_v35 = vmul.f32 %v1208_v42, %v1721_v46  ;;  %v1034_v29 = vld [vmem:[#allocation3] sm:$0xff] (!%p1213_p10) }
 0x49a   : > { %v926_v39 = vmul.f32 %v1212_v14, %v1714_v43  ;;  %v936_v51 = vsel %vm932_vm8, %v925_v16, 0.0  ;;  %1376 = vpow2.f32 %v970_v8  ;;  %vm1046_vm3 = vcmp.ne.s32.totalorder (!%p1213_p10), %v1044_v26, 4294967196 }
 0x49b   : > { %v1361_v47 = vpop.eup %1360  ;;  %v928_v49 = vadd.f32 %v927_v44, %v921_v18  ;;  %v937_v53 = vadd.f32 %v936_v51, %v935_v45  ;;  %1378 = vpow2.f32 %v972_v9  ;;  %vm1047_vm4 = vcmp.ne.s32.totalorder (!%p1213_p10), %v1045_v27, 4294967196 }
 0x49c   : > { %v1363_v48 = vpop.eup %1362  ;;  %v1015_v50 = vsel %vm932_vm8, %v1361_v47, 0.0  ;;  %v938_v61 = vsel %vm932_vm8, %v926_v39, 0.0  ;;  %v1445_v42 = vmov (!%p1213_p10), 0.0  }
 0x49d   : > { %v1016_v19 = vsel %vm932_vm8, %v1363_v48, 0.0  ;;  %v1365_v52 = vpop.eup %1364  ;;  %v929_v41 = vadd.f32 %v928_v49, %v922_v35  ;;  %v939_v2 = vadd.f32 %v938_v61, %v937_v53  ;;  %v1214_v14 = vsel (!%p1213_p10), %vm1046_vm3, 1.0, %v1445_v42 }
 0x49e   : > { %v1017_v54 = vadd.f32 %v1016_v19, %v1015_v50  ;;  %v1018_v0 = vsel %vm932_vm8, %v1365_v52, 0.0  ;;  %v1215_v16 = vsel (!%p1213_p10), %vm1047_vm4, 1.0, %v1445_v42  ;;  %v1071_v49 = vsel (!%p1213_p10), %vm944_vm10, %v1214_v14, 0.0 }
 0x49f   : > { %v1367_v36 = vpop.eup %1366  ;;  %930 = vadd.xlane.f32.xlu1 %v929_v41  ;;  %v1072_v50 = vsel (!%p1213_p10), %vm946_vm9, %v1215_v16, 0.0 }
 0x4a0   : > { %v1369_v55 = vpop.eup %1368  ;;  %v1019_v43 = vadd.f32 %v1018_v0, %v1017_v54  ;;  %v1073_v51 = vadd.f32 (!%p1213_p10), %v1072_v50, %v1071_v49 }
 0x4a1   : > { %v1371_v57 = vpop.eup %1370  ;;  %v1010_v46 = vadd.f32 %v1369_v55, %v1367_v36 }
 0x4a2   : > { %v1373_v1 = vpop.eup %1372  ;;  %v1020_v6 = vsel %vm932_vm8, %v1371_v57, 0.0 }
 0x4a3   : > { %v1011_v3 = vadd.f32 %v1373_v1, %v1010_v46  ;;  %v1375_v4 = vpop.eup %1374  ;;  %940 = vadd.xlane.f32.xlu1 %v939_v2  ;;  %v1021_v7 = vadd.f32 %v1020_v6, %v1019_v43 }
 0x4a4   : > { %v1377_v15 = vpop.eup %1376 }
 0x4a5   : > { %v1012_v5 = vadd.f32 %v1375_v4, %v1011_v3  ;;  %v1379_v20 = vpop.eup %1378  ;;  %v974_v59 = vmul.f32 %v1377_v15, %v966_v17 }
 0x4a6   : > { %v975_v56 = vmul.f32 %v1379_v20, %v967_v22 }
 0x4a7   : > { %1013 = vadd.xlane.f32.xlu0 %v1012_v5  ;;  %1022 = vadd.xlane.f32.xlu1 %v1021_v7 }
 0x52c   : > { %v931_v11 = vpop.xlane.xlu1 %930 }
 0x52d   : > { %v942_v12 = vadd.f32 %v931_v11, %v917_v10 }
 0x52f   : > { %945 = vst.msk [vmem:[#allocation5] sm:$0xff] %vm944_vm10, %v942_v12 }
 0x530   : > { %v941_v21 = vpop.xlane.xlu1 %940 }
 0x531   : > { %v943_v23 = vadd.f32 %v941_v21, %v918_v13 }
 0x532   : > { %1033 = sbr.rel (%p1213_p10) target bundleno = 1591 (0x637), region = 79 }
 0x533   : > { %947 = vst.msk [vmem:[#allocation5 + $0x8] sm:$0x3f] %vm946_vm9, %v943_v23 }
 0x534   : > { %v1014_v62 = vpop.xlane.xlu0 %1013  ;;  %v1023_v60 = vpop.xlane.xlu1 %1022 }
 0x535   : > { %v1024_v58 = vadd.f32 %v1014_v62, %v974_v59  ;;  %v1025_v63 = vadd.f32 %v1023_v60, %v975_v56 }
 0x536   : > { %v1052_v34 = vld [vmem:[#allocation5] sm:$0xff] (!%p1213_p10) }
 0x537   : > { %1026 = vst.msk [vmem:[#allocation4] sm:$0xff] %vm944_vm10, %v1024_v58 }
 0x538   : > { %1027 = vst.msk [vmem:[#allocation4 + $0x8] sm:$0x3f] %vm946_vm9, %v1025_v63 }
 0x53a   : > { %v1053_v38 = vld [vmem:[#allocation5 + $0x8] sm:$0x3f] }
 0x53e   : > { %v1036_v24 = vld [vmem:[#allocation4] sm:$0xff] }
 0x53f   : > { %v1037_v25 = vld [vmem:[#allocation4 + $0x8] sm:$0x3f]  ;;  %1380 = vlog2.f32 %v1036_v24 }
 0x540   : > { %1382 = vlog2.f32 %v1037_v25 }
 0x549   : > { %v1381_v28 = vpop.eup %1380 }
 0x54a   : > { %v1383_v30 = vpop.eup %1382  ;;  %v1039_v32 = vmul.f32 0.6931472, %v1381_v28 }
 0x54b   : > { %v1041_v33 = vmul.f32 0.6931472, %v1383_v30 }
 0x54c   : > { %v1042_v37 = vadd.f32 %v1039_v32, %v1034_v29 }
 0x54d   : > { %v1043_v40 = vadd.f32 %v1041_v33, %v1035_v31 }
 0x54e   : > { %v1054_v18 = vsub.f32 %v1042_v37, %v1052_v34 }
 0x54f   : > { %v1055_v44 = vsub.f32 %v1043_v40, %v1053_v38 }
 0x550   : > { %v1056_v45 = vmul.f32 %v1214_v14, %v1054_v18 }
 0x551   : > { %v1057_v47 = vmul.f32 %v1215_v16, %v1055_v44 }
 0x552   : > { %v1058_v48 = vsel %vm944_vm10, %v1056_v45, 0.0 }
 0x553   : > { %v1059_v35 = vsel %vm946_vm9, %v1057_v47, 0.0 }
 0x554   : > { %v1060_v39 = vadd.f32 %v1059_v35, %v1058_v48 }
 0x556   : > { %1061 = vadd.xlane.f32.xlu0 %v1060_v39 }
 0x55a   : > { %1074 = vadd.xlane.f32.xlu0 %v1073_v51 }
 0x5e3   : > { %v1062_v19 = vpop.xlane.xlu0 %1061 }
 0x5e4   : > { %v1063_v52 = vrot.slane %v1062_v19, 4 }
 0x5e6   : > { %v1064_v41 = vadd.f32 %v1063_v52, %v1062_v19 }
 0x5e7   : > { %v1075_v53 = vpop.xlane.xlu0 %1074 }
 0x5e8   : > { %v1065_v54 = vrot.slane %v1064_v41, 2  ;;  %v1076_v36 = vrot.slane %v1075_v53, 4 }
 0x5ea   : > { %v1077_v55 = vadd.f32 %v1076_v36, %v1075_v53  ;;  %v1066_v57 = vadd.f32 %v1065_v54, %v1064_v41 }
 0x5ec   : > { %v1078_v61 = vrot.slane %v1077_v55, 2  ;;  %v1067_v46 = vrot.slane %v1066_v57, 1 }
 0x5ee   : > { %v1079_v0 = vadd.f32 %v1078_v61, %v1077_v55  ;;  %v1068_v1 = vadd.f32 %v1067_v46, %v1066_v57 }
 0x5f0   : > { %1252 = vpush %v1068_v1  ;;  %v1080_v2 = vrot.slane %v1079_v0, 1 }
 0x5f2   : > { %v1081_v43 = vadd.f32 %v1080_v2, %v1079_v0 }
 0x5f4   : > { %1254 = vpush %v1081_v43 }
 0x621   : > { %s1253_s23 = spop %1252 }
 0x622   : > { %v1070_v6 = vstv %s1253_s23 }
 0x625   : > { %s1255_s26 = spop %1254 }
 0x626   : > { %v1083_v3 = vstv %s1255_s26 }
 0x627   : > { %v1084_v4 = vmax.f32 %v1083_v3, 1.0 }
 0x629   : > { %1384 = vrcp.f32 %v1084_v4 }
 0x633   : > { %v1385_v5 = vpop.eup %1384 }
 0x634   : > { %v1086_v7 = vmul.f32 %v1385_v5, %v1070_v6 }
 0x636   : > { %1088 = vst.msk [vmem:[#allocation7] sm:$0x1] %vm1087_vm5, %v1086_v7 }
 0x637 PF: > { %p1260_p11 = scmp.eq.s32.totalorder %s1503_s27, 1  ;;  %s1446_s24 = smov [#allocation7]  }
 0x638   : > { %s1096_s29 = sshll.u32 %s1446_s24, 4  ;;  %s1097_s29 = int_to_ptr.vmem [resolvable:$true] %s1096_s29 }
 0x639   : > { %s1386_s30 = scalar_lea.vmem %s1097_s29, 16  ;;  %s1392_s9 = scalar_lea.vmem %s1097_s29, 32 }
 0x63a   : > { %p1387_p12 = scmp.ne.s32.totalorder %s1097_s29, %s1386_s30  ;;  %p1393_p1 = scmp.lt.s32.totalorder %s1097_s29, %s1097_s29 }
 0x63b   : > { %p1394_p2 = scmp.lt.s32.totalorder %s1392_s9, %s1386_s30 }
 0x63c   : > { %p1388_p13 = pnand %p1387_p12, %p1260_p11 }
 0x63d   : > { %p1395_p3 = por %p1394_p2, %p1393_p1 }
 0x63e   : > { %p1389_p0 = pneg %p1388_p13 }
 0x640   : > { %p1396_p4 = pnand %p1395_p3, %p1389_p0 }
 0x642   : > { %1399 = shalt.err (!%p1396_p4)
}
 0x643   : > { %s1400_s12 = scalar_lea.hbm %s1847_s7, 16 }
 0x644   : > { %p1401_p5 = scmp.ne.s32.totalorder %s1847_s7, %s1400_s12  ;;  %p1406_p8 = scmp.lt.u32.totalorder %s1400_s12, %s1847_s7 }
 0x646   : > { %p1402_p6 = pnand %p1401_p5, %p1260_p11 }
 0x648   : > { %p1403_p7 = pneg %p1402_p6 }
 0x64a   : > { %p1408_p9 = pnand %p1406_p8, %p1403_p7 }
 0x64c   : > { %1411 = shalt.err (!%p1408_p9)
}
 0x64d   : > { %1257 = dma.vmem_to_hbm [thread:$0]  (%p1260_p11), %s1097_s29, 16, %s1847_s7, [#allocation8]  }
 0x64e   : > { %1425 = dma.done.wait (%p1260_p11), [#allocation8], 16  }
 0x64f   : > { %1427 = vsyncadd (%p1260_p11), [#allocation8], 4294967280 }
 0x650 PF: > { %p15_p10 = scmp.ge.s32.totalorder %s1506_s28, 4   ;;  %s1848_s24 = smov %s1434_s25 }
 0x651   : > { %s1849_s25 = smov %s1515_s8  ;;  %s1850_s26 = smov %s1506_s28 }
 0x652   :  { %17 = sbr.rel (!%p15_p10) target bundleno = 2 (0x2), region = 114 }
 0x659   :  { %1109 = vsyncpa [#allocation8], 1 }
 0x65a   :  { %1111 = vsyncpa [#allocation8 + $0x1], 1 }

// kernel: blip_decoder_forward.6
= control target key start
LH: loop header
LB: loop body
LE: loop exit
PB: predicated region body
PF: predicated region fallthrough
CT: control target
= control target key end

     0   :  { %s6027_s0 = inlined_call_operand.vmem [shape: s32[2], index: 0, kind: input, shape index: {}]   ;;  %s6028_s1 = inlined_call_operand.vmem [shape: f32[2,8,128], index: 1, kind: input, shape index: {}]   ;;  %s6029_s2 = inlined_call_operand.vmem [shape: bf16[2,5,128], index: 2, kind: input, shape index: {}]   ;;  %s6030_s3 = inlined_call_operand.vmem [shape: f32[2,128], index: 3, kind: input, shape index: {}]   ;;  %s6031_s4 = inlined_call_operand.vmem [shape: bf16[2,128,384], index: 4, kind: input, shape index: {}]   ;;  %s6032_s5 = inlined_call_operand.vmem [shape: f32[2,1,384], index: 5, kind: input, shape index: {}]   ;;  %s6033_s6 = inlined_call_operand.vmem [shape: bf16[2,128,128], index: 6, kind: input, shape index: {}]   ;;  %s6034_s7 = inlined_call_operand.hbm [shape: f32[2,1,128], index: 7, kind: input, shape index: {}]   ;;  %s6035_s8 = inlined_call_operand.hbm [shape: f32[2,2,128], index: 8, kind: input, shape index: {}]   ;;  %s6036_s9 = inlined_call_operand.vmem [shape: bf16[2,128,128], index: 9, kind: input, shape index: {}]   ;;  %s6037_s10 = inlined_call_operand.hbm [shape: f32[2,1,128], index: 10, kind: input, shape index: {}]   ;;  %s6038_s11 = inlined_call_operand.vmem [shape: bf16[2,128,256], index: 11, kind: input, shape index: {}]   ;;  %s6039_s12 = inlined_call_operand.hbm [shape: f32[2,1,256], index: 12, kind: input, shape index: {}]   ;;  %s6040_s13 = inlined_call_operand.vmem [shape: bf16[2,128,128], index: 13, kind: input, shape index: {}]   ;;  %s6041_s14 = inlined_call_operand.hbm [shape: f32[2,1,128], index: 14, kind: input, shape index: {}]   ;;  %s6042_s15 = inlined_call_operand.hbm [shape: f32[2,2,128], index: 15, kind: input, shape index: {}]   ;;  %s6043_s16 = inlined_call_operand.vmem [shape: bf16[2,128,512], index: 16, kind: input, shape index: {}]   ;;  %s6044_s17 = inlined_call_operand.vmem [shape: f32[2,1,512], index: 17, kind: input, shape index: {}]   ;;  %s6045_s18 = inlined_call_operand.vmem [shape: bf16[2,512,128], index: 18, kind: input, shape index: {}]   ;;  %s6046_s19 = inlined_call_operand.hbm [shape: f32[2,1,128], index: 19, kind: input, shape index: {}]   ;;  %s6047_s20 = inlined_call_operand.hbm [shape: f32[2,2,128], index: 20, kind: input, shape index: {}]   ;;  %s6048_s21 = inlined_call_operand.vmem [shape: f32[2,8,128], index: 21, kind: output, shape index: {}]  }
   0x1   :  { %6061 = sst [smem:[#allocation34_spill]] %s6027_s0 }
   0x2   :  { %6062 = sst [smem:[#allocation35_spill]] %s6028_s1  ;;  %s6083_s26 = sld [smem:[#allocation34_spill]] }
   0x3   :  { %6063 = sst [smem:[#allocation36_spill]] %s6029_s2 }
   0x4   :  { %6064 = sst [smem:[#allocation37_spill]] %s6030_s3 }
   0x5   :  { %6065 = sst [smem:[#allocation38_spill]] %s6031_s4 }
   0x6   :  { %6066 = sst [smem:[#allocation39_spill]] %s6032_s5 }
   0x7   :  { %6067 = sst [smem:[#allocation40_spill]] %s6033_s6 }
   0x8   :  { %6068 = sst [smem:[#allocation41_spill]] %s6034_s7 }
   0x9   :  { %6069 = sst [smem:[#allocation42_spill]] %s6035_s8 }
   0xa   :  { %6070 = sst [smem:[#allocation43_spill]] %s6036_s9 }
   0xb   :  { %6071 = sst [smem:[#allocation44_spill]] %s6037_s10 }
   0xc   :  { %6072 = sst [smem:[#allocation45_spill]] %s6038_s11 }
   0xd   :  { %6073 = sst [smem:[#allocation46_spill]] %s6039_s12 }
   0xe   :  { %6074 = sst [smem:[#allocation47_spill]] %s6040_s13  ;;  %s26_s13 = sshll.u32 %s6083_s26, 4  ;;  %s27_s13 = int_to_ptr.vmem [resolvable:$true] %s26_s13 }
   0xf   :  { %6075 = sst [smem:[#allocation48_spill]] %s6041_s14  ;;  %s4734_s27 = scalar_lea.vmem %s27_s13, 16 }
  0x10   :  { %6076 = sst [smem:[#allocation49_spill]] %s6042_s15  ;;  %p4735_p0 = scmp.ne.s32.totalorder %s27_s13, %s4734_s27 }
  0x11   :  { %6077 = sst [smem:[#allocation50_spill]] %s6043_s16  ;;  %p4739_p1 = scmp.lt.s32.totalorder %s27_s13, %s27_s13 }
  0x12   :  { %6078 = sst [smem:[#allocation51_spill]] %s6044_s17  ;;  %p4740_p2 = scmp.lt.s32.totalorder %s4734_s27, %s4734_s27 }
  0x13   :  { %6079 = sst [smem:[#allocation52_spill]] %s6045_s18 }
  0x14   :  { %6080 = sst [smem:[#allocation53_spill]] %s6046_s19  ;;  %p4741_p3 = por %p4740_p2, %p4739_p1 }
  0x15   :  { %6081 = sst [smem:[#allocation54_spill]] %s6047_s20 }
  0x16   :  { %6082 = sst [smem:[#allocation55_spill]] %s6048_s21  ;;  %p4742_p4 = pnand %p4741_p3, %p4735_p0 }
  0x18   :  { %4745 = shalt.err (!%p4742_p4)  }
  0x19   :  { %s5072_s3 = smov [#allocation5]  }
  0x1a   :  { %29 = dma.vmem_to_smem %s27_s13, 16, %s5072_s3, [#allocation4] }
  0x1b   :  { %5018 = dma.done.wait [#allocation4], 16 }
  0x1c   :  { %5019 = vsyncadd [#allocation4], 4294967280 }
  0x1d   :  { %31 = sfence }
  0x1e   :  { %32 = vsyncpa [#allocation7], 0 }
  0x1f   :  { %34 = vsyncpa [#allocation7 + $0x1], 0 }
  0x20   :  { %35 = vsyncpa [#allocation9], 0 }
  0x21   :  { %37 = vsyncpa [#allocation9 + $0x1], 0 }
  0x22   :  { %38 = vsyncpa [#allocation12], 0 }
  0x23   :  { %40 = vsyncpa [#allocation12 + $0x1], 0 }
  0x24   :  { %41 = vsyncpa [#allocation15], 0 }
  0x25   :  { %43 = vsyncpa [#allocation15 + $0x1], 0 }
  0x26   :  { %44 = vsyncpa [#allocation18], 0 }
  0x27   :  { %46 = vsyncpa [#allocation18 + $0x1], 0  ;;  %s5202_s28 = smov 0   ;;  %s5204_s29 = smov 0  }
  0x28   :  { %s5206_s0 = smov 0   ;;  %s5208_s13 = smov 0  }
  0x29   :  { %s5210_s4 = smov 0   ;;  %s5212_s30 = smov 0  }
  0x2a   :  { %s5214_s5 = smov 0   ;;  %s5216_s22 = smov 0  }
  0x2b LB: > { %6084 = sst [smem:[#allocation25_spill]] %s5046_s29  ;;  %s6050_s23 = sadd.s32 4294967295, %s5070_s22   ;;  %s5070_s22 = sphi %s5216_s22, %s52_s22   ;;  %s5066_s5 = sphi %s5214_s5, %s6151_s5   ;;  %s5062_s30 = sphi %s5212_s30, %s6150_s30   ;;  %s5058_s4 = sphi %s5210_s4, %s6149_s4   ;;  %s5054_s13 = sphi %s5208_s13, %s6148_s13   ;;  %s5050_s0 = sphi %s5206_s0, %s6147_s0   ;;  %s5046_s29 = sphi %s5204_s29, %s6146_s29   ;;  %s5042_s28 = sphi %s5202_s28, %s6145_s28  }
  0x2c   : > { %6085 = sst [smem:[#allocation26_spill]] %s5050_s0  ;;  %s61_s1 = sadd.s32 1, %s5062_s30 }
  0x2d   : > { %6086 = sst [smem:[#allocation27_spill]] %s5062_s30  ;;  %p62_p5 = scmp.ge.s32.totalorder %s61_s1, 2 }
  0x2e   : > { %6087 = sst [smem:[#allocation28_spill]] %s5066_s5  ;;  %s64_s24 = sadd.s32 1, %s5066_s5 }
  0x2f   : > { %6088 = sst [smem:[#allocation29_spill]] %s5070_s22  ;;  %s222_s2 = sadd.s32 1, %s5050_s0 }
  0x30   : > { %p229_p6 = scmp.ne.s32.totalorder %s5050_s0, %s5046_s29  ;;  %s6153_s1 = smov (%p62_p5, %s61_s1), 0 }
  0x31   : > { %6089 = sst [smem:[#allocation30_spill]] %s6153_s1  ;;  %s6155_s24 = smov (!%p62_p5, %s64_s24), %s5066_s5 }
  0x32   : > { %s219_s25 = ssub.s32 %s5062_s30, %s6153_s1  ;;  %p230_p7 = scmp.eq.s32.totalorder %s5070_s22, 0 }
  0x33   : > { %p66_p8 = scmp.ge.s32.totalorder %s6155_s24, 2  ;;  %p220_p9 = scmp.eq.s32.totalorder %s219_s25, 0 }
  0x34   : > { %p231_p10 = por %p230_p7, %p229_p6  ;;  %p235_p11 = scmp.ne.s32.totalorder %s5046_s29, %s5042_s28 }
  0x35   : > { %s6157_s24 = smov (%p66_p8, %s6155_s24), 0  ;;  %p236_p12 = scmp.eq.s32.totalorder %s6050_s23, 0 }
  0x36   : > { %6090 = sst [smem:[#allocation31_spill]] %s6157_s24  ;;  %p4452_p13 = scmp.lt.s32.totalorder %s5070_s22, 4 }
  0x37   : > { %s5256_s26 = scalar_select %p220_p9, %s5050_s0, %s222_s2  }
  0x38   : > { %s5262_s27 = sand.u32 1, %s5050_s0   ;;  %p5264_p0 = por %p236_p12, %p235_p11 }
  0x39   : > { %6091 = sst [smem:[#allocation32_spill]] %s5256_s26  ;;  %s5269_s1 = sand.u32 1, %s5070_s22  }
  0x3a   : > { %s6092_s3 = scalar_select %p5264_p0, 1, 0 }
  0x3b   : > { %p5271_p1 = pnand %p4452_p13, %p231_p10  ;;  %s5276_s28 = sshll.u32 %s5262_s27, 1 }
  0x3c   : > { %s5279_s2 = sshll.u32 %s5062_s30, 5  ;;  %s6094_s8 = sld [smem:[#allocation42_spill]] }
  0x3d   : > { %s6093_s25 = scalar_select %p5271_p1, 1, 0 }
  0x3e   : > { %s684_s26 = scalar_lea.vmem [#allocation8], %s5276_s28  ;;  %p5296_p4 = pneg %p5271_p1 }
  0x3f   : > { %s691_s0 = sshll.u32 %s684_s26, 4  ;;  %s5288_s0 = int_to_ptr.vmem [resolvable:$true] %s691_s0 }
  0x42   : > { %s5285_s5 = scalar_lea.hbm %s6094_s8, %s5279_s2  ;;  %s4751_s16 = scalar_lea.hbm %s6094_s8, 64 }
  0x43   : > { %s4746_s18 = scalar_lea.hbm %s5285_s5, 32  ;;  %p4752_p7 = scmp.lt.u32.totalorder %s5285_s5, %s6094_s8 }
  0x44   : > { %p4747_p3 = scmp.ne.s32.totalorder %s5285_s5, %s4746_s18  ;;  %p4753_p8 = scmp.lt.u32.totalorder %s4751_s16, %s4746_s18 }
  0x45   : > { %p4755_p10 = scmp.lt.u32.totalorder %s4746_s18, %s5285_s5 }
  0x46   : > { %p4749_p5 = pnand %p5296_p4, %p4747_p3  ;;  %p4754_p9 = por %p4753_p8, %p4752_p7 }
  0x48   : > { %p4750_p6 = pneg %p4749_p5  ;;  %p4756_p11 = por %p4755_p10, %p4754_p9 }
  0x4a   : > { %p4757_p12 = pnand %p4756_p11, %p4750_p6 }
  0x4c   : > { %4760 = shalt.err (!%p4757_p12)
}
  0x4d   : > { %s4761_s21 = scalar_lea.vmem %s5288_s0, 32  ;;  %s5073_s23 = smov [#allocation8]  }
  0x4e   : > { %p4762_p13 = scmp.ne.s32.totalorder %s5288_s0, %s4761_s21  ;;  %s4766_s24 = sshll.u32 %s5073_s23, 4  ;;  %s4767_s24 = int_to_ptr.vmem [resolvable:$false] %s4766_s24 }
  0x4f   : > { %s4768_s11 = scalar_lea.vmem %s4767_s24, 64  ;;  %p4769_p2 = scmp.lt.s32.totalorder %s5288_s0, %s4767_s24 }
  0x50   : > { %p4764_p3 = pnand %p4762_p13, %p5296_p4  ;;  %p4770_p0 = scmp.lt.s32.totalorder %s4768_s11, %s4761_s21 }
  0x52   : > { %p4765_p5 = pneg %p4764_p3  ;;  %p4771_p7 = por %p4770_p0, %p4769_p2 }
  0x54   : > { %p4772_p8 = pnand %p4771_p7, %p4765_p5 }
  0x56   : > { %4775 = shalt.err (!%p4772_p8)
}
  0x57   : > { %s6096_s16 = scalar_lea.sflag [#allocation9], %s5269_s1  ;;  %p849_p6 = scmp.lt.s32.totalorder %s5070_s22, 5 }
  0x58   : > { %4433 = dma.hbm_to_vmem [thread:$0]  (!%p5271_p1), %s5285_s5, 32, %s5288_s0, %s6096_s16  }
  0x59   : > { %s6097_s12 = sld [smem:[#allocation46_spill]]  ;;  %p6098_p0 = scmp.ge.s32.totalorder %s5070_s22, 1 }
  0x5a   : > { %s735_s24 = scalar_lea.vmem [#allocation11], %s5276_s28 }
  0x5b   : > { %p5330_p2 = pnand %p6098_p0, %p849_p6  ;;  %s743_s11 = sshll.u32 %s735_s24, 4  ;;  %s744_s11 = int_to_ptr.vmem [resolvable:$true] %s743_s11 }
  0x5d   : > { %s6099_s23 = scalar_select %p5330_p2, 1, 0 }
  0x5f   : > { %s5326_s21 = scalar_lea.hbm %s6097_s12, %s5279_s2  ;;  %s4781_s18 = scalar_lea.hbm %s6097_s12, 64 }
  0x60   : > { %s4776_s0 = scalar_lea.hbm %s5326_s21, 32  ;;  %p4782_p12 = scmp.lt.u32.totalorder %s5326_s21, %s6097_s12 }
  0x61   : > { %p4777_p9 = scmp.ne.s32.totalorder %s5326_s21, %s4776_s0  ;;  %p4783_p13 = scmp.lt.u32.totalorder %s4781_s18, %s4776_s0 }
  0x62   : > { %p4785_p5 = scmp.lt.u32.totalorder %s4776_s0, %s5326_s21 }
  0x63   : > { %p4779_p10 = pnand %p4777_p9, %p5296_p4  ;;  %p4784_p3 = por %p4783_p13, %p4782_p12 }
  0x65   : > { %p4780_p11 = pneg %p4779_p10  ;;  %p4786_p7 = por %p4785_p5, %p4784_p3 }
  0x67   : > { %p4787_p8 = pnand %p4786_p7, %p4780_p11 }
  0x69   : > { %4790 = shalt.err (!%p4787_p8)
}
  0x6a   : > { %s4791_s24 = scalar_lea.vmem %s744_s11, 32  ;;  %s5074_s8 = smov [#allocation11]  }
  0x6b   : > { %p4792_p6 = scmp.ne.s32.totalorder %s744_s11, %s4791_s24  ;;  %s4796_s6 = sshll.u32 %s5074_s8, 4  ;;  %s4797_s6 = int_to_ptr.vmem [resolvable:$false] %s4796_s6 }
  0x6c   : > { %s4798_s5 = scalar_lea.vmem %s4797_s6, 64  ;;  %p4799_p10 = scmp.lt.s32.totalorder %s744_s11, %s4797_s6 }
  0x6d   : > { %p4794_p0 = pnand %p4792_p6, %p5296_p4  ;;  %p4800_p2 = scmp.lt.s32.totalorder %s4798_s5, %s4791_s24 }
  0x6f   : > { %p4795_p9 = pneg %p4794_p0  ;;  %p4801_p1 = por %p4800_p2, %p4799_p10 }
  0x71   : > { %p4802_p12 = pnand %p4801_p1, %p4795_p9 }
  0x73   : > { %4805 = shalt.err (!%p4802_p12)
}
  0x74   : > { %p6100_p13 = scmp.ne.s32.totalorder %s6093_s25, 0  ;;  %s6101_s9 = scalar_lea.sflag [#allocation12], %s5269_s1 }
  0x75   : > { %s6102_s15 = sld [smem:[#allocation49_spill]]  ;;  %s779_s6 = scalar_lea.vmem [#allocation14], %s5276_s28 }
  0x76   : > { %4439 = dma.hbm_to_vmem [thread:$0]  (!%p6100_p13), %s5326_s21, 32, %s744_s11, %s6101_s9  }
  0x77   : > { %s786_s18 = sshll.u32 %s779_s6, 4  ;;  %s787_s18 = int_to_ptr.vmem [resolvable:$true] %s786_s18 }
  0x7b   : > { %s5359_s8 = scalar_lea.hbm %s6102_s15, %s5279_s2  ;;  %s4811_s11 = scalar_lea.hbm %s6102_s15, 64 }
  0x7c   : > { %s4806_s24 = scalar_lea.hbm %s5359_s8, 32  ;;  %p4812_p3 = scmp.lt.u32.totalorder %s5359_s8, %s6102_s15 }
  0x7d   : > { %p4807_p1 = scmp.ne.s32.totalorder %s5359_s8, %s4806_s24  ;;  %p4813_p5 = scmp.lt.u32.totalorder %s4811_s11, %s4806_s24 }
  0x7e   : > { %p4815_p8 = scmp.lt.u32.totalorder %s4806_s24, %s5359_s8 }
  0x7f   : > { %p4809_p2 = pnand %p4807_p1, %p5296_p4  ;;  %p4814_p7 = por %p4813_p5, %p4812_p3 }
  0x81   : > { %p4810_p11 = pneg %p4809_p2  ;;  %p4816_p6 = por %p4815_p8, %p4814_p7 }
  0x83   : > { %p4817_p0 = pnand %p4816_p6, %p4810_p11 }
  0x85   : > { %4820 = shalt.err (!%p4817_p0)
}
  0x86   : > { %s4821_s16 = scalar_lea.vmem %s787_s18, 32  ;;  %s5075_s6 = smov [#allocation14]  }
  0x87   : > { %p4822_p9 = scmp.ne.s32.totalorder %s787_s18, %s4821_s16  ;;  %s4826_s26 = sshll.u32 %s5075_s6, 4  ;;  %s4827_s26 = int_to_ptr.vmem [resolvable:$false] %s4826_s26 }
  0x88   : > { %s4828_s5 = scalar_lea.vmem %s4827_s26, 64  ;;  %p4829_p1 = scmp.lt.s32.totalorder %s787_s18, %s4827_s26 }
  0x89   : > { %p4824_p10 = pnand %p4822_p9, %p5296_p4  ;;  %p4830_p2 = scmp.lt.s32.totalorder %s4828_s5, %s4821_s16 }
  0x8b   : > { %p4825_p12 = pneg %p4824_p10  ;;  %p4831_p13 = por %p4830_p2, %p4829_p1 }
  0x8d   : > { %p4832_p3 = pnand %p4831_p13, %p4825_p12 }
  0x8f   : > { %4835 = shalt.err (!%p4832_p3)
}
  0x90   : > { %p6103_p5 = scmp.ne.s32.totalorder %s6093_s25, 0  ;;  %s6104_s24 = scalar_lea.sflag [#allocation15], %s5269_s1 }
  0x91   : > { %s5383_s21 = sshll.u32 %s5062_s30, 4  ;;  %s666_s11 = scalar_lea.vmem [#allocation6], %s5262_s27 }
  0x92   : > { %4445 = dma.hbm_to_vmem [thread:$0]  (!%p6103_p5), %s5359_s8, 32, %s787_s18, %s6104_s24  }
  0x93   : > { %s673_s9 = sshll.u32 %s666_s11, 4  ;;  %s6105_s7 = sld [smem:[#allocation41_spill]]  ;;  %s674_s9 = int_to_ptr.vmem [resolvable:$true] %s673_s9 }
  0x94   : > { %s664_s6 = scalar_lea.sflag [#allocation7], %s5262_s27 }
  0x99   : > { %s5390_s16 = scalar_lea.hbm %s6105_s7, %s5383_s21  ;;  %s4841_s24 = scalar_lea.hbm %s6105_s7, 32 }
  0x9a   : > { %s4836_s5 = scalar_lea.hbm %s5390_s16, 16  ;;  %p4842_p8 = scmp.lt.u32.totalorder %s5390_s16, %s6105_s7 }
  0x9b   : > { %p4837_p13 = scmp.ne.s32.totalorder %s5390_s16, %s4836_s5  ;;  %p4843_p6 = scmp.lt.u32.totalorder %s4841_s24, %s4836_s5 }
  0x9c   : > { %p4845_p9 = scmp.lt.u32.totalorder %s4836_s5, %s5390_s16 }
  0x9d   : > { %p4839_p11 = pnand %p4837_p13, %p5296_p4  ;;  %p4844_p0 = por %p4843_p6, %p4842_p8 }
  0x9f   : > { %p4840_p7 = pneg %p4839_p11  ;;  %p4846_p10 = por %p4845_p9, %p4844_p0 }
  0xa1   : > { %p4847_p12 = pnand %p4846_p10, %p4840_p7 }
  0xa3   : > { %4850 = shalt.err (!%p4847_p12)
}
  0xa4   : > { %s4851_s26 = scalar_lea.vmem %s674_s9, 16  ;;  %s5076_s0 = smov [#allocation6]  }
  0xa5   : > { %p4852_p1 = scmp.ne.s32.totalorder %s674_s9, %s4851_s26  ;;  %s4856_s15 = sshll.u32 %s5076_s0, 4  ;;  %s4857_s15 = int_to_ptr.vmem [resolvable:$false] %s4856_s15 }
  0xa6   : > { %s4858_s8 = scalar_lea.vmem %s4857_s15, 32  ;;  %p4859_p13 = scmp.lt.s32.totalorder %s674_s9, %s4857_s15 }
  0xa7   : > { %p4854_p2 = pnand %p4852_p1, %p5296_p4  ;;  %p4860_p11 = scmp.lt.s32.totalorder %s4858_s8, %s4851_s26 }
  0xa9   : > { %p4855_p3 = pneg %p4854_p2  ;;  %p4861_p5 = por %p4860_p11, %p4859_p13 }
  0xab   : > { %p4862_p6 = pnand %p4861_p5, %p4855_p3 }
  0xad   : > { %4865 = shalt.err (!%p4862_p6)
}
  0xae   : > { %p6106_p8 = scmp.ne.s32.totalorder %s6093_s25, 0  ;;  %s6107_s10 = sld [smem:[#allocation44_spill]] }
  0xaf   : > { %s709_s15 = scalar_lea.vmem [#allocation10], %s5262_s27  ;;  %s6108_s14 = sld [smem:[#allocation48_spill]] }
  0xb0   : > { %4430 = dma.hbm_to_vmem [thread:$0]  (!%p6106_p8), %s5390_s16, 16, %s674_s9, %s664_s6  }
  0xb1   : > { %s716_s24 = sshll.u32 %s709_s15, 4  ;;  %s717_s24 = int_to_ptr.vmem [resolvable:$true] %s716_s24 }
  0xb4   : > { %s5414_s18 = scalar_lea.hbm %s6107_s10, %s5383_s21  ;;  %s4871_s6 = scalar_lea.hbm %s6107_s10, 32 }
  0xb5   : > { %s5421_s0 = scalar_lea.hbm %s6108_s14, %s5383_s21  ;;  %s4866_s8 = scalar_lea.hbm %s5414_s18, 16 }
  0xb6   : > { %p4867_p5 = scmp.ne.s32.totalorder %s5414_s18, %s4866_s8  ;;  %p4872_p9 = scmp.lt.u32.totalorder %s5414_s18, %s6107_s10 }
  0xb7   : > { %p4873_p10 = scmp.lt.u32.totalorder %s4871_s6, %s4866_s8  ;;  %p4875_p1 = scmp.lt.u32.totalorder %s4866_s8, %s5414_s18 }
  0xb8   : > { %p4869_p7 = pnand %p4867_p5, %p5296_p4 }
  0xb9   : > { %p4874_p12 = por %p4873_p10, %p4872_p9 }
  0xba   : > { %p4870_p0 = pneg %p4869_p7 }
  0xbb   : > { %p4876_p2 = por %p4875_p1, %p4874_p12 }
  0xbd   : > { %p4877_p3 = pnand %p4876_p2, %p4870_p0 }
  0xbf   : > { %4880 = shalt.err (!%p4877_p3)
}
  0xc0   : > { %s4881_s15 = scalar_lea.vmem %s717_s24, 16  ;;  %s5077_s11 = smov [#allocation10]  }
  0xc1   : > { %p4882_p13 = scmp.ne.s32.totalorder %s717_s24, %s4881_s15  ;;  %s4886_s26 = sshll.u32 %s5077_s11, 4  ;;  %s4887_s26 = int_to_ptr.vmem [resolvable:$false] %s4886_s26 }
  0xc2   : > { %s4888_s9 = scalar_lea.vmem %s4887_s26, 32  ;;  %p4889_p5 = scmp.lt.s32.totalorder %s717_s24, %s4887_s26 }
  0xc3   : > { %p4884_p11 = pnand %p4882_p13, %p5296_p4  ;;  %p4890_p7 = scmp.lt.s32.totalorder %s4888_s9, %s4881_s15 }
  0xc5   : > { %p4885_p6 = pneg %p4884_p11  ;;  %p4891_p8 = por %p4890_p7, %p4889_p5 }
  0xc7   : > { %p4892_p9 = pnand %p4891_p8, %p4885_p6 }
  0xc9   : > { %4895 = shalt.err (!%p4892_p9)
}
  0xca   : > { %p6109_p10 = scmp.ne.s32.totalorder %s6093_s25, 0  ;;  %s6110_s8 = scalar_lea.sflag [#allocation9], %s5269_s1 }
  0xcb   : > { %s761_s16 = scalar_lea.vmem [#allocation13], %s5262_s27  ;;  %s6111_s19 = sld [smem:[#allocation53_spill]] }
  0xcc   : > { %4436 = dma.hbm_to_vmem [thread:$0]  (!%p6109_p10), %s5414_s18, 16, %s717_s24, %s6110_s8  }
  0xcd   : > { %s768_s6 = sshll.u32 %s761_s16, 4  ;;  %s4896_s11 = scalar_lea.hbm %s5421_s0, 16  ;;  %s769_s6 = int_to_ptr.vmem [resolvable:$true] %s768_s6 }
  0xce   : > { %p4897_p8 = scmp.ne.s32.totalorder %s5421_s0, %s4896_s11  ;;  %s4901_s7 = scalar_lea.hbm %s6108_s14, 32 }
  0xcf   : > { %p4902_p1 = scmp.lt.u32.totalorder %s5421_s0, %s6108_s14  ;;  %p4903_p2 = scmp.lt.u32.totalorder %s4901_s7, %s4896_s11 }
  0xd0   : > { %p4899_p0 = pnand %p4897_p8, %p5296_p4  ;;  %p4905_p13 = scmp.lt.u32.totalorder %s4896_s11, %s5421_s0 }
  0xd1   : > { %s5447_s15 = scalar_lea.hbm %s6111_s19, %s5383_s21  ;;  %p4904_p3 = por %p4903_p2, %p4902_p1 }
  0xd2   : > { %p4900_p12 = pneg %p4899_p0 }
  0xd3   : > { %p4906_p11 = por %p4905_p13, %p4904_p3 }
  0xd5   : > { %p4907_p6 = pnand %p4906_p11, %p4900_p12 }
  0xd7   : > { %4910 = shalt.err (!%p4907_p6)
}
  0xd8   : > { %s4911_s21 = scalar_lea.vmem %s769_s6, 16  ;;  %s5078_s18 = smov [#allocation13]  }
  0xd9   : > { %p4912_p5 = scmp.ne.s32.totalorder %s769_s6, %s4911_s21  ;;  %s4916_s24 = sshll.u32 %s5078_s18, 4  ;;  %s4917_s24 = int_to_ptr.vmem [resolvable:$false] %s4916_s24 }
  0xda   : > { %s4918_s8 = scalar_lea.vmem %s4917_s24, 32  ;;  %p4919_p8 = scmp.lt.s32.totalorder %s769_s6, %s4917_s24 }
  0xdb   : > { %p4914_p7 = pnand %p4912_p5, %p5296_p4  ;;  %p4920_p0 = scmp.lt.s32.totalorder %s4918_s8, %s4911_s21 }
  0xdd   : > { %p4915_p9 = pneg %p4914_p7  ;;  %p4921_p10 = por %p4920_p0, %p4919_p8 }
  0xdf   : > { %p4922_p1 = pnand %p4921_p10, %p4915_p9 }
  0xe1   : > { %4925 = shalt.err (!%p4922_p1)
}
  0xe2   : > { %p6112_p2 = scmp.ne.s32.totalorder %s6093_s25, 0  ;;  %s6113_s7 = scalar_lea.sflag [#allocation12], %s5269_s1 }
  0xe3   : > { %s819_s10 = scalar_lea.vmem [#allocation16], %s5262_s27  ;;  %s4926_s16 = scalar_lea.hbm %s5447_s15, 16 }
  0xe4   : > { %4442 = dma.hbm_to_vmem [thread:$0]  (!%p6112_p2), %s5421_s0, 16, %s769_s6, %s6113_s7  }
  0xe5   : > { %s826_s30 = sshll.u32 %s819_s10, 4  ;;  %p4927_p12 = scmp.ne.s32.totalorder %s5447_s15, %s4926_s16  ;;  %s827_s30 = int_to_ptr.vmem [resolvable:$true] %s826_s30 }
  0xe6   : > { %s4931_s11 = scalar_lea.hbm %s6111_s19, 32  ;;  %p4932_p13 = scmp.lt.u32.totalorder %s5447_s15, %s6111_s19 }
  0xe7   : > { %p4929_p10 = pnand %p4927_p12, %p5296_p4  ;;  %p4933_p11 = scmp.lt.u32.totalorder %s4931_s11, %s4926_s16 }
  0xe8   : > { %p4935_p5 = scmp.lt.u32.totalorder %s4926_s16, %s5447_s15 }
  0xe9   : > { %p4930_p3 = pneg %p4929_p10  ;;  %p4934_p6 = por %p4933_p11, %p4932_p13 }
  0xeb   : > { %p4936_p7 = por %p4935_p5, %p4934_p6 }
  0xed   : > { %p4937_p9 = pnand %p4936_p7, %p4930_p3 }
  0xef   : > { %4940 = shalt.err (!%p4937_p9)
}
  0xf0   : > { %s4941_s0 = scalar_lea.vmem %s827_s30, 16  ;;  %s5079_s6 = smov [#allocation16]  }
  0xf1   : > { %p4942_p8 = scmp.ne.s32.totalorder %s827_s30, %s4941_s0  ;;  %s4946_s21 = sshll.u32 %s5079_s6, 4  ;;  %s4947_s21 = int_to_ptr.vmem [resolvable:$false] %s4946_s21 }
  0xf2   : > { %s4948_s18 = scalar_lea.vmem %s4947_s21, 32  ;;  %p4949_p12 = scmp.lt.s32.totalorder %s827_s30, %s4947_s21 }
  0xf3   : > { %p4944_p0 = pnand %p4942_p8, %p5296_p4  ;;  %p4950_p10 = scmp.lt.s32.totalorder %s4948_s18, %s4941_s0 }
  0xf5   : > { %p4945_p1 = pneg %p4944_p0  ;;  %p4951_p2 = por %p4950_p10, %p4949_p12 }
  0xf7   : > { %p4952_p11 = pnand %p4951_p2, %p4945_p1 }
  0xf9   : > { %4955 = shalt.err (!%p4952_p11)
}
  0xfa   : > { %p6114_p13 = scmp.ne.s32.totalorder %s6093_s25, 0  ;;  %s6115_s24 = scalar_lea.sflag [#allocation15], %s5269_s1 }
  0xfb   : > { %s6116_s20 = sld [smem:[#allocation54_spill]]  ;;  %s837_s16 = scalar_lea.vmem [#allocation17], %s5276_s28 }
  0xfc   : > { %4448 = dma.hbm_to_vmem [thread:$0]  (!%p6114_p13), %s5447_s15, 16, %s827_s30, %s6115_s24  }
  0xfd   : > { %s844_s12 = sshll.u32 %s837_s16, 4  ;;  %s834_s5 = scalar_lea.sflag [#allocation18], %s5262_s27  ;;  %s845_s12 = int_to_ptr.vmem [resolvable:$true] %s844_s12 }
 0x101   : > { %s5492_s10 = scalar_lea.hbm %s6116_s20, %s5279_s2  ;;  %s4961_s30 = scalar_lea.hbm %s6116_s20, 64 }
 0x102   : > { %s4956_s1 = scalar_lea.hbm %s5492_s10, 32  ;;  %p4962_p5 = scmp.lt.u32.totalorder %s5492_s10, %s6116_s20 }
 0x103   : > { %p4957_p2 = scmp.ne.s32.totalorder %s5492_s10, %s4956_s1  ;;  %p4963_p7 = scmp.lt.u32.totalorder %s4961_s30, %s4956_s1 }
 0x104   : > { %p4965_p8 = scmp.lt.u32.totalorder %s4956_s1, %s5492_s10 }
 0x105   : > { %p4959_p3 = pnand %p4957_p2, %p5296_p4  ;;  %p4964_p9 = por %p4963_p7, %p4962_p5 }
 0x107   : > { %p4960_p6 = pneg %p4959_p3  ;;  %p4966_p0 = por %p4965_p8, %p4964_p9 }
 0x109   : > { %p4967_p1 = pnand %p4966_p0, %p4960_p6 }
 0x10b   : > { %4970 = shalt.err (!%p4967_p1)
}
 0x10c   : > { %s4971_s27 = scalar_lea.vmem %s845_s12, 32  ;;  %s5080_s28 = smov [#allocation17]  }
 0x10d   : > { %p4972_p12 = scmp.ne.s32.totalorder %s845_s12, %s4971_s27  ;;  %s4976_s9 = sshll.u32 %s5080_s28, 4  ;;  %s4977_s9 = int_to_ptr.vmem [resolvable:$false] %s4976_s9 }
 0x10e   : > { %s4978_s0 = scalar_lea.vmem %s4977_s9, 64  ;;  %p4979_p2 = scmp.lt.s32.totalorder %s845_s12, %s4977_s9 }
 0x10f   : > { %p4974_p10 = pnand %p4972_p12, %p5296_p4  ;;  %p4980_p3 = scmp.lt.s32.totalorder %s4978_s0, %s4971_s27 }
 0x111   : > { %p4975_p11 = pneg %p4974_p10  ;;  %p4981_p13 = por %p4980_p3, %p4979_p2 }
 0x113   : > { %p4982_p5 = pnand %p4981_p13, %p4975_p11 }
 0x115   : > { %4985 = shalt.err (!%p4982_p5)
}
 0x116   : > { %p6117_p7 = scmp.ne.s32.totalorder %s6093_s25, 0  ;;  %p6118_p6 = scmp.ne.s32.totalorder %s6099_s23, 0 }
 0x118   : > { %4451 = dma.hbm_to_vmem [thread:$0]  (!%p6117_p7), %s5492_s10, 32, %s845_s12, %s834_s5  }
 0x119   : > { %853 = sbr.rel (%p6118_p6) target bundleno = 5800 (0x16a8), region = 100 }
 0x120   : > { %s5516_s17 = sand.u32 1, %s5046_s29   ;;  %p6119_p4 = scmp.ne.s32.totalorder %s6092_s3, 0 }
 0x121   : > { %s856_s6 = scalar_lea.sflag [#allocation7], %s5516_s17 }
 0x122   : > { %5021 = dma.done.wait (%p6119_p4), %s856_s6, 16  }
 0x123   : > { %5023 = vsyncadd (%p6119_p4), %s856_s6, 4294967280  ;;  %s6120_s25 = sadd.s32 4294967295, %s5070_s22   ;;  %s5527_s23 = sshll.u32 %s5516_s17, 1 }
 0x124   : > { %s863_s18 = sand.u32 1, %s6120_s25   ;;  %6121 = sst [smem:[#allocation33_spill]] %s5527_s23 }
 0x125   : > { %s864_s24 = scalar_lea.sflag [#allocation9], %s863_s18 }
 0x126   : > { %5025 = dma.done.wait (%p6119_p4), %s864_s24, 48  }
 0x127   : > { %5027 = vsyncadd (%p6119_p4), %s864_s24, 4294967248  ;;  %s881_s10 = scalar_lea.sflag [#allocation12], %s863_s18 }
 0x128   : > { %5029 = dma.done.wait (%p6119_p4), %s881_s10, 48  }
 0x129   : > { %5031 = vsyncadd (%p6119_p4), %s881_s10, 4294967248  ;;  %s898_s5 = scalar_lea.sflag [#allocation15], %s863_s18 }
 0x12a   : > { %5033 = dma.done.wait (%p6119_p4), %s898_s5, 48  }
 0x12b   : > { %5035 = vsyncadd (%p6119_p4), %s898_s5, 4294967248  ;;  %s915_s15 = scalar_lea.sflag [#allocation18], %s5516_s17 }
 0x12c   : > { %5037 = dma.done.wait (%p6119_p4), %s915_s15, 32  }
 0x12d   : > { %5039 = vsyncadd (%p6119_p4), %s915_s15, 4294967264  ;;  %p1056_p13 = scmp.lt.s32.totalorder %s5058_s4, 1  ;;  %p1064_p9 = scmp.lt.s32.totalorder %s5054_s13, 1 }
 0x12e   : > { %s6122_s6 = sld [smem:[#allocation35_spill]]  ;;  %s6123_s10 = sld [smem:[#allocation36_spill]] }
 0x12f   : > { %s1057_s26 = scalar_select %p1056_p13, %s5058_s4, 1 }
 0x130   : > { %s1065_s2 = scalar_select %p1064_p9, %s5054_s13, 1 }
 0x131   : > { %s3945_s27 = sshll.u32 %s1057_s26, 3  ;;  %s3946_s28 = sshll.u32 %s1057_s26, 2 }
 0x132   : > { %s4409_s3 = smul.u32 192, %s1065_s2  ;;  %s4115_s15 = sshll.u32 %s1065_s2, 6 }
 0x133   : > { %s4410_s30 = smul.u32 3, %s1065_s2  ;;  %s6124_s12 = sld [smem:[#allocation40_spill]] }
 0x134   : > { %s1059_s25 = scalar_lea.vmem %s6122_s6, %s3945_s27  ;;  %s5563_s5 = scalar_lea.vmem %s6123_s10, %s3946_s28 }
 0x135   : > { %s6125_s26 = sld [smem:[#allocation38_spill]]  ;;  %s6126_s6 = sld [smem:[#allocation43_spill]] }
 0x136   : > { %s6127_s24 = sld [smem:[#allocation39_spill]]  ;;  %s4117_s19 = sshll.u32 %s1065_s2, 7 }
 0x137   : > { %s6129_s16 = sld [smem:[#allocation47_spill]]  ;;  %s3958_s9 = sshll.u32 %s1065_s2, 2 }
 0x138   : > { %s6130_s22 = sld [smem:[#allocation50_spill]]  ;;  %s6131_s18 = sld [smem:[#allocation51_spill]] }
 0x139   : > { %s5568_s7 = scalar_lea.vmem %s6124_s12, %s4115_s15  ;;  %s6128_s12 = sld [smem:[#allocation45_spill]] }
 0x13a   : > { %s6132_s1 = sld [smem:[#allocation52_spill]]  ;;  %s6133_s8 = sld [smem:[#allocation55_spill]] }
 0x13b   : > { %s5573_s21 = scalar_lea.vmem %s6125_s26, %s4409_s3  ;;  %s5578_s14 = scalar_lea.vmem %s6126_s6, %s4115_s15 }
 0x13c   : > { %s5583_s10 = scalar_lea.vmem %s6127_s24, %s4410_s30  ;;  %s4119_s26 = sshll.u32 %s1065_s2, 8 }
 0x13d   : > { %s5593_s3 = scalar_lea.vmem %s6129_s16, %s4115_s15  ;;  %p3962_p8 = scmp.ne.s32.totalorder %s5054_s13, 0 }
 0x13e   : > { %s5598_s23 = scalar_lea.vmem %s6130_s22, %s4119_s26  ;;  %s5603_s24 = scalar_lea.vmem %s6131_s18, %s3958_s9  ;;  %v1117_v0 = vld [vmem:[%s1059_s25] sm:$0xff] (!%p3962_p8)  ;;  %v1130_v7 = vlaneseq (!%p3962_p8) }
 0x13f   : > { %s5588_s11 = scalar_lea.vmem %s6128_s12, %s4117_s19  ;;  %1115 = sbr.rel (%p3962_p8) target bundleno = 631 (0x277), region = 136  ;;  %1118 = vadd.xlane.f32.xlu0 (!%p3962_p8), %v1117_v0 }
 0x140   : > { %s5608_s12 = scalar_lea.vmem %s6132_s1, %s4119_s26  ;;  %s5613_s16 = scalar_lea.vmem %s6133_s8, %s3945_s27  ;;  %v1131_v9 = vshrl.u32 (!%p3962_p8), %v1130_v7, 7 }
 0x141   : > { %s6134_s27 = sld [smem:[#allocation37_spill]] (!%p3962_p8) }
 0x142   : > { %v1132_v10 = vsub.s32 (!%p3962_p8), 0, %v1131_v9  ;;  %v1137_v12 = vsub.s32 (!%p3962_p8), 1, %v1131_v9 }
 0x147   : > { %v1116_v11 = vld [vmem:[%s6134_s27] sm:$0x3] }
 0x148   : > { %v1133_v13 = vrot.slane %v1116_v11, %v1132_v10  ;;  %v1138_v16 = vrot.slane %v1116_v11, %v1137_v12 }
 0x1cc   : > { %v1119_v1 = vpop.xlane.xlu0 %1118 }
 0x1cd   : > { %v1121_v2 = vmul.f32 0.0078125, %v1119_v1 }
 0x1cf   : > { %v1122_v3 = vsub.f32 %v1117_v0, %v1121_v2 }
 0x1d1   : > { %v1123_v4 = vmul.f32 %v1122_v3, %v1122_v3 }
 0x1d3   : > { %1124 = vadd.xlane.f32.xlu0 %v1123_v4 }
 0x260   : > { %v1125_v5 = vpop.xlane.xlu0 %1124 }
 0x261   : > { %v1126_v6 = vmul.f32 0.0078125, %v1125_v5 }
 0x263   : > { %v1127_v8 = vadd.f32 1e-12, %v1126_v6 }
 0x265   : > { %4526 = vrsqrt.f32 %v1127_v8 }
 0x26f   : > { %v4527_v14 = vpop.eup %4526 }
 0x270   : > { %v1129_v15 = vmul.f32 %v4527_v14, %v1122_v3 }
 0x272   : > { %v1134_v17 = vmul.f32 %v1133_v13, %v1129_v15 }
 0x274   : > { %v1139_v18 = vadd.f32 %v1138_v16, %v1134_v17 }
 0x276   : > { %1140 = vst [vmem:[#allocation2] sm:$0xff] %v1139_v18 }
 0x277 PF: > { %v4528_v19 = vld [vmem:[%s5573_s21 + $0x4] ss:$12 sps:$4 sm:$0xff]   ;;  %v4530_v20 = vld [vmem:[%s5573_s21] ss:$12 sps:$4 sm:$0xff]   ;;  %v5081_v21 = vmov 0   ;;  %v5082_v22 = vmov 0.0   ;;  %v1143_v47 = vlaneseq }
 0x278   : > { %1362 = vmatprep.mubr.bf16.mxu0 %v5081_v21  ;;  %4233 = vmatprep.subr.bf16.mxu1 %v5082_v22  ;;  %v4531_v23 = vld [vmem:[%s5573_s21 + $0x1c] ss:$12 sps:$4 sm:$0xff]   ;;  %v4533_v24 = vld [vmem:[%s5573_s21 + $0x18] ss:$12 sps:$4 sm:$0xff]   ;;  %v4534_v25 = vld [vmem:[%s5573_s21 + $0x34] ss:$12 sps:$4 sm:$0xff]  }
 0x279   : > { %1330 = vmatprep.subr.bf16.mxu0 %v4528_v19  ;;  %v4536_v26 = vld [vmem:[%s5573_s21 + $0x30] ss:$12 sps:$4 sm:$0xff]   ;;  %v4537_v27 = vld [vmem:[%s5573_s21 + $0x4c] ss:$12 sps:$4 sm:$0xff]   ;;  %v4539_v28 = vld [vmem:[%s5573_s21 + $0x48] ss:$12 sps:$4 sm:$0xff]  }
 0x27a   : > { %1331 = vmatpush1.bf16.msra.mxu0 %v4530_v20  ;;  %v4552_v29 = vld [vmem:[%s5573_s21 + $0x8] ss:$12 sps:$4 sm:$0xff]   ;;  %v4540_v30 = vld [vmem:[%s5573_s21 + $0x64] ss:$12 sps:$4 sm:$0xff]   ;;  %v4553_v31 = vld [vmem:[%s5573_s21 + $0x20] ss:$12 sps:$4 sm:$0xff]  }
 0x27b   : > { %1332 = vmatprep.subr.bf16.mxu0 %v4531_v23  ;;  %4234 = vmatpush3.bf16.msra.mxu1 %v4552_v29  ;;  %v4542_v32 = vld [vmem:[%s5573_s21 + $0x60] ss:$12 sps:$4 sm:$0xff]   ;;  %v4543_v33 = vld [vmem:[%s5573_s21 + $0x7c] ss:$12 sps:$4 sm:$0xff]   ;;  %v4545_v34 = vld [vmem:[%s5573_s21 + $0x78] ss:$12 sps:$4 sm:$0xff]  }
 0x27c   : > { %4235 = vmatprep.subr.bf16.mxu1 %v5082_v22  ;;  %v4554_v35 = vld [vmem:[%s5573_s21 + $0x38] ss:$12 sps:$4 sm:$0xff]   ;;  %v4546_v36 = vld [vmem:[%s5573_s21 + $0x94] ss:$12 sps:$4 sm:$0xff]   ;;  %v4555_v37 = vld [vmem:[%s5573_s21 + $0x50] ss:$12 sps:$4 sm:$0xff]  }
 0x27d   : > { %v4548_v38 = vld [vmem:[%s5573_s21 + $0x90] ss:$12 sps:$4 sm:$0xff]   ;;  %v4549_v39 = vld [vmem:[%s5573_s21 + $0xac] ss:$12 sps:$4 sm:$0xff]   ;;  %v4556_v40 = vld [vmem:[%s5573_s21 + $0x68] ss:$12 sps:$4 sm:$0xff]  }
 0x27e   : > { %1333 = vmatpush1.bf16.msra.mxu0 %v4533_v24  ;;  %v4551_v41 = vld [vmem:[%s5573_s21 + $0xa8] ss:$12 sps:$4 sm:$0xff]   ;;  %v5645_v42 = vld [vmem:[#allocation2] sm:$0xff]  ;;  %v4559_v46 = vld [vmem:[%s5573_s21 + $0xb0] ss:$12 sps:$4 sm:$0xff]   ;;  %vm5083_vm0 = vmmov 0  }
 0x27f   : > { %1334 = vmatprep.subr.bf16.mxu0 %v4534_v25  ;;  %4236 = vmatpush3.bf16.msra.mxu1 %v4553_v31  ;;  %v4557_v43 = vld [vmem:[%s5573_s21 + $0x80] ss:$12 sps:$4 sm:$0xff]   ;;  %v1152_v44 = vpack.c.bf16 %v5645_v42, %v5645_v42  ;;  %v4558_v45 = vld [vmem:[%s5573_s21 + $0x98] ss:$12 sps:$4 sm:$0xff]   ;;  %v5664_v48 = vshrl.u32 %v1143_v47, 7  ;;  %vm1414_vm1 = vcmask 261120  }
 0x280   : > { %4237 = vmatprep.subr.bf16.mxu1 %v5082_v22  ;;  %4249 = vmatprep.mubr.msk.bf16.mxu1 %vm5083_vm0, %v5082_v22  ;;  %v1185_v50 = vld [vmem:[%s5583_s10] sm:$0x7]  ;;  %s5084_s21 = smov 96   ;;  %s5085_s25 = smov 64   ;;  %vm1479_vm2 = vcmask 1043456   ;;  %v1146_v8 = vand.u32 127, %v1143_v47 }
 0x281   : > { %v5667_v49 = vsub.s32 1, %v5664_v48  ;;  %v5671_v51 = vsub.s32 0, %v5664_v48  ;;  %s5086_s10 = smov 32   ;;  %v1197_v63 = vsub.s32 2, %v5664_v48  ;;  %s1142_s26 = sld [smem:[#allocation5 + %s5058_s4]]  ;;  %vm1463_vm6 = vcmask 64512  }
 0x282   : > { %1335 = vmatpush1.bf16.msra.mxu0 %v4536_v26  ;;  %vm1147_vm3 = vcmp.le.s32.totalorder %v1146_v8, %v5664_v48  ;;  %v5087_v11 = vmov -1e+09   ;;  %vm1643_vm7 = vcmask 523520   ;;  %vm1761_vm8 = vcmask 785920   ;;  %s6135_s4 = scalar_lea.vmem [#allocation6], %s5516_s17  ;;  %p4111_p0 = scmp.ne.s32.totalorder %s5054_s13, 1 }
 0x283   : > { %1336 = vmatprep.subr.bf16.mxu0 %v4537_v27  ;;  %4238 = vmatpush3.bf16.msra.mxu1 %v4554_v35  ;;  %v1194_v52 = vrot.slane %v1185_v50, %v5667_v49  ;;  %v1190_v53 = vrot.slane %v1185_v50, %v5671_v51  ;;  %v1198_v0 = vrot.slane %v1185_v50, %v1197_v63  ;;  %vm1879_vm9 = vcmask 1048320  }
 0x284   : > { %4239 = vmatprep.subr.bf16.mxu1 %v5082_v22  ;;  %vm2346_vm10 = vcmask 1041408   ;;  %vm2347_vm11 = vcmask 1042432   ;;  %vm2330_vm12 = vcmask 39936  }
 0x286   : > { %1337 = vmatpush1.bf16.msra.mxu0 %v4539_v28 }
 0x287   : > { %1338 = vmatprep.subr.bf16.mxu0 %v4540_v30  ;;  %4240 = vmatpush3.bf16.msra.mxu1 %v4555_v37  ;;  %v1148_v9 = vstv %s1142_s26 }
 0x288   : > { %4241 = vmatprep.subr.bf16.mxu1 %v5082_v22  ;;  %vm1149_vm4 = vcmp.lt.s32.totalorder %v1146_v8, %v1148_v9 }
 0x289   : > { %vm1150_vm5 = vmand %vm1147_vm3, %vm1149_vm4 }
 0x28a   : > { %1339 = vmatpush1.bf16.msra.mxu0 %v4542_v32  ;;  %v5695_v12 = vsel %vm1150_vm5, 0.0, %v5087_v11 }
 0x28b   : > { %1340 = vmatprep.subr.bf16.mxu0 %v4543_v33  ;;  %4242 = vmatpush3.bf16.msra.mxu1 %v4556_v40 }
 0x28c   : > { %4243 = vmatprep.subr.bf16.mxu1 %v5082_v22 }
 0x28e   : > { %1341 = vmatpush1.bf16.msra.mxu0 %v4545_v34 }
 0x28f   : > { %1342 = vmatprep.subr.bf16.mxu0 %v4546_v36  ;;  %4244 = vmatpush3.bf16.msra.mxu1 %v4557_v43 }
 0x290   : > { %4245 = vmatprep.subr.bf16.mxu1 %v5082_v22 }
 0x292   : > { %1343 = vmatpush1.bf16.msra.mxu0 %v4548_v38 }
 0x293   : > { %1344 = vmatprep.subr.bf16.mxu0 %v4549_v39  ;;  %4246 = vmatpush3.bf16.msra.mxu1 %v4558_v45 }
 0x294   : > { %4247 = vmatprep.subr.bf16.mxu1 %v5082_v22 }
 0x296   : > { %1345 = vmatpush1.bf16.msra.mxu0 %v4551_v41 }
 0x297   : > { %4277 = vmatprep.subr.bf16.mxu0 %v5082_v22  ;;  %4248 = vmatpush3.bf16.msra.mxu1 %v4559_v46 }
 0x298   : > { %4253 = vmatprep.subr.bf16.mxu1 %v5082_v22 }
 0x299   : > { %1363 = vmatmul.mubr.bf16.vlgmr.msra.gmra.mrb[0].mxu0 %v1152_v44 }
 0x29a   : > { %4279 = vmatprep.mubr.msk.bf16.mxu0 %vm5083_vm0, %v5082_v22  ;;  %4250 = vmatmul.mubr.bf16.vlgmr.msra.gmra.mrb[0].mxu1 %v1152_v44 }
 0x29b   : > { %4255 = vmatprep.mubr.msk.bf16.mxu1 %vm5083_vm0, %v5082_v22 }
 0x36c   : > { %v1364_v54 = vpop.f32.mrb[0].mxu0 }
 0x36d   : > { %v1366_v55 = vpop.f32.mrb[1].mxu0  ;;  %v1365_v59 = vadd.f32 %v1364_v54, %v1190_v53  ;;  %v1405_v1 = vpop.f32.mrb[0].mxu1 }
 0x36e   : > { %v1367_v56 = vadd.f32 %v1366_v55, %v1194_v52  ;;  %v1368_v57 = vpop.f32.mrb[2].mxu0  ;;  %v1406_v2 = vadd.f32 %v1405_v1, %v1198_v0  ;;  %v4251_v3 = vpop.f32.mrb[1].mxu1 }
 0x36f   : > { %v1369_v58 = vpop.f32.mrb[3].mxu0  ;;  %v1411_v62 = vpack.c.bf16 %v1365_v59, %v1365_v59  ;;  %v1408_v4 = vpop.f32.mrb[2].mxu1 }
 0x370   : > { %v1412_v60 = vpack.c.bf16 %v1367_v56, %v1367_v56  ;;  %v5688_v5 = vpack.c.bf16 %v1406_v2, %v1406_v2  ;;  %v4252_v6 = vpop.f32.mrb[3].mxu1 }
 0x372   : > { %1528 = vrot.lane.b32.xlu1 %v1412_v60, %s5084_s21  ;;  %v1419_v61 = vsel %vm1414_vm1, %v1412_v60, 0  ;;  %v1481_v7 = vsel %vm1479_vm2, %v5688_v5, 0 }
 0x373   : > { %4254 = vmatpush3.bf16.xpose.msra.mxu1 %v1419_v61 }
 0x374   : > { %4259 = vmatprep.subr.bf16.mxu1 %v5082_v22 }
 0x376   : > { %1525 = vrot.lane.b32.xlu1 %v1411_v62, %s5084_s21 }
 0x37a   : > { %1645 = vrot.lane.b32.xlu1 %v1411_v62, %s5085_s25  ;;  %4256 = vmatmul.mubr.msk.bf16.vlgmr.msra.gmra.mrb[4].mxu1 %vm1414_vm1, %v1411_v62 }
 0x37b   : > { %4261 = vmatprep.mubr.msk.bf16.mxu1 %vm5083_vm0, %v5082_v22  ;;  %4260 = vmatpush3.bf16.msra.mxu1 %v1481_v7 }
 0x37c   : > { %4265 = vmatprep.subr.bf16.mxu1 %v5082_v22 }
 0x37e   : > { %1765 = vrot.lane.b32.xlu1 %v1412_v60, %s5086_s10 }
 0x382   : > { %1763 = vrot.lane.b32.xlu1 %v1411_v62, %s5086_s10 }
 0x3e4   : > { %v1529_v26 = vpop.permute.xlu1 %1528 }
 0x3e5   : > { %v1534_v37 = vsel %vm1414_vm1, %v1529_v26, 0 }
 0x3e8   : > { %v1526_v27 = vpop.permute.xlu1 %1525 }
 0x3ec   : > { %v1646_v29 = vpop.permute.xlu1 %1645 }
 0x3f0   : > { %v1766_v32 = vpop.permute.xlu1 %1765 }
 0x3f1   : > { %v1771_v35 = vsel %vm1414_vm1, %v1766_v32, 0 }
 0x3f4   : > { %v1764_v38 = vpop.permute.xlu1 %1763 }
 0x44d   : > { %v1455_v10 = vpop.f32.mrb[4].mxu1 }
 0x44e   : > { %v1461_v13 = vmul.f32 0.17677669, %v1455_v10  ;;  %v4257_v14 = vpop.f32.mrb[5].mxu1 }
 0x44f   : > { %v1458_v15 = vpop.f32.mrb[6].mxu1 }
 0x450   : > { %v4258_v16 = vpop.f32.mrb[7].mxu1  ;;  %v1462_v17 = vadd.f32 %v1461_v13, %v5695_v12 }
 0x452   : > { %v1464_v18 = vsel %vm1463_vm6, %v1462_v17, -inf }
 0x453   : > { %1465 = vmax.xlane.f32.xlu0 %v1464_v18 }
 0x4e0   : > { %v1466_v19 = vpop.xlane.xlu0 %1465 }
 0x4e1   : > { %v1467_v20 = vsub.f32 %v1462_v17, %v1466_v19 }
 0x4e3   : > { %v1468_v23 = vmul.f32 1.442695, %v1467_v20 }
 0x4e5   : > { %4688 = vpow2.f32 %v1468_v23 }
 0x4ef   : > { %v4689_v24 = vpop.eup %4688 }
 0x4f0   : > { %v1470_v25 = vsel %vm1463_vm6, %v4689_v24, 0.0 }
 0x4f1   : > { %1471 = vadd.xlane.f32.xlu0 %v1470_v25 }
 0x507   : > { %1647 = vrot.lane.b32.xlu0 %v1412_v60, %s5085_s25 }
 0x57e   : > { %v1472_v28 = vpop.xlane.xlu0 %1471 }
 0x57f   : > { %4690 = vrcp.f32 %v1472_v28 }
 0x582   : > { %v1648_v30 = vpop.permute.xlu0 %1647 }
 0x583   : > { %v1653_v31 = vsel %vm1414_vm1, %v1648_v30, 0 }
 0x584   : > { %4278 = vmatpush3.bf16.xpose.msra.mxu0 %v1653_v31 }
 0x585   : > { %4289 = vmatprep.subr.bf16.mxu0 %v5082_v22 }
 0x589   : > { %v4691_v33 = vpop.eup %4690 }
 0x58a   : > { %v1474_v34 = vmul.f32 %v4691_v33, %v4689_v24 }
 0x58b   : > { %4280 = vmatmul.mubr.msk.bf16.vlgmr.msra.gmra.mrb[4].mxu0 %vm1414_vm1, %v1646_v29 }
 0x58c   : > { %4290 = vmatpush3.bf16.xpose.msra.mxu0 %v1771_v35  ;;  %v1475_v36 = vpack.c.bf16 %v1474_v34, %v1474_v34  ;;  %4291 = vmatprep.mubr.msk.bf16.mxu0 %vm5083_vm0, %v5082_v22 }
 0x58d   : > { %4301 = vmatprep.subr.bf16.mxu0 %v5082_v22 }
 0x58e   : > { %4262 = vmatmul.mubr.msk.bf16.vlgmr.msra.gmra.mrb[8].mxu1 %vm1463_vm6, %v1475_v36 }
 0x58f   : > { %4266 = vmatpush3.bf16.xpose.msra.mxu1 %v1534_v37  ;;  %4267 = vmatprep.mubr.msk.bf16.mxu1 %vm5083_vm0, %v5082_v22 }
 0x590   : > { %4271 = vmatprep.subr.bf16.mxu1 %v5082_v22 }
 0x593   : > { %4292 = vmatmul.mubr.msk.bf16.vlgmr.msra.gmra.mrb[8].mxu0 %vm1414_vm1, %v1764_v38 }
 0x594   : > { %4317 = vmatprep.mubr.msk.bf16.mxu0 %vm5083_vm0, %v5082_v22 }
 0x596   : > { %4268 = vmatmul.mubr.msk.bf16.vlgmr.msra.gmra.mrb[12].mxu1 %vm1414_vm1, %v1526_v27 }
 0x597   : > { %4273 = vmatprep.mubr.msk.bf16.mxu1 %vm5083_vm0, %v5082_v22 }
 0x65e   : > { %v1689_v39 = vpop.f32.mrb[4].mxu0 }
 0x65f   : > { %v1695_v40 = vmul.f32 0.17677669, %v1689_v39  ;;  %v4281_v41 = vpop.f32.mrb[5].mxu0 }
 0x660   : > { %v1692_v43 = vpop.f32.mrb[6].mxu0  ;;  %v4561_v41 = vld [vmem:[%s5568_s7 + $0x8] sm:$0xff]  }
 0x661   : > { %v1517_v44 = vpop.f32.mrb[8].mxu1  ;;  %v4282_v45 = vpop.f32.mrb[7].mxu0  ;;  %v1696_v46 = vadd.f32 %v1695_v40, %v5695_v12  ;;  %v4560_v40 = vld [vmem:[%s5568_s7] sm:$0xff]   ;;  %v4562_v43 = vld [vmem:[%s5568_s7 + $0x10] sm:$0xff]  }
 0x662   : > { %1523 = vst.msk [vmem:[#allocation3] sm:$0xff] %vm1414_vm1, %v1517_v44  ;;  %v4263_v47 = vpop.f32.mrb[9].mxu1  ;;  %4302 = vmatpush3.bf16.msra.mxu0 %v4560_v40  ;;  %v4563_v44 = vld [vmem:[%s5568_s7 + $0x18] sm:$0xff]   ;;  %v4564_v45 = vld [vmem:[%s5568_s7 + $0x20] sm:$0xff]  }
 0x663   : > { %v1520_v50 = vpop.f32.mrb[10].mxu1  ;;  %v1697_v52 = vsel %vm1463_vm6, %v1696_v46, -inf  ;;  %4303 = vmatprep.subr.bf16.mxu0 %v5082_v22  ;;  %v2130_v40 = vld [vmem:[%s5563_s5] sm:$0x7] }
 0x664   : > { %1698 = vmax.xlane.f32.xlu0 %v1697_v52  ;;  %v4264_v53 = vpop.f32.mrb[11].mxu1 }
 0x666   : > { %v1807_v54 = vpop.f32.mrb[8].mxu0  ;;  %4304 = vmatpush3.bf16.msra.mxu0 %v4561_v41  ;;  %v4598_v41 = vld [vmem:[%s5578_s14 + $0x30] sm:$0xff]  }
 0x667   : > { %v4293_v55 = vpop.f32.mrb[9].mxu0  ;;  %v1813_v59 = vmul.f32 0.17677669, %v1807_v54  ;;  %4305 = vmatprep.subr.bf16.mxu0 %v5082_v22  ;;  %v4566_v54 = vld [vmem:[%s5568_s7 + $0x30] sm:$0xff]  }
 0x668   : > { %v1810_v56 = vpop.f32.mrb[10].mxu0  ;;  %v4567_v55 = vld [vmem:[%s5568_s7 + $0x38] sm:$0xff]  }
 0x669   : > { %v1570_v57 = vpop.f32.mrb[12].mxu1  ;;  %v4294_v58 = vpop.f32.mrb[11].mxu0  ;;  %v1814_v3 = vadd.f32 %v1813_v59, %v5695_v12 }
 0x66a   : > { %v1576_v60 = vmul.f32 0.17677669, %v1570_v57  ;;  %v4269_v61 = vpop.f32.mrb[13].mxu1  ;;  %4306 = vmatpush3.bf16.msra.mxu0 %v4562_v43  ;;  %v4599_v43 = vld [vmem:[%s5578_s14 + $0x38] sm:$0xff]  }
 0x66b   : > { %v1573_v62 = vpop.f32.mrb[14].mxu1  ;;  %v1815_v4 = vsel %vm1463_vm6, %v1814_v3, -inf  ;;  %4307 = vmatprep.subr.bf16.mxu0 %v5082_v22 }
 0x66c   : > { %v4270_v0 = vpop.f32.mrb[15].mxu1  ;;  %v1577_v1 = vadd.f32 %v1576_v60, %v5695_v12 }
 0x66e   : > { %v1578_v2 = vsel %vm1463_vm6, %v1577_v1, -inf  ;;  %4308 = vmatpush3.bf16.msra.mxu0 %v4563_v44 }
 0x66f   : > { %1579 = vmax.xlane.f32.xlu1 %v1578_v2  ;;  %4309 = vmatprep.subr.bf16.mxu0 %v5082_v22 }
 0x672   : > { %4310 = vmatpush3.bf16.msra.mxu0 %v4564_v45 }
 0x673   : > { %1816 = vmax.xlane.f32.xlu1 %v1815_v4  ;;  %4311 = vmatprep.subr.bf16.mxu0 %v5082_v22 }
 0x6f1   : > { %v1699_v6 = vpop.xlane.xlu0 %1698 }
 0x6f2   : > { %v1700_v7 = vsub.f32 %v1696_v46, %v1699_v6  ;;  %v4565_v46 = vld [vmem:[%s5568_s7 + $0x28] sm:$0xff]   ;;  %s6136_s7 = sld [smem:[#allocation33_spill]] }
 0x6f3   : > { %4312 = vmatpush3.bf16.msra.mxu0 %v4565_v46 }
 0x6f4   : > { %v1701_v8 = vmul.f32 1.442695, %v1700_v7  ;;  %4313 = vmatprep.subr.bf16.mxu0 %v5082_v22  ;;  %v3995_v7 = vld [vmem:[%s6135_s4] ss:$0 sm:$0xff] }
 0x6f6   : > { %4692 = vpow2.f32 %v1701_v8 }
 0x6f7   : > { %4314 = vmatpush3.bf16.msra.mxu0 %v4566_v54 }
 0x6f8   : > { %4315 = vmatprep.subr.bf16.mxu0 %v5082_v22  ;;  %s6137_s5 = scalar_lea.vmem [#allocation8], %s6136_s7  ;;  %s6141_s9 = scalar_lea.vmem [#allocation14], %s6136_s7 }
 0x6fb   : > { %4316 = vmatpush3.bf16.msra.mxu0 %v4567_v55 }
 0x6fc   : > { %v1580_v9 = vpop.xlane.xlu1 %1579 }
 0x6fd   : > { %v1581_v10 = vsub.f32 %v1577_v1, %v1580_v9 }
 0x6ff   : > { %v1582_v16 = vmul.f32 1.442695, %v1581_v10 }
 0x700   : > { %v4693_v11 = vpop.eup %4692  ;;  %v1817_v13 = vpop.xlane.xlu1 %1816 }
 0x701   : > { %v1818_v14 = vsub.f32 %v1814_v3, %v1817_v13  ;;  %v1703_v15 = vsel %vm1463_vm6, %v4693_v11, 0.0 }
 0x702   : > { %1704 = vadd.xlane.f32.xlu0 %v1703_v15  ;;  %v4568_v15 = vld [vmem:[%s5588_s11] ss:$8 sps:$4 sm:$0xff]  }
 0x703   : > { %v1819_v17 = vmul.f32 1.442695, %v1818_v14 }
 0x705   : > { %4694 = vpow2.f32 %v1819_v17  ;;  %v4573_v17 = vld [vmem:[%s5588_s11 + $0x14] ss:$8 sps:$4 sm:$0xff]  }
 0x706   : > { %4696 = vpow2.f32 %v1582_v16  ;;  %v4570_v16 = vld [vmem:[%s5588_s11 + $0x4] ss:$8 sps:$4 sm:$0xff]  }
 0x707   : > { %2239 = vmatprep.subr.bf16.mxu0 %v4570_v16 }
 0x70f   : > { %v4695_v12 = vpop.eup %4694 }
 0x710   : > { %v1821_v18 = vsel %vm1463_vm6, %v4695_v12, 0.0  ;;  %v4697_v19 = vpop.eup %4696 }
 0x711   : > { %1822 = vadd.xlane.f32.xlu1 %v1821_v18  ;;  %v1584_v20 = vsel %vm1463_vm6, %v4697_v19, 0.0  ;;  %v4571_v18 = vld [vmem:[%s5588_s11 + $0x10] ss:$8 sps:$4 sm:$0xff]  }
 0x715   : > { %1585 = vadd.xlane.f32.xlu1 %v1584_v20  ;;  %v4581_v20 = vld [vmem:[%s5578_s14 + $0x8] sm:$0xff]  }
 0x718   : > { %1591 = vrot.lane.b32.xlu0 %v5688_v5, %s5084_s21 }
 0x726   : > { %1709 = vrot.lane.b32.xlu1 %v5688_v5, %s5085_s25 }
 0x72a   : > { %1827 = vrot.lane.b32.xlu1 %v5688_v5, %s5086_s10 }
 0x78f   : > { %v1705_v23 = vpop.xlane.xlu0 %1704 }
 0x793   : > { %v1592_v24 = vpop.permute.xlu0 %1591 }
 0x794   : > { %v1597_v25 = vsel %vm1479_vm2, %v1592_v24, 0  ;;  %v4578_v24 = vld [vmem:[%s5588_s11 + $0x30] ss:$8 sps:$4 sm:$0xff]  }
 0x795   : > { %4272 = vmatpush3.bf16.msra.mxu1 %v1597_v25  ;;  %v4584_v25 = vld [vmem:[%s5588_s11 + $0x44] ss:$8 sps:$4 sm:$0xff]  }
 0x796   : > { %4283 = vmatprep.subr.bf16.mxu1 %v5082_v22 }
 0x79e   : > { %v1823_v26 = vpop.xlane.xlu1 %1822 }
 0x7a2   : > { %v1586_v27 = vpop.xlane.xlu1 %1585 }
 0x7a3   : > { %4698 = vrcp.f32 %v1586_v27 }
 0x7a4   : > { %4700 = vrcp.f32 %v1705_v23  ;;  %v4580_v23 = vld [vmem:[%s5588_s11 + $0x34] ss:$8 sps:$4 sm:$0xff]  }
 0x7a5   : > { %4702 = vrcp.f32 %v1823_v26  ;;  %v4582_v26 = vld [vmem:[%s5588_s11 + $0x40] ss:$8 sps:$4 sm:$0xff]  }
 0x7a6   : > { %v1710_v30 = vpop.permute.xlu1 %1709 }
 0x7a7   : > { %v1715_v33 = vsel %vm1479_vm2, %v1710_v30, 0 }
 0x7aa   : > { %v1828_v34 = vpop.permute.xlu1 %1827 }
 0x7ab   : > { %v1833_v37 = vsel %vm1479_vm2, %v1828_v34, 0  ;;  %v4592_v34 = vld [vmem:[%s5588_s11 + $0x64] ss:$8 sps:$4 sm:$0xff]  }
 0x7ad   : > { %v4699_v28 = vpop.eup %4698 }
 0x7ae   : > { %v1588_v29 = vmul.f32 %v4699_v28, %v4697_v19  ;;  %v4701_v32 = vpop.eup %4700  ;;  %v4576_v19 = vld [vmem:[%s5588_s11 + $0x24] ss:$8 sps:$4 sm:$0xff]  }
 0x7af   : > { %v1707_v5 = vmul.f32 %v4701_v32, %v4693_v11  ;;  %v4703_v36 = vpop.eup %4702  ;;  %v4588_v32 = vld [vmem:[%s5588_s11 + $0x54] ss:$8 sps:$4 sm:$0xff]  }
 0x7b0   : > { %v1589_v31 = vpack.c.bf16 %v1588_v29, %v1588_v29  ;;  %v1825_v38 = vmul.f32 %v4703_v36, %v4695_v12  ;;  %v4577_v12 = vld [vmem:[%s5578_s14] sm:$0xff]  }
 0x7b1   : > { %v1708_v35 = vpack.c.bf16 %v1707_v5, %v1707_v5  ;;  %v4589_v5 = vld [vmem:[%s5578_s14 + $0x18] sm:$0xff]   ;;  %v4593_v36 = vld [vmem:[%s5578_s14 + $0x20] sm:$0xff]  }
 0x7b2   : > { %4274 = vmatmul.mubr.msk.bf16.vlgmr.msra.gmra.mrb[16].mxu1 %vm1463_vm6, %v1589_v31  ;;  %v1826_v39 = vpack.c.bf16 %v1825_v38, %v1825_v38  ;;  %v4585_v31 = vld [vmem:[%s5578_s14 + $0x10] sm:$0xff]  }
 0x7b3   : > { %4284 = vmatpush3.bf16.msra.mxu1 %v1715_v33  ;;  %4285 = vmatprep.mubr.msk.bf16.mxu1 %vm5083_vm0, %v5082_v22  ;;  %v4586_v33 = vld [vmem:[%s5588_s11 + $0x50] ss:$8 sps:$4 sm:$0xff]  }
 0x7b4   : > { %4295 = vmatprep.subr.bf16.mxu1 %v5082_v22  ;;  %v4594_v38 = vld [vmem:[%s5588_s11 + $0x70] ss:$8 sps:$4 sm:$0xff]  }
 0x7ba   : > { %4286 = vmatmul.mubr.msk.bf16.vlgmr.msra.gmra.mrb[20].mxu1 %vm1463_vm6, %v1708_v35  ;;  %v4590_v35 = vld [vmem:[%s5588_s11 + $0x60] ss:$8 sps:$4 sm:$0xff]  }
 0x7bb   : > { %4296 = vmatpush3.bf16.msra.mxu1 %v1833_v37  ;;  %4297 = vmatprep.mubr.msk.bf16.mxu1 %vm5083_vm0, %v5082_v22  ;;  %v4596_v37 = vld [vmem:[%s5588_s11 + $0x74] ss:$8 sps:$4 sm:$0xff]  }
 0x7bc   : > { %4321 = vmatprep.subr.bf16.mxu1 %v5082_v22 }
 0x7c2   : > { %4298 = vmatmul.mubr.msk.bf16.vlgmr.msra.gmra.mrb[24].mxu1 %vm1463_vm6, %v1826_v39  ;;  %v4597_v39 = vld [vmem:[%s5578_s14 + $0x28] sm:$0xff]   ;;  %s6138_s14 = scalar_lea.vmem [#allocation11], %s6136_s7 }
 0x7c3   : > { %4337 = vmatprep.mubr.msk.bf16.mxu1 %vm5083_vm0, %v5082_v22  ;;  %4322 = vmatpush3.bf16.msra.mxu1 %v4577_v12 }
 0x7c4   : > { %4323 = vmatprep.subr.bf16.mxu1 %v5082_v22 }
 0x7c7   : > { %4324 = vmatpush3.bf16.msra.mxu1 %v4581_v20 }
 0x7c8   : > { %4325 = vmatprep.subr.bf16.mxu1 %v5082_v22 }
 0x7cb   : > { %4326 = vmatpush3.bf16.msra.mxu1 %v4585_v31 }
 0x7cc   : > { %4327 = vmatprep.subr.bf16.mxu1 %v5082_v22 }
 0x7cf   : > { %4328 = vmatpush3.bf16.msra.mxu1 %v4589_v5 }
 0x7d0   : > { %4329 = vmatprep.subr.bf16.mxu1 %v5082_v22 }
 0x7d3   : > { %4330 = vmatpush3.bf16.msra.mxu1 %v4593_v36 }
 0x7d4   : > { %4331 = vmatprep.subr.bf16.mxu1 %v5082_v22 }
 0x7d7   : > { %4332 = vmatpush3.bf16.msra.mxu1 %v4597_v39 }
 0x7d8   : > { %4333 = vmatprep.subr.bf16.mxu1 %v5082_v22 }
 0x7db   : > { %4334 = vmatpush3.bf16.msra.mxu1 %v4598_v41 }
 0x7dc   : > { %4335 = vmatprep.subr.bf16.mxu1 %v5082_v22 }
 0x7df   : > { %4336 = vmatpush3.bf16.msra.mxu1 %v4599_v43 }
 0x7e0   : > { %4341 = vmatprep.subr.bf16.mxu1 %v5082_v22 }
 0x885   : > { %v1633_v47 = vpop.f32.mrb[16].mxu1 }
 0x886   : > { %1640 = vrot.lane.b32.xlu0 %v1633_v47, %s5086_s10  ;;  %v4275_v50 = vpop.f32.mrb[17].mxu1  ;;  %v1994_v47 = vld [vmem:[%s6137_s5] sm:$0x3] }
 0x887   : > { %v1636_v52 = vpop.f32.mrb[18].mxu1  ;;  %v2011_v50 = vrot.slane %v1994_v47, %v5671_v51  ;;  %v2016_v54 = vrot.slane %v1994_v47, %v5667_v49 }
 0x888   : > { %v4276_v53 = vpop.f32.mrb[19].mxu1 }
 0x88d   : > { %v1751_v56 = vpop.f32.mrb[20].mxu1 }
 0x88e   : > { %1758 = vrot.lane.b32.xlu1 %v1751_v56, %s5085_s25  ;;  %v4287_v57 = vpop.f32.mrb[21].mxu1 }
 0x88f   : > { %v1754_v58 = vpop.f32.mrb[22].mxu1 }
 0x890   : > { %v4288_v59 = vpop.f32.mrb[23].mxu1  ;;  %v2147_v58 = vld [vmem:[%s6138_s14] sm:$0x3] }
 0x891   : > { %v2152_v59 = vrot.slane %v2147_v58, %v5671_v51 }
 0x895   : > { %v1869_v60 = vpop.f32.mrb[24].mxu1 }
 0x896   : > { %1876 = vrot.lane.b32.xlu0 %v1869_v60, %s5084_s21  ;;  %v4299_v61 = vpop.f32.mrb[25].mxu1 }
 0x897   : > { %v1872_v62 = vpop.f32.mrb[26].mxu1 }
 0x898   : > { %v4300_v0 = vpop.f32.mrb[27].mxu1 }
 0x8f8   : > { %v1641_v1 = vpop.permute.xlu0 %1640 }
 0x8f9   : > { %1644 = vst.msk [vmem:[#allocation3] sm:$0xff] %vm1643_vm7, %v1641_v1 }
 0x900   : > { %v1759_v2 = vpop.permute.xlu1 %1758 }
 0x901   : > { %1762 = vst.msk [vmem:[#allocation3] sm:$0xff] %vm1761_vm8, %v1759_v2 }
 0x908   : > { %v1877_v3 = vpop.permute.xlu0 %1876 }
 0x909   : > { %1880 = vst.msk [vmem:[#allocation3] sm:$0xff] %vm1879_vm9, %v1877_v3 }
 0x910   : > { %v1881_v4 = vld [vmem:[#allocation3] sm:$0xff] }
 0x911   : > { %v1882_v6 = vpack.c.bf16 %v1881_v4, %v1881_v4  ;;  %v2156_v4 = vrot.slane %v2147_v58, %v5667_v49 }
 0x913   : > { %4318 = vmatmul.mubr.bf16.vlgmr.msra.gmra.mrb[12].mxu0 %v1882_v6 }
 0x914   : > { %2271 = vmatprep.mubr.bf16.mxu0 %v5081_v21  ;;  %2240 = vmatpush1.bf16.msra.mxu0 %v4568_v15 }
 0x915   : > { %2241 = vmatprep.subr.bf16.mxu0 %v4573_v17 }
 0x918   : > { %2242 = vmatpush1.bf16.msra.mxu0 %v4571_v18 }
 0x919   : > { %2243 = vmatprep.subr.bf16.mxu0 %v4576_v19 }
 0x9e6   : > { %v1988_v8 = vpop.f32.mrb[12].mxu0 }
 0x9e7   : > { %v1989_v9 = vadd.f32 %v3995_v7, %v1988_v8  ;;  %v4319_v10 = vpop.f32.mrb[13].mxu0  ;;  %v5088_v8 = vmov 65535  }
 0x9e8   : > { %v1991_v11 = vpop.f32.mrb[14].mxu0 }
 0x9e9   : > { %v4320_v13 = vpop.f32.mrb[15].mxu0  ;;  %v1995_v14 = vadd.f32 %v1989_v9, %v5645_v42  ;;  %v4574_v42 = vld [vmem:[%s5588_s11 + $0x20] ss:$8 sps:$4 sm:$0xff]   ;;  %s6139_s11 = scalar_lea.vmem [#allocation10], %s5516_s17  ;;  %v2348_v9 = vsel %vm2346_vm10, 4294967295, %v5088_v8 }
 0x9ea   : > { %2244 = vmatpush1.bf16.msra.mxu0 %v4574_v42  ;;  %v4004_v7 = vld [vmem:[%s6139_s11] ss:$0 sm:$0xff]  ;;  %v5831_v15 = vsel %vm2347_vm11, %v2348_v9, 0 }
 0x9eb   : > { %1996 = vadd.xlane.f32.xlu1 %v1995_v14  ;;  %2245 = vmatprep.subr.bf16.mxu0 %v4580_v23 }
 0x9ee   : > { %2246 = vmatpush1.bf16.msra.mxu0 %v4578_v24 }
 0x9ef   : > { %2247 = vmatprep.subr.bf16.mxu0 %v4584_v25 }
 0x9f2   : > { %2248 = vmatpush1.bf16.msra.mxu0 %v4582_v26 }
 0x9f3   : > { %2249 = vmatprep.subr.bf16.mxu0 %v4588_v32 }
 0x9f6   : > { %2250 = vmatpush1.bf16.msra.mxu0 %v4586_v33 }
 0x9f7   : > { %2251 = vmatprep.subr.bf16.mxu0 %v4592_v34 }
 0x9fa   : > { %2252 = vmatpush1.bf16.msra.mxu0 %v4590_v35 }
 0x9fb   : > { %2253 = vmatprep.subr.bf16.mxu0 %v4596_v37 }
 0x9fe   : > { %2254 = vmatpush1.bf16.msra.mxu0 %v4594_v38 }
 0x9ff   : > { %4365 = vmatprep.subr.bf16.mxu0 %v5082_v22 }
 0xa01   : > { %2272 = vmatmul.mubr.bf16.vlgmr.msra.gmra.mrb[16].mxu0 %v2130_v40 }
 0xa02   : > { %4367 = vmatprep.mubr.msk.bf16.mxu0 %vm5083_vm0, %v5082_v22 }
 0xa78   : > { %v1997_v27 = vpop.xlane.xlu1 %1996 }
 0xa79   : > { %v1999_v28 = vmul.f32 0.0078125, %v1997_v27 }
 0xa7b   : > { %v2000_v29 = vsub.f32 %v1995_v14, %v1999_v28 }
 0xa7d   : > { %v2001_v30 = vmul.f32 %v2000_v29, %v2000_v29 }
 0xa7f   : > { %2002 = vadd.xlane.f32.xlu0 %v2001_v30 }
 0xad4   : > { %v2273_v60 = vpop.f32.mrb[16].mxu0 }
 0xad5   : > { %v2274_v61 = vadd.f32 %v2273_v60, %v2152_v59  ;;  %v2275_v62 = vpop.f32.mrb[17].mxu0 }
 0xad6   : > { %v2277_v0 = vpop.f32.mrb[18].mxu0  ;;  %v2276_v6 = vadd.f32 %v2275_v62, %v2156_v4 }
 0xad7   : > { %v2281_v1 = vpack.c.bf16 %v2274_v61, %v2274_v61  ;;  %v2278_v2 = vpop.f32.mrb[19].mxu0 }
 0xad8   : > { %v5829_v10 = vpack.c.bf16 %v2276_v6, %v2276_v6 }
 0xad9   : > { %v2287_v3 = vsel %vm1414_vm1, %v2281_v1, 0 }
 0xada   : > { %v2351_v18 = vand.u32 %v5831_v15, %v5829_v10 }
 0xb0c   : > { %v2003_v44 = vpop.xlane.xlu0 %2002 }
 0xb0d   : > { %v2004_v45 = vmul.f32 0.0078125, %v2003_v44 }
 0xb0f   : > { %v2005_v46 = vadd.f32 1e-12, %v2004_v45 }
 0xb11   : > { %4704 = vrsqrt.f32 %v2005_v46 }
 0xb1b   : > { %v4705_v52 = vpop.eup %4704 }
 0xb1c   : > { %v2007_v53 = vmul.f32 %v4705_v52, %v2000_v29 }
 0xb1e   : > { %v2012_v55 = vmul.f32 %v2011_v50, %v2007_v53 }
 0xb20   : > { %v5815_v56 = vadd.f32 %v2016_v54, %v2012_v55 }
 0xb22   : > { %v2018_v57 = vpack.c.bf16 %v5815_v56, %v5815_v56 }
 0xb24   : > { %4338 = vmatmul.mubr.bf16.vlgmr.msra.gmra.mrb[28].mxu1 %v2018_v57 }
 0xb25   : > { %4343 = vmatprep.mubr.msk.bf16.mxu1 %vm5083_vm0, %v5082_v22  ;;  %4342 = vmatpush3.bf16.xpose.msra.mxu1 %v2287_v3 }
 0xb26   : > { %4347 = vmatprep.subr.bf16.mxu1 %v5082_v22 }
 0xbf7   : > { %v2124_v11 = vpop.f32.mrb[28].mxu1 }
 0xbf8   : > { %v2125_v13 = vadd.f32 %v4004_v7, %v2124_v11  ;;  %v4339_v14 = vpop.f32.mrb[29].mxu1 }
 0xbf9   : > { %v2127_v16 = vpop.f32.mrb[30].mxu1 }
 0xbfa   : > { %v2280_v17 = vpack.c.bf16 %v2125_v13, %v2125_v13  ;;  %v4340_v12 = vpop.f32.mrb[31].mxu1 }
 0xbfc   : > { %4344 = vmatmul.mubr.msk.bf16.vlgmr.msra.gmra.mrb[32].mxu1 %vm1414_vm1, %v2280_v17 }
 0xbfd   : > { %4348 = vmatpush3.bf16.msra.mxu1 %v2351_v18  ;;  %4349 = vmatprep.mubr.msk.bf16.mxu1 %vm5083_vm0, %v5082_v22 }
 0xbfe   : > { %4353 = vmatprep.subr.bf16.mxu1 %v5082_v22 }
 0xccf   : > { %v2323_v19 = vpop.f32.mrb[32].mxu1 }
 0xcd0   : > { %v2329_v20 = vmul.f32 0.17677669, %v2323_v19  ;;  %v4345_v42 = vpop.f32.mrb[33].mxu1 }
 0xcd1   : > { %v2326_v23 = vpop.f32.mrb[34].mxu1 }
 0xcd2   : > { %v4346_v24 = vpop.f32.mrb[35].mxu1  ;;  %v2331_v25 = vsel %vm2330_vm12, %v2329_v20, -inf }
 0xcd3   : > { %2332 = vmax.xlane.f32.xlu0 %v2331_v25 }
 0xce9   : > { %2398 = vrot.lane.b32.xlu0 %v2281_v1, %s5084_s21 }
 0xced   : > { %2513 = vrot.lane.b32.xlu0 %v2280_v17, %s5085_s25 }
 0xcf1   : > { %2629 = vrot.lane.b32.xlu0 %v2280_v17, %s5086_s10 }
 0xd60   : > { %v2333_v26 = vpop.xlane.xlu0 %2332 }
 0xd61   : > { %v2334_v27 = vsub.f32 %v2329_v20, %v2333_v26 }
 0xd63   : > { %v2335_v28 = vmul.f32 1.442695, %v2334_v27 }
 0xd64   : > { %v2399_v34 = vpop.permute.xlu0 %2398 }
 0xd65   : > { %4706 = vpow2.f32 %v2335_v28  ;;  %v2404_v39 = vsel %vm1414_vm1, %v2399_v34, 0 }
 0xd68   : > { %v2514_v40 = vpop.permute.xlu0 %2513 }
 0xd6c   : > { %v2630_v43 = vpop.permute.xlu0 %2629 }
 0xd6f   : > { %v4707_v29 = vpop.eup %4706 }
 0xd70   : > { %v2337_v30 = vsel %vm2330_vm12, %v4707_v29, 0.0 }
 0xd71   : > { %2338 = vadd.xlane.f32.xlu1 %v2337_v30 }
 0xd82   : > { %2395 = vrot.lane.b32.xlu1 %v2280_v17, %s5084_s21 }
 0xd86   : > { %2515 = vrot.lane.b32.xlu1 %v2281_v1, %s5085_s25 }
 0xd8a   : > { %2631 = vrot.lane.b32.xlu1 %v2281_v1, %s5086_s10 }
 0xdfe   : > { %v2339_v31 = vpop.xlane.xlu1 %2338 }
 0xdff   : > { %4708 = vrcp.f32 %v2339_v31 }
 0xe02   : > { %v2396_v32 = vpop.permute.xlu1 %2395 }
 0xe06   : > { %v2516_v33 = vpop.permute.xlu1 %2515 }
 0xe07   : > { %v2521_v5 = vsel %vm1414_vm1, %v2516_v33, 0 }
 0xe08   : > { %4366 = vmatpush3.bf16.xpose.msra.mxu0 %v2521_v5 }
 0xe09   : > { %v4709_v35 = vpop.eup %4708  ;;  %4377 = vmatprep.subr.bf16.mxu0 %v5082_v22 }
 0xe0a   : > { %v2341_v36 = vmul.f32 %v4709_v35, %v4707_v29  ;;  %v2632_v37 = vpop.permute.xlu1 %2631 }
 0xe0b   : > { %v2637_v41 = vsel %vm1414_vm1, %v2632_v37, 0 }
 0xe0c   : > { %v2342_v38 = vpack.c.bf16 %v2341_v36, %v2341_v36 }
 0xe0e   : > { %4350 = vmatmul.mubr.msk.bf16.vlgmr.msra.gmra.mrb[36].mxu1 %vm2330_vm12, %v2342_v38 }
 0xe0f   : > { %4354 = vmatpush3.bf16.xpose.msra.mxu1 %v2404_v39  ;;  %4368 = vmatmul.mubr.msk.bf16.vlgmr.msra.gmra.mrb[20].mxu0 %vm1414_vm1, %v2514_v40 }
 0xe10   : > { %4378 = vmatpush3.bf16.xpose.msra.mxu0 %v2637_v41  ;;  %4355 = vmatprep.mubr.msk.bf16.mxu1 %vm5083_vm0, %v5082_v22 }
 0xe11   : > { %4379 = vmatprep.mubr.msk.bf16.mxu0 %vm5083_vm0, %v5082_v22  ;;  %4359 = vmatprep.subr.bf16.mxu1 %v5082_v22 }
 0xe12   : > { %4389 = vmatprep.subr.bf16.mxu0 %v5082_v22 }
 0xe16   : > { %4356 = vmatmul.mubr.msk.bf16.vlgmr.msra.gmra.mrb[40].mxu1 %vm1414_vm1, %v2396_v32 }
 0xe17   : > { %4380 = vmatmul.mubr.msk.bf16.vlgmr.msra.gmra.mrb[24].mxu0 %vm1414_vm1, %v2630_v43  ;;  %4361 = vmatprep.mubr.msk.bf16.mxu1 %vm5083_vm0, %v5082_v22  ;;  %v4600_v43 = vld [vmem:[%s5593_s3] sm:$0xff]  }
 0xe18   : > { %4405 = vmatprep.mubr.msk.bf16.mxu0 %vm5083_vm0, %v5082_v22  ;;  %4390 = vmatpush3.bf16.msra.mxu0 %v4600_v43  ;;  %v4646_v43 = vld [vmem:[%s5598_s23 + $0xc4] ss:$16 sps:$4 sm:$0xff]  }
 0xe19   : > { %4391 = vmatprep.subr.bf16.mxu0 %v5082_v22 }
 0xee1   : > { %v2387_v44 = vpop.f32.mrb[36].mxu1 }
 0xee2   : > { %2393 = vst.msk [vmem:[#allocation3] sm:$0xff] %vm1414_vm1, %v2387_v44  ;;  %v4351_v45 = vpop.f32.mrb[37].mxu1  ;;  %v2557_v46 = vpop.f32.mrb[20].mxu0  ;;  %v4601_v44 = vld [vmem:[%s5593_s3 + $0x8] sm:$0xff]  }
 0xee3   : > { %v2563_v47 = vmul.f32 0.17677669, %v2557_v46  ;;  %v2390_v50 = vpop.f32.mrb[38].mxu1  ;;  %v4369_v52 = vpop.f32.mrb[21].mxu0  ;;  %4392 = vmatpush3.bf16.msra.mxu0 %v4601_v44  ;;  %v4603_v45 = vld [vmem:[%s5593_s3 + $0x18] sm:$0xff]   ;;  %v4604_v46 = vld [vmem:[%s5593_s3 + $0x20] sm:$0xff]  }
 0xee4   : > { %v4352_v53 = vpop.f32.mrb[39].mxu1  ;;  %v2560_v54 = vpop.f32.mrb[22].mxu0  ;;  %4393 = vmatprep.subr.bf16.mxu0 %v5082_v22  ;;  %v4649_v44 = vld [vmem:[%s5598_s23 + $0xcc] ss:$16 sps:$4 sm:$0xff]  }
 0xee5   : > { %v4370_v55 = vpop.f32.mrb[23].mxu0  ;;  %v2564_v57 = vsel %vm2330_vm12, %v2563_v47, -inf }
 0xee6   : > { %2565 = vmax.xlane.f32.xlu0 %v2564_v57  ;;  %v4606_v55 = vld [vmem:[%s5593_s3 + $0x30] sm:$0xff]   ;;  %v4607_v57 = vld [vmem:[%s5593_s3 + $0x38] sm:$0xff]  }
 0xee9   : > { %v2440_v58 = vpop.f32.mrb[40].mxu1 }
 0xeea   : > { %v2446_v59 = vmul.f32 0.17677669, %v2440_v58  ;;  %v4357_v60 = vpop.f32.mrb[41].mxu1  ;;  %v2673_v61 = vpop.f32.mrb[24].mxu0 }
 0xeeb   : > { %v2679_v62 = vmul.f32 0.17677669, %v2673_v61  ;;  %v2443_v0 = vpop.f32.mrb[42].mxu1  ;;  %v4381_v1 = vpop.f32.mrb[25].mxu0 }
 0xeec   : > { %v4358_v2 = vpop.f32.mrb[43].mxu1  ;;  %v2676_v3 = vpop.f32.mrb[26].mxu0  ;;  %v2447_v4 = vsel %vm2330_vm12, %v2446_v59, -inf }
 0xeed   : > { %v4382_v6 = vpop.f32.mrb[27].mxu0  ;;  %2448 = vmax.xlane.f32.xlu1 %v2447_v4  ;;  %v2680_v7 = vsel %vm2330_vm12, %v2679_v62, -inf }
 0xeee   : > { %2681 = vmax.xlane.f32.xlu0 %v2680_v7 }
 0xf73   : > { %v2566_v8 = vpop.xlane.xlu0 %2565 }
 0xf74   : > { %v2567_v9 = vsub.f32 %v2563_v47, %v2566_v8  ;;  %v4605_v47 = vld [vmem:[%s5593_s3 + $0x28] sm:$0xff]  }
 0xf76   : > { %v2568_v11 = vmul.f32 1.442695, %v2567_v9 }
 0xf78   : > { %4710 = vpow2.f32 %v2568_v11 }
 0xf7a   : > { %v2449_v13 = vpop.xlane.xlu1 %2448 }
 0xf7b   : > { %v2450_v14 = vsub.f32 %v2446_v59, %v2449_v13  ;;  %v2682_v16 = vpop.xlane.xlu0 %2681 }
 0xf7c   : > { %v2683_v17 = vsub.f32 %v2679_v62, %v2682_v16 }
 0xf7d   : > { %v2451_v12 = vmul.f32 1.442695, %v2450_v14 }
 0xf7e   : > { %v2684_v18 = vmul.f32 1.442695, %v2683_v17 }
 0xf80   : > { %4712 = vpow2.f32 %v2684_v18  ;;  %v4610_v18 = vld [vmem:[%s5598_s23 + $0x4] ss:$16 sps:$4 sm:$0xff]  }
 0xf81   : > { %4714 = vpow2.f32 %v2451_v12  ;;  %v4608_v12 = vld [vmem:[%s5598_s23] ss:$16 sps:$4 sm:$0xff]  }
 0xf82   : > { %v4711_v19 = vpop.eup %4710 }
 0xf83   : > { %v2570_v20 = vsel %vm2330_vm12, %v4711_v19, 0.0 }
 0xf84   : > { %2571 = vadd.xlane.f32.xlu0 %v2570_v20  ;;  %v4613_v20 = vld [vmem:[%s5598_s23 + $0xc] ss:$16 sps:$4 sm:$0xff]  }
 0xf8a   : > { %v4713_v42 = vpop.eup %4712 }
 0xf8b   : > { %v2686_v23 = vsel %vm2330_vm12, %v4713_v42, 0.0  ;;  %v4715_v24 = vpop.eup %4714 }
 0xf8c   : > { %2687 = vadd.xlane.f32.xlu1 %v2686_v23  ;;  %v2453_v25 = vsel %vm2330_vm12, %v4715_v24, 0.0  ;;  %v4614_v23 = vld [vmem:[%s5598_s23 + $0x20] ss:$16 sps:$4 sm:$0xff]  }
 0xf90   : > { %2454 = vadd.xlane.f32.xlu1 %v2453_v25  ;;  %v4622_v25 = vld [vmem:[%s5598_s23 + $0x44] ss:$16 sps:$4 sm:$0xff]  }
 0xf9a   : > { %2460 = vrot.lane.b32.xlu0 %v5829_v10, %s5084_s21 }
 0xfa1   : > { %2576 = vrot.lane.b32.xlu1 %v5829_v10, %s5085_s25 }
 0xfa5   : > { %2692 = vrot.lane.b32.xlu1 %v5829_v10, %s5086_s10 }
0x1011   : > { %v2572_v26 = vpop.xlane.xlu0 %2571 }
0x1015   : > { %v2461_v27 = vpop.permute.xlu0 %2460 }
0x1016   : > { %v2466_v28 = vand.u32 %v2461_v27, %v5831_v15  ;;  %v4623_v27 = vld [vmem:[%s5598_s23 + $0x48] ss:$16 sps:$4 sm:$0xff]  }
0x1018   : > { %4360 = vmatpush3.bf16.msra.mxu1 %v2466_v28 }
0x1019   : > { %v2688_v29 = vpop.xlane.xlu1 %2687  ;;  %4371 = vmatprep.subr.bf16.mxu1 %v5082_v22 }
0x101d   : > { %v2455_v30 = vpop.xlane.xlu1 %2454 }
0x101e   : > { %4716 = vrcp.f32 %v2455_v30 }
0x101f   : > { %4718 = vrcp.f32 %v2572_v26  ;;  %v4620_v26 = vld [vmem:[%s5598_s23 + $0x40] ss:$16 sps:$4 sm:$0xff]  }
0x1020   : > { %4720 = vrcp.f32 %v2688_v29 }
0x1021   : > { %v2577_v33 = vpop.permute.xlu1 %2576 }
0x1022   : > { %v2582_v35 = vand.u32 %v2577_v33, %v5831_v15  ;;  %v4631_v33 = vld [vmem:[%s5598_s23 + $0x6c] ss:$16 sps:$4 sm:$0xff]  }
0x1025   : > { %v2693_v36 = vpop.permute.xlu1 %2692 }
0x1026   : > { %v2698_v39 = vand.u32 %v2693_v36, %v5831_v15  ;;  %v4602_v15 = vld [vmem:[%s5593_s3 + $0x10] sm:$0xff]   ;;  %s6140_s3 = scalar_lea.vmem [#allocation13], %s5516_s17 }
0x1027   : > { %4394 = vmatpush3.bf16.msra.mxu0 %v4602_v15  ;;  %v4037_v8 = vld [vmem:[%s6140_s3] ss:$0 sm:$0xff] }
0x1028   : > { %v4717_v31 = vpop.eup %4716  ;;  %4395 = vmatprep.subr.bf16.mxu0 %v5082_v22  ;;  %v4632_v36 = vld [vmem:[%s5598_s23 + $0x80] ss:$16 sps:$4 sm:$0xff]  }
0x1029   : > { %v2457_v32 = vmul.f32 %v4717_v31, %v4715_v24  ;;  %v4719_v34 = vpop.eup %4718  ;;  %v4617_v24 = vld [vmem:[%s5598_s23 + $0x28] ss:$16 sps:$4 sm:$0xff]   ;;  %v4644_v15 = vld [vmem:[%s5598_s23 + $0xc0] ss:$16 sps:$4 sm:$0xff]  }
0x102a   : > { %v2574_v10 = vmul.f32 %v4719_v34, %v4711_v19  ;;  %v4721_v38 = vpop.eup %4720  ;;  %v4611_v19 = vld [vmem:[%s5598_s23 + $0x8] ss:$16 sps:$4 sm:$0xff]  }
0x102b   : > { %v2458_v5 = vpack.c.bf16 %v2457_v32, %v2457_v32  ;;  %v2690_v40 = vmul.f32 %v4721_v38, %v4713_v42  ;;  %4396 = vmatpush3.bf16.msra.mxu0 %v4603_v45  ;;  %v4619_v42 = vld [vmem:[%s5598_s23 + $0x2c] ss:$16 sps:$4 sm:$0xff]   ;;  %v4628_v32 = vld [vmem:[%s5598_s23 + $0x64] ss:$16 sps:$4 sm:$0xff]   ;;  %v4629_v34 = vld [vmem:[%s5598_s23 + $0x68] ss:$16 sps:$4 sm:$0xff]  }
0x102c   : > { %v2575_v37 = vpack.c.bf16 %v2574_v10, %v2574_v10  ;;  %4397 = vmatprep.subr.bf16.mxu0 %v5082_v22  ;;  %v4637_v10 = vld [vmem:[%s5598_s23 + $0x8c] ss:$16 sps:$4 sm:$0xff]   ;;  %v4640_v38 = vld [vmem:[%s5598_s23 + $0xa4] ss:$16 sps:$4 sm:$0xff]   ;;  %v4647_v45 = vld [vmem:[%s5598_s23 + $0xc8] ss:$16 sps:$4 sm:$0xff]  }
0x102d   : > { %4362 = vmatmul.mubr.msk.bf16.vlgmr.msra.gmra.mrb[44].mxu1 %vm2330_vm12, %v2458_v5  ;;  %v2691_v41 = vpack.c.bf16 %v2690_v40, %v2690_v40  ;;  %v4626_v5 = vld [vmem:[%s5598_s23 + $0x60] ss:$16 sps:$4 sm:$0xff]  }
0x102e   : > { %4372 = vmatpush3.bf16.msra.mxu1 %v2582_v35  ;;  %4373 = vmatprep.mubr.msk.bf16.mxu1 %vm5083_vm0, %v5082_v22  ;;  %v4634_v35 = vld [vmem:[%s5598_s23 + $0x84] ss:$16 sps:$4 sm:$0xff]   ;;  %v4638_v40 = vld [vmem:[%s5598_s23 + $0xa0] ss:$16 sps:$4 sm:$0xff]  }
0x102f   : > { %4383 = vmatprep.subr.bf16.mxu1 %v5082_v22  ;;  %4398 = vmatpush3.bf16.msra.mxu0 %v4604_v46  ;;  %v4652_v46 = vld [vmem:[%s5598_s23 + $0xe4] ss:$16 sps:$4 sm:$0xff]  }
0x1030   : > { %4399 = vmatprep.subr.bf16.mxu0 %v5082_v22 }
0x1033   : > { %4400 = vmatpush3.bf16.msra.mxu0 %v4605_v47  ;;  %v4655_v47 = vld [vmem:[%s5598_s23 + $0xec] ss:$16 sps:$4 sm:$0xff]  }
0x1034   : > { %4401 = vmatprep.subr.bf16.mxu0 %v5082_v22 }
0x1035   : > { %4374 = vmatmul.mubr.msk.bf16.vlgmr.msra.gmra.mrb[48].mxu1 %vm2330_vm12, %v2575_v37  ;;  %v4635_v37 = vld [vmem:[%s5598_s23 + $0x88] ss:$16 sps:$4 sm:$0xff]  }
0x1036   : > { %4384 = vmatpush3.bf16.msra.mxu1 %v2698_v39  ;;  %4385 = vmatprep.mubr.msk.bf16.mxu1 %vm5083_vm0, %v5082_v22  ;;  %v4643_v39 = vld [vmem:[%s5598_s23 + $0xac] ss:$16 sps:$4 sm:$0xff]  }
0x1037   : > { %4402 = vmatpush3.bf16.msra.mxu0 %v4606_v55  ;;  %3096 = vmatprep.subr.bf16.mxu1 %v4610_v18  ;;  %v4670_v18 = vld [vmem:[%s5608_s12 + $0x18] sm:$0xff]  }
0x1038   : > { %4403 = vmatprep.subr.bf16.mxu0 %v5082_v22 }
0x103b   : > { %4404 = vmatpush3.bf16.msra.mxu0 %v4607_v57 }
0x103c   : > { %3137 = vmatprep.subr.bf16.mxu0 %v4613_v20  ;;  %v4672_v20 = vld [vmem:[%s5608_s12 + $0x60] sm:$0xff]  }
0x103d   : > { %4386 = vmatmul.mubr.msk.bf16.vlgmr.msra.gmra.mrb[52].mxu1 %vm2330_vm12, %v2691_v41  ;;  %v4641_v41 = vld [vmem:[%s5598_s23 + $0xa8] ss:$16 sps:$4 sm:$0xff]  }
0x103e   : > { %3128 = vmatprep.mubr.bf16.mxu1 %v5081_v21  ;;  %3097 = vmatpush1.bf16.msra.mxu1 %v4608_v12  ;;  %v4669_v12 = vld [vmem:[%s5608_s12 + $0xd8] sm:$0xff]  }
0x1100   : > { %v2502_v50 = vpop.f32.mrb[44].mxu1 }
0x1101   : > { %2509 = vrot.lane.b32.xlu0 %v2502_v50, %s5086_s10  ;;  %v4363_v52 = vpop.f32.mrb[45].mxu1  ;;  %v4650_v50 = vld [vmem:[%s5598_s23 + $0xe0] ss:$16 sps:$4 sm:$0xff]  }
0x1102   : > { %v2505_v53 = vpop.f32.mrb[46].mxu1  ;;  %v4653_v52 = vld [vmem:[%s5598_s23 + $0xe8] ss:$16 sps:$4 sm:$0xff]  }
0x1103   : > { %v4364_v54 = vpop.f32.mrb[47].mxu1  ;;  %v4656_v53 = vld [vmem:[%s5608_s12 + $0x40] sm:$0xff]  }
0x1104   : > { %v4657_v54 = vld [vmem:[%s5608_s12 + $0xc0] sm:$0xff]  }
0x1108   : > { %v2618_v58 = vpop.f32.mrb[48].mxu1 }
0x1109   : > { %2625 = vrot.lane.b32.xlu1 %v2618_v58, %s5085_s25  ;;  %v4375_v59 = vpop.f32.mrb[49].mxu1 }
0x110a   : > { %v2621_v60 = vpop.f32.mrb[50].mxu1  ;;  %v2858_v59 = vld [vmem:[%s6141_s9] sm:$0x3] }
0x110b   : > { %v4376_v61 = vpop.f32.mrb[51].mxu1  ;;  %v2874_v60 = vrot.slane %v2858_v59, %v5671_v51 }
0x1110   : > { %v2734_v62 = vpop.f32.mrb[52].mxu1 }
0x1111   : > { %2741 = vrot.lane.b32.xlu0 %v2734_v62, %s5084_s21  ;;  %v4387_v0 = vpop.f32.mrb[53].mxu1 }
0x1112   : > { %v2737_v1 = vpop.f32.mrb[54].mxu1  ;;  %v2879_v0 = vrot.slane %v2858_v59, %v5667_v49 }
0x1113   : > { %v4388_v2 = vpop.f32.mrb[55].mxu1 }
0x1173   : > { %v2510_v3 = vpop.permute.xlu0 %2509 }
0x1174   : > { %2512 = vst.msk [vmem:[#allocation3] sm:$0xff] %vm1643_vm7, %v2510_v3  ;;  %v4658_v3 = vld [vmem:[%s5608_s12] sm:$0xff]  }
0x117b   : > { %v2626_v4 = vpop.permute.xlu1 %2625 }
0x117c   : > { %2628 = vst.msk [vmem:[#allocation3] sm:$0xff] %vm1761_vm8, %v2626_v4  ;;  %v4659_v4 = vld [vmem:[%s5608_s12 + $0x80] sm:$0xff]  }
0x1183   : > { %v2742_v22 = vpop.permute.xlu0 %2741 }
0x1184   : > { %2744 = vst.msk [vmem:[#allocation3] sm:$0xff] %vm1879_vm9, %v2742_v22 }
0x118b   : > { %v2745_v6 = vld [vmem:[#allocation3] sm:$0xff] }
0x118c   : > { %v2746_v7 = vpack.c.bf16 %v2745_v6, %v2745_v6  ;;  %v4660_v6 = vld [vmem:[%s5608_s12 + $0x48] sm:$0xff]  }
0x118e   : > { %4406 = vmatmul.mubr.bf16.vlgmr.msra.gmra.mrb[28].mxu0 %v2746_v7  ;;  %v4661_v7 = vld [vmem:[%s5608_s12 + $0xc8] sm:$0xff]  }
0x118f   : > { %3169 = vmatprep.mubr.bf16.mxu0 %v5081_v21  ;;  %v4616_v21 = vld [vmem:[%s5598_s23 + $0x24] ss:$16 sps:$4 sm:$0xff]   ;;  %3138 = vmatpush1.bf16.msra.mxu0 %v4611_v19  ;;  %v4671_v19 = vld [vmem:[%s5608_s12 + $0x98] sm:$0xff]  }
0x1190   : > { %3098 = vmatprep.subr.bf16.mxu1 %v4616_v21  ;;  %3139 = vmatprep.subr.bf16.mxu0 %v4619_v42  ;;  %v4673_v21 = vld [vmem:[%s5608_s12 + $0xe0] sm:$0xff]  }
0x1191   : > { %3099 = vmatpush1.bf16.msra.mxu1 %v4614_v23  ;;  %v4674_v42 = vld [vmem:[%s5608_s12 + $0x20] sm:$0xff]  }
0x1192   : > { %3100 = vmatprep.subr.bf16.mxu1 %v4622_v25  ;;  %v4675_v23 = vld [vmem:[%s5608_s12 + $0xa0] sm:$0xff]   ;;  %v4677_v25 = vld [vmem:[%s5608_s12 + $0xe8] sm:$0xff]  }
0x1193   : > { %3140 = vmatpush1.bf16.msra.mxu0 %v4617_v24  ;;  %v4676_v24 = vld [vmem:[%s5608_s12 + $0x68] sm:$0xff]  }
0x1195   : > { %3101 = vmatpush1.bf16.msra.mxu1 %v4620_v26  ;;  %v4679_v26 = vld [vmem:[%s5608_s12 + $0xa8] sm:$0xff]  }
0x1196   : > { %3102 = vmatprep.subr.bf16.mxu1 %v4628_v32  ;;  %v4685_v32 = vld [vmem:[%s5608_s12 + $0xf8] sm:$0xff]  }
0x1199   : > { %3103 = vmatpush1.bf16.msra.mxu1 %v4626_v5  ;;  %v4687_v5 = vld [vmem:[%s5608_s12 + $0xb8] sm:$0xff]  }
0x119a   : > { %3104 = vmatprep.subr.bf16.mxu1 %v4634_v35  ;;  %v2930_v35 = vsub.s32 3, %v5664_v48 }
0x119d   : > { %3105 = vmatpush1.bf16.msra.mxu1 %v4632_v36 }
0x119e   : > { %3106 = vmatprep.subr.bf16.mxu1 %v4640_v38 }
0x11a1   : > { %3107 = vmatpush1.bf16.msra.mxu1 %v4638_v40 }
0x11a2   : > { %3108 = vmatprep.subr.bf16.mxu1 %v4646_v43 }
0x11a5   : > { %3109 = vmatpush1.bf16.msra.mxu1 %v4644_v15 }
0x11a6   : > { %3110 = vmatprep.subr.bf16.mxu1 %v4652_v46 }
0x11a9   : > { %3111 = vmatpush1.bf16.msra.mxu1 %v4650_v50 }
0x11aa   : > { %4189 = vmatprep.subr.bf16.mxu1 %v4656_v53 }
0x1261   : > { %v2852_v9 = vpop.f32.mrb[28].mxu0 }
0x1262   : > { %v2853_v11 = vadd.f32 %v4037_v8, %v2852_v9  ;;  %v4407_v13 = vpop.f32.mrb[29].mxu0  ;;  %v4662_v8 = vld [vmem:[%s5608_s12 + $0x8] sm:$0xff]  }
0x1263   : > { %v2855_v14 = vpop.f32.mrb[30].mxu0  ;;  %v4663_v9 = vld [vmem:[%s5608_s12 + $0x88] sm:$0xff]   ;;  %v4665_v13 = vld [vmem:[%s5608_s12 + $0xd0] sm:$0xff]  }
0x1264   : > { %v4408_v16 = vpop.f32.mrb[31].mxu0  ;;  %v2859_v17 = vadd.f32 %v2853_v11, %v5815_v56  ;;  %v4625_v56 = vld [vmem:[%s5598_s23 + $0x4c] ss:$16 sps:$4 sm:$0xff]   ;;  %v4664_v11 = vld [vmem:[%s5608_s12 + $0x50] sm:$0xff]   ;;  %s6142_s23 = scalar_lea.vmem [#allocation16], %s5516_s17  ;;  %s6143_s17 = scalar_lea.vmem [#allocation17], %s6136_s7 }
0x1265   : > { %3141 = vmatprep.subr.bf16.mxu0 %v4625_v56  ;;  %v4666_v14 = vld [vmem:[%s5608_s12 + $0x10] sm:$0xff]   ;;  %v4678_v56 = vld [vmem:[%s5608_s12 + $0x28] sm:$0xff]  }
0x1266   : > { %2860 = vadd.xlane.f32.xlu1 %v2859_v17  ;;  %3142 = vmatpush1.bf16.msra.mxu0 %v4623_v27  ;;  %v4667_v16 = vld [vmem:[%s5608_s12 + $0x90] sm:$0xff]  }
0x1267   : > { %3143 = vmatprep.subr.bf16.mxu0 %v4631_v33  ;;  %v4680_v27 = vld [vmem:[%s5608_s12 + $0x70] sm:$0xff]   ;;  %v4686_v33 = vld [vmem:[%s5608_s12 + $0x38] sm:$0xff]  }
0x126a   : > { %3144 = vmatpush1.bf16.msra.mxu0 %v4629_v34  ;;  %v2914_v34 = vld [vmem:[%s5603_s24] sm:$0xf] }
0x126b   : > { %3145 = vmatprep.subr.bf16.mxu0 %v4637_v10  ;;  %v2919_v10 = vrot.slane %v2914_v34, %v5671_v51  ;;  %v2927_v36 = vrot.slane %v2914_v34, %v1197_v63  ;;  %v2931_v38 = vrot.slane %v2914_v34, %v2930_v35 }
0x126e   : > { %3146 = vmatpush1.bf16.msra.mxu0 %v4635_v37  ;;  %v2923_v37 = vrot.slane %v2914_v34, %v5667_v49 }
0x126f   : > { %3147 = vmatprep.subr.bf16.mxu0 %v4643_v39 }
0x1272   : > { %3148 = vmatpush1.bf16.msra.mxu0 %v4641_v41 }
0x1273   : > { %3149 = vmatprep.subr.bf16.mxu0 %v4649_v44 }
0x1276   : > { %3150 = vmatpush1.bf16.msra.mxu0 %v4647_v45 }
0x1277   : > { %3151 = vmatprep.subr.bf16.mxu0 %v4655_v47 }
0x127a   : > { %3152 = vmatpush1.bf16.msra.mxu0 %v4653_v52 }
0x127b   : > { %4211 = vmatprep.subr.bf16.mxu0 %v4657_v54 }
0x12f3   : > { %v2861_v28 = vpop.xlane.xlu1 %2860 }
0x12f4   : > { %v2862_v29 = vmul.f32 0.0078125, %v2861_v28  ;;  %v4681_v28 = vld [vmem:[%s5608_s12 + $0xf0] sm:$0xff]  }
0x12f6   : > { %v2863_v30 = vsub.f32 %v2859_v17, %v2862_v29  ;;  %v4668_v17 = vld [vmem:[%s5608_s12 + $0x58] sm:$0xff]   ;;  %v4682_v29 = vld [vmem:[%s5608_s12 + $0x30] sm:$0xff]  }
0x12f8   : > { %v2864_v31 = vmul.f32 %v2863_v30, %v2863_v30 }
0x12fa   : > { %2865 = vadd.xlane.f32.xlu0 %v2864_v31  ;;  %v4684_v31 = vld [vmem:[%s5608_s12 + $0x78] sm:$0xff]  }
0x1387   : > { %v2866_v55 = vpop.xlane.xlu0 %2865 }
0x1388   : > { %v2867_v57 = vmul.f32 0.0078125, %v2866_v55 }
0x138a   : > { %v2868_v58 = vadd.f32 1e-12, %v2867_v57 }
0x138c   : > { %4722 = vrsqrt.f32 %v2868_v58 }
0x1396   : > { %v4723_v61 = vpop.eup %4722 }
0x1397   : > { %v2870_v62 = vmul.f32 %v4723_v61, %v2863_v30  ;;  %v4683_v30 = vld [vmem:[%s5608_s12 + $0xb0] sm:$0xff]  }
0x1399   : > { %v2875_v1 = vmul.f32 %v2874_v60, %v2870_v62 }
0x139b   : > { %v5954_v2 = vadd.f32 %v2879_v0, %v2875_v1 }
0x139d   : > { %v2881_v22 = vpack.c.bf16 %v5954_v2, %v5954_v2 }
0x139f   : > { %3129 = vmatmul.mubr.bf16.vlgmr.msra.gmra.mrb[56].mxu1 %v2881_v22  ;;  %3170 = vmatmul.mubr.bf16.vlgmr.msra.gmra.mrb[32].mxu0 %v2881_v22 }
0x13a0   : > { %4190 = vmatpush3.bf16.msra.mxu1 %v4658_v3  ;;  %4212 = vmatpush3.bf16.msra.mxu0 %v4659_v4 }
0x13a1   : > { %4191 = vmatprep.subr.bf16.mxu1 %v4660_v6  ;;  %4213 = vmatprep.subr.bf16.mxu0 %v4661_v7 }
0x13a4   : > { %4192 = vmatpush3.bf16.msra.mxu1 %v4662_v8  ;;  %4214 = vmatpush3.bf16.msra.mxu0 %v4663_v9 }
0x13a5   : > { %4193 = vmatprep.subr.bf16.mxu1 %v4664_v11  ;;  %4215 = vmatprep.subr.bf16.mxu0 %v4665_v13 }
0x13a8   : > { %4194 = vmatpush3.bf16.msra.mxu1 %v4666_v14  ;;  %4216 = vmatpush3.bf16.msra.mxu0 %v4667_v16 }
0x13a9   : > { %4195 = vmatprep.subr.bf16.mxu1 %v4668_v17  ;;  %4217 = vmatprep.subr.bf16.mxu0 %v4669_v12 }
0x13ac   : > { %4196 = vmatpush3.bf16.msra.mxu1 %v4670_v18  ;;  %4218 = vmatpush3.bf16.msra.mxu0 %v4671_v19  ;;  %v4078_v19 = vld [vmem:[%s6142_s23] ss:$0 sm:$0xff] }
0x13ad   : > { %4197 = vmatprep.subr.bf16.mxu1 %v4672_v20  ;;  %4219 = vmatprep.subr.bf16.mxu0 %v4673_v21 }
0x13b0   : > { %4198 = vmatpush3.bf16.msra.mxu1 %v4674_v42  ;;  %4220 = vmatpush3.bf16.msra.mxu0 %v4675_v23 }
0x13b1   : > { %4199 = vmatprep.subr.bf16.mxu1 %v4676_v24  ;;  %4221 = vmatprep.subr.bf16.mxu0 %v4677_v25 }
0x13b4   : > { %4200 = vmatpush3.bf16.msra.mxu1 %v4678_v56  ;;  %4222 = vmatpush3.bf16.msra.mxu0 %v4679_v26 }
0x13b5   : > { %4201 = vmatprep.subr.bf16.mxu1 %v4680_v27  ;;  %4223 = vmatprep.subr.bf16.mxu0 %v4681_v28 }
0x13b8   : > { %4202 = vmatpush3.bf16.msra.mxu1 %v4682_v29  ;;  %4224 = vmatpush3.bf16.msra.mxu0 %v4683_v30 }
0x13b9   : > { %4203 = vmatprep.subr.bf16.mxu1 %v4684_v31  ;;  %4225 = vmatprep.subr.bf16.mxu0 %v4685_v32 }
0x13bc   : > { %4204 = vmatpush3.bf16.msra.mxu1 %v4686_v33  ;;  %4226 = vmatpush3.bf16.msra.mxu0 %v4687_v5 }
0x1472   : > { %v3130_v39 = vpop.f32.mrb[56].mxu1  ;;  %v3171_v40 = vpop.f32.mrb[32].mxu0 }
0x1473   : > { %v3131_v41 = vadd.f32 %v3130_v39, %v2919_v10  ;;  %v3172_v43 = vadd.f32 %v3171_v40, %v2927_v36  ;;  %v3132_v44 = vpop.f32.mrb[57].mxu1  ;;  %v3173_v15 = vpop.f32.mrb[33].mxu0  ;;  %v3545_v10 = vld [vmem:[%s6143_s17] sm:$0x3] }
0x1474   : > { %v3133_v45 = vadd.f32 %v3132_v44, %v2923_v37  ;;  %v3174_v46 = vadd.f32 %v3173_v15, %v2931_v38  ;;  %v3134_v47 = vpop.f32.mrb[58].mxu1  ;;  %v3175_v50 = vpop.f32.mrb[34].mxu0  ;;  %v3561_v36 = vrot.slane %v3545_v10, %v5671_v51  ;;  %v3566_v38 = vrot.slane %v3545_v10, %v5667_v49 }
0x1475   : > { %v3182_v52 = vmul.f32 0.70710677, %v3131_v41  ;;  %v3184_v53 = vmul.f32 0.70710677, %v3172_v43  ;;  %v3135_v48 = vpop.f32.mrb[59].mxu1  ;;  %v3176_v63 = vpop.f32.mrb[35].mxu0 }
0x1476   : > { %v3183_v54 = vmul.f32 0.70710677, %v3133_v45  ;;  %v3185_v55 = vmul.f32 0.70710677, %v3174_v46  ;;  %v3178_v61 = vmul.f32 0.5, %v3131_v41  ;;  %v3180_v1 = vmul.f32 0.5, %v3172_v43 }
0x1477   : > { %4724 = verf.f32 %v3182_v52  ;;  %v3179_v3 = vmul.f32 0.5, %v3133_v45  ;;  %v3181_v6 = vmul.f32 0.5, %v3174_v46 }
0x1478   : > { %4726 = verf.f32 %v3184_v53 }
0x1479   : > { %4728 = verf.f32 %v3183_v54 }
0x147a   : > { %4730 = verf.f32 %v3185_v55 }
0x1481   : > { %v4725_v57 = vpop.eup %4724 }
0x1482   : > { %v4727_v58 = vpop.eup %4726  ;;  %v3190_v59 = vadd.f32 1.0, %v4725_v57 }
0x1483   : > { %v4729_v60 = vpop.eup %4728  ;;  %v3192_v62 = vadd.f32 1.0, %v4727_v58 }
0x1484   : > { %v4731_v0 = vpop.eup %4730  ;;  %v3191_v4 = vadd.f32 1.0, %v4729_v60  ;;  %v3194_v22 = vmul.f32 %v3190_v59, %v3178_v61 }
0x1485   : > { %v3193_v7 = vadd.f32 1.0, %v4731_v0  ;;  %v3196_v8 = vmul.f32 %v3192_v62, %v3180_v1 }
0x1486   : > { %v3195_v9 = vmul.f32 %v3191_v4, %v3179_v3  ;;  %v3198_v14 = vpack.c.bf16 %v3194_v22, %v3194_v22 }
0x1487   : > { %v3197_v11 = vmul.f32 %v3193_v7, %v3181_v6  ;;  %v3200_v17 = vpack.c.bf16 %v3196_v8, %v3196_v8 }
0x1488   : > { %v3199_v13 = vpack.c.bf16 %v3195_v9, %v3195_v9 }
0x1489   : > { %v3201_v16 = vpack.c.bf16 %v3197_v11, %v3197_v11 }
0x148a   : > { %3497 = vmatprep.mubr.bf16.mxu1 %v3199_v13 }
0x148b   : > { %3537 = vmatprep.mubr.bf16.mxu0 %v3201_v16  ;;  %3498 = vmatmul.mubr.bf16.vlgmr.msra.gmra.mrb[60].mxu1 %v3198_v14 }
0x148c   : > { %3538 = vmatmul.mubr.bf16.vlgmr.msra.gmra.mrb[36].mxu0 %v3200_v17 }
0x155e   : > { %v4205_v12 = vpop.f32.mrb[60].mxu1 }
0x155f   : > { %v4227_v18 = vpop.f32.mrb[36].mxu0  ;;  %v4206_v20 = vpop.f32.mrb[61].mxu1 }
0x1560   : > { %v4207_v21 = vadd.f32 %v4206_v20, %v4205_v12  ;;  %v4228_v42 = vpop.f32.mrb[37].mxu0  ;;  %v4208_v23 = vpop.f32.mrb[62].mxu1 }
0x1561   : > { %v4229_v24 = vadd.f32 %v4228_v42, %v4227_v18  ;;  %v4230_v25 = vpop.f32.mrb[38].mxu0  ;;  %v4209_v56 = vpop.f32.mrb[63].mxu1 }
0x1562   : > { %v3500_v26 = vadd.f32 %v4207_v21, %v4078_v19  ;;  %v4231_v27 = vpop.f32.mrb[39].mxu0 }
0x1564   : > { %v3540_v28 = vadd.f32 %v4229_v24, %v3500_v26 }
0x1566   : > { %v3546_v29 = vadd.f32 %v3540_v28, %v5954_v2 }
0x1568   : > { %3547 = vadd.xlane.f32.xlu0 %v3546_v29 }
0x15f5   : > { %v3548_v30 = vpop.xlane.xlu0 %3547 }
0x15f6   : > { %v3549_v31 = vmul.f32 0.0078125, %v3548_v30 }
0x15f8   : > { %v3550_v32 = vsub.f32 %v3546_v29, %v3549_v31 }
0x15fa   : > { %v3551_v33 = vmul.f32 %v3550_v32, %v3550_v32 }
0x15fc   : > { %3552 = vadd.xlane.f32.xlu1 %v3551_v33 }
0x1689   : > { %v3553_v5 = vpop.xlane.xlu1 %3552 }
0x168a   : > { %v3554_v34 = vmul.f32 0.0078125, %v3553_v5 }
0x168c   : > { %v3555_v35 = vadd.f32 1e-12, %v3554_v34 }
0x168e   : > { %4732 = vrsqrt.f32 %v3555_v35 }
0x1698   : > { %v4733_v37 = vpop.eup %4732 }
0x1699   : > { %v3557_v39 = vmul.f32 %v4733_v37, %v3550_v32  ;;  %3572 = sbr.rel (%p4111_p0) target bundleno = 5800 (0x16a8), region = 140 }
0x169b   : > { %v3562_v40 = vmul.f32 %v3561_v36, %v3557_v39 }
0x169d   : > { %v3567_v2 = vadd.f32 %v3566_v38, %v3562_v40 }
0x169f   : > { %3568 = vst [vmem:[#allocation2] sm:$0xff] %v3567_v2 }
0x16a6   : > { %v3573_v41 = vld [vmem:[#allocation2] sm:$0xff] }
0x16a7   : > { %3574 = vst [vmem:[%s5613_s16] sm:$0xff] %v3573_v41 }
0x16a8 PF: > { %s6144_s0 = sld [smem:[#allocation29_spill]]  ;;  %s6145_s28 = sld [smem:[#allocation25_spill]] }
0x16a9   : > { %s6146_s29 = sld [smem:[#allocation26_spill]]  ;;  %s6148_s13 = sld [smem:[#allocation27_spill]] }
0x16aa   : > { %s6149_s4 = sld [smem:[#allocation28_spill]]  ;;  %s6150_s30 = sld [smem:[#allocation30_spill]] }
0x16ab   : > { %s6151_s5 = sld [smem:[#allocation31_spill]] }
0x16ae   : > { %s52_s22 = sadd.s32 1, %s6144_s0   ;;  %s6147_s0 = sld [smem:[#allocation32_spill]] }
0x16af   : > { %p49_p1 = scmp.ge.s32.totalorder %s52_s22, 6  }
0x16b1   :  { %51 = sbr.rel (!%p49_p1) target bundleno = 43 (0x2b), region = 266 }
0x16b8   :  { %3594 = vsyncpa [#allocation7], 1 }
0x16b9   :  { %3596 = vsyncpa [#allocation7 + $0x1], 1 }
0x16ba   :  { %3597 = vsyncpa [#allocation9], 1 }
0x16bb   :  { %3599 = vsyncpa [#allocation9 + $0x1], 1 }
0x16bc   :  { %3600 = vsyncpa [#allocation12], 1 }
0x16bd   :  { %3602 = vsyncpa [#allocation12 + $0x1], 1 }
0x16be   :  { %3603 = vsyncpa [#allocation15], 1 }
0x16bf   :  { %3605 = vsyncpa [#allocation15 + $0x1], 1 }
0x16c0   :  { %3606 = vsyncpa [#allocation18], 1 }
0x16c1   :  { %3608 = vsyncpa [#allocation18 + $0x1], 1 }

</bundles_post_ra>
